<compile_context>
chip_gen: v5e
topology: v5e:2x2
jax: 0.10.0
libtpu: 0.0.40
codegen_flags: <defaults>
</compile_context>

<pallas_src>
import numpy as np
import jax
import jax.numpy as jnp
from jax import lax
from jax.experimental import pallas as pl
from jax.experimental.pallas import tpu as pltpu
from jax.scipy.linalg import block_diag

F32 = jnp.float32
VMEM = pltpu.MemorySpace.VMEM


# ----------------------------- in-kernel helpers -----------------------------

def _layernorm(y, gamma, beta, eps=1e-5):
    mean = jnp.mean(y, axis=-1, keepdims=True)
    var = jnp.mean(jnp.square(y - mean), axis=-1, keepdims=True)
    return (y - mean) * lax.rsqrt(var + eps) * gamma + beta


def _elu(x):
    return jnp.where(x > 0, x, jnp.exp(x) - 1.0)


def _grn_block(x, w_sx, b_sx, w_fwd, b_fwd, w_gg, b_gg, gamma, beta, c_add=None):
    """Fused GatedResNet on 2-D rows.  w_sx = [w_skip | w_x], w_gg = [w_gate | w_glu]."""
    out_dim = gamma.shape[-1]
    r = jnp.dot(x, w_sx, preferred_element_type=F32) + b_sx        # one matmul for skip+hidden
    skip = r[:, :out_dim]
    h = r[:, out_dim:]
    if c_add is not None:
        h = h + c_add
    h = _elu(h)
    h = jnp.dot(h, w_fwd, preferred_element_type=F32) + b_fwd
    gg = jnp.dot(h, w_gg, preferred_element_type=F32) + b_gg       # one matmul for gate+glu
    gate = jax.nn.sigmoid(gg[:, :out_dim])
    fwd = gg[:, out_dim:]
    return _layernorm(gate * fwd + skip, gamma, beta)


def _grn8(x, param_refs, c_add=None):
    w_sx, b_sx, w_fwd, b_fwd, w_gg, b_gg, gamma, beta = (r[...] for r in param_refs)
    return _grn_block(x, w_sx, b_sx, w_fwd, b_fwd, w_gg, b_gg, gamma, beta, c_add=c_add)


# --------------------------------- fused kernel -------------------------------

def _seq2seq_kernel(*refs):
    """Entire Seq2Seq forward in one kernel (static varsel + encoders, temporal varsel x2,
    encoder/decoder LSTM, shared GatedSkipConn)."""
    (sflat_ref, sx2_ref, hflat_ref, hx2_ref, fflat_ref, fx2_ref,
     exph_ref, expf_ref) = refs[:8]
    idx = [8]

    def take(n):
        p = refs[idx[0]:idx[0] + n]
        idx[0] += n
        return p

    ss_p, sv_p, se_p = take(8), take(8), take(8)        # static sel-wt GRN, var GRN, 4 encoders
    hs_p, hv_p = take(9), take(8)                       # history sel-wt GRN (w/ ctx), var GRN
    fs_p, fv_p = take(9), take(8)                       # future  sel-wt GRN (w/ ctx), var GRN
    el_p, dl_p, g_p = take(3), take(3), take(4)         # encoder LSTM, decoder LSTM, shared GSC
    fh_ref, ff_ref, ce_ref = take(3)                    # outputs

    B, Th, H = fh_ref.shape
    Tf = ff_ref.shape[1]

    # ---- (1) static VarSelectNet + 4 static covariate encoders -> ctx [B, 4, H]
    sflat = sflat_ref[...]                               # [B, Vs*H]
    sx2 = sx2_ref[...]                                   # [B*Vs, H]
    Vs = sflat.shape[1] // H

    wt = _grn8(sflat, ss_p)                              # [B, Vs]
    var = _grn8(sx2, sv_p)                               # [B*Vs, H]

    # torch softmax(dim=-2) on a [B, Vs] tensor = softmax over the batch axis
    m = jnp.max(wt, axis=0, keepdims=True)
    ex = jnp.exp(wt - m)
    p = ex * pl.reciprocal(jnp.sum(ex, axis=0, keepdims=True), approx=True)      # [B, Vs]
    selected = jnp.sum(p[:, :, None] * var.reshape(B, Vs, H), axis=1)            # [B, H]

    # 4 static-covariate-encoder GRNs, fused via stacked / block-diagonal weights
    e_wsx, e_bsx, e_wfwd, e_bfwd, e_wgg, e_bgg, e_gamma, e_beta = (r[...] for r in se_p)
    r = jnp.dot(selected, e_wsx, preferred_element_type=F32) + e_bsx             # [B, 8H]
    skip = r[:, :4 * H]
    h = _elu(r[:, 4 * H:])
    h = jnp.dot(h, e_wfwd, preferred_element_type=F32) + e_bfwd                  # [B, 4H]
    gg = jnp.dot(h, e_wgg, preferred_element_type=F32) + e_bgg                   # [B, 8H]
    y = jax.nn.sigmoid(gg[:, :4 * H]) * gg[:, 4 * H:] + skip                     # [B, 4H]
    ctx = _layernorm(y.reshape(B, 4, H), e_gamma, e_beta)                        # [B, 4, H]
    c_sel = ctx[:, 0, :]                                 # c_selection
    c_cell = ctx[:, 1, :]                                # c_cell
    c_hidden = ctx[:, 2, :]                              # c_hidden
    ce_ref[...] = ctx[:, 3:4, :].astype(ce_ref.dtype)    # c_enrichment output

    # ---- (2) temporal VarSelectNet for history / future
    def temporal(flat, x2, expand, sp, vp, T):
        V = flat.shape[1] // H
        w_sx, b_sx, w_c, w_fwd, b_fwd, w_gg, b_gg, gamma, beta = (rr[...] for rr in sp)
        c_hid = jnp.dot(c_sel, w_c, preferred_element_type=F32)                  # [B, hid]
        c_rows = jnp.dot(expand, c_hid, preferred_element_type=F32)              # [B*T, hid]
        wt_t = _grn_block(flat, w_sx, b_sx, w_fwd, b_fwd, w_gg, b_gg, gamma, beta,
                          c_add=c_rows)                                          # [B*T, V]
        var_t = _grn8(x2, vp)                                                    # [B*T*V, H]
        wt3 = wt_t.reshape(B, T, V)
        # torch softmax(dim=-2) on [B, T, V] = softmax over time
        m_t = jnp.max(wt3, axis=1, keepdims=True)
        ex_t = jnp.exp(wt3 - m_t)
        pr = ex_t * pl.reciprocal(jnp.sum(ex_t, axis=1, keepdims=True), approx=True)
        return jnp.sum(pr[..., None] * var_t.reshape(B, T, V, H), axis=2)        # [B, T, H]

    sel_hist = temporal(hflat_ref[...], hx2_ref[...], exph_ref[...], hs_p, hv_p, Th)
    sel_fut = temporal(fflat_ref[...], fx2_ref[...], expf_ref[...], fs_p, fv_p, Tf)

    # ---- (3) encoder LSTM + decoder LSTM + shared GatedSkipConn
    e_wih, e_whh, e_b = (rr[...] for rr in el_p)
    d_wih, d_whh, d_b = (rr[...] for rr in dl_p)
    g_wgg, g_bgg, g_gamma, g_beta = (rr[...] for rr in g_p)

    def run_lstm(x3, w_ih, w_hh, b, h0, c0, T):
        # hoisted input projection: one [B*T, H] x [H, 4H] matmul instead of T tiny ones
        gx = jnp.dot(x3.reshape(B * T, H), w_ih, preferred_element_type=F32) + b
        gx = gx.reshape(B, T, 4 * H)
        h_t, c_t = h0, c0
        outs = []
        for t in range(T):                               # short fixed trip count -> fully unrolled
            gates = gx[:, t, :] + jnp.dot(h_t, w_hh, preferred_element_type=F32)   # [B, 4H]
            sig = jax.nn.sigmoid(gates)                  # one full-width EUP op, slice afterwards
            i_g = sig[:, 0:H]
            f_g = sig[:, H:2 * H]
            o_g = sig[:, 3 * H:4 * H]
            g_g = jnp.tanh(gates[:, 2 * H:3 * H])        # PyTorch gate order i, f, g, o
            c_t = f_g * c_t + i_g * g_g
            h_t = o_g * jnp.tanh(c_t)
            outs.append(h_t[:, None, :])
        return jnp.concatenate(outs, axis=1), h_t, c_t   # [B, T, H], [B, H], [B, H]

    out_h, hT, cT = run_lstm(sel_hist, e_wih, e_whh, e_b, c_hidden, c_cell, Th)
    out_f, _, _ = run_lstm(sel_fut, d_wih, d_whh, d_b, hT, cT, Tf)

    def gsc(x_gate3, skip3, T, o_ref):
        # shared GatedSkipConn (same weights for history / future), packed [w_gate | w_fwd]
        gg2 = jnp.dot(x_gate3.reshape(B * T, H), g_wgg, preferred_element_type=F32) + g_bgg
        y2 = jax.nn.sigmoid(gg2[:, :H]) * gg2[:, H:] + skip3.reshape(B * T, H)
        o_ref[...] = _layernorm(y2, g_gamma, g_beta).reshape(B, T, H).astype(o_ref.dtype)

    gsc(out_h, sel_hist, Th, fh_ref)
    gsc(out_f, sel_fut, Tf, ff_ref)


# ------------------------------- parameter init -------------------------------

def _linear(key, in_dim, out_dim, bias=True):
    kw, kb = jax.random.split(key)
    bound = 1.0 / np.sqrt(in_dim)
    w = jax.random.uniform(kw, (in_dim, out_dim), F32, -bound, bound)  # stored as [in, out]
    if not bias:
        return w
    b = jax.random.uniform(kb, (1, out_dim), F32, -bound, bound)
    return w, b


def init_grn(key, x_dim, hid_dim, c_dim=None, out_dim=None):
    out_dim = out_dim if out_dim else x_dim
    ks = jax.random.split(key, 6)
    w_skip, b_skip = _linear(ks[0], x_dim, out_dim)
    w_x, b_x = _linear(ks[1], x_dim, hid_dim)
    w_fwd, b_fwd = _linear(ks[3], hid_dim, hid_dim)
    w_gate, b_gate = _linear(ks[4], hid_dim, out_dim)
    w_glu, b_glu = _linear(ks[5], hid_dim, out_dim)
    p = {'w_sx': jnp.concatenate([w_skip, w_x], axis=1),      # [x_dim, out+hid]
         'b_sx': jnp.concatenate([b_skip, b_x], axis=1),
         'w_fwd': w_fwd, 'b_fwd': b_fwd,
         'w_gg': jnp.concatenate([w_gate, w_glu], axis=1),    # [hid, 2*out]
         'b_gg': jnp.concatenate([b_gate, b_glu], axis=1),
         'gamma': jnp.ones((1, out_dim), F32),
         'beta': jnp.zeros((1, out_dim), F32)}
    if c_dim is not None:
        p['w_c'] = _linear(ks[2], c_dim, hid_dim, bias=False)
    return p


def init_varsel(key, var_dim, hid_dim, c_dim=None):
    k1, k2 = jax.random.split(key)
    return {'sel_wt_grn': init_grn(k1, var_dim * hid_dim, hid_dim, c_dim=c_dim, out_dim=var_dim),
            'var_grn': init_grn(k2, hid_dim, hid_dim)}


def init_static_encoders(key, H):
    """4 GRNs (H->H) packed: stacked [w_skip|w_x], block-diagonal fc_forward / gate / glu."""
    w_skip, b_skip, w_x, b_x = [], [], [], []
    w_fwd, b_fwd, w_gate, b_gate, w_glu, b_glu = [], [], [], [], [], []
    for k in jax.random.split(key, 4):   # order: selection, cell, hidden, enrichment
        k0, k1, k2, k3, k4 = jax.random.split(k, 5)
        ws, bs = _linear(k0, H, H); w_skip.append(ws); b_skip.append(bs)
        wx, bx = _linear(k1, H, H); w_x.append(wx); b_x.append(bx)
        wf, bf = _linear(k2, H, H); w_fwd.append(wf); b_fwd.append(bf)
        wg, bg = _linear(k3, H, H); w_gate.append(wg); b_gate.append(bg)
        wu, bu = _linear(k4, H, H); w_glu.append(wu); b_glu.append(bu)
    return {
        'w_sx': jnp.concatenate([jnp.concatenate(w_skip, 1), jnp.concatenate(w_x, 1)], axis=1),    # [H, 8H]
        'b_sx': jnp.concatenate([jnp.concatenate(b_skip, 1), jnp.concatenate(b_x, 1)], axis=1),    # [1, 8H]
        'w_fwd': block_diag(*w_fwd).astype(F32),                                                   # [4H, 4H]
        'b_fwd': jnp.concatenate(b_fwd, axis=1),                                                   # [1, 4H]
        'w_gg': jnp.concatenate([block_diag(*w_gate), block_diag(*w_glu)], axis=1).astype(F32),    # [4H, 8H]
        'b_gg': jnp.concatenate([jnp.concatenate(b_gate, 1), jnp.concatenate(b_glu, 1)], axis=1),  # [1, 8H]
        'gamma': jnp.ones((1, 4, H), F32),
        'beta': jnp.zeros((1, 4, H), F32),
    }


def init_lstm(key, hid_dim):
    ks = jax.random.split(key, 4)
    bound = 1.0 / np.sqrt(hid_dim)
    w_ih = jax.random.uniform(ks[0], (hid_dim, 4 * hid_dim), F32, -bound, bound)
    w_hh = jax.random.uniform(ks[1], (hid_dim, 4 * hid_dim), F32, -bound, bound)
    b_ih = jax.random.uniform(ks[2], (1, 4 * hid_dim), F32, -bound, bound)
    b_hh = jax.random.uniform(ks[3], (1, 4 * hid_dim), F32, -bound, bound)
    return {'w_ih': w_ih, 'w_hh': w_hh, 'b': b_ih + b_hh}


def init_gsc(key, x_dim, out_dim):
    k1, k2 = jax.random.split(key)
    w_gate, b_gate = _linear(k1, x_dim, out_dim)
    w_fwd, b_fwd = _linear(k2, x_dim, out_dim)
    return {'w_gg': jnp.concatenate([w_gate, w_fwd], axis=1),
            'b_gg': jnp.concatenate([b_gate, b_fwd], axis=1),
            'gamma': jnp.ones((1, out_dim), F32),
            'beta': jnp.zeros((1, out_dim), F32)}


def init_seq2seq(key, static_dim, history_dim, future_dim, hid_dim):
    ks = jax.random.split(key, 7)
    return {
        'static_sel': init_varsel(ks[0], static_dim, hid_dim),
        'static_encoders': init_static_encoders(ks[1], hid_dim),
        'history_sel': init_varsel(ks[2], history_dim, hid_dim, c_dim=hid_dim),
        'future_sel': init_varsel(ks[3], future_dim, hid_dim, c_dim=hid_dim),
        'encoder_lstm': init_lstm(ks[4], hid_dim),
        'decoder_lstm': init_lstm(ks[5], hid_dim),
        'gated_skip_conn': init_gsc(ks[6], hid_dim, hid_dim),
    }


_GRN_KEYS = ('w_sx', 'b_sx', 'w_fwd', 'b_fwd', 'w_gg', 'b_gg', 'gamma', 'beta')


def _grn_args(p):
    return [p[k] for k in _GRN_KEYS]


def _grn_c_args(p):
    return [p['w_sx'], p['b_sx'], p['w_c'], p['w_fwd'], p['b_fwd'],
            p['w_gg'], p['b_gg'], p['gamma'], p['beta']]


# --------------------------------- forward -----------------------------------

def seq2seq_forward(params, static, history, future):
    # static:  [B, static_dim, H]; history: [B, Th, history_dim, H]; future: [B, Tf, future_dim, H]
    B, Vs, H = static.shape
    _, Th, Vh, _ = history.shape
    _, Tf, Vf, _ = future.shape

    # tiny row->batch one-hot maps for in-kernel context broadcast (constant-folded by XLA)
    expand_h = jnp.repeat(jnp.eye(B, dtype=F32), Th, axis=0)   # [B*Th, B]
    expand_f = jnp.repeat(jnp.eye(B, dtype=F32), Tf, axis=0)   # [B*Tf, B]

    inputs = [static.reshape(B, Vs * H), static.reshape(B * Vs, H),
              history.reshape(B * Th, Vh * H), history.reshape(B * Th * Vh, H),
              future.reshape(B * Tf, Vf * H), future.reshape(B * Tf * Vf, H),
              expand_h, expand_f]
    inputs += _grn_args(params['static_sel']['sel_wt_grn'])
    inputs += _grn_args(params['static_sel']['var_grn'])
    inputs += _grn_args(params['static_encoders'])
    inputs += _grn_c_args(params['history_sel']['sel_wt_grn'])
    inputs += _grn_args(params['history_sel']['var_grn'])
    inputs += _grn_c_args(params['future_sel']['sel_wt_grn'])
    inputs += _grn_args(params['future_sel']['var_grn'])
    inputs += [params['encoder_lstm']['w_ih'], params['encoder_lstm']['w_hh'], params['encoder_lstm']['b']]
    inputs += [params['decoder_lstm']['w_ih'], params['decoder_lstm']['w_hh'], params['decoder_lstm']['b']]
    inputs += [params['gated_skip_conn']['w_gg'], params['gated_skip_conn']['b_gg'],
               params['gated_skip_conn']['gamma'], params['gated_skip_conn']['beta']]

    feature_history, feature_future, c_enrichment = pl.pallas_call(
        _seq2seq_kernel,
        out_shape=(jax.ShapeDtypeStruct((B, Th, H), F32),
                   jax.ShapeDtypeStruct((B, Tf, H), F32),
                   jax.ShapeDtypeStruct((B, 1, H), F32)),
        in_specs=[pl.BlockSpec(memory_space=VMEM) for _ in inputs],
        out_specs=(pl.BlockSpec(memory_space=VMEM),
                   pl.BlockSpec(memory_space=VMEM),
                   pl.BlockSpec(memory_space=VMEM)),
    )(*inputs)
    return feature_history, feature_future, c_enrichment


# ----------------------------------- main -------------------------------------

if __name__ == "__main__":
    key = jax.random.PRNGKey(0)
    B, H = 2, 32
    static_dim, history_dim, future_dim = 4, 3, 5
    hist_len, fut_len = 8, 4

    kp, k1, k2, k3 = jax.random.split(key, 4)
    params = init_seq2seq(kp, static_dim, history_dim, future_dim, H)

    static = jax.random.normal(k1, (B, static_dim, H), F32)
    history = jax.random.normal(k2, (B, hist_len, history_dim, H), F32)
    future = jax.random.normal(k3, (B, fut_len, future_dim, H), F32)

    fwd = jax.jit(seq2seq_forward)
    feat_hist, feat_fut, c_enr = fwd(params, static, history, future)
    jax.block_until_ready((feat_hist, feat_fut, c_enr))

    assert feat_hist.shape == (B, hist_len, H)
    assert feat_fut.shape == (B, fut_len, H)
    assert c_enr.shape == (B, 1, H)
    assert bool(jnp.all(jnp.isfinite(feat_hist))) and bool(jnp.all(jnp.isfinite(feat_fut)))
    assert bool(jnp.all(jnp.isfinite(c_enr)))
    print("KERNEL_OK")
</pallas_src>

<mosaic_0001>
module attributes {stable_mosaic.version = 11 : i64} {
  func.func @_seq2seq_kernel(%arg0: memref<2x128xf32, #tpu.memory_space<vmem>>, %arg1: memref<8x32xf32, #tpu.memory_space<vmem>>, %arg2: memref<16x96xf32, #tpu.memory_space<vmem>>, %arg3: memref<48x32xf32, #tpu.memory_space<vmem>>, %arg4: memref<8x160xf32, #tpu.memory_space<vmem>>, %arg5: memref<40x32xf32, #tpu.memory_space<vmem>>, %arg6: memref<16x2xf32, #tpu.memory_space<vmem>>, %arg7: memref<8x2xf32, #tpu.memory_space<vmem>>, %arg8: memref<128x36xf32, #tpu.memory_space<vmem>>, %arg9: memref<1x36xf32, #tpu.memory_space<vmem>>, %arg10: memref<32x32xf32, #tpu.memory_space<vmem>>, %arg11: memref<1x32xf32, #tpu.memory_space<vmem>>, %arg12: memref<32x8xf32, #tpu.memory_space<vmem>>, %arg13: memref<1x8xf32, #tpu.memory_space<vmem>>, %arg14: memref<1x4xf32, #tpu.memory_space<vmem>>, %arg15: memref<1x4xf32, #tpu.memory_space<vmem>>, %arg16: memref<32x64xf32, #tpu.memory_space<vmem>>, %arg17: memref<1x64xf32, #tpu.memory_space<vmem>>, %arg18: memref<32x32xf32, #tpu.memory_space<vmem>>, %arg19: memref<1x32xf32, #tpu.memory_space<vmem>>, %arg20: memref<32x64xf32, #tpu.memory_space<vmem>>, %arg21: memref<1x64xf32, #tpu.memory_space<vmem>>, %arg22: memref<1x32xf32, #tpu.memory_space<vmem>>, %arg23: memref<1x32xf32, #tpu.memory_space<vmem>>, %arg24: memref<32x256xf32, #tpu.memory_space<vmem>>, %arg25: memref<1x256xf32, #tpu.memory_space<vmem>>, %arg26: memref<128x128xf32, #tpu.memory_space<vmem>>, %arg27: memref<1x128xf32, #tpu.memory_space<vmem>>, %arg28: memref<128x256xf32, #tpu.memory_space<vmem>>, %arg29: memref<1x256xf32, #tpu.memory_space<vmem>>, %arg30: memref<1x4x32xf32, #tpu.memory_space<vmem>>, %arg31: memref<1x4x32xf32, #tpu.memory_space<vmem>>, %arg32: memref<96x35xf32, #tpu.memory_space<vmem>>, %arg33: memref<1x35xf32, #tpu.memory_space<vmem>>, %arg34: memref<32x32xf32, #tpu.memory_space<vmem>>, %arg35: memref<32x32xf32, #tpu.memory_space<vmem>>, %arg36: memref<1x32xf32, #tpu.memory_space<vmem>>, %arg37: memref<32x6xf32, #tpu.memory_space<vmem>>, %arg38: memref<1x6xf32, #tpu.memory_space<vmem>>, %arg39: memref<1x3xf32, #tpu.memory_space<vmem>>, %arg40: memref<1x3xf32, #tpu.memory_space<vmem>>, %arg41: memref<32x64xf32, #tpu.memory_space<vmem>>, %arg42: memref<1x64xf32, #tpu.memory_space<vmem>>, %arg43: memref<32x32xf32, #tpu.memory_space<vmem>>, %arg44: memref<1x32xf32, #tpu.memory_space<vmem>>, %arg45: memref<32x64xf32, #tpu.memory_space<vmem>>, %arg46: memref<1x64xf32, #tpu.memory_space<vmem>>, %arg47: memref<1x32xf32, #tpu.memory_space<vmem>>, %arg48: memref<1x32xf32, #tpu.memory_space<vmem>>, %arg49: memref<160x37xf32, #tpu.memory_space<vmem>>, %arg50: memref<1x37xf32, #tpu.memory_space<vmem>>, %arg51: memref<32x32xf32, #tpu.memory_space<vmem>>, %arg52: memref<32x32xf32, #tpu.memory_space<vmem>>, %arg53: memref<1x32xf32, #tpu.memory_space<vmem>>, %arg54: memref<32x10xf32, #tpu.memory_space<vmem>>, %arg55: memref<1x10xf32, #tpu.memory_space<vmem>>, %arg56: memref<1x5xf32, #tpu.memory_space<vmem>>, %arg57: memref<1x5xf32, #tpu.memory_space<vmem>>, %arg58: memref<32x64xf32, #tpu.memory_space<vmem>>, %arg59: memref<1x64xf32, #tpu.memory_space<vmem>>, %arg60: memref<32x32xf32, #tpu.memory_space<vmem>>, %arg61: memref<1x32xf32, #tpu.memory_space<vmem>>, %arg62: memref<32x64xf32, #tpu.memory_space<vmem>>, %arg63: memref<1x64xf32, #tpu.memory_space<vmem>>, %arg64: memref<1x32xf32, #tpu.memory_space<vmem>>, %arg65: memref<1x32xf32, #tpu.memory_space<vmem>>, %arg66: memref<32x128xf32, #tpu.memory_space<vmem>>, %arg67: memref<32x128xf32, #tpu.memory_space<vmem>>, %arg68: memref<1x128xf32, #tpu.memory_space<vmem>>, %arg69: memref<32x128xf32, #tpu.memory_space<vmem>>, %arg70: memref<32x128xf32, #tpu.memory_space<vmem>>, %arg71: memref<1x128xf32, #tpu.memory_space<vmem>>, %arg72: memref<32x64xf32, #tpu.memory_space<vmem>>, %arg73: memref<1x64xf32, #tpu.memory_space<vmem>>, %arg74: memref<1x32xf32, #tpu.memory_space<vmem>>, %arg75: memref<1x32xf32, #tpu.memory_space<vmem>>, %arg76: memref<2x8x32xf32, #tpu.memory_space<vmem>>, %arg77: memref<2x4x32xf32, #tpu.memory_space<vmem>>, %arg78: memref<2x1x32xf32, #tpu.memory_space<vmem>>) attributes {dimension_semantics = [], scalar_prefetch = 0 : i64, scratch_operands = 0 : i64, tpu.core_type = #tpu.core_type<tc>} {
    %c0 = arith.constant 0 : index
    %c0_0 = arith.constant 0 : index
    %0 = vector.load %arg0[%c0, %c0_0] : memref<2x128xf32, #tpu.memory_space<vmem>>, vector<2x128xf32>
    %c0_1 = arith.constant 0 : index
    %c0_2 = arith.constant 0 : index
    %1 = vector.load %arg1[%c0_1, %c0_2] : memref<8x32xf32, #tpu.memory_space<vmem>>, vector<8x32xf32>
    %c0_3 = arith.constant 0 : index
    %c0_4 = arith.constant 0 : index
    %2 = vector.load %arg8[%c0_3, %c0_4] : memref<128x36xf32, #tpu.memory_space<vmem>>, vector<128x36xf32>
    %c0_5 = arith.constant 0 : index
    %c0_6 = arith.constant 0 : index
    %3 = vector.load %arg9[%c0_5, %c0_6] : memref<1x36xf32, #tpu.memory_space<vmem>>, vector<1x36xf32>
    %c0_7 = arith.constant 0 : index
    %c0_8 = arith.constant 0 : index
    %4 = vector.load %arg10[%c0_7, %c0_8] : memref<32x32xf32, #tpu.memory_space<vmem>>, vector<32x32xf32>
    %c0_9 = arith.constant 0 : index
    %c0_10 = arith.constant 0 : index
    %5 = vector.load %arg11[%c0_9, %c0_10] : memref<1x32xf32, #tpu.memory_space<vmem>>, vector<1x32xf32>
    %c0_11 = arith.constant 0 : index
    %c0_12 = arith.constant 0 : index
    %6 = vector.load %arg12[%c0_11, %c0_12] : memref<32x8xf32, #tpu.memory_space<vmem>>, vector<32x8xf32>
    %c0_13 = arith.constant 0 : index
    %c0_14 = arith.constant 0 : index
    %7 = vector.load %arg13[%c0_13, %c0_14] : memref<1x8xf32, #tpu.memory_space<vmem>>, vector<1x8xf32>
    %c0_15 = arith.constant 0 : index
    %c0_16 = arith.constant 0 : index
    %8 = vector.load %arg14[%c0_15, %c0_16] : memref<1x4xf32, #tpu.memory_space<vmem>>, vector<1x4xf32>
    %c0_17 = arith.constant 0 : index
    %c0_18 = arith.constant 0 : index
    %9 = vector.load %arg15[%c0_17, %c0_18] : memref<1x4xf32, #tpu.memory_space<vmem>>, vector<1x4xf32>
    %cst = arith.constant dense<0.000000e+00> : vector<2x36xf32>
    %10 = tpu.matmul %0, %2, %cst {dimension_numbers = #tpu.dot_dimension_numbers<[1], [0], [0], [1], [0, 0, 1, 1], [], []>} : vector<2x128xf32>, vector<128x36xf32>, vector<2x36xf32> -> vector<2x36xf32>
    %11 = vector.broadcast %3 : vector<1x36xf32> to vector<2x36xf32>
    %12 = arith.addf %10, %11 : vector<2x36xf32>
    %13 = vector.extract_strided_slice %12 {offsets = [0, 0], sizes = [2, 4], strides = [1, 1]} : vector<2x36xf32> to vector<2x4xf32>
    %14 = vector.extract_strided_slice %12 {offsets = [0, 4], sizes = [2, 32], strides = [1, 1]} : vector<2x36xf32> to vector<2x32xf32>
    %cst_19 = arith.constant 0.000000e+00 : f32
    %15 = vector.broadcast %cst_19 : f32 to vector<2x32xf32>
    %16 = arith.cmpf ogt, %14, %15 : vector<2x32xf32>
    %17 = math.exp %14 : vector<2x32xf32>
    %cst_20 = arith.constant 1.000000e+00 : f32
    %18 = vector.broadcast %cst_20 : f32 to vector<2x32xf32>
    %19 = arith.subf %17, %18 : vector<2x32xf32>
    %20 = arith.select %16, %14, %19 : vector<2x32xi1>, vector<2x32xf32>
    %cst_21 = arith.constant dense<0.000000e+00> : vector<2x32xf32>
    %21 = tpu.matmul %20, %4, %cst_21 {dimension_numbers = #tpu.dot_dimension_numbers<[1], [0], [0], [1], [0, 0, 1, 1], [], []>} : vector<2x32xf32>, vector<32x32xf32>, vector<2x32xf32> -> vector<2x32xf32>
    %22 = vector.broadcast %5 : vector<1x32xf32> to vector<2x32xf32>
    %23 = arith.addf %21, %22 : vector<2x32xf32>
    %cst_22 = arith.constant dense<0.000000e+00> : vector<2x8xf32>
    %24 = tpu.matmul %23, %6, %cst_22 {dimension_numbers = #tpu.dot_dimension_numbers<[1], [0], [0], [1], [0, 0, 1, 1], [], []>} : vector<2x32xf32>, vector<32x8xf32>, vector<2x8xf32> -> vector<2x8xf32>
    %25 = vector.broadcast %7 : vector<1x8xf32> to vector<2x8xf32>
    %26 = arith.addf %24, %25 : vector<2x8xf32>
    %27 = vector.extract_strided_slice %26 {offsets = [0, 0], sizes = [2, 4], strides = [1, 1]} : vector<2x8xf32> to vector<2x4xf32>
    %28 = arith.negf %27 : vector<2x4xf32>
    %29 = math.exp %28 : vector<2x4xf32>
    %cst_23 = arith.constant 1.000000e+00 : f32
    %30 = vector.broadcast %cst_23 : f32 to vector<2x4xf32>
    %31 = arith.addf %30, %29 : vector<2x4xf32>
    %32 = arith.divf %30, %31 : vector<2x4xf32>
    %33 = vector.extract_strided_slice %26 {offsets = [0, 4], sizes = [2, 4], strides = [1, 1]} : vector<2x8xf32> to vector<2x4xf32>
    %34 = arith.mulf %32, %33 : vector<2x4xf32>
    %35 = arith.addf %34, %13 : vector<2x4xf32>
    %cst_24 = arith.constant dense<0.000000e+00> : vector<2xf32>
    %36 = vector.multi_reduction <add>, %35, %cst_24 [1] : vector<2x4xf32> to vector<2xf32>
    %37 = vector.shape_cast %36 : vector<2xf32> to vector<2x1xf32>
    %cst_25 = arith.constant 4.000000e+00 : f32
    %38 = vector.broadcast %cst_25 : f32 to vector<2x1xf32>
    %39 = arith.divf %37, %38 : vector<2x1xf32>
    %40 = vector.broadcast %39 : vector<2x1xf32> to vector<2x4xf32>
    %41 = arith.subf %35, %40 : vector<2x4xf32>
    %42 = arith.mulf %41, %41 : vector<2x4xf32>
    %cst_26 = arith.constant dense<0.000000e+00> : vector<2xf32>
    %43 = vector.multi_reduction <add>, %42, %cst_26 [1] : vector<2x4xf32> to vector<2xf32>
    %44 = vector.shape_cast %43 : vector<2xf32> to vector<2x1xf32>
    %cst_27 = arith.constant 4.000000e+00 : f32
    %45 = vector.broadcast %cst_27 : f32 to vector<2x1xf32>
    %46 = arith.divf %44, %45 : vector<2x1xf32>
    %47 = vector.broadcast %39 : vector<2x1xf32> to vector<2x4xf32>
    %48 = arith.subf %35, %47 : vector<2x4xf32>
    %cst_28 = arith.constant 9.99999974E-6 : f32
    %49 = vector.broadcast %cst_28 : f32 to vector<2x1xf32>
    %50 = arith.addf %46, %49 : vector<2x1xf32>
    %51 = math.rsqrt %50 : vector<2x1xf32>
    %52 = vector.broadcast %51 : vector<2x1xf32> to vector<2x4xf32>
    %53 = arith.mulf %48, %52 : vector<2x4xf32>
    %54 = vector.broadcast %8 : vector<1x4xf32> to vector<2x4xf32>
    %55 = arith.mulf %53, %54 : vector<2x4xf32>
    %56 = vector.broadcast %9 : vector<1x4xf32> to vector<2x4xf32>
    %57 = arith.addf %55, %56 : vector<2x4xf32>
    %c0_29 = arith.constant 0 : index
    %c0_30 = arith.constant 0 : index
    %58 = vector.load %arg16[%c0_29, %c0_30] : memref<32x64xf32, #tpu.memory_space<vmem>>, vector<32x64xf32>
    %c0_31 = arith.constant 0 : index
    %c0_32 = arith.constant 0 : index
    %59 = vector.load %arg17[%c0_31, %c0_32] : memref<1x64xf32, #tpu.memory_space<vmem>>, vector<1x64xf32>
    %c0_33 = arith.constant 0 : index
    %c0_34 = arith.constant 0 : index
    %60 = vector.load %arg18[%c0_33, %c0_34] : memref<32x32xf32, #tpu.memory_space<vmem>>, vector<32x32xf32>
    %c0_35 = arith.constant 0 : index
    %c0_36 = arith.constant 0 : index
    %61 = vector.load %arg19[%c0_35, %c0_36] : memref<1x32xf32, #tpu.memory_space<vmem>>, vector<1x32xf32>
    %c0_37 = arith.constant 0 : index
    %c0_38 = arith.constant 0 : index
    %62 = vector.load %arg20[%c0_37, %c0_38] : memref<32x64xf32, #tpu.memory_space<vmem>>, vector<32x64xf32>
    %c0_39 = arith.constant 0 : index
    %c0_40 = arith.constant 0 : index
    %63 = vector.load %arg21[%c0_39, %c0_40] : memref<1x64xf32, #tpu.memory_space<vmem>>, vector<1x64xf32>
    %c0_41 = arith.constant 0 : index
    %c0_42 = arith.constant 0 : index
    %64 = vector.load %arg22[%c0_41, %c0_42] : memref<1x32xf32, #tpu.memory_space<vmem>>, vector<1x32xf32>
    %c0_43 = arith.constant 0 : index
    %c0_44 = arith.constant 0 : index
    %65 = vector.load %arg23[%c0_43, %c0_44] : memref<1x32xf32, #tpu.memory_space<vmem>>, vector<1x32xf32>
    %cst_45 = arith.constant dense<0.000000e+00> : vector<8x64xf32>
    %66 = tpu.matmul %1, %58, %cst_45 {dimension_numbers = #tpu.dot_dimension_numbers<[1], [0], [0], [1], [0, 0, 1, 1], [], []>} : vector<8x32xf32>, vector<32x64xf32>, vector<8x64xf32> -> vector<8x64xf32>
    %67 = vector.broadcast %59 : vector<1x64xf32> to vector<8x64xf32>
    %68 = arith.addf %66, %67 : vector<8x64xf32>
    %69 = vector.extract_strided_slice %68 {offsets = [0, 0], sizes = [8, 32], strides = [1, 1]} : vector<8x64xf32> to vector<8x32xf32>
    %70 = vector.extract_strided_slice %68 {offsets = [0, 32], sizes = [8, 32], strides = [1, 1]} : vector<8x64xf32> to vector<8x32xf32>
    %cst_46 = arith.constant 0.000000e+00 : f32
    %71 = vector.broadcast %cst_46 : f32 to vector<8x32xf32>
    %72 = arith.cmpf ogt, %70, %71 : vector<8x32xf32>
    %73 = math.exp %70 : vector<8x32xf32>
    %cst_47 = arith.constant 1.000000e+00 : f32
    %74 = vector.broadcast %cst_47 : f32 to vector<8x32xf32>
    %75 = arith.subf %73, %74 : vector<8x32xf32>
    %76 = arith.select %72, %70, %75 : vector<8x32xi1>, vector<8x32xf32>
    %cst_48 = arith.constant dense<0.000000e+00> : vector<8x32xf32>
    %77 = tpu.matmul %76, %60, %cst_48 {dimension_numbers = #tpu.dot_dimension_numbers<[1], [0], [0], [1], [0, 0, 1, 1], [], []>} : vector<8x32xf32>, vector<32x32xf32>, vector<8x32xf32> -> vector<8x32xf32>
    %78 = vector.broadcast %61 : vector<1x32xf32> to vector<8x32xf32>
    %79 = arith.addf %77, %78 : vector<8x32xf32>
    %cst_49 = arith.constant dense<0.000000e+00> : vector<8x64xf32>
    %80 = tpu.matmul %79, %62, %cst_49 {dimension_numbers = #tpu.dot_dimension_numbers<[1], [0], [0], [1], [0, 0, 1, 1], [], []>} : vector<8x32xf32>, vector<32x64xf32>, vector<8x64xf32> -> vector<8x64xf32>
    %81 = vector.broadcast %63 : vector<1x64xf32> to vector<8x64xf32>
    %82 = arith.addf %80, %81 : vector<8x64xf32>
    %83 = vector.extract_strided_slice %82 {offsets = [0, 0], sizes = [8, 32], strides = [1, 1]} : vector<8x64xf32> to vector<8x32xf32>
    %84 = arith.negf %83 : vector<8x32xf32>
    %85 = math.exp %84 : vector<8x32xf32>
    %cst_50 = arith.constant 1.000000e+00 : f32
    %86 = vector.broadcast %cst_50 : f32 to vector<8x32xf32>
    %87 = arith.addf %86, %85 : vector<8x32xf32>
    %88 = arith.divf %86, %87 : vector<8x32xf32>
    %89 = vector.extract_strided_slice %82 {offsets = [0, 32], sizes = [8, 32], strides = [1, 1]} : vector<8x64xf32> to vector<8x32xf32>
    %90 = arith.mulf %88, %89 : vector<8x32xf32>
    %91 = arith.addf %90, %69 : vector<8x32xf32>
    %cst_51 = arith.constant dense<0.000000e+00> : vector<8xf32>
    %92 = vector.multi_reduction <add>, %91, %cst_51 [1] : vector<8x32xf32> to vector<8xf32>
    %93 = vector.shape_cast %92 : vector<8xf32> to vector<8x1xf32>
    %cst_52 = arith.constant 3.200000e+01 : f32
    %94 = vector.broadcast %cst_52 : f32 to vector<8x1xf32>
    %95 = arith.divf %93, %94 : vector<8x1xf32>
    %96 = vector.broadcast %95 : vector<8x1xf32> to vector<8x32xf32>
    %97 = arith.subf %91, %96 : vector<8x32xf32>
    %98 = arith.mulf %97, %97 : vector<8x32xf32>
    %cst_53 = arith.constant dense<0.000000e+00> : vector<8xf32>
    %99 = vector.multi_reduction <add>, %98, %cst_53 [1] : vector<8x32xf32> to vector<8xf32>
    %100 = vector.shape_cast %99 : vector<8xf32> to vector<8x1xf32>
    %cst_54 = arith.constant 3.200000e+01 : f32
    %101 = vector.broadcast %cst_54 : f32 to vector<8x1xf32>
    %102 = arith.divf %100, %101 : vector<8x1xf32>
    %103 = vector.broadcast %95 : vector<8x1xf32> to vector<8x32xf32>
    %104 = arith.subf %91, %103 : vector<8x32xf32>
    %cst_55 = arith.constant 9.99999974E-6 : f32
    %105 = vector.broadcast %cst_55 : f32 to vector<8x1xf32>
    %106 = arith.addf %102, %105 : vector<8x1xf32>
    %107 = math.rsqrt %106 : vector<8x1xf32>
    %108 = vector.broadcast %107 : vector<8x1xf32> to vector<8x32xf32>
    %109 = arith.mulf %104, %108 : vector<8x32xf32>
    %110 = vector.broadcast %64 : vector<1x32xf32> to vector<8x32xf32>
    %111 = arith.mulf %109, %110 : vector<8x32xf32>
    %112 = vector.broadcast %65 : vector<1x32xf32> to vector<8x32xf32>
    %113 = arith.addf %111, %112 : vector<8x32xf32>
    %cst_56 = arith.constant dense<0xFF800000> : vector<4xf32>
    %114 = vector.multi_reduction <maximumf>, %57, %cst_56 [0] : vector<2x4xf32> to vector<4xf32>
    %115 = vector.shape_cast %114 : vector<4xf32> to vector<1x4xf32>
    %116 = vector.broadcast %115 : vector<1x4xf32> to vector<2x4xf32>
    %117 = arith.subf %57, %116 : vector<2x4xf32>
    %118 = math.exp %117 : vector<2x4xf32>
    %cst_57 = arith.constant dense<0.000000e+00> : vector<4xf32>
    %119 = vector.multi_reduction <add>, %118, %cst_57 [0] : vector<2x4xf32> to vector<4xf32>
    %120 = vector.shape_cast %119 : vector<4xf32> to vector<1x4xf32>
    %121 = tpu.reciprocal %120 {approx = true} : vector<1x4xf32> -> vector<1x4xf32>
    %122 = vector.broadcast %121 : vector<1x4xf32> to vector<2x4xf32>
    %123 = arith.mulf %118, %122 : vector<2x4xf32>
    %124 = vector.shape_cast %123 : vector<2x4xf32> to vector<2x4x1xf32>
    %125 = vector.shape_cast %113 : vector<8x32xf32> to vector<2x4x32xf32>
    %126 = vector.broadcast %124 : vector<2x4x1xf32> to vector<2x4x32xf32>
    %127 = arith.mulf %126, %125 : vector<2x4x32xf32>
    %cst_58 = arith.constant dense<0.000000e+00> : vector<2x32xf32>
    %128 = vector.multi_reduction <add>, %127, %cst_58 [1] : vector<2x4x32xf32> to vector<2x32xf32>
    %c0_59 = arith.constant 0 : index
    %c0_60 = arith.constant 0 : index
    %129 = vector.load %arg24[%c0_59, %c0_60] : memref<32x256xf32, #tpu.memory_space<vmem>>, vector<32x256xf32>
    %c0_61 = arith.constant 0 : index
    %c0_62 = arith.constant 0 : index
    %130 = vector.load %arg25[%c0_61, %c0_62] : memref<1x256xf32, #tpu.memory_space<vmem>>, vector<1x256xf32>
    %c0_63 = arith.constant 0 : index
    %c0_64 = arith.constant 0 : index
    %131 = vector.load %arg26[%c0_63, %c0_64] : memref<128x128xf32, #tpu.memory_space<vmem>>, vector<128x128xf32>
    %c0_65 = arith.constant 0 : index
    %c0_66 = arith.constant 0 : index
    %132 = vector.load %arg27[%c0_65, %c0_66] : memref<1x128xf32, #tpu.memory_space<vmem>>, vector<1x128xf32>
    %c0_67 = arith.constant 0 : index
    %c0_68 = arith.constant 0 : index
    %133 = vector.load %arg28[%c0_67, %c0_68] : memref<128x256xf32, #tpu.memory_space<vmem>>, vector<128x256xf32>
    %c0_69 = arith.constant 0 : index
    %c0_70 = arith.constant 0 : index
    %134 = vector.load %arg29[%c0_69, %c0_70] : memref<1x256xf32, #tpu.memory_space<vmem>>, vector<1x256xf32>
    %c0_71 = arith.constant 0 : index
    %c0_72 = arith.constant 0 : index
    %c0_73 = arith.constant 0 : index
    %135 = vector.load %arg30[%c0_71, %c0_72, %c0_73] : memref<1x4x32xf32, #tpu.memory_space<vmem>>, vector<1x4x32xf32>
    %c0_74 = arith.constant 0 : index
    %c0_75 = arith.constant 0 : index
    %c0_76 = arith.constant 0 : index
    %136 = vector.load %arg31[%c0_74, %c0_75, %c0_76] : memref<1x4x32xf32, #tpu.memory_space<vmem>>, vector<1x4x32xf32>
    %cst_77 = arith.constant dense<0.000000e+00> : vector<2x256xf32>
    %137 = tpu.matmul %128, %129, %cst_77 {dimension_numbers = #tpu.dot_dimension_numbers<[1], [0], [0], [1], [0, 0, 1, 1], [], []>} : vector<2x32xf32>, vector<32x256xf32>, vector<2x256xf32> -> vector<2x256xf32>
    %138 = vector.broadcast %130 : vector<1x256xf32> to vector<2x256xf32>
    %139 = arith.addf %137, %138 : vector<2x256xf32>
    %140 = vector.extract_strided_slice %139 {offsets = [0, 0], sizes = [2, 128], strides = [1, 1]} : vector<2x256xf32> to vector<2x128xf32>
    %141 = vector.extract_strided_slice %139 {offsets = [0, 128], sizes = [2, 128], strides = [1, 1]} : vector<2x256xf32> to vector<2x128xf32>
    %cst_78 = arith.constant 0.000000e+00 : f32
    %142 = vector.broadcast %cst_78 : f32 to vector<2x128xf32>
    %143 = arith.cmpf ogt, %141, %142 : vector<2x128xf32>
    %144 = math.exp %141 : vector<2x128xf32>
    %cst_79 = arith.constant 1.000000e+00 : f32
    %145 = vector.broadcast %cst_79 : f32 to vector<2x128xf32>
    %146 = arith.subf %144, %145 : vector<2x128xf32>
    %147 = arith.select %143, %141, %146 : vector<2x128xi1>, vector<2x128xf32>
    %cst_80 = arith.constant dense<0.000000e+00> : vector<2x128xf32>
    %148 = tpu.matmul %147, %131, %cst_80 {dimension_numbers = #tpu.dot_dimension_numbers<[1], [0], [0], [1], [0, 0, 1, 1], [], []>} : vector<2x128xf32>, vector<128x128xf32>, vector<2x128xf32> -> vector<2x128xf32>
    %149 = vector.broadcast %132 : vector<1x128xf32> to vector<2x128xf32>
    %150 = arith.addf %148, %149 : vector<2x128xf32>
    %cst_81 = arith.constant dense<0.000000e+00> : vector<2x256xf32>
    %151 = tpu.matmul %150, %133, %cst_81 {dimension_numbers = #tpu.dot_dimension_numbers<[1], [0], [0], [1], [0, 0, 1, 1], [], []>} : vector<2x128xf32>, vector<128x256xf32>, vector<2x256xf32> -> vector<2x256xf32>
    %152 = vector.broadcast %134 : vector<1x256xf32> to vector<2x256xf32>
    %153 = arith.addf %151, %152 : vector<2x256xf32>
    %154 = vector.extract_strided_slice %153 {offsets = [0, 0], sizes = [2, 128], strides = [1, 1]} : vector<2x256xf32> to vector<2x128xf32>
    %155 = arith.negf %154 : vector<2x128xf32>
    %156 = math.exp %155 : vector<2x128xf32>
    %cst_82 = arith.constant 1.000000e+00 : f32
    %157 = vector.broadcast %cst_82 : f32 to vector<2x128xf32>
    %158 = arith.addf %157, %156 : vector<2x128xf32>
    %159 = arith.divf %157, %158 : vector<2x128xf32>
    %160 = vector.extract_strided_slice %153 {offsets = [0, 128], sizes = [2, 128], strides = [1, 1]} : vector<2x256xf32> to vector<2x128xf32>
    %161 = arith.mulf %159, %160 : vector<2x128xf32>
    %162 = arith.addf %161, %140 : vector<2x128xf32>
    %163 = vector.shape_cast %162 : vector<2x128xf32> to vector<2x4x32xf32>
    %cst_83 = arith.constant dense<0.000000e+00> : vector<2x4xf32>
    %164 = vector.multi_reduction <add>, %163, %cst_83 [2] : vector<2x4x32xf32> to vector<2x4xf32>
    %165 = vector.shape_cast %164 : vector<2x4xf32> to vector<2x4x1xf32>
    %cst_84 = arith.constant 3.200000e+01 : f32
    %166 = vector.broadcast %cst_84 : f32 to vector<2x4x1xf32>
    %167 = arith.divf %165, %166 : vector<2x4x1xf32>
    %168 = vector.broadcast %167 : vector<2x4x1xf32> to vector<2x4x32xf32>
    %169 = arith.subf %163, %168 : vector<2x4x32xf32>
    %170 = arith.mulf %169, %169 : vector<2x4x32xf32>
    %cst_85 = arith.constant dense<0.000000e+00> : vector<2x4xf32>
    %171 = vector.multi_reduction <add>, %170, %cst_85 [2] : vector<2x4x32xf32> to vector<2x4xf32>
    %172 = vector.shape_cast %171 : vector<2x4xf32> to vector<2x4x1xf32>
    %cst_86 = arith.constant 3.200000e+01 : f32
    %173 = vector.broadcast %cst_86 : f32 to vector<2x4x1xf32>
    %174 = arith.divf %172, %173 : vector<2x4x1xf32>
    %175 = vector.broadcast %167 : vector<2x4x1xf32> to vector<2x4x32xf32>
    %176 = arith.subf %163, %175 : vector<2x4x32xf32>
    %cst_87 = arith.constant 9.99999974E-6 : f32
    %177 = vector.broadcast %cst_87 : f32 to vector<2x4x1xf32>
    %178 = arith.addf %174, %177 : vector<2x4x1xf32>
    %179 = math.rsqrt %178 : vector<2x4x1xf32>
    %180 = vector.broadcast %179 : vector<2x4x1xf32> to vector<2x4x32xf32>
    %181 = arith.mulf %176, %180 : vector<2x4x32xf32>
    %182 = vector.broadcast %135 : vector<1x4x32xf32> to vector<2x4x32xf32>
    %183 = arith.mulf %181, %182 : vector<2x4x32xf32>
    %184 = vector.broadcast %136 : vector<1x4x32xf32> to vector<2x4x32xf32>
    %185 = arith.addf %183, %184 : vector<2x4x32xf32>
    %186 = vector.extract_strided_slice %185 {offsets = [0, 0, 0], sizes = [2, 1, 32], strides = [1, 1, 1]} : vector<2x4x32xf32> to vector<2x1x32xf32>
    %187 = vector.shape_cast %186 : vector<2x1x32xf32> to vector<2x32xf32>
    %188 = vector.extract_strided_slice %185 {offsets = [0, 1, 0], sizes = [2, 1, 32], strides = [1, 1, 1]} : vector<2x4x32xf32> to vector<2x1x32xf32>
    %189 = vector.shape_cast %188 : vector<2x1x32xf32> to vector<2x32xf32>
    %190 = vector.extract_strided_slice %185 {offsets = [0, 2, 0], sizes = [2, 1, 32], strides = [1, 1, 1]} : vector<2x4x32xf32> to vector<2x1x32xf32>
    %191 = vector.shape_cast %190 : vector<2x1x32xf32> to vector<2x32xf32>
    %192 = vector.extract_strided_slice %185 {offsets = [0, 3, 0], sizes = [2, 1, 32], strides = [1, 1, 1]} : vector<2x4x32xf32> to vector<2x1x32xf32>
    %c0_88 = arith.constant 0 : index
    %c0_89 = arith.constant 0 : index
    %c0_90 = arith.constant 0 : index
    %193 = vector.load %arg78[%c0_88, %c0_89, %c0_90] : memref<2x1x32xf32, #tpu.memory_space<vmem>>, vector<2x1x32xf32>
    tpu.vector_store %arg78[%c0_88, %c0_89, %c0_90], %192 {strides = array<i32>} : memref<2x1x32xf32, #tpu.memory_space<vmem>>, vector<2x1x32xf32>,
    %c0_91 = arith.constant 0 : index
    %c0_92 = arith.constant 0 : index
    %194 = vector.load %arg2[%c0_91, %c0_92] : memref<16x96xf32, #tpu.memory_space<vmem>>, vector<16x96xf32>
    %c0_93 = arith.constant 0 : index
    %c0_94 = arith.constant 0 : index
    %195 = vector.load %arg3[%c0_93, %c0_94] : memref<48x32xf32, #tpu.memory_space<vmem>>, vector<48x32xf32>
    %c0_95 = arith.constant 0 : index
    %c0_96 = arith.constant 0 : index
    %196 = vector.load %arg6[%c0_95, %c0_96] : memref<16x2xf32, #tpu.memory_space<vmem>>, vector<16x2xf32>
    %c0_97 = arith.constant 0 : index
    %c0_98 = arith.constant 0 : index
    %197 = vector.load %arg32[%c0_97, %c0_98] : memref<96x35xf32, #tpu.memory_space<vmem>>, vector<96x35xf32>
    %c0_99 = arith.constant 0 : index
    %c0_100 = arith.constant 0 : index
    %198 = vector.load %arg33[%c0_99, %c0_100] : memref<1x35xf32, #tpu.memory_space<vmem>>, vector<1x35xf32>
    %c0_101 = arith.constant 0 : index
    %c0_102 = arith.constant 0 : index
    %199 = vector.load %arg34[%c0_101, %c0_102] : memref<32x32xf32, #tpu.memory_space<vmem>>, vector<32x32xf32>
    %c0_103 = arith.constant 0 : index
    %c0_104 = arith.constant 0 : index
    %200 = vector.load %arg35[%c0_103, %c0_104] : memref<32x32xf32, #tpu.memory_space<vmem>>, vector<32x32xf32>
    %c0_105 = arith.constant 0 : index
    %c0_106 = arith.constant 0 : index
    %201 = vector.load %arg36[%c0_105, %c0_106] : memref<1x32xf32, #tpu.memory_space<vmem>>, vector<1x32xf32>
    %c0_107 = arith.constant 0 : index
    %c0_108 = arith.constant 0 : index
    %202 = vector.load %arg37[%c0_107, %c0_108] : memref<32x6xf32, #tpu.memory_space<vmem>>, vector<32x6xf32>
    %c0_109 = arith.constant 0 : index
    %c0_110 = arith.constant 0 : index
    %203 = vector.load %arg38[%c0_109, %c0_110] : memref<1x6xf32, #tpu.memory_space<vmem>>, vector<1x6xf32>
    %c0_111 = arith.constant 0 : index
    %c0_112 = arith.constant 0 : index
    %204 = vector.load %arg39[%c0_111, %c0_112] : memref<1x3xf32, #tpu.memory_space<vmem>>, vector<1x3xf32>
    %c0_113 = arith.constant 0 : index
    %c0_114 = arith.constant 0 : index
    %205 = vector.load %arg40[%c0_113, %c0_114] : memref<1x3xf32, #tpu.memory_space<vmem>>, vector<1x3xf32>
    %cst_115 = arith.constant dense<0.000000e+00> : vector<2x32xf32>
    %206 = tpu.matmul %187, %199, %cst_115 {dimension_numbers = #tpu.dot_dimension_numbers<[1], [0], [0], [1], [0, 0, 1, 1], [], []>} : vector<2x32xf32>, vector<32x32xf32>, vector<2x32xf32> -> vector<2x32xf32>
    %cst_116 = arith.constant dense<0.000000e+00> : vector<16x32xf32>
    %207 = tpu.matmul %196, %206, %cst_116 {dimension_numbers = #tpu.dot_dimension_numbers<[1], [0], [0], [1], [0, 0, 1, 1], [], []>} : vector<16x2xf32>, vector<2x32xf32>, vector<16x32xf32> -> vector<16x32xf32>
    %cst_117 = arith.constant dense<0.000000e+00> : vector<16x35xf32>
    %208 = tpu.matmul %194, %197, %cst_117 {dimension_numbers = #tpu.dot_dimension_numbers<[1], [0], [0], [1], [0, 0, 1, 1], [], []>} : vector<16x96xf32>, vector<96x35xf32>, vector<16x35xf32> -> vector<16x35xf32>
    %209 = vector.broadcast %198 : vector<1x35xf32> to vector<16x35xf32>
    %210 = arith.addf %208, %209 : vector<16x35xf32>
    %211 = vector.extract_strided_slice %210 {offsets = [0, 0], sizes = [16, 3], strides = [1, 1]} : vector<16x35xf32> to vector<16x3xf32>
    %212 = vector.extract_strided_slice %210 {offsets = [0, 3], sizes = [16, 32], strides = [1, 1]} : vector<16x35xf32> to vector<16x32xf32>
    %213 = arith.addf %212, %207 : vector<16x32xf32>
    %cst_118 = arith.constant 0.000000e+00 : f32
    %214 = vector.broadcast %cst_118 : f32 to vector<16x32xf32>
    %215 = arith.cmpf ogt, %213, %214 : vector<16x32xf32>
    %216 = math.exp %213 : vector<16x32xf32>
    %cst_119 = arith.constant 1.000000e+00 : f32
    %217 = vector.broadcast %cst_119 : f32 to vector<16x32xf32>
    %218 = arith.subf %216, %217 : vector<16x32xf32>
    %219 = arith.select %215, %213, %218 : vector<16x32xi1>, vector<16x32xf32>
    %cst_120 = arith.constant dense<0.000000e+00> : vector<16x32xf32>
    %220 = tpu.matmul %219, %200, %cst_120 {dimension_numbers = #tpu.dot_dimension_numbers<[1], [0], [0], [1], [0, 0, 1, 1], [], []>} : vector<16x32xf32>, vector<32x32xf32>, vector<16x32xf32> -> vector<16x32xf32>
    %221 = vector.broadcast %201 : vector<1x32xf32> to vector<16x32xf32>
    %222 = arith.addf %220, %221 : vector<16x32xf32>
    %cst_121 = arith.constant dense<0.000000e+00> : vector<16x6xf32>
    %223 = tpu.matmul %222, %202, %cst_121 {dimension_numbers = #tpu.dot_dimension_numbers<[1], [0], [0], [1], [0, 0, 1, 1], [], []>} : vector<16x32xf32>, vector<32x6xf32>, vector<16x6xf32> -> vector<16x6xf32>
    %224 = vector.broadcast %203 : vector<1x6xf32> to vector<16x6xf32>
    %225 = arith.addf %223, %224 : vector<16x6xf32>
    %226 = vector.extract_strided_slice %225 {offsets = [0, 0], sizes = [16, 3], strides = [1, 1]} : vector<16x6xf32> to vector<16x3xf32>
    %227 = arith.negf %226 : vector<16x3xf32>
    %228 = math.exp %227 : vector<16x3xf32>
    %cst_122 = arith.constant 1.000000e+00 : f32
    %229 = vector.broadcast %cst_122 : f32 to vector<16x3xf32>
    %230 = arith.addf %229, %228 : vector<16x3xf32>
    %231 = arith.divf %229, %230 : vector<16x3xf32>
    %232 = vector.extract_strided_slice %225 {offsets = [0, 3], sizes = [16, 3], strides = [1, 1]} : vector<16x6xf32> to vector<16x3xf32>
    %233 = arith.mulf %231, %232 : vector<16x3xf32>
    %234 = arith.addf %233, %211 : vector<16x3xf32>
    %cst_123 = arith.constant dense<0.000000e+00> : vector<16xf32>
    %235 = vector.multi_reduction <add>, %234, %cst_123 [1] : vector<16x3xf32> to vector<16xf32>
    %236 = vector.shape_cast %235 : vector<16xf32> to vector<16x1xf32>
    %cst_124 = arith.constant 3.000000e+00 : f32
    %237 = vector.broadcast %cst_124 : f32 to vector<16x1xf32>
    %238 = arith.divf %236, %237 : vector<16x1xf32>
    %239 = vector.broadcast %238 : vector<16x1xf32> to vector<16x3xf32>
    %240 = arith.subf %234, %239 : vector<16x3xf32>
    %241 = arith.mulf %240, %240 : vector<16x3xf32>
    %cst_125 = arith.constant dense<0.000000e+00> : vector<16xf32>
    %242 = vector.multi_reduction <add>, %241, %cst_125 [1] : vector<16x3xf32> to vector<16xf32>
    %243 = vector.shape_cast %242 : vector<16xf32> to vector<16x1xf32>
    %cst_126 = arith.constant 3.000000e+00 : f32
    %244 = vector.broadcast %cst_126 : f32 to vector<16x1xf32>
    %245 = arith.divf %243, %244 : vector<16x1xf32>
    %246 = vector.broadcast %238 : vector<16x1xf32> to vector<16x3xf32>
    %247 = arith.subf %234, %246 : vector<16x3xf32>
    %cst_127 = arith.constant 9.99999974E-6 : f32
    %248 = vector.broadcast %cst_127 : f32 to vector<16x1xf32>
    %249 = arith.addf %245, %248 : vector<16x1xf32>
    %250 = math.rsqrt %249 : vector<16x1xf32>
    %251 = vector.broadcast %250 : vector<16x1xf32> to vector<16x3xf32>
    %252 = arith.mulf %247, %251 : vector<16x3xf32>
    %253 = vector.broadcast %204 : vector<1x3xf32> to vector<16x3xf32>
    %254 = arith.mulf %252, %253 : vector<16x3xf32>
    %255 = vector.broadcast %205 : vector<1x3xf32> to vector<16x3xf32>
    %256 = arith.addf %254, %255 : vector<16x3xf32>
    %c0_128 = arith.constant 0 : index
    %c0_129 = arith.constant 0 : index
    %257 = vector.load %arg41[%c0_128, %c0_129] : memref<32x64xf32, #tpu.memory_space<vmem>>, vector<32x64xf32>
    %c0_130 = arith.constant 0 : index
    %c0_131 = arith.constant 0 : index
    %258 = vector.load %arg42[%c0_130, %c0_131] : memref<1x64xf32, #tpu.memory_space<vmem>>, vector<1x64xf32>
    %c0_132 = arith.constant 0 : index
    %c0_133 = arith.constant 0 : index
    %259 = vector.load %arg43[%c0_132, %c0_133] : memref<32x32xf32, #tpu.memory_space<vmem>>, vector<32x32xf32>
    %c0_134 = arith.constant 0 : index
    %c0_135 = arith.constant 0 : index
    %260 = vector.load %arg44[%c0_134, %c0_135] : memref<1x32xf32, #tpu.memory_space<vmem>>, vector<1x32xf32>
    %c0_136 = arith.constant 0 : index
    %c0_137 = arith.constant 0 : index
    %261 = vector.load %arg45[%c0_136, %c0_137] : memref<32x64xf32, #tpu.memory_space<vmem>>, vector<32x64xf32>
    %c0_138 = arith.constant 0 : index
    %c0_139 = arith.constant 0 : index
    %262 = vector.load %arg46[%c0_138, %c0_139] : memref<1x64xf32, #tpu.memory_space<vmem>>, vector<1x64xf32>
    %c0_140 = arith.constant 0 : index
    %c0_141 = arith.constant 0 : index
    %263 = vector.load %arg47[%c0_140, %c0_141] : memref<1x32xf32, #tpu.memory_space<vmem>>, vector<1x32xf32>
    %c0_142 = arith.constant 0 : index
    %c0_143 = arith.constant 0 : index
    %264 = vector.load %arg48[%c0_142, %c0_143] : memref<1x32xf32, #tpu.memory_space<vmem>>, vector<1x32xf32>
    %cst_144 = arith.constant dense<0.000000e+00> : vector<48x64xf32>
    %265 = tpu.matmul %195, %257, %cst_144 {dimension_numbers = #tpu.dot_dimension_numbers<[1], [0], [0], [1], [0, 0, 1, 1], [], []>} : vector<48x32xf32>, vector<32x64xf32>, vector<48x64xf32> -> vector<48x64xf32>
    %266 = vector.broadcast %258 : vector<1x64xf32> to vector<48x64xf32>
    %267 = arith.addf %265, %266 : vector<48x64xf32>
    %268 = vector.extract_strided_slice %267 {offsets = [0, 0], sizes = [48, 32], strides = [1, 1]} : vector<48x64xf32> to vector<48x32xf32>
    %269 = vector.extract_strided_slice %267 {offsets = [0, 32], sizes = [48, 32], strides = [1, 1]} : vector<48x64xf32> to vector<48x32xf32>
    %cst_145 = arith.constant 0.000000e+00 : f32
    %270 = vector.broadcast %cst_145 : f32 to vector<48x32xf32>
    %271 = arith.cmpf ogt, %269, %270 : vector<48x32xf32>
    %272 = math.exp %269 : vector<48x32xf32>
    %cst_146 = arith.constant 1.000000e+00 : f32
    %273 = vector.broadcast %cst_146 : f32 to vector<48x32xf32>
    %274 = arith.subf %272, %273 : vector<48x32xf32>
    %275 = arith.select %271, %269, %274 : vector<48x32xi1>, vector<48x32xf32>
    %cst_147 = arith.constant dense<0.000000e+00> : vector<48x32xf32>
    %276 = tpu.matmul %275, %259, %cst_147 {dimension_numbers = #tpu.dot_dimension_numbers<[1], [0], [0], [1], [0, 0, 1, 1], [], []>} : vector<48x32xf32>, vector<32x32xf32>, vector<48x32xf32> -> vector<48x32xf32>
    %277 = vector.broadcast %260 : vector<1x32xf32> to vector<48x32xf32>
    %278 = arith.addf %276, %277 : vector<48x32xf32>
    %cst_148 = arith.constant dense<0.000000e+00> : vector<48x64xf32>
    %279 = tpu.matmul %278, %261, %cst_148 {dimension_numbers = #tpu.dot_dimension_numbers<[1], [0], [0], [1], [0, 0, 1, 1], [], []>} : vector<48x32xf32>, vector<32x64xf32>, vector<48x64xf32> -> vector<48x64xf32>
    %280 = vector.broadcast %262 : vector<1x64xf32> to vector<48x64xf32>
    %281 = arith.addf %279, %280 : vector<48x64xf32>
    %282 = vector.extract_strided_slice %281 {offsets = [0, 0], sizes = [48, 32], strides = [1, 1]} : vector<48x64xf32> to vector<48x32xf32>
    %283 = arith.negf %282 : vector<48x32xf32>
    %284 = math.exp %283 : vector<48x32xf32>
    %cst_149 = arith.constant 1.000000e+00 : f32
    %285 = vector.broadcast %cst_149 : f32 to vector<48x32xf32>
    %286 = arith.addf %285, %284 : vector<48x32xf32>
    %287 = arith.divf %285, %286 : vector<48x32xf32>
    %288 = vector.extract_strided_slice %281 {offsets = [0, 32], sizes = [48, 32], strides = [1, 1]} : vector<48x64xf32> to vector<48x32xf32>
    %289 = arith.mulf %287, %288 : vector<48x32xf32>
    %290 = arith.addf %289, %268 : vector<48x32xf32>
    %cst_150 = arith.constant dense<0.000000e+00> : vector<48xf32>
    %291 = vector.multi_reduction <add>, %290, %cst_150 [1] : vector<48x32xf32> to vector<48xf32>
    %292 = vector.shape_cast %291 : vector<48xf32> to vector<48x1xf32>
    %cst_151 = arith.constant 3.200000e+01 : f32
    %293 = vector.broadcast %cst_151 : f32 to vector<48x1xf32>
    %294 = arith.divf %292, %293 : vector<48x1xf32>
    %295 = vector.broadcast %294 : vector<48x1xf32> to vector<48x32xf32>
    %296 = arith.subf %290, %295 : vector<48x32xf32>
    %297 = arith.mulf %296, %296 : vector<48x32xf32>
    %cst_152 = arith.constant dense<0.000000e+00> : vector<48xf32>
    %298 = vector.multi_reduction <add>, %297, %cst_152 [1] : vector<48x32xf32> to vector<48xf32>
    %299 = vector.shape_cast %298 : vector<48xf32> to vector<48x1xf32>
    %cst_153 = arith.constant 3.200000e+01 : f32
    %300 = vector.broadcast %cst_153 : f32 to vector<48x1xf32>
    %301 = arith.divf %299, %300 : vector<48x1xf32>
    %302 = vector.broadcast %294 : vector<48x1xf32> to vector<48x32xf32>
    %303 = arith.subf %290, %302 : vector<48x32xf32>
    %cst_154 = arith.constant 9.99999974E-6 : f32
    %304 = vector.broadcast %cst_154 : f32 to vector<48x1xf32>
    %305 = arith.addf %301, %304 : vector<48x1xf32>
    %306 = math.rsqrt %305 : vector<48x1xf32>
    %307 = vector.broadcast %306 : vector<48x1xf32> to vector<48x32xf32>
    %308 = arith.mulf %303, %307 : vector<48x32xf32>
    %309 = vector.broadcast %263 : vector<1x32xf32> to vector<48x32xf32>
    %310 = arith.mulf %308, %309 : vector<48x32xf32>
    %311 = vector.broadcast %264 : vector<1x32xf32> to vector<48x32xf32>
    %312 = arith.addf %310, %311 : vector<48x32xf32>
    %313 = vector.shape_cast %256 : vector<16x3xf32> to vector<2x8x3xf32>
    %cst_155 = arith.constant dense<0xFF800000> : vector<2x3xf32>
    %314 = vector.multi_reduction <maximumf>, %313, %cst_155 [1] : vector<2x8x3xf32> to vector<2x3xf32>
    %315 = vector.shape_cast %314 : vector<2x3xf32> to vector<2x1x3xf32>
    %316 = vector.broadcast %315 : vector<2x1x3xf32> to vector<2x8x3xf32>
    %317 = arith.subf %313, %316 : vector<2x8x3xf32>
    %318 = math.exp %317 : vector<2x8x3xf32>
    %cst_156 = arith.constant dense<0.000000e+00> : vector<2x3xf32>
    %319 = vector.multi_reduction <add>, %318, %cst_156 [1] : vector<2x8x3xf32> to vector<2x3xf32>
    %320 = vector.shape_cast %319 : vector<2x3xf32> to vector<2x1x3xf32>
    %321 = tpu.reciprocal %320 {approx = true} : vector<2x1x3xf32> -> vector<2x1x3xf32>
    %322 = vector.broadcast %321 : vector<2x1x3xf32> to vector<2x8x3xf32>
    %323 = arith.mulf %318, %322 : vector<2x8x3xf32>
    %324 = vector.shape_cast %323 : vector<2x8x3xf32> to vector<2x8x3x1xf32>
    %325 = vector.shape_cast %312 : vector<48x32xf32> to vector<2x8x3x32xf32>
    %326 = vector.broadcast %324 : vector<2x8x3x1xf32> to vector<2x8x3x32xf32>
    %327 = arith.mulf %326, %325 : vector<2x8x3x32xf32>
    %cst_157 = arith.constant dense<0.000000e+00> : vector<2x8x32xf32>
    %328 = vector.multi_reduction <add>, %327, %cst_157 [2] : vector<2x8x3x32xf32> to vector<2x8x32xf32>
    %c0_158 = arith.constant 0 : index
    %c0_159 = arith.constant 0 : index
    %329 = vector.load %arg4[%c0_158, %c0_159] : memref<8x160xf32, #tpu.memory_space<vmem>>, vector<8x160xf32>
    %c0_160 = arith.constant 0 : index
    %c0_161 = arith.constant 0 : index
    %330 = vector.load %arg5[%c0_160, %c0_161] : memref<40x32xf32, #tpu.memory_space<vmem>>, vector<40x32xf32>
    %c0_162 = arith.constant 0 : index
    %c0_163 = arith.constant 0 : index
    %331 = vector.load %arg7[%c0_162, %c0_163] : memref<8x2xf32, #tpu.memory_space<vmem>>, vector<8x2xf32>
    %c0_164 = arith.constant 0 : index
    %c0_165 = arith.constant 0 : index
    %332 = vector.load %arg49[%c0_164, %c0_165] : memref<160x37xf32, #tpu.memory_space<vmem>>, vector<160x37xf32>
    %c0_166 = arith.constant 0 : index
    %c0_167 = arith.constant 0 : index
    %333 = vector.load %arg50[%c0_166, %c0_167] : memref<1x37xf32, #tpu.memory_space<vmem>>, vector<1x37xf32>
    %c0_168 = arith.constant 0 : index
    %c0_169 = arith.constant 0 : index
    %334 = vector.load %arg51[%c0_168, %c0_169] : memref<32x32xf32, #tpu.memory_space<vmem>>, vector<32x32xf32>
    %c0_170 = arith.constant 0 : index
    %c0_171 = arith.constant 0 : index
    %335 = vector.load %arg52[%c0_170, %c0_171] : memref<32x32xf32, #tpu.memory_space<vmem>>, vector<32x32xf32>
    %c0_172 = arith.constant 0 : index
    %c0_173 = arith.constant 0 : index
    %336 = vector.load %arg53[%c0_172, %c0_173] : memref<1x32xf32, #tpu.memory_space<vmem>>, vector<1x32xf32>
    %c0_174 = arith.constant 0 : index
    %c0_175 = arith.constant 0 : index
    %337 = vector.load %arg54[%c0_174, %c0_175] : memref<32x10xf32, #tpu.memory_space<vmem>>, vector<32x10xf32>
    %c0_176 = arith.constant 0 : index
    %c0_177 = arith.constant 0 : index
    %338 = vector.load %arg55[%c0_176, %c0_177] : memref<1x10xf32, #tpu.memory_space<vmem>>, vector<1x10xf32>
    %c0_178 = arith.constant 0 : index
    %c0_179 = arith.constant 0 : index
    %339 = vector.load %arg56[%c0_178, %c0_179] : memref<1x5xf32, #tpu.memory_space<vmem>>, vector<1x5xf32>
    %c0_180 = arith.constant 0 : index
    %c0_181 = arith.constant 0 : index
    %340 = vector.load %arg57[%c0_180, %c0_181] : memref<1x5xf32, #tpu.memory_space<vmem>>, vector<1x5xf32>
    %cst_182 = arith.constant dense<0.000000e+00> : vector<2x32xf32>
    %341 = tpu.matmul %187, %334, %cst_182 {dimension_numbers = #tpu.dot_dimension_numbers<[1], [0], [0], [1], [0, 0, 1, 1], [], []>} : vector<2x32xf32>, vector<32x32xf32>, vector<2x32xf32> -> vector<2x32xf32>
    %cst_183 = arith.constant dense<0.000000e+00> : vector<8x32xf32>
    %342 = tpu.matmul %331, %341, %cst_183 {dimension_numbers = #tpu.dot_dimension_numbers<[1], [0], [0], [1], [0, 0, 1, 1], [], []>} : vector<8x2xf32>, vector<2x32xf32>, vector<8x32xf32> -> vector<8x32xf32>
    %cst_184 = arith.constant dense<0.000000e+00> : vector<8x37xf32>
    %343 = tpu.matmul %329, %332, %cst_184 {dimension_numbers = #tpu.dot_dimension_numbers<[1], [0], [0], [1], [0, 0, 1, 1], [], []>} : vector<8x160xf32>, vector<160x37xf32>, vector<8x37xf32> -> vector<8x37xf32>
    %344 = vector.broadcast %333 : vector<1x37xf32> to vector<8x37xf32>
    %345 = arith.addf %343, %344 : vector<8x37xf32>
    %346 = vector.extract_strided_slice %345 {offsets = [0, 0], sizes = [8, 5], strides = [1, 1]} : vector<8x37xf32> to vector<8x5xf32>
    %347 = vector.extract_strided_slice %345 {offsets = [0, 5], sizes = [8, 32], strides = [1, 1]} : vector<8x37xf32> to vector<8x32xf32>
    %348 = arith.addf %347, %342 : vector<8x32xf32>
    %cst_185 = arith.constant 0.000000e+00 : f32
    %349 = vector.broadcast %cst_185 : f32 to vector<8x32xf32>
    %350 = arith.cmpf ogt, %348, %349 : vector<8x32xf32>
    %351 = math.exp %348 : vector<8x32xf32>
    %cst_186 = arith.constant 1.000000e+00 : f32
    %352 = vector.broadcast %cst_186 : f32 to vector<8x32xf32>
    %353 = arith.subf %351, %352 : vector<8x32xf32>
    %354 = arith.select %350, %348, %353 : vector<8x32xi1>, vector<8x32xf32>
    %cst_187 = arith.constant dense<0.000000e+00> : vector<8x32xf32>
    %355 = tpu.matmul %354, %335, %cst_187 {dimension_numbers = #tpu.dot_dimension_numbers<[1], [0], [0], [1], [0, 0, 1, 1], [], []>} : vector<8x32xf32>, vector<32x32xf32>, vector<8x32xf32> -> vector<8x32xf32>
    %356 = vector.broadcast %336 : vector<1x32xf32> to vector<8x32xf32>
    %357 = arith.addf %355, %356 : vector<8x32xf32>
    %cst_188 = arith.constant dense<0.000000e+00> : vector<8x10xf32>
    %358 = tpu.matmul %357, %337, %cst_188 {dimension_numbers = #tpu.dot_dimension_numbers<[1], [0], [0], [1], [0, 0, 1, 1], [], []>} : vector<8x32xf32>, vector<32x10xf32>, vector<8x10xf32> -> vector<8x10xf32>
    %359 = vector.broadcast %338 : vector<1x10xf32> to vector<8x10xf32>
    %360 = arith.addf %358, %359 : vector<8x10xf32>
    %361 = vector.extract_strided_slice %360 {offsets = [0, 0], sizes = [8, 5], strides = [1, 1]} : vector<8x10xf32> to vector<8x5xf32>
    %362 = arith.negf %361 : vector<8x5xf32>
    %363 = math.exp %362 : vector<8x5xf32>
    %cst_189 = arith.constant 1.000000e+00 : f32
    %364 = vector.broadcast %cst_189 : f32 to vector<8x5xf32>
    %365 = arith.addf %364, %363 : vector<8x5xf32>
    %366 = arith.divf %364, %365 : vector<8x5xf32>
    %367 = vector.extract_strided_slice %360 {offsets = [0, 5], sizes = [8, 5], strides = [1, 1]} : vector<8x10xf32> to vector<8x5xf32>
    %368 = arith.mulf %366, %367 : vector<8x5xf32>
    %369 = arith.addf %368, %346 : vector<8x5xf32>
    %cst_190 = arith.constant dense<0.000000e+00> : vector<8xf32>
    %370 = vector.multi_reduction <add>, %369, %cst_190 [1] : vector<8x5xf32> to vector<8xf32>
    %371 = vector.shape_cast %370 : vector<8xf32> to vector<8x1xf32>
    %cst_191 = arith.constant 5.000000e+00 : f32
    %372 = vector.broadcast %cst_191 : f32 to vector<8x1xf32>
    %373 = arith.divf %371, %372 : vector<8x1xf32>
    %374 = vector.broadcast %373 : vector<8x1xf32> to vector<8x5xf32>
    %375 = arith.subf %369, %374 : vector<8x5xf32>
    %376 = arith.mulf %375, %375 : vector<8x5xf32>
    %cst_192 = arith.constant dense<0.000000e+00> : vector<8xf32>
    %377 = vector.multi_reduction <add>, %376, %cst_192 [1] : vector<8x5xf32> to vector<8xf32>
    %378 = vector.shape_cast %377 : vector<8xf32> to vector<8x1xf32>
    %cst_193 = arith.constant 5.000000e+00 : f32
    %379 = vector.broadcast %cst_193 : f32 to vector<8x1xf32>
    %380 = arith.divf %378, %379 : vector<8x1xf32>
    %381 = vector.broadcast %373 : vector<8x1xf32> to vector<8x5xf32>
    %382 = arith.subf %369, %381 : vector<8x5xf32>
    %cst_194 = arith.constant 9.99999974E-6 : f32
    %383 = vector.broadcast %cst_194 : f32 to vector<8x1xf32>
    %384 = arith.addf %380, %383 : vector<8x1xf32>
    %385 = math.rsqrt %384 : vector<8x1xf32>
    %386 = vector.broadcast %385 : vector<8x1xf32> to vector<8x5xf32>
    %387 = arith.mulf %382, %386 : vector<8x5xf32>
    %388 = vector.broadcast %339 : vector<1x5xf32> to vector<8x5xf32>
    %389 = arith.mulf %387, %388 : vector<8x5xf32>
    %390 = vector.broadcast %340 : vector<1x5xf32> to vector<8x5xf32>
    %391 = arith.addf %389, %390 : vector<8x5xf32>
    %c0_195 = arith.constant 0 : index
    %c0_196 = arith.constant 0 : index
    %392 = vector.load %arg58[%c0_195, %c0_196] : memref<32x64xf32, #tpu.memory_space<vmem>>, vector<32x64xf32>
    %c0_197 = arith.constant 0 : index
    %c0_198 = arith.constant 0 : index
    %393 = vector.load %arg59[%c0_197, %c0_198] : memref<1x64xf32, #tpu.memory_space<vmem>>, vector<1x64xf32>
    %c0_199 = arith.constant 0 : index
    %c0_200 = arith.constant 0 : index
    %394 = vector.load %arg60[%c0_199, %c0_200] : memref<32x32xf32, #tpu.memory_space<vmem>>, vector<32x32xf32>
    %c0_201 = arith.constant 0 : index
    %c0_202 = arith.constant 0 : index
    %395 = vector.load %arg61[%c0_201, %c0_202] : memref<1x32xf32, #tpu.memory_space<vmem>>, vector<1x32xf32>
    %c0_203 = arith.constant 0 : index
    %c0_204 = arith.constant 0 : index
    %396 = vector.load %arg62[%c0_203, %c0_204] : memref<32x64xf32, #tpu.memory_space<vmem>>, vector<32x64xf32>
    %c0_205 = arith.constant 0 : index
    %c0_206 = arith.constant 0 : index
    %397 = vector.load %arg63[%c0_205, %c0_206] : memref<1x64xf32, #tpu.memory_space<vmem>>, vector<1x64xf32>
    %c0_207 = arith.constant 0 : index
    %c0_208 = arith.constant 0 : index
    %398 = vector.load %arg64[%c0_207, %c0_208] : memref<1x32xf32, #tpu.memory_space<vmem>>, vector<1x32xf32>
    %c0_209 = arith.constant 0 : index
    %c0_210 = arith.constant 0 : index
    %399 = vector.load %arg65[%c0_209, %c0_210] : memref<1x32xf32, #tpu.memory_space<vmem>>, vector<1x32xf32>
    %cst_211 = arith.constant dense<0.000000e+00> : vector<40x64xf32>
    %400 = tpu.matmul %330, %392, %cst_211 {dimension_numbers = #tpu.dot_dimension_numbers<[1], [0], [0], [1], [0, 0, 1, 1], [], []>} : vector<40x32xf32>, vector<32x64xf32>, vector<40x64xf32> -> vector<40x64xf32>
    %401 = vector.broadcast %393 : vector<1x64xf32> to vector<40x64xf32>
    %402 = arith.addf %400, %401 : vector<40x64xf32>
    %403 = vector.extract_strided_slice %402 {offsets = [0, 0], sizes = [40, 32], strides = [1, 1]} : vector<40x64xf32> to vector<40x32xf32>
    %404 = vector.extract_strided_slice %402 {offsets = [0, 32], sizes = [40, 32], strides = [1, 1]} : vector<40x64xf32> to vector<40x32xf32>
    %cst_212 = arith.constant 0.000000e+00 : f32
    %405 = vector.broadcast %cst_212 : f32 to vector<40x32xf32>
    %406 = arith.cmpf ogt, %404, %405 : vector<40x32xf32>
    %407 = math.exp %404 : vector<40x32xf32>
    %cst_213 = arith.constant 1.000000e+00 : f32
    %408 = vector.broadcast %cst_213 : f32 to vector<40x32xf32>
    %409 = arith.subf %407, %408 : vector<40x32xf32>
    %410 = arith.select %406, %404, %409 : vector<40x32xi1>, vector<40x32xf32>
    %cst_214 = arith.constant dense<0.000000e+00> : vector<40x32xf32>
    %411 = tpu.matmul %410, %394, %cst_214 {dimension_numbers = #tpu.dot_dimension_numbers<[1], [0], [0], [1], [0, 0, 1, 1], [], []>} : vector<40x32xf32>, vector<32x32xf32>, vector<40x32xf32> -> vector<40x32xf32>
    %412 = vector.broadcast %395 : vector<1x32xf32> to vector<40x32xf32>
    %413 = arith.addf %411, %412 : vector<40x32xf32>
    %cst_215 = arith.constant dense<0.000000e+00> : vector<40x64xf32>
    %414 = tpu.matmul %413, %396, %cst_215 {dimension_numbers = #tpu.dot_dimension_numbers<[1], [0], [0], [1], [0, 0, 1, 1], [], []>} : vector<40x32xf32>, vector<32x64xf32>, vector<40x64xf32> -> vector<40x64xf32>
    %415 = vector.broadcast %397 : vector<1x64xf32> to vector<40x64xf32>
    %416 = arith.addf %414, %415 : vector<40x64xf32>
    %417 = vector.extract_strided_slice %416 {offsets = [0, 0], sizes = [40, 32], strides = [1, 1]} : vector<40x64xf32> to vector<40x32xf32>
    %418 = arith.negf %417 : vector<40x32xf32>
    %419 = math.exp %418 : vector<40x32xf32>
    %cst_216 = arith.constant 1.000000e+00 : f32
    %420 = vector.broadcast %cst_216 : f32 to vector<40x32xf32>
    %421 = arith.addf %420, %419 : vector<40x32xf32>
    %422 = arith.divf %420, %421 : vector<40x32xf32>
    %423 = vector.extract_strided_slice %416 {offsets = [0, 32], sizes = [40, 32], strides = [1, 1]} : vector<40x64xf32> to vector<40x32xf32>
    %424 = arith.mulf %422, %423 : vector<40x32xf32>
    %425 = arith.addf %424, %403 : vector<40x32xf32>
    %cst_217 = arith.constant dense<0.000000e+00> : vector<40xf32>
    %426 = vector.multi_reduction <add>, %425, %cst_217 [1] : vector<40x32xf32> to vector<40xf32>
    %427 = vector.shape_cast %426 : vector<40xf32> to vector<40x1xf32>
    %cst_218 = arith.constant 3.200000e+01 : f32
    %428 = vector.broadcast %cst_218 : f32 to vector<40x1xf32>
    %429 = arith.divf %427, %428 : vector<40x1xf32>
    %430 = vector.broadcast %429 : vector<40x1xf32> to vector<40x32xf32>
    %431 = arith.subf %425, %430 : vector<40x32xf32>
    %432 = arith.mulf %431, %431 : vector<40x32xf32>
    %cst_219 = arith.constant dense<0.000000e+00> : vector<40xf32>
    %433 = vector.multi_reduction <add>, %432, %cst_219 [1] : vector<40x32xf32> to vector<40xf32>
    %434 = vector.shape_cast %433 : vector<40xf32> to vector<40x1xf32>
    %cst_220 = arith.constant 3.200000e+01 : f32
    %435 = vector.broadcast %cst_220 : f32 to vector<40x1xf32>
    %436 = arith.divf %434, %435 : vector<40x1xf32>
    %437 = vector.broadcast %429 : vector<40x1xf32> to vector<40x32xf32>
    %438 = arith.subf %425, %437 : vector<40x32xf32>
    %cst_221 = arith.constant 9.99999974E-6 : f32
    %439 = vector.broadcast %cst_221 : f32 to vector<40x1xf32>
    %440 = arith.addf %436, %439 : vector<40x1xf32>
    %441 = math.rsqrt %440 : vector<40x1xf32>
    %442 = vector.broadcast %441 : vector<40x1xf32> to vector<40x32xf32>
    %443 = arith.mulf %438, %442 : vector<40x32xf32>
    %444 = vector.broadcast %398 : vector<1x32xf32> to vector<40x32xf32>
    %445 = arith.mulf %443, %444 : vector<40x32xf32>
    %446 = vector.broadcast %399 : vector<1x32xf32> to vector<40x32xf32>
    %447 = arith.addf %445, %446 : vector<40x32xf32>
    %448 = vector.shape_cast %391 : vector<8x5xf32> to vector<2x4x5xf32>
    %cst_222 = arith.constant dense<0xFF800000> : vector<2x5xf32>
    %449 = vector.multi_reduction <maximumf>, %448, %cst_222 [1] : vector<2x4x5xf32> to vector<2x5xf32>
    %450 = vector.shape_cast %449 : vector<2x5xf32> to vector<2x1x5xf32>
    %451 = vector.broadcast %450 : vector<2x1x5xf32> to vector<2x4x5xf32>
    %452 = arith.subf %448, %451 : vector<2x4x5xf32>
    %453 = math.exp %452 : vector<2x4x5xf32>
    %cst_223 = arith.constant dense<0.000000e+00> : vector<2x5xf32>
    %454 = vector.multi_reduction <add>, %453, %cst_223 [1] : vector<2x4x5xf32> to vector<2x5xf32>
    %455 = vector.shape_cast %454 : vector<2x5xf32> to vector<2x1x5xf32>
    %456 = tpu.reciprocal %455 {approx = true} : vector<2x1x5xf32> -> vector<2x1x5xf32>
    %457 = vector.broadcast %456 : vector<2x1x5xf32> to vector<2x4x5xf32>
    %458 = arith.mulf %453, %457 : vector<2x4x5xf32>
    %459 = vector.shape_cast %458 : vector<2x4x5xf32> to vector<2x4x5x1xf32>
    %460 = vector.shape_cast %447 : vector<40x32xf32> to vector<2x4x5x32xf32>
    %461 = vector.broadcast %459 : vector<2x4x5x1xf32> to vector<2x4x5x32xf32>
    %462 = arith.mulf %461, %460 : vector<2x4x5x32xf32>
    %cst_224 = arith.constant dense<0.000000e+00> : vector<2x4x32xf32>
    %463 = vector.multi_reduction <add>, %462, %cst_224 [2] : vector<2x4x5x32xf32> to vector<2x4x32xf32>
    %c0_225 = arith.constant 0 : index
    %c0_226 = arith.constant 0 : index
    %464 = vector.load %arg66[%c0_225, %c0_226] : memref<32x128xf32, #tpu.memory_space<vmem>>, vector<32x128xf32>
    %c0_227 = arith.constant 0 : index
    %c0_228 = arith.constant 0 : index
    %465 = vector.load %arg67[%c0_227, %c0_228] : memref<32x128xf32, #tpu.memory_space<vmem>>, vector<32x128xf32>
    %c0_229 = arith.constant 0 : index
    %c0_230 = arith.constant 0 : index
    %466 = vector.load %arg68[%c0_229, %c0_230] : memref<1x128xf32, #tpu.memory_space<vmem>>, vector<1x128xf32>
    %c0_231 = arith.constant 0 : index
    %c0_232 = arith.constant 0 : index
    %467 = vector.load %arg69[%c0_231, %c0_232] : memref<32x128xf32, #tpu.memory_space<vmem>>, vector<32x128xf32>
    %c0_233 = arith.constant 0 : index
    %c0_234 = arith.constant 0 : index
    %468 = vector.load %arg70[%c0_233, %c0_234] : memref<32x128xf32, #tpu.memory_space<vmem>>, vector<32x128xf32>
    %c0_235 = arith.constant 0 : index
    %c0_236 = arith.constant 0 : index
    %469 = vector.load %arg71[%c0_235, %c0_236] : memref<1x128xf32, #tpu.memory_space<vmem>>, vector<1x128xf32>
    %c0_237 = arith.constant 0 : index
    %c0_238 = arith.constant 0 : index
    %470 = vector.load %arg72[%c0_237, %c0_238] : memref<32x64xf32, #tpu.memory_space<vmem>>, vector<32x64xf32>
    %c0_239 = arith.constant 0 : index
    %c0_240 = arith.constant 0 : index
    %471 = vector.load %arg73[%c0_239, %c0_240] : memref<1x64xf32, #tpu.memory_space<vmem>>, vector<1x64xf32>
    %c0_241 = arith.constant 0 : index
    %c0_242 = arith.constant 0 : index
    %472 = vector.load %arg74[%c0_241, %c0_242] : memref<1x32xf32, #tpu.memory_space<vmem>>, vector<1x32xf32>
    %c0_243 = arith.constant 0 : index
    %c0_244 = arith.constant 0 : index
    %473 = vector.load %arg75[%c0_243, %c0_244] : memref<1x32xf32, #tpu.memory_space<vmem>>, vector<1x32xf32>
    %474 = vector.shape_cast %328 : vector<2x8x32xf32> to vector<16x32xf32>
    %cst_245 = arith.constant dense<0.000000e+00> : vector<16x128xf32>
    %475 = tpu.matmul %474, %464, %cst_245 {dimension_numbers = #tpu.dot_dimension_numbers<[1], [0], [0], [1], [0, 0, 1, 1], [], []>} : vector<16x32xf32>, vector<32x128xf32>, vector<16x128xf32> -> vector<16x128xf32>
    %476 = vector.broadcast %466 : vector<1x128xf32> to vector<16x128xf32>
    %477 = arith.addf %475, %476 : vector<16x128xf32>
    %478 = vector.shape_cast %477 : vector<16x128xf32> to vector<2x8x128xf32>
    %479 = vector.extract_strided_slice %478 {offsets = [0, 0, 0], sizes = [2, 1, 128], strides = [1, 1, 1]} : vector<2x8x128xf32> to vector<2x1x128xf32>
    %480 = vector.shape_cast %479 : vector<2x1x128xf32> to vector<2x128xf32>
    %cst_246 = arith.constant dense<0.000000e+00> : vector<2x128xf32>
    %481 = tpu.matmul %191, %465, %cst_246 {dimension_numbers = #tpu.dot_dimension_numbers<[1], [0], [0], [1], [0, 0, 1, 1], [], []>} : vector<2x32xf32>, vector<32x128xf32>, vector<2x128xf32> -> vector<2x128xf32>
    %482 = arith.addf %480, %481 : vector<2x128xf32>
    %483 = arith.negf %482 : vector<2x128xf32>
    %484 = math.exp %483 : vector<2x128xf32>
    %cst_247 = arith.constant 1.000000e+00 : f32
    %485 = vector.broadcast %cst_247 : f32 to vector<2x128xf32>
    %486 = arith.addf %485, %484 : vector<2x128xf32>
    %487 = arith.divf %485, %486 : vector<2x128xf32>
    %488 = vector.extract_strided_slice %487 {offsets = [0, 0], sizes = [2, 32], strides = [1, 1]} : vector<2x128xf32> to vector<2x32xf32>
    %489 = vector.extract_strided_slice %487 {offsets = [0, 32], sizes = [2, 32], strides = [1, 1]} : vector<2x128xf32> to vector<2x32xf32>
    %490 = vector.extract_strided_slice %487 {offsets = [0, 96], sizes = [2, 32], strides = [1, 1]} : vector<2x128xf32> to vector<2x32xf32>
    %491 = vector.extract_strided_slice %482 {offsets = [0, 64], sizes = [2, 32], strides = [1, 1]} : vector<2x128xf32> to vector<2x32xf32>
    %492 = math.tanh %491 : vector<2x32xf32>
    %493 = arith.mulf %489, %189 : vector<2x32xf32>
    %494 = arith.mulf %488, %492 : vector<2x32xf32>
    %495 = arith.addf %493, %494 : vector<2x32xf32>
    %496 = math.tanh %495 : vector<2x32xf32>
    %497 = arith.mulf %490, %496 : vector<2x32xf32>
    %498 = vector.shape_cast %497 : vector<2x32xf32> to vector<2x1x32xf32>
    %499 = vector.extract_strided_slice %478 {offsets = [0, 1, 0], sizes = [2, 1, 128], strides = [1, 1, 1]} : vector<2x8x128xf32> to vector<2x1x128xf32>
    %500 = vector.shape_cast %499 : vector<2x1x128xf32> to vector<2x128xf32>
    %cst_248 = arith.constant dense<0.000000e+00> : vector<2x128xf32>
    %501 = tpu.matmul %497, %465, %cst_248 {dimension_numbers = #tpu.dot_dimension_numbers<[1], [0], [0], [1], [0, 0, 1, 1], [], []>} : vector<2x32xf32>, vector<32x128xf32>, vector<2x128xf32> -> vector<2x128xf32>
    %502 = arith.addf %500, %501 : vector<2x128xf32>
    %503 = arith.negf %502 : vector<2x128xf32>
    %504 = math.exp %503 : vector<2x128xf32>
    %cst_249 = arith.constant 1.000000e+00 : f32
    %505 = vector.broadcast %cst_249 : f32 to vector<2x128xf32>
    %506 = arith.addf %505, %504 : vector<2x128xf32>
    %507 = arith.divf %505, %506 : vector<2x128xf32>
    %508 = vector.extract_strided_slice %507 {offsets = [0, 0], sizes = [2, 32], strides = [1, 1]} : vector<2x128xf32> to vector<2x32xf32>
    %509 = vector.extract_strided_slice %507 {offsets = [0, 32], sizes = [2, 32], strides = [1, 1]} : vector<2x128xf32> to vector<2x32xf32>
    %510 = vector.extract_strided_slice %507 {offsets = [0, 96], sizes = [2, 32], strides = [1, 1]} : vector<2x128xf32> to vector<2x32xf32>
    %511 = vector.extract_strided_slice %502 {offsets = [0, 64], sizes = [2, 32], strides = [1, 1]} : vector<2x128xf32> to vector<2x32xf32>
    %512 = math.tanh %511 : vector<2x32xf32>
    %513 = arith.mulf %509, %495 : vector<2x32xf32>
    %514 = arith.mulf %508, %512 : vector<2x32xf32>
    %515 = arith.addf %513, %514 : vector<2x32xf32>
    %516 = math.tanh %515 : vector<2x32xf32>
    %517 = arith.mulf %510, %516 : vector<2x32xf32>
    %518 = vector.shape_cast %517 : vector<2x32xf32> to vector<2x1x32xf32>
    %519 = vector.extract_strided_slice %478 {offsets = [0, 2, 0], sizes = [2, 1, 128], strides = [1, 1, 1]} : vector<2x8x128xf32> to vector<2x1x128xf32>
    %520 = vector.shape_cast %519 : vector<2x1x128xf32> to vector<2x128xf32>
    %cst_250 = arith.constant dense<0.000000e+00> : vector<2x128xf32>
    %521 = tpu.matmul %517, %465, %cst_250 {dimension_numbers = #tpu.dot_dimension_numbers<[1], [0], [0], [1], [0, 0, 1, 1], [], []>} : vector<2x32xf32>, vector<32x128xf32>, vector<2x128xf32> -> vector<2x128xf32>
    %522 = arith.addf %520, %521 : vector<2x128xf32>
    %523 = arith.negf %522 : vector<2x128xf32>
    %524 = math.exp %523 : vector<2x128xf32>
    %cst_251 = arith.constant 1.000000e+00 : f32
    %525 = vector.broadcast %cst_251 : f32 to vector<2x128xf32>
    %526 = arith.addf %525, %524 : vector<2x128xf32>
    %527 = arith.divf %525, %526 : vector<2x128xf32>
    %528 = vector.extract_strided_slice %527 {offsets = [0, 0], sizes = [2, 32], strides = [1, 1]} : vector<2x128xf32> to vector<2x32xf32>
    %529 = vector.extract_strided_slice %527 {offsets = [0, 32], sizes = [2, 32], strides = [1, 1]} : vector<2x128xf32> to vector<2x32xf32>
    %530 = vector.extract_strided_slice %527 {offsets = [0, 96], sizes = [2, 32], strides = [1, 1]} : vector<2x128xf32> to vector<2x32xf32>
    %531 = vector.extract_strided_slice %522 {offsets = [0, 64], sizes = [2, 32], strides = [1, 1]} : vector<2x128xf32> to vector<2x32xf32>
    %532 = math.tanh %531 : vector<2x32xf32>
    %533 = arith.mulf %529, %515 : vector<2x32xf32>
    %534 = arith.mulf %528, %532 : vector<2x32xf32>
    %535 = arith.addf %533, %534 : vector<2x32xf32>
    %536 = math.tanh %535 : vector<2x32xf32>
    %537 = arith.mulf %530, %536 : vector<2x32xf32>
    %538 = vector.shape_cast %537 : vector<2x32xf32> to vector<2x1x32xf32>
    %539 = vector.extract_strided_slice %478 {offsets = [0, 3, 0], sizes = [2, 1, 128], strides = [1, 1, 1]} : vector<2x8x128xf32> to vector<2x1x128xf32>
    %540 = vector.shape_cast %539 : vector<2x1x128xf32> to vector<2x128xf32>
    %cst_252 = arith.constant dense<0.000000e+00> : vector<2x128xf32>
    %541 = tpu.matmul %537, %465, %cst_252 {dimension_numbers = #tpu.dot_dimension_numbers<[1], [0], [0], [1], [0, 0, 1, 1], [], []>} : vector<2x32xf32>, vector<32x128xf32>, vector<2x128xf32> -> vector<2x128xf32>
    %542 = arith.addf %540, %541 : vector<2x128xf32>
    %543 = arith.negf %542 : vector<2x128xf32>
    %544 = math.exp %543 : vector<2x128xf32>
    %cst_253 = arith.constant 1.000000e+00 : f32
    %545 = vector.broadcast %cst_253 : f32 to vector<2x128xf32>
    %546 = arith.addf %545, %544 : vector<2x128xf32>
    %547 = arith.divf %545, %546 : vector<2x128xf32>
    %548 = vector.extract_strided_slice %547 {offsets = [0, 0], sizes = [2, 32], strides = [1, 1]} : vector<2x128xf32> to vector<2x32xf32>
    %549 = vector.extract_strided_slice %547 {offsets = [0, 32], sizes = [2, 32], strides = [1, 1]} : vector<2x128xf32> to vector<2x32xf32>
    %550 = vector.extract_strided_slice %547 {offsets = [0, 96], sizes = [2, 32], strides = [1, 1]} : vector<2x128xf32> to vector<2x32xf32>
    %551 = vector.extract_strided_slice %542 {offsets = [0, 64], sizes = [2, 32], strides = [1, 1]} : vector<2x128xf32> to vector<2x32xf32>
    %552 = math.tanh %551 : vector<2x32xf32>
    %553 = arith.mulf %549, %535 : vector<2x32xf32>
    %554 = arith.mulf %548, %552 : vector<2x32xf32>
    %555 = arith.addf %553, %554 : vector<2x32xf32>
    %556 = math.tanh %555 : vector<2x32xf32>
    %557 = arith.mulf %550, %556 : vector<2x32xf32>
    %558 = vector.shape_cast %557 : vector<2x32xf32> to vector<2x1x32xf32>
    %559 = vector.extract_strided_slice %478 {offsets = [0, 4, 0], sizes = [2, 1, 128], strides = [1, 1, 1]} : vector<2x8x128xf32> to vector<2x1x128xf32>
    %560 = vector.shape_cast %559 : vector<2x1x128xf32> to vector<2x128xf32>
    %cst_254 = arith.constant dense<0.000000e+00> : vector<2x128xf32>
    %561 = tpu.matmul %557, %465, %cst_254 {dimension_numbers = #tpu.dot_dimension_numbers<[1], [0], [0], [1], [0, 0, 1, 1], [], []>} : vector<2x32xf32>, vector<32x128xf32>, vector<2x128xf32> -> vector<2x128xf32>
    %562 = arith.addf %560, %561 : vector<2x128xf32>
    %563 = arith.negf %562 : vector<2x128xf32>
    %564 = math.exp %563 : vector<2x128xf32>
    %cst_255 = arith.constant 1.000000e+00 : f32
    %565 = vector.broadcast %cst_255 : f32 to vector<2x128xf32>
    %566 = arith.addf %565, %564 : vector<2x128xf32>
    %567 = arith.divf %565, %566 : vector<2x128xf32>
    %568 = vector.extract_strided_slice %567 {offsets = [0, 0], sizes = [2, 32], strides = [1, 1]} : vector<2x128xf32> to vector<2x32xf32>
    %569 = vector.extract_strided_slice %567 {offsets = [0, 32], sizes = [2, 32], strides = [1, 1]} : vector<2x128xf32> to vector<2x32xf32>
    %570 = vector.extract_strided_slice %567 {offsets = [0, 96], sizes = [2, 32], strides = [1, 1]} : vector<2x128xf32> to vector<2x32xf32>
    %571 = vector.extract_strided_slice %562 {offsets = [0, 64], sizes = [2, 32], strides = [1, 1]} : vector<2x128xf32> to vector<2x32xf32>
    %572 = math.tanh %571 : vector<2x32xf32>
    %573 = arith.mulf %569, %555 : vector<2x32xf32>
    %574 = arith.mulf %568, %572 : vector<2x32xf32>
    %575 = arith.addf %573, %574 : vector<2x32xf32>
    %576 = math.tanh %575 : vector<2x32xf32>
    %577 = arith.mulf %570, %576 : vector<2x32xf32>
    %578 = vector.shape_cast %577 : vector<2x32xf32> to vector<2x1x32xf32>
    %579 = vector.extract_strided_slice %478 {offsets = [0, 5, 0], sizes = [2, 1, 128], strides = [1, 1, 1]} : vector<2x8x128xf32> to vector<2x1x128xf32>
    %580 = vector.shape_cast %579 : vector<2x1x128xf32> to vector<2x128xf32>
    %cst_256 = arith.constant dense<0.000000e+00> : vector<2x128xf32>
    %581 = tpu.matmul %577, %465, %cst_256 {dimension_numbers = #tpu.dot_dimension_numbers<[1], [0], [0], [1], [0, 0, 1, 1], [], []>} : vector<2x32xf32>, vector<32x128xf32>, vector<2x128xf32> -> vector<2x128xf32>
    %582 = arith.addf %580, %581 : vector<2x128xf32>
    %583 = arith.negf %582 : vector<2x128xf32>
    %584 = math.exp %583 : vector<2x128xf32>
    %cst_257 = arith.constant 1.000000e+00 : f32
    %585 = vector.broadcast %cst_257 : f32 to vector<2x128xf32>
    %586 = arith.addf %585, %584 : vector<2x128xf32>
    %587 = arith.divf %585, %586 : vector<2x128xf32>
    %588 = vector.extract_strided_slice %587 {offsets = [0, 0], sizes = [2, 32], strides = [1, 1]} : vector<2x128xf32> to vector<2x32xf32>
    %589 = vector.extract_strided_slice %587 {offsets = [0, 32], sizes = [2, 32], strides = [1, 1]} : vector<2x128xf32> to vector<2x32xf32>
    %590 = vector.extract_strided_slice %587 {offsets = [0, 96], sizes = [2, 32], strides = [1, 1]} : vector<2x128xf32> to vector<2x32xf32>
    %591 = vector.extract_strided_slice %582 {offsets = [0, 64], sizes = [2, 32], strides = [1, 1]} : vector<2x128xf32> to vector<2x32xf32>
    %592 = math.tanh %591 : vector<2x32xf32>
    %593 = arith.mulf %589, %575 : vector<2x32xf32>
    %594 = arith.mulf %588, %592 : vector<2x32xf32>
    %595 = arith.addf %593, %594 : vector<2x32xf32>
    %596 = math.tanh %595 : vector<2x32xf32>
    %597 = arith.mulf %590, %596 : vector<2x32xf32>
    %598 = vector.shape_cast %597 : vector<2x32xf32> to vector<2x1x32xf32>
    %599 = vector.extract_strided_slice %478 {offsets = [0, 6, 0], sizes = [2, 1, 128], strides = [1, 1, 1]} : vector<2x8x128xf32> to vector<2x1x128xf32>
    %600 = vector.shape_cast %599 : vector<2x1x128xf32> to vector<2x128xf32>
    %cst_258 = arith.constant dense<0.000000e+00> : vector<2x128xf32>
    %601 = tpu.matmul %597, %465, %cst_258 {dimension_numbers = #tpu.dot_dimension_numbers<[1], [0], [0], [1], [0, 0, 1, 1], [], []>} : vector<2x32xf32>, vector<32x128xf32>, vector<2x128xf32> -> vector<2x128xf32>
    %602 = arith.addf %600, %601 : vector<2x128xf32>
    %603 = arith.negf %602 : vector<2x128xf32>
    %604 = math.exp %603 : vector<2x128xf32>
    %cst_259 = arith.constant 1.000000e+00 : f32
    %605 = vector.broadcast %cst_259 : f32 to vector<2x128xf32>
    %606 = arith.addf %605, %604 : vector<2x128xf32>
    %607 = arith.divf %605, %606 : vector<2x128xf32>
    %608 = vector.extract_strided_slice %607 {offsets = [0, 0], sizes = [2, 32], strides = [1, 1]} : vector<2x128xf32> to vector<2x32xf32>
    %609 = vector.extract_strided_slice %607 {offsets = [0, 32], sizes = [2, 32], strides = [1, 1]} : vector<2x128xf32> to vector<2x32xf32>
    %610 = vector.extract_strided_slice %607 {offsets = [0, 96], sizes = [2, 32], strides = [1, 1]} : vector<2x128xf32> to vector<2x32xf32>
    %611 = vector.extract_strided_slice %602 {offsets = [0, 64], sizes = [2, 32], strides = [1, 1]} : vector<2x128xf32> to vector<2x32xf32>
    %612 = math.tanh %611 : vector<2x32xf32>
    %613 = arith.mulf %609, %595 : vector<2x32xf32>
    %614 = arith.mulf %608, %612 : vector<2x32xf32>
    %615 = arith.addf %613, %614 : vector<2x32xf32>
    %616 = math.tanh %615 : vector<2x32xf32>
    %617 = arith.mulf %610, %616 : vector<2x32xf32>
    %618 = vector.shape_cast %617 : vector<2x32xf32> to vector<2x1x32xf32>
    %619 = vector.extract_strided_slice %478 {offsets = [0, 7, 0], sizes = [2, 1, 128], strides = [1, 1, 1]} : vector<2x8x128xf32> to vector<2x1x128xf32>
    %620 = vector.shape_cast %619 : vector<2x1x128xf32> to vector<2x128xf32>
    %cst_260 = arith.constant dense<0.000000e+00> : vector<2x128xf32>
    %621 = tpu.matmul %617, %465, %cst_260 {dimension_numbers = #tpu.dot_dimension_numbers<[1], [0], [0], [1], [0, 0, 1, 1], [], []>} : vector<2x32xf32>, vector<32x128xf32>, vector<2x128xf32> -> vector<2x128xf32>
    %622 = arith.addf %620, %621 : vector<2x128xf32>
    %623 = arith.negf %622 : vector<2x128xf32>
    %624 = math.exp %623 : vector<2x128xf32>
    %cst_261 = arith.constant 1.000000e+00 : f32
    %625 = vector.broadcast %cst_261 : f32 to vector<2x128xf32>
    %626 = arith.addf %625, %624 : vector<2x128xf32>
    %627 = arith.divf %625, %626 : vector<2x128xf32>
    %628 = vector.extract_strided_slice %627 {offsets = [0, 0], sizes = [2, 32], strides = [1, 1]} : vector<2x128xf32> to vector<2x32xf32>
    %629 = vector.extract_strided_slice %627 {offsets = [0, 32], sizes = [2, 32], strides = [1, 1]} : vector<2x128xf32> to vector<2x32xf32>
    %630 = vector.extract_strided_slice %627 {offsets = [0, 96], sizes = [2, 32], strides = [1, 1]} : vector<2x128xf32> to vector<2x32xf32>
    %631 = vector.extract_strided_slice %622 {offsets = [0, 64], sizes = [2, 32], strides = [1, 1]} : vector<2x128xf32> to vector<2x32xf32>
    %632 = math.tanh %631 : vector<2x32xf32>
    %633 = arith.mulf %629, %615 : vector<2x32xf32>
    %634 = arith.mulf %628, %632 : vector<2x32xf32>
    %635 = arith.addf %633, %634 : vector<2x32xf32>
    %636 = math.tanh %635 : vector<2x32xf32>
    %637 = arith.mulf %630, %636 : vector<2x32xf32>
    %638 = vector.shape_cast %637 : vector<2x32xf32> to vector<2x1x32xf32>
    %639 = tpu.concatenate %498, %518, %538, %558, %578, %598, %618, %638 in 1 : vector<2x1x32xf32>, vector<2x1x32xf32>, vector<2x1x32xf32>, vector<2x1x32xf32>, vector<2x1x32xf32>, vector<2x1x32xf32>, vector<2x1x32xf32>, vector<2x1x32xf32> -> vector<2x8x32xf32>
    %640 = vector.shape_cast %463 : vector<2x4x32xf32> to vector<8x32xf32>
    %cst_262 = arith.constant dense<0.000000e+00> : vector<8x128xf32>
    %641 = tpu.matmul %640, %467, %cst_262 {dimension_numbers = #tpu.dot_dimension_numbers<[1], [0], [0], [1], [0, 0, 1, 1], [], []>} : vector<8x32xf32>, vector<32x128xf32>, vector<8x128xf32> -> vector<8x128xf32>
    %642 = vector.broadcast %469 : vector<1x128xf32> to vector<8x128xf32>
    %643 = arith.addf %641, %642 : vector<8x128xf32>
    %644 = vector.shape_cast %643 : vector<8x128xf32> to vector<2x4x128xf32>
    %645 = vector.extract_strided_slice %644 {offsets = [0, 0, 0], sizes = [2, 1, 128], strides = [1, 1, 1]} : vector<2x4x128xf32> to vector<2x1x128xf32>
    %646 = vector.shape_cast %645 : vector<2x1x128xf32> to vector<2x128xf32>
    %cst_263 = arith.constant dense<0.000000e+00> : vector<2x128xf32>
    %647 = tpu.matmul %637, %468, %cst_263 {dimension_numbers = #tpu.dot_dimension_numbers<[1], [0], [0], [1], [0, 0, 1, 1], [], []>} : vector<2x32xf32>, vector<32x128xf32>, vector<2x128xf32> -> vector<2x128xf32>
    %648 = arith.addf %646, %647 : vector<2x128xf32>
    %649 = arith.negf %648 : vector<2x128xf32>
    %650 = math.exp %649 : vector<2x128xf32>
    %cst_264 = arith.constant 1.000000e+00 : f32
    %651 = vector.broadcast %cst_264 : f32 to vector<2x128xf32>
    %652 = arith.addf %651, %650 : vector<2x128xf32>
    %653 = arith.divf %651, %652 : vector<2x128xf32>
    %654 = vector.extract_strided_slice %653 {offsets = [0, 0], sizes = [2, 32], strides = [1, 1]} : vector<2x128xf32> to vector<2x32xf32>
    %655 = vector.extract_strided_slice %653 {offsets = [0, 32], sizes = [2, 32], strides = [1, 1]} : vector<2x128xf32> to vector<2x32xf32>
    %656 = vector.extract_strided_slice %653 {offsets = [0, 96], sizes = [2, 32], strides = [1, 1]} : vector<2x128xf32> to vector<2x32xf32>
    %657 = vector.extract_strided_slice %648 {offsets = [0, 64], sizes = [2, 32], strides = [1, 1]} : vector<2x128xf32> to vector<2x32xf32>
    %658 = math.tanh %657 : vector<2x32xf32>
    %659 = arith.mulf %655, %635 : vector<2x32xf32>
    %660 = arith.mulf %654, %658 : vector<2x32xf32>
    %661 = arith.addf %659, %660 : vector<2x32xf32>
    %662 = math.tanh %661 : vector<2x32xf32>
    %663 = arith.mulf %656, %662 : vector<2x32xf32>
    %664 = vector.shape_cast %663 : vector<2x32xf32> to vector<2x1x32xf32>
    %665 = vector.extract_strided_slice %644 {offsets = [0, 1, 0], sizes = [2, 1, 128], strides = [1, 1, 1]} : vector<2x4x128xf32> to vector<2x1x128xf32>
    %666 = vector.shape_cast %665 : vector<2x1x128xf32> to vector<2x128xf32>
    %cst_265 = arith.constant dense<0.000000e+00> : vector<2x128xf32>
    %667 = tpu.matmul %663, %468, %cst_265 {dimension_numbers = #tpu.dot_dimension_numbers<[1], [0], [0], [1], [0, 0, 1, 1], [], []>} : vector<2x32xf32>, vector<32x128xf32>, vector<2x128xf32> -> vector<2x128xf32>
    %668 = arith.addf %666, %667 : vector<2x128xf32>
    %669 = arith.negf %668 : vector<2x128xf32>
    %670 = math.exp %669 : vector<2x128xf32>
    %cst_266 = arith.constant 1.000000e+00 : f32
    %671 = vector.broadcast %cst_266 : f32 to vector<2x128xf32>
    %672 = arith.addf %671, %670 : vector<2x128xf32>
    %673 = arith.divf %671, %672 : vector<2x128xf32>
    %674 = vector.extract_strided_slice %673 {offsets = [0, 0], sizes = [2, 32], strides = [1, 1]} : vector<2x128xf32> to vector<2x32xf32>
    %675 = vector.extract_strided_slice %673 {offsets = [0, 32], sizes = [2, 32], strides = [1, 1]} : vector<2x128xf32> to vector<2x32xf32>
    %676 = vector.extract_strided_slice %673 {offsets = [0, 96], sizes = [2, 32], strides = [1, 1]} : vector<2x128xf32> to vector<2x32xf32>
    %677 = vector.extract_strided_slice %668 {offsets = [0, 64], sizes = [2, 32], strides = [1, 1]} : vector<2x128xf32> to vector<2x32xf32>
    %678 = math.tanh %677 : vector<2x32xf32>
    %679 = arith.mulf %675, %661 : vector<2x32xf32>
    %680 = arith.mulf %674, %678 : vector<2x32xf32>
    %681 = arith.addf %679, %680 : vector<2x32xf32>
    %682 = math.tanh %681 : vector<2x32xf32>
    %683 = arith.mulf %676, %682 : vector<2x32xf32>
    %684 = vector.shape_cast %683 : vector<2x32xf32> to vector<2x1x32xf32>
    %685 = vector.extract_strided_slice %644 {offsets = [0, 2, 0], sizes = [2, 1, 128], strides = [1, 1, 1]} : vector<2x4x128xf32> to vector<2x1x128xf32>
    %686 = vector.shape_cast %685 : vector<2x1x128xf32> to vector<2x128xf32>
    %cst_267 = arith.constant dense<0.000000e+00> : vector<2x128xf32>
    %687 = tpu.matmul %683, %468, %cst_267 {dimension_numbers = #tpu.dot_dimension_numbers<[1], [0], [0], [1], [0, 0, 1, 1], [], []>} : vector<2x32xf32>, vector<32x128xf32>, vector<2x128xf32> -> vector<2x128xf32>
    %688 = arith.addf %686, %687 : vector<2x128xf32>
    %689 = arith.negf %688 : vector<2x128xf32>
    %690 = math.exp %689 : vector<2x128xf32>
    %cst_268 = arith.constant 1.000000e+00 : f32
    %691 = vector.broadcast %cst_268 : f32 to vector<2x128xf32>
    %692 = arith.addf %691, %690 : vector<2x128xf32>
    %693 = arith.divf %691, %692 : vector<2x128xf32>
    %694 = vector.extract_strided_slice %693 {offsets = [0, 0], sizes = [2, 32], strides = [1, 1]} : vector<2x128xf32> to vector<2x32xf32>
    %695 = vector.extract_strided_slice %693 {offsets = [0, 32], sizes = [2, 32], strides = [1, 1]} : vector<2x128xf32> to vector<2x32xf32>
    %696 = vector.extract_strided_slice %693 {offsets = [0, 96], sizes = [2, 32], strides = [1, 1]} : vector<2x128xf32> to vector<2x32xf32>
    %697 = vector.extract_strided_slice %688 {offsets = [0, 64], sizes = [2, 32], strides = [1, 1]} : vector<2x128xf32> to vector<2x32xf32>
    %698 = math.tanh %697 : vector<2x32xf32>
    %699 = arith.mulf %695, %681 : vector<2x32xf32>
    %700 = arith.mulf %694, %698 : vector<2x32xf32>
    %701 = arith.addf %699, %700 : vector<2x32xf32>
    %702 = math.tanh %701 : vector<2x32xf32>
    %703 = arith.mulf %696, %702 : vector<2x32xf32>
    %704 = vector.shape_cast %703 : vector<2x32xf32> to vector<2x1x32xf32>
    %705 = vector.extract_strided_slice %644 {offsets = [0, 3, 0], sizes = [2, 1, 128], strides = [1, 1, 1]} : vector<2x4x128xf32> to vector<2x1x128xf32>
    %706 = vector.shape_cast %705 : vector<2x1x128xf32> to vector<2x128xf32>
    %cst_269 = arith.constant dense<0.000000e+00> : vector<2x128xf32>
    %707 = tpu.matmul %703, %468, %cst_269 {dimension_numbers = #tpu.dot_dimension_numbers<[1], [0], [0], [1], [0, 0, 1, 1], [], []>} : vector<2x32xf32>, vector<32x128xf32>, vector<2x128xf32> -> vector<2x128xf32>
    %708 = arith.addf %706, %707 : vector<2x128xf32>
    %709 = arith.negf %708 : vector<2x128xf32>
    %710 = math.exp %709 : vector<2x128xf32>
    %cst_270 = arith.constant 1.000000e+00 : f32
    %711 = vector.broadcast %cst_270 : f32 to vector<2x128xf32>
    %712 = arith.addf %711, %710 : vector<2x128xf32>
    %713 = arith.divf %711, %712 : vector<2x128xf32>
    %714 = vector.extract_strided_slice %713 {offsets = [0, 0], sizes = [2, 32], strides = [1, 1]} : vector<2x128xf32> to vector<2x32xf32>
    %715 = vector.extract_strided_slice %713 {offsets = [0, 32], sizes = [2, 32], strides = [1, 1]} : vector<2x128xf32> to vector<2x32xf32>
    %716 = vector.extract_strided_slice %713 {offsets = [0, 96], sizes = [2, 32], strides = [1, 1]} : vector<2x128xf32> to vector<2x32xf32>
    %717 = vector.extract_strided_slice %708 {offsets = [0, 64], sizes = [2, 32], strides = [1, 1]} : vector<2x128xf32> to vector<2x32xf32>
    %718 = math.tanh %717 : vector<2x32xf32>
    %719 = arith.mulf %715, %701 : vector<2x32xf32>
    %720 = arith.mulf %714, %718 : vector<2x32xf32>
    %721 = arith.addf %719, %720 : vector<2x32xf32>
    %722 = math.tanh %721 : vector<2x32xf32>
    %723 = arith.mulf %716, %722 : vector<2x32xf32>
    %724 = vector.shape_cast %723 : vector<2x32xf32> to vector<2x1x32xf32>
    %725 = tpu.concatenate %664, %684, %704, %724 in 1 : vector<2x1x32xf32>, vector<2x1x32xf32>, vector<2x1x32xf32>, vector<2x1x32xf32> -> vector<2x4x32xf32>
    %726 = vector.shape_cast %639 : vector<2x8x32xf32> to vector<16x32xf32>
    %cst_271 = arith.constant dense<0.000000e+00> : vector<16x64xf32>
    %727 = tpu.matmul %726, %470, %cst_271 {dimension_numbers = #tpu.dot_dimension_numbers<[1], [0], [0], [1], [0, 0, 1, 1], [], []>} : vector<16x32xf32>, vector<32x64xf32>, vector<16x64xf32> -> vector<16x64xf32>
    %728 = vector.broadcast %471 : vector<1x64xf32> to vector<16x64xf32>
    %729 = arith.addf %727, %728 : vector<16x64xf32>
    %730 = vector.extract_strided_slice %729 {offsets = [0, 0], sizes = [16, 32], strides = [1, 1]} : vector<16x64xf32> to vector<16x32xf32>
    %731 = arith.negf %730 : vector<16x32xf32>
    %732 = math.exp %731 : vector<16x32xf32>
    %cst_272 = arith.constant 1.000000e+00 : f32
    %733 = vector.broadcast %cst_272 : f32 to vector<16x32xf32>
    %734 = arith.addf %733, %732 : vector<16x32xf32>
    %735 = arith.divf %733, %734 : vector<16x32xf32>
    %736 = vector.extract_strided_slice %729 {offsets = [0, 32], sizes = [16, 32], strides = [1, 1]} : vector<16x64xf32> to vector<16x32xf32>
    %737 = arith.mulf %735, %736 : vector<16x32xf32>
    %738 = vector.shape_cast %328 : vector<2x8x32xf32> to vector<16x32xf32>
    %739 = arith.addf %737, %738 : vector<16x32xf32>
    %cst_273 = arith.constant dense<0.000000e+00> : vector<16xf32>
    %740 = vector.multi_reduction <add>, %739, %cst_273 [1] : vector<16x32xf32> to vector<16xf32>
    %741 = vector.shape_cast %740 : vector<16xf32> to vector<16x1xf32>
    %cst_274 = arith.constant 3.200000e+01 : f32
    %742 = vector.broadcast %cst_274 : f32 to vector<16x1xf32>
    %743 = arith.divf %741, %742 : vector<16x1xf32>
    %744 = vector.broadcast %743 : vector<16x1xf32> to vector<16x32xf32>
    %745 = arith.subf %739, %744 : vector<16x32xf32>
    %746 = arith.mulf %745, %745 : vector<16x32xf32>
    %cst_275 = arith.constant dense<0.000000e+00> : vector<16xf32>
    %747 = vector.multi_reduction <add>, %746, %cst_275 [1] : vector<16x32xf32> to vector<16xf32>
    %748 = vector.shape_cast %747 : vector<16xf32> to vector<16x1xf32>
    %cst_276 = arith.constant 3.200000e+01 : f32
    %749 = vector.broadcast %cst_276 : f32 to vector<16x1xf32>
    %750 = arith.divf %748, %749 : vector<16x1xf32>
    %751 = vector.broadcast %743 : vector<16x1xf32> to vector<16x32xf32>
    %752 = arith.subf %739, %751 : vector<16x32xf32>
    %cst_277 = arith.constant 9.99999974E-6 : f32
    %753 = vector.broadcast %cst_277 : f32 to vector<16x1xf32>
    %754 = arith.addf %750, %753 : vector<16x1xf32>
    %755 = math.rsqrt %754 : vector<16x1xf32>
    %756 = vector.broadcast %755 : vector<16x1xf32> to vector<16x32xf32>
    %757 = arith.mulf %752, %756 : vector<16x32xf32>
    %758 = vector.broadcast %472 : vector<1x32xf32> to vector<16x32xf32>
    %759 = arith.mulf %757, %758 : vector<16x32xf32>
    %760 = vector.broadcast %473 : vector<1x32xf32> to vector<16x32xf32>
    %761 = arith.addf %759, %760 : vector<16x32xf32>
    %762 = vector.shape_cast %761 : vector<16x32xf32> to vector<2x8x32xf32>
    %c0_278 = arith.constant 0 : index
    %c0_279 = arith.constant 0 : index
    %c0_280 = arith.constant 0 : index
    %763 = vector.load %arg76[%c0_278, %c0_279, %c0_280] : memref<2x8x32xf32, #tpu.memory_space<vmem>>, vector<2x8x32xf32>
    tpu.vector_store %arg76[%c0_278, %c0_279, %c0_280], %762 {strides = array<i32>} : memref<2x8x32xf32, #tpu.memory_space<vmem>>, vector<2x8x32xf32>,
    %764 = vector.shape_cast %725 : vector<2x4x32xf32> to vector<8x32xf32>
    %cst_281 = arith.constant dense<0.000000e+00> : vector<8x64xf32>
    %765 = tpu.matmul %764, %470, %cst_281 {dimension_numbers = #tpu.dot_dimension_numbers<[1], [0], [0], [1], [0, 0, 1, 1], [], []>} : vector<8x32xf32>, vector<32x64xf32>, vector<8x64xf32> -> vector<8x64xf32>
    %766 = vector.broadcast %471 : vector<1x64xf32> to vector<8x64xf32>
    %767 = arith.addf %765, %766 : vector<8x64xf32>
    %768 = vector.extract_strided_slice %767 {offsets = [0, 0], sizes = [8, 32], strides = [1, 1]} : vector<8x64xf32> to vector<8x32xf32>
    %769 = arith.negf %768 : vector<8x32xf32>
    %770 = math.exp %769 : vector<8x32xf32>
    %cst_282 = arith.constant 1.000000e+00 : f32
    %771 = vector.broadcast %cst_282 : f32 to vector<8x32xf32>
    %772 = arith.addf %771, %770 : vector<8x32xf32>
    %773 = arith.divf %771, %772 : vector<8x32xf32>
    %774 = vector.extract_strided_slice %767 {offsets = [0, 32], sizes = [8, 32], strides = [1, 1]} : vector<8x64xf32> to vector<8x32xf32>
    %775 = arith.mulf %773, %774 : vector<8x32xf32>
    %776 = vector.shape_cast %463 : vector<2x4x32xf32> to vector<8x32xf32>
    %777 = arith.addf %775, %776 : vector<8x32xf32>
    %cst_283 = arith.constant dense<0.000000e+00> : vector<8xf32>
    %778 = vector.multi_reduction <add>, %777, %cst_283 [1] : vector<8x32xf32> to vector<8xf32>
    %779 = vector.shape_cast %778 : vector<8xf32> to vector<8x1xf32>
    %cst_284 = arith.constant 3.200000e+01 : f32
    %780 = vector.broadcast %cst_284 : f32 to vector<8x1xf32>
    %781 = arith.divf %779, %780 : vector<8x1xf32>
    %782 = vector.broadcast %781 : vector<8x1xf32> to vector<8x32xf32>
    %783 = arith.subf %777, %782 : vector<8x32xf32>
    %784 = arith.mulf %783, %783 : vector<8x32xf32>
    %cst_285 = arith.constant dense<0.000000e+00> : vector<8xf32>
    %785 = vector.multi_reduction <add>, %784, %cst_285 [1] : vector<8x32xf32> to vector<8xf32>
    %786 = vector.shape_cast %785 : vector<8xf32> to vector<8x1xf32>
    %cst_286 = arith.constant 3.200000e+01 : f32
    %787 = vector.broadcast %cst_286 : f32 to vector<8x1xf32>
    %788 = arith.divf %786, %787 : vector<8x1xf32>
    %789 = vector.broadcast %781 : vector<8x1xf32> to vector<8x32xf32>
    %790 = arith.subf %777, %789 : vector<8x32xf32>
    %cst_287 = arith.constant 9.99999974E-6 : f32
    %791 = vector.broadcast %cst_287 : f32 to vector<8x1xf32>
    %792 = arith.addf %788, %791 : vector<8x1xf32>
    %793 = math.rsqrt %792 : vector<8x1xf32>
    %794 = vector.broadcast %793 : vector<8x1xf32> to vector<8x32xf32>
    %795 = arith.mulf %790, %794 : vector<8x32xf32>
    %796 = vector.broadcast %472 : vector<1x32xf32> to vector<8x32xf32>
    %797 = arith.mulf %795, %796 : vector<8x32xf32>
    %798 = vector.broadcast %473 : vector<1x32xf32> to vector<8x32xf32>
    %799 = arith.addf %797, %798 : vector<8x32xf32>
    %800 = vector.shape_cast %799 : vector<8x32xf32> to vector<2x4x32xf32>
    %c0_288 = arith.constant 0 : index
    %c0_289 = arith.constant 0 : index
    %c0_290 = arith.constant 0 : index
    %801 = vector.load %arg77[%c0_288, %c0_289, %c0_290] : memref<2x4x32xf32, #tpu.memory_space<vmem>>, vector<2x4x32xf32>
    tpu.vector_store %arg77[%c0_288, %c0_289, %c0_290], %800 {strides = array<i32>} : memref<2x4x32xf32, #tpu.memory_space<vmem>>, vector<2x4x32xf32>,
    return
  }
}

</mosaic_0001>

<bundles_post_ra>
// kernel: seq2seq_forward.1
= control target key start
LH: loop header
LB: loop body
LE: loop exit
PB: predicated region body
PF: predicated region fallthrough
CT: control target
= control target key end

     0   :  { %s7130_s6 = smov 1   ;;  %s7131_s10 = smov 2   ;;  %s9122_s0 = inlined_call_operand.smem [shape: u32[79], index: -1, kind: input, shape index: {}] }
   0x1   :  { %s7269_s5 = sld [smem:[%s9122_s0]]   ;;  %s7132_s14 = smov 3  }
   0x2   :  { %s7274_s9 = sld [smem:[%s9122_s0 + %s7130_s6]]   ;;  %s7133_s18 = smov 4  }
   0x3   :  { %s7279_s13 = sld [smem:[%s9122_s0 + %s7131_s10]]   ;;  %s7134_s22 = smov 5  }
   0x4   :  { %s7284_s17 = sld [smem:[%s9122_s0 + %s7132_s14]]   ;;  %s7135_s26 = smov 6  }
   0x5   :  { %s7289_s21 = sld [smem:[%s9122_s0 + %s7133_s18]]   ;;  %s7136_s30 = smov 7  }
   0x6   :  { %s7294_s25 = sld [smem:[%s9122_s0 + %s7134_s22]]   ;;  %s7137_s4 = smov 8  }
   0x7   :  { %9176 = sst [smem:[#allocation72_spill]] %s7269_s5  ;;  %s7138_s10 = smov 9  }
   0x8   :  { %9177 = sst [smem:[#allocation73_spill]] %s7274_s9  ;;  %s7139_s15 = smov 10  }
   0x9   :  { %9178 = sst [smem:[#allocation74_spill]] %s7279_s13  ;;  %s7140_s20 = smov 11  }
   0xa   :  { %9179 = sst [smem:[#allocation75_spill]] %s7284_s17  ;;  %s7142_s1 = smov 13  }
   0xb   :  { %9180 = sst [smem:[#allocation76_spill]] %s7289_s21  ;;  %s7143_s7 = smov 14  }
   0xc   :  { %9181 = sst [smem:[#allocation77_spill]] %s7294_s25  ;;  %s7145_s22 = smov 16  }
   0xd   :  { %s7299_s29 = sld [smem:[%s9122_s0 + %s7135_s26]]   ;;  %s7141_s26 = smov 12  }
   0xe   :  { %s7304_s3 = sld [smem:[%s9122_s0 + %s7136_s30]]   ;;  %s7146_s28 = smov 17  }
   0xf   :  { %s7309_s8 = sld [smem:[%s9122_s0 + %s7137_s4]]  }
  0x10   :  { %s7314_s14 = sld [smem:[%s9122_s0 + %s7138_s10]]  }
  0x11   :  { %s7319_s19 = sld [smem:[%s9122_s0 + %s7139_s15]]   ;;  %s7144_s15 = smov 15  }
  0x12   :  { %s7324_s24 = sld [smem:[%s9122_s0 + %s7140_s20]]  }
  0x13   :  { %9182 = sst [smem:[#allocation78_spill]] %s7299_s29 }
  0x14   :  { %9183 = sst [smem:[#allocation79_spill]] %s7304_s3 }
  0x15   :  { %9184 = sst [smem:[#allocation80_spill]] %s7309_s8 }
  0x16   :  { %9185 = sst [smem:[#allocation81_spill]] %s7314_s14 }
  0x17   :  { %9186 = sst [smem:[#allocation82_spill]] %s7319_s19 }
  0x18   :  { %9187 = sst [smem:[#allocation83_spill]] %s7324_s24 }
  0x19   :  { %s7329_s30 = sld [smem:[%s9122_s0 + %s7141_s26]]  }
  0x1a   :  { %s7334_s6 = sld [smem:[%s9122_s0 + %s7142_s1]]  }
  0x1b   :  { %s7339_s12 = sld [smem:[%s9122_s0 + %s7143_s7]]   ;;  %s7147_s7 = smov 18  }
  0x1c   :  { %s7344_s20 = sld [smem:[%s9122_s0 + %s7144_s15]]   ;;  %s7148_s15 = smov 19  }
  0x1d   :  { %s7349_s27 = sld [smem:[%s9122_s0 + %s7145_s22]]   ;;  %s7149_s22 = smov 20  }
  0x1e   :  { %s7354_s4 = sld [smem:[%s9122_s0 + %s7146_s28]]   ;;  %s7150_s28 = smov 21  }
  0x1f   :  { %9188 = sst [smem:[#allocation84_spill]] %s7329_s30 }
  0x20   :  { %9189 = sst [smem:[#allocation85_spill]] %s7334_s6 }
  0x21   :  { %9190 = sst [smem:[#allocation86_spill]] %s7339_s12 }
  0x22   :  { %9191 = sst [smem:[#allocation87_spill]] %s7344_s20 }
  0x23   :  { %9192 = sst [smem:[#allocation88_spill]] %s7349_s27 }
  0x24   :  { %9193 = sst [smem:[#allocation89_spill]] %s7354_s4 }
  0x25   :  { %s7359_s25 = sld [smem:[%s9122_s0 + %s7147_s7]]   ;;  %s7151_s7 = smov 22  }
  0x26   :  { %s7364_s21 = sld [smem:[%s9122_s0 + %s7148_s15]]   ;;  %s7152_s15 = smov 23  }
  0x27   :  { %s7369_s3 = sld [smem:[%s9122_s0 + %s7149_s22]]   ;;  %s7153_s22 = smov 24  }
  0x28   :  { %s7374_s17 = sld [smem:[%s9122_s0 + %s7150_s28]]   ;;  %s7154_s28 = smov 25  }
  0x29   :  { %s7379_s13 = sld [smem:[%s9122_s0 + %s7151_s7]]   ;;  %s7155_s7 = smov 26  }
  0x2a   :  { %s7384_s29 = sld [smem:[%s9122_s0 + %s7152_s15]]   ;;  %s7156_s15 = smov 27  }
  0x2b   :  { %9194 = sst [smem:[#allocation90_spill]] %s7359_s25 }
  0x2c   :  { %9195 = sst [smem:[#allocation91_spill]] %s7364_s21 }
  0x2d   :  { %9196 = sst [smem:[#allocation92_spill]] %s7369_s3 }
  0x2e   :  { %s7389_s20 = sld [smem:[%s9122_s0 + %s7153_s22]]   ;;  %s7157_s22 = smov 28  }
  0x2f   :  { %9197 = sst [smem:[#allocation93_spill]] %s7379_s13 }
  0x30   :  { %s7394_s12 = sld [smem:[%s9122_s0 + %s7154_s28]]   ;;  %s7158_s28 = smov 29  }
  0x31   :  { %s7399_s6 = sld [smem:[%s9122_s0 + %s7155_s7]]   ;;  %s7159_s7 = smov 30  }
  0x32   :  { %s7404_s24 = sld [smem:[%s9122_s0 + %s7156_s15]]   ;;  %s7160_s15 = smov 31  }
  0x33   :  { %s7424_s3 = sld [smem:[%s9122_s0 + %s7160_s15]]   ;;  %s7164_s15 = smov 35  }
  0x34   :  { %9198 = sst [smem:[#allocation94_spill]] %s7389_s20 }
  0x35   :  { %s7409_s20 = sld [smem:[%s9122_s0 + %s7157_s22]]   ;;  %s7161_s22 = smov 32  }
  0x36   :  { %9199 = sst [smem:[#allocation95_spill]] %s7394_s12 }
  0x37   :  { %9200 = sst [smem:[#allocation96_spill]] %s7399_s6 }
  0x38   :  { %9201 = sst [smem:[#allocation97_spill]] %s7404_s24 }
  0x39   :  { %s7414_s12 = sld [smem:[%s9122_s0 + %s7158_s28]]   ;;  %s7162_s28 = smov 33  }
  0x3a   :  { %s7419_s6 = sld [smem:[%s9122_s0 + %s7159_s7]]   ;;  %s7163_s7 = smov 34  }
  0x3b   :  { %9202 = sst [smem:[#allocation98_spill]] %s7409_s20 }
  0x3c   :  { %9205 = sst [smem:[#allocation101_spill]] %s7424_s3 }
  0x3d   :  { %s7429_s20 = sld [smem:[%s9122_s0 + %s7161_s22]]   ;;  %s7165_s22 = smov 36  }
  0x3e   :  { %s7444_s3 = sld [smem:[%s9122_s0 + %s7164_s15]]   ;;  %s7168_s15 = smov 39  }
  0x3f   :  { %9203 = sst [smem:[#allocation99_spill]] %s7414_s12 }
  0x40   :  { %9204 = sst [smem:[#allocation100_spill]] %s7419_s6 }
  0x41   :  { %s7434_s12 = sld [smem:[%s9122_s0 + %s7162_s28]]   ;;  %s7166_s28 = smov 37  }
  0x42   :  { %s7439_s6 = sld [smem:[%s9122_s0 + %s7163_s7]]   ;;  %s7167_s7 = smov 38  }
  0x43   :  { %9206 = sst [smem:[#allocation102_spill]] %s7429_s20 }
  0x44   :  { %9208 = sst [smem:[#allocation104_spill]] %s7444_s3 }
  0x45   :  { %s7449_s20 = sld [smem:[%s9122_s0 + %s7165_s22]]   ;;  %s7169_s22 = smov 40  }
  0x46   :  { %s7454_s30 = sld [smem:[%s9122_s0 + %s7166_s28]]   ;;  %s7170_s28 = smov 41  }
  0x47   :  { %s7464_s3 = sld [smem:[%s9122_s0 + %s7168_s15]]   ;;  %s7172_s15 = smov 43  }
  0x48   :  { %9207 = sst [smem:[#allocation103_spill]] %s7439_s6 }
  0x49   :  { %s7459_s6 = sld [smem:[%s9122_s0 + %s7167_s7]]   ;;  %s7171_s7 = smov 42  }
  0x4a   :  { %s7469_s25 = sld [smem:[%s9122_s0 + %s7169_s22]]   ;;  %s7173_s22 = smov 44  }
  0x4b   :  { %9209 = sst [smem:[#allocation105_spill]] %s7449_s20 }
  0x4c   :  { %9210 = sst [smem:[#allocation106_spill]] %s7454_s30 }
  0x4d   :  { %9211 = sst [smem:[#allocation107_spill]] %s7464_s3 }
  0x4e   :  { %s7474_s30 = sld [smem:[%s9122_s0 + %s7170_s28]]   ;;  %s7174_s28 = smov 45  }
  0x4f   :  { %s7479_s14 = sld [smem:[%s9122_s0 + %s7171_s7]]   ;;  %s7175_s7 = smov 46  }
  0x50   :  { %s7484_s4 = sld [smem:[%s9122_s0 + %s7172_s15]]   ;;  %s7176_s15 = smov 47  }
  0x51   :  { %s7489_s19 = sld [smem:[%s9122_s0 + %s7173_s22]]   ;;  %s7177_s22 = smov 48  }
  0x52   :  { %s7499_s5 = sld [smem:[%s9122_s0 + %s7175_s7]]   ;;  %s7179_s7 = smov 50  }
  0x53   :  { %s7509_s9 = sld [smem:[%s9122_s0 + %s7177_s22]]   ;;  %s7181_s22 = smov 52  }
  0x54   :  { %9212 = sst [smem:[#allocation108_spill]] %s7474_s30 }
  0x55   :  { %9213 = sst [smem:[#allocation109_spill]] %s7479_s14 }
  0x56   :  { %9214 = sst [smem:[#allocation110_spill]] %s7484_s4 }
  0x57   :  { %s7494_s30 = sld [smem:[%s9122_s0 + %s7174_s28]]   ;;  %s7178_s28 = smov 49  }
  0x58   :  { %9216 = sst [smem:[#allocation112_spill]] %s7499_s5 }
  0x59   :  { %s7504_s4 = sld [smem:[%s9122_s0 + %s7176_s15]]   ;;  %s7180_s15 = smov 51  }
  0x5a   :  { %9217 = sst [smem:[#allocation113_spill]] %s7509_s9 }
  0x5b   :  { %s7519_s27 = sld [smem:[%s9122_s0 + %s7179_s7]]   ;;  %s7183_s7 = smov 54  }
  0x5c   :  { %s7524_s8 = sld [smem:[%s9122_s0 + %s7180_s15]]   ;;  %s7184_s15 = smov 55  }
  0x5d   :  { %9215 = sst [smem:[#allocation111_spill]] %s7494_s30 }
  0x5e   :  { %s7514_s30 = sld [smem:[%s9122_s0 + %s7178_s28]]   ;;  %s7182_s28 = smov 53  }
  0x5f   :  { %s7529_s9 = sld [smem:[%s9122_s0 + %s7181_s22]]   ;;  %s7185_s22 = smov 56  }
  0x60   :  { %s7539_s5 = sld [smem:[%s9122_s0 + %s7183_s7]]   ;;  %s7187_s7 = smov 58  }
  0x62   :  { %9219 = sst [smem:[#allocation115_spill]] %s7524_s8 }
  0x63   :  { %s7544_s8 = sld [smem:[%s9122_s0 + %s7184_s15]]   ;;  %s7188_s15 = smov 59  }
  0x64   :  { %9218 = sst [smem:[#allocation114_spill]] %s7514_s30 }
  0x65   :  { %9220 = sst [smem:[#allocation116_spill]] %s7529_s9 }
  0x66   :  { %s7534_s30 = sld [smem:[%s9122_s0 + %s7182_s28]]   ;;  %s7186_s28 = smov 57  }
  0x67   :  { %9222 = sst [smem:[#allocation118_spill]] %s7539_s5 }
  0x68   :  { %s7549_s9 = sld [smem:[%s9122_s0 + %s7185_s22]]   ;;  %s7189_s22 = smov 60  }
  0x69   :  { %s7559_s5 = sld [smem:[%s9122_s0 + %s7187_s7]]   ;;  %s7191_s7 = smov 62  }
  0x6a   :  { %s7564_s14 = sld [smem:[%s9122_s0 + %s7188_s15]]   ;;  %s7192_s15 = smov 63  }
  0x6c   :  { %9221 = sst [smem:[#allocation117_spill]] %s7534_s30 }
  0x6d   :  { %s7554_s30 = sld [smem:[%s9122_s0 + %s7186_s28]]   ;;  %s7190_s28 = smov 61  }
  0x6e   :  { %9223 = sst [smem:[#allocation119_spill]] %s7549_s9 }
  0x6f   :  { %9224 = sst [smem:[#allocation120_spill]] %s7559_s5 }
  0x70   :  { %9225 = sst [smem:[#allocation121_spill]] %s7564_s14 }
  0x71   :  { %s7569_s9 = sld [smem:[%s9122_s0 + %s7189_s22]]   ;;  %s7193_s22 = smov 64  }
  0x72   :  { %s7574_s3 = sld [smem:[%s9122_s0 + %s7190_s28]]   ;;  %s7194_s28 = smov 65  }
  0x73   :  { %s7579_s5 = sld [smem:[%s9122_s0 + %s7191_s7]]   ;;  %s7195_s7 = smov 66  }
  0x74   :  { %s7584_s14 = sld [smem:[%s9122_s0 + %s7192_s15]]   ;;  %s7196_s15 = smov 67  }
  0x75   :  { %s7594_s20 = sld [smem:[%s9122_s0 + %s7194_s28]]   ;;  %s7198_s28 = smov 69  }
  0x77   :  { %9226 = sst [smem:[#allocation122_spill]] %s7569_s9 }
  0x78   :  { %s7589_s9 = sld [smem:[%s9122_s0 + %s7193_s22]]   ;;  %s7197_s22 = smov 68  }
  0x79   :  { %9227 = sst [smem:[#allocation123_spill]] %s7579_s5 }
  0x7a   :  { %9228 = sst [smem:[#allocation124_spill]] %s7584_s14 }
  0x7b   :  { %9229 = sst [smem:[#allocation125_spill]] %s7594_s20 }
  0x7c   :  { %s7599_s5 = sld [smem:[%s9122_s0 + %s7195_s7]]   ;;  %s7199_s7 = smov 70  }
  0x7d   :  { %s7604_s14 = sld [smem:[%s9122_s0 + %s7196_s15]]   ;;  %s7200_s15 = smov 71  }
  0x7e   :  { %s7609_s24 = sld [smem:[%s9122_s0 + %s7197_s22]]   ;;  %s7201_s22 = smov 72  }
  0x7f   :  { %s7614_s20 = sld [smem:[%s9122_s0 + %s7198_s28]]   ;;  %s7202_s28 = smov 73  }
  0x80   :  { %s7629_s13 = sld [smem:[%s9122_s0 + %s7201_s22]]   ;;  %s7205_s22 = smov 76  }
  0x82   :  { %9230 = sst [smem:[#allocation126_spill]] %s7599_s5 }
  0x83   :  { %9231 = sst [smem:[#allocation127_spill]] %s7604_s14 }
  0x84   :  { %s7619_s5 = sld [smem:[%s9122_s0 + %s7199_s7]]   ;;  %s7203_s7 = smov 74  }
  0x85   :  { %9232 = sst [smem:[#allocation128_spill]] %s7614_s20 }
  0x86   :  { %s7624_s14 = sld [smem:[%s9122_s0 + %s7200_s15]]   ;;  %s7204_s15 = smov 75  }
  0x87   :  { %9234 = sst [smem:[#allocation130_spill]] %s7629_s13 }
  0x88   :  { %s7634_s20 = sld [smem:[%s9122_s0 + %s7202_s28]]   ;;  %s7206_s28 = smov 77  }
  0x89   :  { %s7644_s21 = sld [smem:[%s9122_s0 + %s7204_s15]]  }
  0x8a   :  { %9233 = sst [smem:[#allocation129_spill]] %s7619_s5 }
  0x8b   :  { %s7639_s5 = sld [smem:[%s9122_s0 + %s7203_s7]]   ;;  %s7207_s7 = smov 78  }
  0x8c   :  { %s7649_s13 = sld [smem:[%s9122_s0 + %s7205_s22]]  }
  0x8e   :  { %9235 = sst [smem:[#allocation131_spill]] %s7634_s20 }
  0x8f   :  { %s7654_s20 = sld [smem:[%s9122_s0 + %s7206_s28]]  }
  0x91   :  { %9236 = sst [smem:[#allocation132_spill]] %s7639_s5 }
  0x92   :  { %s7659_s5 = sld [smem:[%s9122_s0 + %s7207_s7]]  }
  0x93   :  { %163 = vsyncpa [#allocation3], 0 }
  0x94   :  { %164 = vsyncpa [#allocation6], 0 }
  0x95   :  { %165 = vsyncpa [#allocation9], 0 }
  0x96   :  { %166 = vsyncpa [#allocation12], 0 }
  0x97   :  { %167 = vsyncpa [#allocation15], 0 }
  0x98   :  { %168 = vsyncpa [#allocation18], 0 }
  0x99   :  { %169 = vsyncpa [#allocation21], 0 }
  0x9a   :  { %170 = vsyncpa [#allocation24], 0 }
  0x9b   :  { %171 = vsyncpa [#allocation27], 0 }
  0x9c   :  { %172 = vsyncpa [#allocation30], 0 }
  0x9d   :  { %173 = vsyncpa [#allocation33], 0 }
  0x9e   :  { %174 = vsyncpa [#allocation36], 0 }
  0x9f   :  { %175 = vsyncpa [#allocation39], 0 }
  0xa0   :  { %176 = vsyncpa [#allocation42], 0 }
  0xa1   :  { %177 = vsyncpa [#allocation45], 0 }
  0xa2   :  { %178 = vsyncpa [#allocation48], 0 }
  0xa3   :  { %179 = vsyncpa [#allocation4], 0  ;;  %s237_s0 = sshll.u32 %s7374_s17, 4  ;;  %s238_s0 = int_to_ptr.hbm [resolvable:$true] %s237_s0 }
  0xa4   :  { %180 = vsyncpa [#allocation52], 0  ;;  %s7208_s15 = smov [#allocation5]   ;;  %s259_s18 = sshll.u32 %s7384_s29, 4  ;;  %s260_s18 = int_to_ptr.hbm [resolvable:$true] %s259_s18 }
  0xa5   :  { %s239_s16 = sshll.u32 %s7208_s15, 4  ;;  %s6278_s22 = sshra.s32 %s238_s0, 4  ;;  %s240_s16 = int_to_ptr.vmem [resolvable:$true] %s239_s16  ;;  %s6279_s22 = int_to_ptr.hbm [resolvable:$true] %s6278_s22 }
  0xa6   :  { %s6280_s23 = scalar_lea.hbm %s6279_s22, 1  ;;  %s6282_s26 = scalar_lea.hbm %s7374_s17, 1 }
  0xa7   :  { %p6281_p0 = scmp.ne.s32.totalorder %s6279_s22, %s6280_s23  ;;  %p6283_p1 = scmp.lt.s32.totalorder %s6279_s22, %s7374_s17 }
  0xa8   :  { %p6284_p2 = scmp.lt.s32.totalorder %s6282_s26, %s6280_s23 }
  0xaa   :  { %p6285_p3 = por %p6284_p2, %p6283_p1 }
  0xac   :  { %p6286_p4 = pnand %p6285_p3, %p6281_p0 }
  0xae   :  { %6289 = shalt.err (!%p6286_p4)
}
  0xaf   :  { %242 = dma.hbm_to_vmem [thread:$0]  %s238_s0, 16, %s240_s16, [#allocation6]  }
  0xb0   :  { %s7209_s28 = smov [#allocation8]   ;;  %s297_s2 = sshll.u32 %s7434_s12, 4  ;;  %s298_s2 = int_to_ptr.hbm [resolvable:$true] %s297_s2 }
  0xb1   :  { %s261_s1 = sshll.u32 %s7209_s28, 4  ;;  %s6302_s7 = sshra.s32 %s260_s18, 4  ;;  %s262_s1 = int_to_ptr.vmem [resolvable:$true] %s261_s1  ;;  %s6303_s7 = int_to_ptr.hbm [resolvable:$true] %s6302_s7 }
  0xb2   :  { %s6304_s10 = scalar_lea.hbm %s6303_s7, 1  ;;  %s6306_s11 = scalar_lea.hbm %s7384_s29, 1 }
  0xb3   :  { %p6305_p5 = scmp.ne.s32.totalorder %s6303_s7, %s6304_s10  ;;  %p6307_p6 = scmp.lt.s32.totalorder %s6303_s7, %s7384_s29 }
  0xb4   :  { %p6308_p7 = scmp.lt.s32.totalorder %s6306_s11, %s6304_s10 }
  0xb6   :  { %p6309_p8 = por %p6308_p7, %p6307_p6 }
  0xb8   :  { %p6310_p9 = pnand %p6309_p8, %p6305_p5 }
  0xba   :  { %6313 = shalt.err (!%p6310_p9)
}
  0xbb   :  { %264 = dma.hbm_to_vmem [thread:$0]  %s260_s18, 16, %s262_s1, [#allocation9]  }
  0xbc   :  { %s325_s17 = sshll.u32 %s7459_s6, 4  ;;  %s7210_s0 = smov [#allocation11]   ;;  %s326_s17 = int_to_ptr.hbm [resolvable:$true] %s325_s17 }
  0xbd   :  { %s299_s15 = sshll.u32 %s7210_s0, 4  ;;  %s6326_s16 = sshra.s32 %s298_s2, 4  ;;  %s300_s15 = int_to_ptr.vmem [resolvable:$true] %s299_s15  ;;  %s6327_s16 = int_to_ptr.hbm [resolvable:$true] %s6326_s16 }
  0xbe   :  { %s6328_s22 = scalar_lea.hbm %s6327_s16, 1  ;;  %s6330_s23 = scalar_lea.hbm %s7434_s12, 1 }
  0xbf   :  { %p6329_p10 = scmp.ne.s32.totalorder %s6327_s16, %s6328_s22  ;;  %p6331_p11 = scmp.lt.s32.totalorder %s6327_s16, %s7434_s12 }
  0xc0   :  { %p6332_p12 = scmp.lt.s32.totalorder %s6330_s23, %s6328_s22 }
  0xc2   :  { %p6333_p13 = por %p6332_p12, %p6331_p11 }
  0xc4   :  { %p6334_p0 = pnand %p6333_p13, %p6329_p10 }
  0xc6   :  { %6337 = shalt.err (!%p6334_p0)
}
  0xc7   :  { %302 = dma.hbm_to_vmem [thread:$0]  %s298_s2, 16, %s300_s15, [#allocation12]  }
  0xc8   :  { %s7211_s29 = smov [#allocation14]   ;;  %s347_s26 = sshll.u32 %s7469_s25, 4  ;;  %s348_s26 = int_to_ptr.hbm [resolvable:$true] %s347_s26 }
  0xc9   :  { %s327_s18 = sshll.u32 %s7211_s29, 4  ;;  %s6350_s28 = sshra.s32 %s326_s17, 4  ;;  %s328_s18 = int_to_ptr.vmem [resolvable:$true] %s327_s18  ;;  %s6351_s28 = int_to_ptr.hbm [resolvable:$true] %s6350_s28 }
  0xca   :  { %s6352_s1 = scalar_lea.hbm %s6351_s28, 1  ;;  %s6354_s7 = scalar_lea.hbm %s7459_s6, 1 }
  0xcb   :  { %p6353_p1 = scmp.ne.s32.totalorder %s6351_s28, %s6352_s1  ;;  %p6355_p2 = scmp.lt.s32.totalorder %s6351_s28, %s7459_s6 }
  0xcc   :  { %p6356_p3 = scmp.lt.s32.totalorder %s6354_s7, %s6352_s1 }
  0xce   :  { %p6357_p4 = por %p6356_p3, %p6355_p2 }
  0xd0   :  { %p6358_p5 = pnand %p6357_p4, %p6353_p1 }
  0xd2   :  { %6361 = shalt.err (!%p6358_p5)
}
  0xd3   :  { %330 = dma.hbm_to_vmem [thread:$0]  %s326_s17, 16, %s328_s18, [#allocation15]  }
  0xd4   :  { %s373_s12 = sshll.u32 %s7489_s19, 4  ;;  %s7212_s2 = smov [#allocation17]   ;;  %s374_s12 = int_to_ptr.hbm [resolvable:$true] %s373_s12 }
  0xd5   :  { %s349_s10 = sshll.u32 %s7212_s2, 4  ;;  %s6374_s11 = sshra.s32 %s348_s26, 4  ;;  %s350_s10 = int_to_ptr.vmem [resolvable:$true] %s349_s10  ;;  %s6375_s11 = int_to_ptr.hbm [resolvable:$true] %s6374_s11 }
  0xd6   :  { %s6376_s0 = scalar_lea.hbm %s6375_s11, 1  ;;  %s6378_s15 = scalar_lea.hbm %s7469_s25, 1 }
  0xd7   :  { %p6377_p6 = scmp.ne.s32.totalorder %s6375_s11, %s6376_s0  ;;  %p6379_p7 = scmp.lt.s32.totalorder %s6375_s11, %s7469_s25 }
  0xd8   :  { %p6380_p8 = scmp.lt.s32.totalorder %s6378_s15, %s6376_s0 }
  0xda   :  { %p6381_p9 = por %p6380_p8, %p6379_p7 }
  0xdc   :  { %p6382_p10 = pnand %p6381_p9, %p6377_p6 }
  0xde   :  { %6385 = shalt.err (!%p6382_p10)
}
  0xdf   :  { %352 = dma.hbm_to_vmem [thread:$0]  %s348_s26, 16, %s350_s10, [#allocation18]  }
  0xe0   :  { %s7213_s6 = smov [#allocation20]   ;;  %s397_s16 = sshll.u32 %s7504_s4, 4  ;;  %s398_s16 = int_to_ptr.hbm [resolvable:$true] %s397_s16 }
  0xe1   :  { %s375_s17 = sshll.u32 %s7213_s6, 4  ;;  %s6398_s22 = sshra.s32 %s374_s12, 4  ;;  %s376_s17 = int_to_ptr.vmem [resolvable:$true] %s375_s17  ;;  %s6399_s22 = int_to_ptr.hbm [resolvable:$true] %s6398_s22 }
  0xe2   :  { %s6400_s23 = scalar_lea.hbm %s6399_s22, 1  ;;  %s6402_s29 = scalar_lea.hbm %s7489_s19, 1 }
  0xe3   :  { %p6401_p11 = scmp.ne.s32.totalorder %s6399_s22, %s6400_s23  ;;  %p6403_p12 = scmp.lt.s32.totalorder %s6399_s22, %s7489_s19 }
  0xe4   :  { %p6404_p13 = scmp.lt.s32.totalorder %s6402_s29, %s6400_s23 }
  0xe6   :  { %p6405_p0 = por %p6404_p13, %p6403_p12 }
  0xe8   :  { %p6406_p1 = pnand %p6405_p0, %p6401_p11 }
  0xea   :  { %6409 = shalt.err (!%p6406_p1)
}
  0xeb   :  { %378 = dma.hbm_to_vmem [thread:$0]  %s374_s12, 16, %s376_s17, [#allocation21]  }
  0xec   :  { %s421_s25 = sshll.u32 %s7519_s27, 4  ;;  %s7214_s18 = smov [#allocation23]   ;;  %s422_s25 = int_to_ptr.hbm [resolvable:$true] %s421_s25 }
  0xed   :  { %s399_s26 = sshll.u32 %s7214_s18, 4  ;;  %s6422_s28 = sshra.s32 %s398_s16, 4  ;;  %s400_s26 = int_to_ptr.vmem [resolvable:$true] %s399_s26  ;;  %s6423_s28 = int_to_ptr.hbm [resolvable:$true] %s6422_s28 }
  0xee   :  { %s6424_s1 = scalar_lea.hbm %s6423_s28, 1  ;;  %s6426_s7 = scalar_lea.hbm %s7504_s4, 1 }
  0xef   :  { %p6425_p2 = scmp.ne.s32.totalorder %s6423_s28, %s6424_s1  ;;  %p6427_p3 = scmp.lt.s32.totalorder %s6423_s28, %s7504_s4 }
  0xf0   :  { %p6428_p4 = scmp.lt.s32.totalorder %s6426_s7, %s6424_s1 }
  0xf2   :  { %p6429_p5 = por %p6428_p4, %p6427_p3 }
  0xf4   :  { %p6430_p6 = pnand %p6429_p5, %p6425_p2 }
  0xf6   :  { %6433 = shalt.err (!%p6430_p6)
}
  0xf7   :  { %402 = dma.hbm_to_vmem [thread:$0]  %s398_s16, 16, %s400_s26, [#allocation24]  }
  0xf8   :  { %s7215_s19 = smov [#allocation26]   ;;  %s449_s2 = sshll.u32 %s7544_s8, 4  ;;  %s450_s2 = int_to_ptr.hbm [resolvable:$true] %s449_s2 }
  0xf9   :  { %s423_s12 = sshll.u32 %s7215_s19, 4  ;;  %s6446_s10 = sshra.s32 %s422_s25, 4  ;;  %s424_s12 = int_to_ptr.vmem [resolvable:$true] %s423_s12  ;;  %s6447_s10 = int_to_ptr.hbm [resolvable:$true] %s6446_s10 }
  0xfa   :  { %s6448_s11 = scalar_lea.hbm %s6447_s10, 1  ;;  %s6450_s0 = scalar_lea.hbm %s7519_s27, 1 }
  0xfb   :  { %p6449_p7 = scmp.ne.s32.totalorder %s6447_s10, %s6448_s11  ;;  %p6451_p8 = scmp.lt.s32.totalorder %s6447_s10, %s7519_s27 }
  0xfc   :  { %p6452_p9 = scmp.lt.s32.totalorder %s6450_s0, %s6448_s11 }
  0xfe   :  { %p6453_p10 = por %p6452_p9, %p6451_p8 }
 0x100   :  { %p6454_p11 = pnand %p6453_p10, %p6449_p7 }
 0x102   :  { %6457 = shalt.err (!%p6454_p11)
}
 0x103   :  { %426 = dma.hbm_to_vmem [thread:$0]  %s422_s25, 16, %s424_s12, [#allocation27]  }
 0x104   :  { %s471_s4 = sshll.u32 %s7554_s30, 4  ;;  %s7216_s15 = smov [#allocation29]   ;;  %s472_s4 = int_to_ptr.hbm [resolvable:$true] %s471_s4 }
 0x105   :  { %s451_s6 = sshll.u32 %s7216_s15, 4  ;;  %s6470_s17 = sshra.s32 %s450_s2, 4  ;;  %s452_s6 = int_to_ptr.vmem [resolvable:$true] %s451_s6  ;;  %s6471_s17 = int_to_ptr.hbm [resolvable:$true] %s6470_s17 }
 0x106   :  { %s6472_s16 = scalar_lea.hbm %s6471_s17, 1  ;;  %s6474_s22 = scalar_lea.hbm %s7544_s8, 1 }
 0x107   :  { %p6473_p12 = scmp.ne.s32.totalorder %s6471_s17, %s6472_s16  ;;  %p6475_p13 = scmp.lt.s32.totalorder %s6471_s17, %s7544_s8 }
 0x108   :  { %p6476_p0 = scmp.lt.s32.totalorder %s6474_s22, %s6472_s16 }
 0x10a   :  { %p6477_p1 = por %p6476_p0, %p6475_p13 }
 0x10c   :  { %p6478_p2 = pnand %p6477_p1, %p6473_p12 }
 0x10e   :  { %6481 = shalt.err (!%p6478_p2)
}
 0x10f   :  { %454 = dma.hbm_to_vmem [thread:$0]  %s450_s2, 16, %s452_s6, [#allocation30]  }
 0x110   :  { %s7217_s27 = smov [#allocation32]   ;;  %s497_s29 = sshll.u32 %s7574_s3, 4  ;;  %s498_s29 = int_to_ptr.hbm [resolvable:$true] %s497_s29 }
 0x111   :  { %s473_s23 = sshll.u32 %s7217_s27, 4  ;;  %s6494_s25 = sshra.s32 %s472_s4, 4  ;;  %s474_s23 = int_to_ptr.vmem [resolvable:$true] %s473_s23  ;;  %s6495_s25 = int_to_ptr.hbm [resolvable:$true] %s6494_s25 }
 0x112   :  { %s6496_s18 = scalar_lea.hbm %s6495_s25, 1  ;;  %s6498_s26 = scalar_lea.hbm %s7554_s30, 1 }
 0x113   :  { %p6497_p3 = scmp.ne.s32.totalorder %s6495_s25, %s6496_s18  ;;  %p6499_p4 = scmp.lt.s32.totalorder %s6495_s25, %s7554_s30 }
 0x114   :  { %p6500_p5 = scmp.lt.s32.totalorder %s6498_s26, %s6496_s18 }
 0x116   :  { %p6501_p6 = por %p6500_p5, %p6499_p4 }
 0x118   :  { %p6502_p7 = pnand %p6501_p6, %p6497_p3 }
 0x11a   :  { %6505 = shalt.err (!%p6502_p7)
}
 0x11b   :  { %476 = dma.hbm_to_vmem [thread:$0]  %s472_s4, 16, %s474_s23, [#allocation33]  }
 0x11c   :  { %s521_s8 = sshll.u32 %s7589_s9, 4  ;;  %s7218_s28 = smov [#allocation35]   ;;  %s522_s8 = int_to_ptr.hbm [resolvable:$true] %s521_s8 }
 0x11d   :  { %s499_s1 = sshll.u32 %s7218_s28, 4  ;;  %s6518_s7 = sshra.s32 %s498_s29, 4  ;;  %s500_s1 = int_to_ptr.vmem [resolvable:$true] %s499_s1  ;;  %s6519_s7 = int_to_ptr.hbm [resolvable:$true] %s6518_s7 }
 0x11e   :  { %s6520_s19 = scalar_lea.hbm %s6519_s7, 1  ;;  %s6522_s12 = scalar_lea.hbm %s7574_s3, 1 }
 0x11f   :  { %p6521_p8 = scmp.ne.s32.totalorder %s6519_s7, %s6520_s19  ;;  %p6523_p9 = scmp.lt.s32.totalorder %s6519_s7, %s7574_s3 }
 0x120   :  { %p6524_p10 = scmp.lt.s32.totalorder %s6522_s12, %s6520_s19 }
 0x122   :  { %p6525_p11 = por %p6524_p10, %p6523_p9 }
 0x124   :  { %p6526_p12 = pnand %p6525_p11, %p6521_p8 }
 0x126   :  { %6529 = shalt.err (!%p6526_p12)
}
 0x127   :  { %502 = dma.hbm_to_vmem [thread:$0]  %s498_s29, 16, %s500_s1, [#allocation36]  }
 0x128   :  { %s7219_s30 = smov [#allocation38]   ;;  %s547_s10 = sshll.u32 %s7609_s24, 4  ;;  %s548_s10 = int_to_ptr.hbm [resolvable:$true] %s547_s10 }
 0x129   :  { %s523_s2 = sshll.u32 %s7219_s30, 4  ;;  %s6542_s11 = sshra.s32 %s522_s8, 4  ;;  %s524_s2 = int_to_ptr.vmem [resolvable:$true] %s523_s2  ;;  %s6543_s11 = int_to_ptr.hbm [resolvable:$true] %s6542_s11 }
 0x12a   :  { %s6544_s0 = scalar_lea.hbm %s6543_s11, 1  ;;  %s6546_s4 = scalar_lea.hbm %s7589_s9, 1 }
 0x12b   :  { %p6545_p13 = scmp.ne.s32.totalorder %s6543_s11, %s6544_s0  ;;  %p6547_p0 = scmp.lt.s32.totalorder %s6543_s11, %s7589_s9 }
 0x12c   :  { %p6548_p1 = scmp.lt.s32.totalorder %s6546_s4, %s6544_s0 }
 0x12e   :  { %p6549_p2 = por %p6548_p1, %p6547_p0 }
 0x130   :  { %p6550_p3 = pnand %p6549_p2, %p6545_p13 }
 0x132   :  { %6553 = shalt.err (!%p6550_p3)
}
 0x133   :  { %526 = dma.hbm_to_vmem [thread:$0]  %s522_s8, 16, %s524_s2, [#allocation39]  }
 0x134   :  { %s573_s3 = sshll.u32 %s7624_s14, 4  ;;  %s7220_s15 = smov [#allocation41]   ;;  %s574_s3 = int_to_ptr.hbm [resolvable:$true] %s573_s3 }
 0x135   :  { %s549_s6 = sshll.u32 %s7220_s15, 4  ;;  %s6566_s17 = sshra.s32 %s548_s10, 4  ;;  %s550_s6 = int_to_ptr.vmem [resolvable:$true] %s549_s6  ;;  %s6567_s17 = int_to_ptr.hbm [resolvable:$true] %s6566_s17 }
 0x136   :  { %s6568_s16 = scalar_lea.hbm %s6567_s17, 1  ;;  %s6570_s22 = scalar_lea.hbm %s7609_s24, 1 }
 0x137   :  { %p6569_p4 = scmp.ne.s32.totalorder %s6567_s17, %s6568_s16  ;;  %p6571_p5 = scmp.lt.s32.totalorder %s6567_s17, %s7609_s24 }
 0x138   :  { %p6572_p6 = scmp.lt.s32.totalorder %s6570_s22, %s6568_s16 }
 0x13a   :  { %p6573_p7 = por %p6572_p6, %p6571_p5 }
 0x13c   :  { %p6574_p8 = pnand %p6573_p7, %p6569_p4 }
 0x13e   :  { %6577 = shalt.err (!%p6574_p8)
}
 0x13f   :  { %552 = dma.hbm_to_vmem [thread:$0]  %s548_s10, 16, %s550_s6, [#allocation42]  }
 0x140   :  { %s9237_s9 = sld [smem:[#allocation132_spill]]  ;;  %s7221_s27 = smov [#allocation44]  }
 0x141   :  { %s575_s23 = sshll.u32 %s7221_s27, 4  ;;  %s6590_s25 = sshra.s32 %s574_s3, 4  ;;  %s576_s23 = int_to_ptr.vmem [resolvable:$true] %s575_s23  ;;  %s6591_s25 = int_to_ptr.hbm [resolvable:$true] %s6590_s25 }
 0x142   :  { %s6592_s18 = scalar_lea.hbm %s6591_s25, 1  ;;  %s6594_s26 = scalar_lea.hbm %s7624_s14, 1 }
 0x143   :  { %p6593_p9 = scmp.ne.s32.totalorder %s6591_s25, %s6592_s18  ;;  %p6595_p10 = scmp.lt.s32.totalorder %s6591_s25, %s7624_s14 }
 0x144   :  { %p6596_p11 = scmp.lt.s32.totalorder %s6594_s26, %s6592_s18 }
 0x146   :  { %s597_s29 = sshll.u32 %s9237_s9, 4  ;;  %p6597_p12 = por %p6596_p11, %p6595_p10  ;;  %s598_s29 = int_to_ptr.hbm [resolvable:$true] %s597_s29 }
 0x148   :  { %p6598_p13 = pnand %p6597_p12, %p6593_p9 }
 0x14a   :  { %6601 = shalt.err (!%p6598_p13)
}
 0x14b   :  { %578 = dma.hbm_to_vmem [thread:$0]  %s574_s3, 16, %s576_s23, [#allocation45]  }
 0x14c   :  { %s9238_s24 = sld [smem:[#allocation91_spill]]  ;;  %s7222_s28 = smov [#allocation47]  }
 0x14d   :  { %s599_s1 = sshll.u32 %s7222_s28, 4  ;;  %s6614_s7 = sshra.s32 %s598_s29, 4  ;;  %s600_s1 = int_to_ptr.vmem [resolvable:$true] %s599_s1  ;;  %s6615_s7 = int_to_ptr.hbm [resolvable:$true] %s6614_s7 }
 0x14e   :  { %s6616_s19 = scalar_lea.hbm %s6615_s7, 1  ;;  %s6618_s12 = scalar_lea.hbm %s9237_s9, 1 }
 0x14f   :  { %p6617_p0 = scmp.ne.s32.totalorder %s6615_s7, %s6616_s19  ;;  %p6619_p1 = scmp.lt.s32.totalorder %s6615_s7, %s9237_s9 }
 0x150   :  { %p6620_p2 = scmp.lt.s32.totalorder %s6618_s12, %s6616_s19 }
 0x152   :  { %s224_s8 = sshll.u32 %s9238_s24, 4  ;;  %p6621_p3 = por %p6620_p2, %p6619_p1  ;;  %s225_s8 = int_to_ptr.hbm [resolvable:$true] %s224_s8 }
 0x154   :  { %p6622_p4 = pnand %p6621_p3, %p6617_p0 }
 0x156   :  { %6625 = shalt.err (!%p6622_p4)
}
 0x157   :  { %602 = dma.hbm_to_vmem [thread:$0]  %s598_s29, 16, %s600_s1, [#allocation48]  }
 0x158   :  { %s9239_s14 = sld [smem:[#allocation93_spill]]  ;;  %s7223_s30 = smov [#allocation2]  }
 0x159   :  { %s226_s2 = sshll.u32 %s7223_s30, 4  ;;  %s6638_s11 = sshra.s32 %s225_s8, 4  ;;  %s227_s2 = int_to_ptr.vmem [resolvable:$true] %s226_s2  ;;  %s6639_s11 = int_to_ptr.hbm [resolvable:$true] %s6638_s11 }
 0x15a   :  { %s6640_s0 = scalar_lea.hbm %s6639_s11, 1  ;;  %s6642_s4 = scalar_lea.hbm %s9238_s24, 1 }
 0x15b   :  { %p6641_p5 = scmp.ne.s32.totalorder %s6639_s11, %s6640_s0  ;;  %p6643_p6 = scmp.lt.s32.totalorder %s6639_s11, %s9238_s24 }
 0x15c   :  { %p6644_p7 = scmp.lt.s32.totalorder %s6642_s4, %s6640_s0 }
 0x15e   :  { %s248_s10 = sshll.u32 %s9239_s14, 4  ;;  %p6645_p8 = por %p6644_p7, %p6643_p6  ;;  %s249_s10 = int_to_ptr.hbm [resolvable:$true] %s248_s10 }
 0x160   :  { %p6646_p9 = pnand %p6645_p8, %p6641_p5 }
 0x162   :  { %6649 = shalt.err (!%p6646_p9)
}
 0x163   :  { %229 = dma.hbm_to_vmem [thread:$0]  %s225_s8, 16, %s227_s2, [#allocation3]  }
 0x164   :  { %s9240_s3 = sld [smem:[#allocation97_spill]]  ;;  %s7224_s6 = smov [#allocation7]  }
 0x165   :  { %s250_s17 = sshll.u32 %s7224_s6, 4  ;;  %s6662_s16 = sshra.s32 %s249_s10, 4  ;;  %s251_s17 = int_to_ptr.vmem [resolvable:$true] %s250_s17  ;;  %s6663_s16 = int_to_ptr.hbm [resolvable:$true] %s6662_s16 }
 0x166   :  { %s6664_s22 = scalar_lea.hbm %s6663_s16, 1  ;;  %s6666_s9 = scalar_lea.hbm %s9239_s14, 1 }
 0x167   :  { %p6665_p10 = scmp.ne.s32.totalorder %s6663_s16, %s6664_s22  ;;  %p6667_p11 = scmp.lt.s32.totalorder %s6663_s16, %s9239_s14 }
 0x168   :  { %p6668_p12 = scmp.lt.s32.totalorder %s6666_s9, %s6664_s22 }
 0x16a   :  { %s276_s15 = sshll.u32 %s9240_s3, 4  ;;  %p6669_p13 = por %p6668_p12, %p6667_p11  ;;  %s277_s15 = int_to_ptr.hbm [resolvable:$true] %s276_s15 }
 0x16c   :  { %p6670_p0 = pnand %p6669_p13, %p6665_p10 }
 0x16e   :  { %6673 = shalt.err (!%p6670_p0)
}
 0x16f   :  { %253 = dma.hbm_to_vmem [thread:$0]  %s249_s10, 16, %s251_s17, [#allocation6]  }
 0x170   :  { %s9241_s27 = sld [smem:[#allocation105_spill]]  ;;  %s7225_s23 = smov [#allocation10]  }
 0x171   :  { %s278_s29 = sshll.u32 %s7225_s23, 4  ;;  %s6686_s18 = sshra.s32 %s277_s15, 4  ;;  %s279_s29 = int_to_ptr.vmem [resolvable:$true] %s278_s29  ;;  %s6687_s18 = int_to_ptr.hbm [resolvable:$true] %s6686_s18 }
 0x172   :  { %s6688_s26 = scalar_lea.hbm %s6687_s18, 1  ;;  %s6690_s24 = scalar_lea.hbm %s9240_s3, 1 }
 0x173   :  { %p6689_p1 = scmp.ne.s32.totalorder %s6687_s18, %s6688_s26  ;;  %p6691_p2 = scmp.lt.s32.totalorder %s6687_s18, %s9240_s3 }
 0x174   :  { %p6692_p3 = scmp.lt.s32.totalorder %s6690_s24, %s6688_s26 }
 0x176   :  { %s312_s25 = sshll.u32 %s9241_s27, 4  ;;  %p6693_p4 = por %p6692_p3, %p6691_p2  ;;  %s313_s25 = int_to_ptr.hbm [resolvable:$true] %s312_s25 }
 0x178   :  { %p6694_p5 = pnand %p6693_p4, %p6689_p1 }
 0x17a   :  { %6697 = shalt.err (!%p6694_p5)
}
 0x17b   :  { %281 = dma.hbm_to_vmem [thread:$0]  %s277_s15, 16, %s279_s29, [#allocation9]  }
 0x17c   :  { %s9242_s8 = sld [smem:[#allocation107_spill]]  ;;  %s7226_s1 = smov [#allocation13]  }
 0x17d   :  { %s314_s7 = sshll.u32 %s7226_s1, 4  ;;  %s6710_s19 = sshra.s32 %s313_s25, 4  ;;  %s315_s7 = int_to_ptr.vmem [resolvable:$true] %s314_s7  ;;  %s6711_s19 = int_to_ptr.hbm [resolvable:$true] %s6710_s19 }
 0x17e   :  { %s6712_s12 = scalar_lea.hbm %s6711_s19, 1  ;;  %s6714_s14 = scalar_lea.hbm %s9241_s27, 1 }
 0x17f   :  { %p6713_p6 = scmp.ne.s32.totalorder %s6711_s19, %s6712_s12  ;;  %p6715_p7 = scmp.lt.s32.totalorder %s6711_s19, %s9241_s27 }
 0x180   :  { %p6716_p8 = scmp.lt.s32.totalorder %s6714_s14, %s6712_s12 }
 0x182   :  { %s336_s28 = sshll.u32 %s9242_s8, 4  ;;  %p6717_p9 = por %p6716_p8, %p6715_p7  ;;  %s337_s28 = int_to_ptr.hbm [resolvable:$true] %s336_s28 }
 0x184   :  { %p6718_p10 = pnand %p6717_p9, %p6713_p6 }
 0x186   :  { %6721 = shalt.err (!%p6718_p10)
}
 0x187   :  { %317 = dma.hbm_to_vmem [thread:$0]  %s313_s25, 16, %s315_s7, [#allocation12]  }
 0x188   :  { %s9243_s30 = sld [smem:[#allocation109_spill]]  ;;  %s7227_s2 = smov [#allocation16]  }
 0x189   :  { %s338_s10 = sshll.u32 %s7227_s2, 4  ;;  %s6734_s0 = sshra.s32 %s337_s28, 4  ;;  %s339_s10 = int_to_ptr.vmem [resolvable:$true] %s338_s10  ;;  %s6735_s0 = int_to_ptr.hbm [resolvable:$true] %s6734_s0 }
 0x18a   :  { %s6736_s4 = scalar_lea.hbm %s6735_s0, 1  ;;  %s6738_s3 = scalar_lea.hbm %s9242_s8, 1 }
 0x18b   :  { %p6737_p11 = scmp.ne.s32.totalorder %s6735_s0, %s6736_s4  ;;  %p6739_p12 = scmp.lt.s32.totalorder %s6735_s0, %s9242_s8 }
 0x18c   :  { %p6740_p13 = scmp.lt.s32.totalorder %s6738_s3, %s6736_s4 }
 0x18e   :  { %s360_s11 = sshll.u32 %s9243_s30, 4  ;;  %p6741_p0 = por %p6740_p13, %p6739_p12  ;;  %s361_s11 = int_to_ptr.hbm [resolvable:$true] %s360_s11 }
 0x190   :  { %p6742_p1 = pnand %p6741_p0, %p6737_p11 }
 0x192   :  { %6745 = shalt.err (!%p6742_p1)
}
 0x193   :  { %341 = dma.hbm_to_vmem [thread:$0]  %s337_s28, 16, %s339_s10, [#allocation15]  }
 0x194   :  { %s9244_s15 = sld [smem:[#allocation112_spill]]  ;;  %s7228_s17 = smov [#allocation19]  }
 0x195   :  { %s362_s16 = sshll.u32 %s7228_s17, 4  ;;  %s6758_s22 = sshra.s32 %s361_s11, 4  ;;  %s363_s16 = int_to_ptr.vmem [resolvable:$true] %s362_s16  ;;  %s6759_s22 = int_to_ptr.hbm [resolvable:$true] %s6758_s22 }
 0x196   :  { %s6760_s9 = scalar_lea.hbm %s6759_s22, 1  ;;  %s6762_s27 = scalar_lea.hbm %s9243_s30, 1 }
 0x197   :  { %p6761_p2 = scmp.ne.s32.totalorder %s6759_s22, %s6760_s9  ;;  %p6763_p3 = scmp.lt.s32.totalorder %s6759_s22, %s9243_s30 }
 0x198   :  { %p6764_p4 = scmp.lt.s32.totalorder %s6762_s27, %s6760_s9 }
 0x19a   :  { %s386_s6 = sshll.u32 %s9244_s15, 4  ;;  %p6765_p5 = por %p6764_p4, %p6763_p3  ;;  %s387_s6 = int_to_ptr.hbm [resolvable:$true] %s386_s6 }
 0x19c   :  { %p6766_p6 = pnand %p6765_p5, %p6761_p2 }
 0x19e   :  { %6769 = shalt.err (!%p6766_p6)
}
 0x19f   :  { %365 = dma.hbm_to_vmem [thread:$0]  %s361_s11, 16, %s363_s16, [#allocation18]  }
 0x1a0   :  { %s9245_s23 = sld [smem:[#allocation113_spill]]  ;;  %s7229_s29 = smov [#allocation22]  }
 0x1a1   :  { %s388_s25 = sshll.u32 %s7229_s29, 4  ;;  %s6782_s26 = sshra.s32 %s387_s6, 4  ;;  %s389_s25 = int_to_ptr.vmem [resolvable:$true] %s388_s25  ;;  %s6783_s26 = int_to_ptr.hbm [resolvable:$true] %s6782_s26 }
 0x1a2   :  { %s6784_s24 = scalar_lea.hbm %s6783_s26, 1  ;;  %s6786_s8 = scalar_lea.hbm %s9244_s15, 1 }
 0x1a3   :  { %p6785_p7 = scmp.ne.s32.totalorder %s6783_s26, %s6784_s24  ;;  %p6787_p8 = scmp.lt.s32.totalorder %s6783_s26, %s9244_s15 }
 0x1a4   :  { %p6788_p9 = scmp.lt.s32.totalorder %s6786_s8, %s6784_s24 }
 0x1a6   :  { %s408_s18 = sshll.u32 %s9245_s23, 4  ;;  %p6789_p10 = por %p6788_p9, %p6787_p8  ;;  %s409_s18 = int_to_ptr.hbm [resolvable:$true] %s408_s18 }
 0x1a8   :  { %p6790_p11 = pnand %p6789_p10, %p6785_p7 }
 0x1aa   :  { %6793 = shalt.err (!%p6790_p11)
}
 0x1ab   :  { %391 = dma.hbm_to_vmem [thread:$0]  %s387_s6, 16, %s389_s25, [#allocation21]  }
 0x1ac   :  { %s9246_s28 = sld [smem:[#allocation117_spill]]  ;;  %s7230_s7 = smov [#allocation25]  }
 0x1ad   :  { %s410_s19 = sshll.u32 %s7230_s7, 4  ;;  %s6806_s12 = sshra.s32 %s409_s18, 4  ;;  %s411_s19 = int_to_ptr.vmem [resolvable:$true] %s410_s19  ;;  %s6807_s12 = int_to_ptr.hbm [resolvable:$true] %s6806_s12 }
 0x1ae   :  { %s6808_s14 = scalar_lea.hbm %s6807_s12, 1  ;;  %s6810_s30 = scalar_lea.hbm %s9245_s23, 1 }
 0x1af   :  { %p6809_p12 = scmp.ne.s32.totalorder %s6807_s12, %s6808_s14  ;;  %p6811_p13 = scmp.lt.s32.totalorder %s6807_s12, %s9245_s23 }
 0x1b0   :  { %p6812_p0 = scmp.lt.s32.totalorder %s6810_s30, %s6808_s14 }
 0x1b2   :  { %s436_s1 = sshll.u32 %s9246_s28, 4  ;;  %p6813_p1 = por %p6812_p0, %p6811_p13  ;;  %s437_s1 = int_to_ptr.hbm [resolvable:$true] %s436_s1 }
 0x1b4   :  { %p6814_p2 = pnand %p6813_p1, %p6809_p12 }
 0x1b6   :  { %6817 = shalt.err (!%p6814_p2)
}
 0x1b7   :  { %413 = dma.hbm_to_vmem [thread:$0]  %s409_s18, 16, %s411_s19, [#allocation24]  }
 0x1b8   :  { %s9247_s2 = sld [smem:[#allocation119_spill]]  ;;  %s7231_s10 = smov [#allocation28]  }
 0x1b9   :  { %s438_s11 = sshll.u32 %s7231_s10, 4  ;;  %s6830_s4 = sshra.s32 %s437_s1, 4  ;;  %s439_s11 = int_to_ptr.vmem [resolvable:$true] %s438_s11  ;;  %s6831_s4 = int_to_ptr.hbm [resolvable:$true] %s6830_s4 }
 0x1ba   :  { %s6832_s3 = scalar_lea.hbm %s6831_s4, 1  ;;  %s6834_s15 = scalar_lea.hbm %s9246_s28, 1 }
 0x1bb   :  { %p6833_p3 = scmp.ne.s32.totalorder %s6831_s4, %s6832_s3  ;;  %p6835_p4 = scmp.lt.s32.totalorder %s6831_s4, %s9246_s28 }
 0x1bc   :  { %p6836_p5 = scmp.lt.s32.totalorder %s6834_s15, %s6832_s3 }
 0x1be   :  { %s460_s0 = sshll.u32 %s9247_s2, 4  ;;  %p6837_p6 = por %p6836_p5, %p6835_p4  ;;  %s461_s0 = int_to_ptr.hbm [resolvable:$true] %s460_s0 }
 0x1c0   :  { %p6838_p7 = pnand %p6837_p6, %p6833_p3 }
 0x1c2   :  { %6841 = shalt.err (!%p6838_p7)
}
 0x1c3   :  { %441 = dma.hbm_to_vmem [thread:$0]  %s437_s1, 16, %s439_s11, [#allocation27]  }
 0x1c4   :  { %s9248_s6 = sld [smem:[#allocation121_spill]]  ;;  %s7232_s16 = smov [#allocation31]  }
 0x1c5   :  { %s462_s22 = sshll.u32 %s7232_s16, 4  ;;  %s6854_s9 = sshra.s32 %s461_s0, 4  ;;  %s463_s22 = int_to_ptr.vmem [resolvable:$true] %s462_s22  ;;  %s6855_s9 = int_to_ptr.hbm [resolvable:$true] %s6854_s9 }
 0x1c6   :  { %s6856_s27 = scalar_lea.hbm %s6855_s9, 1  ;;  %s6858_s23 = scalar_lea.hbm %s9247_s2, 1 }
 0x1c7   :  { %p6857_p8 = scmp.ne.s32.totalorder %s6855_s9, %s6856_s27  ;;  %p6859_p9 = scmp.lt.s32.totalorder %s6855_s9, %s9247_s2 }
 0x1c8   :  { %p6860_p10 = scmp.lt.s32.totalorder %s6858_s23, %s6856_s27 }
 0x1ca   :  { %s484_s17 = sshll.u32 %s9248_s6, 4  ;;  %p6861_p11 = por %p6860_p10, %p6859_p9  ;;  %s485_s17 = int_to_ptr.hbm [resolvable:$true] %s484_s17 }
 0x1cc   :  { %p6862_p12 = pnand %p6861_p11, %p6857_p8 }
 0x1ce   :  { %6865 = shalt.err (!%p6862_p12)
}
 0x1cf   :  { %465 = dma.hbm_to_vmem [thread:$0]  %s461_s0, 16, %s463_s22, [#allocation30]  }
 0x1d0   :  { %s9249_s29 = sld [smem:[#allocation124_spill]]  ;;  %s7233_s25 = smov [#allocation34]  }
 0x1d1   :  { %s486_s18 = sshll.u32 %s7233_s25, 4  ;;  %s6878_s24 = sshra.s32 %s485_s17, 4  ;;  %s487_s18 = int_to_ptr.vmem [resolvable:$true] %s486_s18  ;;  %s6879_s24 = int_to_ptr.hbm [resolvable:$true] %s6878_s24 }
 0x1d2   :  { %s6880_s8 = scalar_lea.hbm %s6879_s24, 1  ;;  %s6882_s28 = scalar_lea.hbm %s9248_s6, 1 }
 0x1d3   :  { %p6881_p13 = scmp.ne.s32.totalorder %s6879_s24, %s6880_s8  ;;  %p6883_p0 = scmp.lt.s32.totalorder %s6879_s24, %s9248_s6 }
 0x1d4   :  { %p6884_p1 = scmp.lt.s32.totalorder %s6882_s28, %s6880_s8 }
 0x1d6   :  { %s510_s26 = sshll.u32 %s9249_s29, 4  ;;  %p6885_p2 = por %p6884_p1, %p6883_p0  ;;  %s511_s26 = int_to_ptr.hbm [resolvable:$true] %s510_s26 }
 0x1d8   :  { %p6886_p3 = pnand %p6885_p2, %p6881_p13 }
 0x1da   :  { %6889 = shalt.err (!%p6886_p3)
}
 0x1db   :  { %489 = dma.hbm_to_vmem [thread:$0]  %s485_s17, 16, %s487_s18, [#allocation33]  }
 0x1dc   :  { %s9250_s1 = sld [smem:[#allocation125_spill]]  ;;  %s7234_s19 = smov [#allocation37]  }
 0x1dd   :  { %s512_s12 = sshll.u32 %s7234_s19, 4  ;;  %s6902_s14 = sshra.s32 %s511_s26, 4  ;;  %s513_s12 = int_to_ptr.vmem [resolvable:$true] %s512_s12  ;;  %s6903_s14 = int_to_ptr.hbm [resolvable:$true] %s6902_s14 }
 0x1de   :  { %s6904_s30 = scalar_lea.hbm %s6903_s14, 1  ;;  %s6906_s2 = scalar_lea.hbm %s9249_s29, 1 }
 0x1df   :  { %p6905_p4 = scmp.ne.s32.totalorder %s6903_s14, %s6904_s30  ;;  %p6907_p5 = scmp.lt.s32.totalorder %s6903_s14, %s9249_s29 }
 0x1e0   :  { %p6908_p6 = scmp.lt.s32.totalorder %s6906_s2, %s6904_s30 }
 0x1e2   :  { %s532_s7 = sshll.u32 %s9250_s1, 4  ;;  %p6909_p7 = por %p6908_p6, %p6907_p5  ;;  %s533_s7 = int_to_ptr.hbm [resolvable:$true] %s532_s7 }
 0x1e4   :  { %p6910_p8 = pnand %p6909_p7, %p6905_p4 }
 0x1e6   :  { %6913 = shalt.err (!%p6910_p8)
}
 0x1e7   :  { %515 = dma.hbm_to_vmem [thread:$0]  %s511_s26, 16, %s513_s12, [#allocation36]  }
 0x1e8   :  { %s9251_s10 = sld [smem:[#allocation129_spill]]  ;;  %s7235_s11 = smov [#allocation40]  }
 0x1e9   :  { %s534_s0 = sshll.u32 %s7235_s11, 4  ;;  %s6926_s3 = sshra.s32 %s533_s7, 4  ;;  %s535_s0 = int_to_ptr.vmem [resolvable:$true] %s534_s0  ;;  %s6927_s3 = int_to_ptr.hbm [resolvable:$true] %s6926_s3 }
 0x1ea   :  { %s6928_s15 = scalar_lea.hbm %s6927_s3, 1  ;;  %s6930_s6 = scalar_lea.hbm %s9250_s1, 1 }
 0x1eb   :  { %p6929_p9 = scmp.ne.s32.totalorder %s6927_s3, %s6928_s15  ;;  %p6931_p10 = scmp.lt.s32.totalorder %s6927_s3, %s9250_s1 }
 0x1ec   :  { %p6932_p11 = scmp.lt.s32.totalorder %s6930_s6, %s6928_s15 }
 0x1ee   :  { %s559_s4 = sshll.u32 %s9251_s10, 4  ;;  %p6933_p12 = por %p6932_p11, %p6931_p10  ;;  %s7744_s4 = int_to_ptr.hbm [resolvable:$true] %s559_s4 }
 0x1f0   :  { %p6934_p13 = pnand %p6933_p12, %p6929_p9 }
 0x1f2   :  { %6937 = shalt.err (!%p6934_p13)
}
 0x1f3   :  { %537 = dma.hbm_to_vmem [thread:$0]  %s533_s7, 16, %s535_s0, [#allocation39]  }
 0x1f4   :  { %s9252_s17 = sld [smem:[#allocation131_spill]]  ;;  %s7236_s16 = smov [#allocation43]  }
 0x1f5   :  { %s561_s22 = sshll.u32 %s7236_s16, 4  ;;  %s6950_s27 = sshra.s32 %s7744_s4, 4  ;;  %s562_s22 = int_to_ptr.vmem [resolvable:$true] %s561_s22  ;;  %s6951_s27 = int_to_ptr.hbm [resolvable:$true] %s6950_s27 }
 0x1f6   :  { %s6952_s23 = scalar_lea.hbm %s6951_s27, 32  ;;  %s6954_s29 = scalar_lea.hbm %s9251_s10, 32 }
 0x1f7   :  { %p6953_p0 = scmp.ne.s32.totalorder %s6951_s27, %s6952_s23  ;;  %p6955_p1 = scmp.lt.s32.totalorder %s6951_s27, %s9251_s10 }
 0x1f8   :  { %p6956_p2 = scmp.lt.s32.totalorder %s6954_s29, %s6952_s23 }
 0x1fa   :  { %s586_s9 = sshll.u32 %s9252_s17, 4  ;;  %p6957_p3 = por %p6956_p2, %p6955_p1  ;;  %s587_s9 = int_to_ptr.hbm [resolvable:$true] %s586_s9 }
 0x1fc   :  { %p6958_p4 = pnand %p6957_p3, %p6953_p0 }
 0x1fe   :  { %6961 = shalt.err (!%p6958_p4)
}
 0x1ff   :  { %s7237_s25 = smov 128   ;;  %s7238_s18 = smov 8  }
 0x200   :  { %567 = dma.hbm_to_vmem [thread:$0]  %s7744_s4, 512, %s562_s22, [#allocation42], %s7237_s25, %s7237_s25, %s7238_s18  }
 0x201   :  { %s7239_s26 = smov [#allocation46]   ;;  %s608_s8 = sshll.u32 %s7644_s21, 4  ;;  %s609_s8 = int_to_ptr.hbm [resolvable:$true] %s608_s8 }
 0x202   :  { %s588_s24 = sshll.u32 %s7239_s26, 4  ;;  %s6974_s28 = sshra.s32 %s587_s9, 4  ;;  %s589_s24 = int_to_ptr.vmem [resolvable:$true] %s588_s24  ;;  %s6975_s28 = int_to_ptr.hbm [resolvable:$true] %s6974_s28 }
 0x203   :  { %s6976_s1 = scalar_lea.hbm %s6975_s28, 1  ;;  %s6978_s7 = scalar_lea.hbm %s9252_s17, 1 }
 0x204   :  { %p6977_p5 = scmp.ne.s32.totalorder %s6975_s28, %s6976_s1  ;;  %p6979_p6 = scmp.lt.s32.totalorder %s6975_s28, %s9252_s17 }
 0x205   :  { %p6980_p7 = scmp.lt.s32.totalorder %s6978_s7, %s6976_s1 }
 0x207   :  { %p6981_p8 = por %p6980_p7, %p6979_p6 }
 0x209   :  { %p6982_p9 = pnand %p6981_p8, %p6977_p5 }
 0x20b   :  { %6985 = shalt.err (!%p6982_p9)
}
 0x20c   :  { %591 = dma.hbm_to_vmem [thread:$0]  %s587_s9, 16, %s589_s24, [#allocation45]  }
 0x20d   :  { %s7240_s19 = smov [#allocation49]   ;;  %s6998_s14 = sshra.s32 %s609_s8, 4  ;;  %s6999_s14 = int_to_ptr.hbm [resolvable:$true] %s6998_s14 }
 0x20e   :  { %s610_s12 = sshll.u32 %s7240_s19, 4  ;;  %s7000_s30 = scalar_lea.hbm %s6999_s14, 1  ;;  %s611_s12 = int_to_ptr.vmem [resolvable:$true] %s610_s12 }
 0x20f   :  { %p7001_p10 = scmp.ne.s32.totalorder %s6999_s14, %s7000_s30  ;;  %s7002_s2 = scalar_lea.hbm %s7644_s21, 1 }
 0x210   :  { %p7003_p11 = scmp.lt.s32.totalorder %s6999_s14, %s7644_s21  ;;  %p7004_p12 = scmp.lt.s32.totalorder %s7002_s2, %s7000_s30 }
 0x212   :  { %p7005_p13 = por %p7004_p12, %p7003_p11 }
 0x214   :  { %p7006_p0 = pnand %p7005_p13, %p7001_p10 }
 0x216   :  { %7009 = shalt.err (!%p7006_p0)
}
 0x217   :  { %613 = dma.hbm_to_vmem [thread:$0]  %s609_s8, 16, %s611_s12, [#allocation48]  }
 0x218   :  { %7094 = dma.done.wait [#allocation3], 16  }
 0x219   :  { %7095 = vsyncadd [#allocation3], 4294967280 }
 0x21a   :  { %7096 = dma.done.wait [#allocation6], 32  }
 0x21b   :  { %7097 = vsyncadd [#allocation6], 4294967264 }
 0x21c   :  { %7098 = dma.done.wait [#allocation9], 32  }
 0x21d   :  { %7099 = vsyncadd [#allocation9], 4294967264 }
 0x21e   :  { %7100 = dma.done.wait [#allocation12], 32  }
 0x21f   :  { %7101 = vsyncadd [#allocation12], 4294967264 }
 0x220   :  { %7102 = dma.done.wait [#allocation15], 32  }
 0x221   :  { %7103 = vsyncadd [#allocation15], 4294967264 }
 0x222   :  { %7104 = dma.done.wait [#allocation18], 32  }
 0x223   :  { %7105 = vsyncadd [#allocation18], 4294967264 }
 0x224   :  { %7106 = dma.done.wait [#allocation21], 32  }
 0x225   :  { %7107 = vsyncadd [#allocation21], 4294967264 }
 0x226   :  { %7108 = dma.done.wait [#allocation24], 32  }
 0x227   :  { %7109 = vsyncadd [#allocation24], 4294967264 }
 0x228   :  { %7110 = dma.done.wait [#allocation27], 32  }
 0x229   :  { %7111 = vsyncadd [#allocation27], 4294967264 }
 0x22a   :  { %7112 = dma.done.wait [#allocation30], 32  }
 0x22b   :  { %7113 = vsyncadd [#allocation30], 4294967264 }
 0x22c   :  { %7114 = dma.done.wait [#allocation33], 32  }
 0x22d   :  { %7115 = vsyncadd [#allocation33], 4294967264 }
 0x22e   :  { %7116 = dma.done.wait [#allocation36], 32  }
 0x22f   :  { %7117 = vsyncadd [#allocation36], 4294967264 }
 0x230   :  { %7118 = dma.done.wait [#allocation39], 32  }
 0x231   :  { %7119 = vsyncadd [#allocation39], 4294967264 }
 0x232   :  { %7120 = dma.done.wait [#allocation42], 528  }
 0x233   :  { %7121 = vsyncadd [#allocation42], 4294966768 }
 0x234   :  { %7122 = dma.done.wait [#allocation45], 32  }
 0x235   :  { %7123 = vsyncadd [#allocation45], 4294967264 }
 0x236   :  { %7124 = dma.done.wait [#allocation48], 32  }
 0x237   :  { %7125 = vsyncadd [#allocation48], 4294967264  ;;  %s9253_s21 = sld [smem:[#allocation80_spill]]  ;;  %vm803_vm0 = vcmask 261120   ;;  %s7241_s16 = smov 124   ;;  %vm877_vm11 = vcmask 25600  }
 0x238   :  { %s9254_s10 = sld [smem:[#allocation88_spill]]  ;;  %s7242_s22 = smov 96   ;;  %v5869_v57 = vld [vmem:[#allocation2] ss:$0 sm:$0xff]  ;;  %v5871_v63 = vld [vmem:[#allocation5] ss:$0 sm:$0xff] }
 0x239   :  { %s9255_s11 = sld [smem:[#allocation73_spill]]  ;;  %s7245_s19 = smov 32  }
 0x23a   :  { %s9256_s0 = sld [smem:[#allocation72_spill]]  ;;  %s7246_s12 = smov 64  }
 0x23b   :  { %s9257_s4 = sld [smem:[#allocation82_spill]] }
 0x23c   :  { %s9258_s3 = sld [smem:[#allocation89_spill]] }
 0x23d   :  { %v755_v0 = vld [vmem:[%s9253_s21 + $0x78] sm:$0xff]  ;;  %v754_v1 = vld [vmem:[%s9253_s21 + $0x70] sm:$0xff]  ;;  %v753_v2 = vld [vmem:[%s9253_s21 + $0x68] sm:$0xff]  ;;  %s9259_s15 = sld [smem:[#allocation81_spill]] }
 0x23e   :  { %772 = vmatpush.msra.mxu0 %v755_v0  ;;  %v752_v3 = vld [vmem:[%s9253_s21 + $0x60] sm:$0xff]  ;;  %v918_v4 = vld [vmem:[%s9254_s10 + $0x18] sm:$0xff]  ;;  %v917_v5 = vld [vmem:[%s9254_s10 + $0x10] sm:$0xff]  ;;  %s9260_s6 = sld [smem:[#allocation90_spill]] }
 0x23f   :  { %950 = vmatpush.msra.mxu3 %v918_v4  ;;  %v751_v6 = vld [vmem:[%s9253_s21 + $0x58] sm:$0xff]  ;;  %v750_v7 = vld [vmem:[%s9253_s21 + $0x50] sm:$0xff]  ;;  %v916_v8 = vld [vmem:[%s9254_s10 + $0x8] sm:$0xff]  ;;  %s9261_s17 = sld [smem:[#allocation84_spill]] }
 0x240   :  { %773 = vmatpush.msra.mxu0 %v754_v1  ;;  %v915_v9 = vld [vmem:[%s9254_s10] sm:$0xff]  ;;  %v749_v11 = vld [vmem:[%s9253_s21 + $0x48] sm:$0xff]  ;;  %v747_v13 = vld [vmem:[%s9253_s21 + $0x38] sm:$0xff]  ;;  %s9262_s9 = sld [smem:[#allocation92_spill]] }
 0x241   :  { %951 = vmatpush.msra.mxu3 %v917_v5  ;;  %v739_v10 = vld [vmem:[%s9255_s11] sm:$0xff]  ;;  %v746_v14 = vld [vmem:[%s9253_s21 + $0x30] sm:$0xff]  ;;  %v745_v15 = vld [vmem:[%s9253_s21 + $0x28] sm:$0xff]  ;;  %s9263_s27 = sld [smem:[#allocation83_spill]] }
 0x242   :  { %774 = vmatpush.msra.mxu0 %v753_v2  ;;  %v748_v12 = vld [vmem:[%s9253_s21 + $0x40] sm:$0xff]  ;;  %v743_v17 = vld [vmem:[%s9253_s21 + $0x18] sm:$0xff]  ;;  %v742_v18 = vld [vmem:[%s9253_s21 + $0x10] sm:$0xff]  ;;  %s9264_s23 = sld [smem:[#allocation85_spill]] }
 0x243   :  { %952 = vmatpush.msra.mxu3 %v916_v8  ;;  %v744_v16 = vld [vmem:[%s9253_s21 + $0x20] sm:$0xff]  ;;  %v741_v19 = vld [vmem:[%s9253_s21 + $0x8] sm:$0xff]  ;;  %v760_v22 = vld [vmem:[%s9257_s4 + $0x18] sm:$0xff]  ;;  %s9265_s29 = sld [smem:[#allocation86_spill]] }
 0x244   :  { %775 = vmatpush.msra.mxu0 %v752_v3  ;;  %v740_v20 = vld [vmem:[%s9253_s21] sm:$0xff]  ;;  %v759_v23 = vld [vmem:[%s9257_s4 + $0x10] sm:$0xff]  ;;  %818 = vmatpush.msra.mxu1 %v760_v22  ;;  %v758_v24 = vld [vmem:[%s9257_s4 + $0x8] sm:$0xff]  ;;  %s9266_s26 = sld [smem:[#allocation87_spill]] }
 0x245   :  { %953 = vmatpush.msra.mxu3 %v915_v9  ;;  %v738_v21 = vld [vmem:[%s9256_s0] sm:$0x3]  ;;  %v923_v40 = vld [vmem:[%s9260_s6 + $0x18] sm:$0xff]  ;;  %v922_v41 = vld [vmem:[%s9260_s6 + $0x10] sm:$0xff]  ;;  %s9267_s24 = sld [smem:[#allocation94_spill]] }
 0x246   :  { %776 = vmatpush.msra.mxu0 %v751_v6  ;;  %5599 = vmatmul.msk.f32.vlgmr.msra.gmra.mxu3 %vm803_vm0, %v739_v10  ;;  %v5867_v25 = vld [vmem:[%s9258_s3] ss:$0 sm:$0xff]  ;;  %v921_v42 = vld [vmem:[%s9260_s6 + $0x8] sm:$0xff]  ;;  %v765_v44 = vld [vmem:[%s9261_s17 + $0x18] sm:$0xff]  ;;  %s9268_s8 = sld [smem:[#allocation96_spill]] }
 0x247   :  { %819 = vmatpush.msra.mxu1 %v759_v23  ;;  %v757_v26 = vld [vmem:[%s9257_s4] sm:$0xff]  ;;  %v764_v45 = vld [vmem:[%s9261_s17 + $0x10] sm:$0xff]  ;;  %844 = vmatpush.msra.mxu2 %v765_v44  ;;  %v763_v48 = vld [vmem:[%s9261_s17 + $0x8] sm:$0xff]  ;;  %s9269_s28 = sld [smem:[#allocation98_spill]] }
 0x248   :  { %777 = vmatpush.msra.mxu0 %v750_v7  ;;  %v5866_v28 = vld [vmem:[%s9259_s15] ss:$0 sm:$0xff]  ;;  %v928_v50 = vld [vmem:[%s9262_s9 + $0x18] sm:$0xff]  ;;  %v927_v51 = vld [vmem:[%s9262_s9 + $0x10] sm:$0xff]  ;;  %s9270_s1 = sld [smem:[#allocation95_spill]]  ;;  %s7249_s15 = smov 3  }
 0x249   :  { %820 = vmatpush.msra.mxu1 %v758_v24  ;;  %v920_v43 = vld [vmem:[%s9260_s6] sm:$0xff]  ;;  %845 = vmatpush.msra.mxu2 %v764_v45  ;;  %v926_v52 = vld [vmem:[%s9262_s9 + $0x8] sm:$0xff]  ;;  %s9271_s7 = sld [smem:[#allocation99_spill]] }
 0x24a   :  { %778 = vmatpush.msra.mxu0 %v749_v11  ;;  %v762_v49 = vld [vmem:[%s9261_s17] sm:$0xff]  ;;  %s9272_s14 = sld [smem:[#allocation103_spill]]  ;;  %s7250_s17 = smov 125  }
 0x24b   :  { %821 = vmatpush.msra.mxu1 %v757_v26  ;;  %846 = vmatpush.msra.mxu2 %v763_v48  ;;  %v925_v53 = vld [vmem:[%s9262_s9] sm:$0xff]  ;;  %s9273_s30 = sld [smem:[#allocation100_spill]] }
 0x24c   :  { %779 = vmatpush.msra.mxu0 %v748_v12  ;;  %v5868_v54 = vld [vmem:[%s9263_s27] ss:$0 sm:$0xff]  ;;  %s9274_s2 = sld [smem:[#allocation101_spill]] }
 0x24d   :  { %983 = vmatpush.msrb.mxu1 %v923_v40  ;;  %847 = vmatpush.msra.mxu2 %v762_v49  ;;  %v5870_v60 = vld [vmem:[%s9264_s23] ss:$0 sm:$0xff]  ;;  %s9275_s21 = sld [smem:[#allocation78_spill]] }
 0x24e   :  { %780 = vmatpush.msra.mxu0 %v747_v13  ;;  %s9276_s10 = sld [smem:[#allocation102_spill]] }
 0x24f   :  { %984 = vmatpush.msrb.mxu1 %v922_v41  ;;  %1009 = vmatpush.msrb.mxu2 %v928_v50  ;;  %s9277_s11 = sld [smem:[#allocation108_spill]] }
 0x250   :  { %781 = vmatpush.msra.mxu0 %v746_v14  ;;  %s9278_s0 = sld [smem:[#allocation74_spill]] }
 0x251   :  { %985 = vmatpush.msrb.mxu1 %v921_v42  ;;  %1010 = vmatpush.msrb.mxu2 %v927_v51  ;;  %s9279_s4 = sld [smem:[#allocation115_spill]] }
 0x252   :  { %782 = vmatpush.msra.mxu0 %v745_v15  ;;  %s9280_s3 = sld [smem:[#allocation75_spill]] }
 0x253   :  { %986 = vmatpush.msrb.mxu1 %v920_v43  ;;  %1011 = vmatpush.msrb.mxu2 %v926_v52  ;;  %s9281_s6 = sld [smem:[#allocation104_spill]] }
 0x254   :  { %783 = vmatpush.msra.mxu0 %v744_v16  ;;  %s9283_s9 = sld [smem:[#allocation106_spill]] }
 0x255   :  { %1012 = vmatpush.msrb.mxu2 %v925_v53  ;;  %s9284_s27 = sld [smem:[#allocation111_spill]] }
 0x256   :  { %784 = vmatpush.msra.mxu0 %v743_v17  ;;  %s9285_s23 = sld [smem:[#allocation79_spill]] }
 0x258   :  { %785 = vmatpush.msra.mxu0 %v742_v18 }
 0x25a   :  { %786 = vmatpush.msra.mxu0 %v741_v19 }
 0x25c   :  { %787 = vmatpush.msra.mxu0 %v740_v20 }
 0x25d   :  { %788 = vmatmul.f32.vlgmr.msra.gmra.mxu0 %v738_v21 }
 0x2c9   :  { %v955_v27 = vpop.f32.mrf.mxu3 }
 0x2ca   :  { %v7790_v29 = vadd.f32 %v5867_v25, %v955_v27 }
 0x2cc   :  { %v959_v33 = vmul.f32 1.442695, %v7790_v29  ;;  %vm958_vm2 = vcmp.gt.f32.partialorder %v7790_v29, 0.0 }
 0x2da   :  { %v789_v30 = vpop.f32.mrf.mxu0 }
 0x2db   :  { %v7792_v31 = vadd.f32 %v5866_v28, %v789_v30 }
 0x2dd   :  { %v793_v32 = vmul.f32 1.442695, %v7792_v31  ;;  %vm792_vm1 = vcmp.gt.f32.partialorder %v7792_v31, 0.0 }
 0x2df   :  { %5902 = vpow2.f32 %v793_v32 }
 0x2e0   :  { %5904 = vpow2.f32 %v959_v33 }
 0x2e5   :  { %v5903_v34 = vpop.eup %5902 }
 0x2e6   :  { %v5595_v35 = vadd.f32 -1.0, %v5903_v34  ;;  %v5905_v36 = vpop.eup %5904 }
 0x2e7   :  { %v5600_v38 = vadd.f32 -1.0, %v5905_v36 }
 0x2e8   :  { %v796_v37 = vsel %vm792_vm1, %v7792_v31, %v5595_v35 }
 0x2e9   :  { %801 = vrot.lane.b32.xlu0 %v796_v37, %s7241_s16  ;;  %v962_v39 = vsel %vm958_vm2, %v7790_v29, %v5600_v38  ;;  %v7243_v37 = vmov 4.0   ;;  %v7244_v38 = vmov 32.0  }
 0x2f1   :  { %967 = vrot.lane.b32.xlu0 %v962_v39, %s7242_s22 }
 0x35b   :  { %v802_v46 = vpop.permute.xlu0 %801 }
 0x35c   :  { %5596 = vmatmul.msk.f32.vlgmr.msra.gmra.mxu1 %vm803_vm0, %v802_v46 }
 0x363   :  { %v968_v47 = vpop.permute.xlu0 %967 }
 0x364   :  { %5601 = vmatmul.msk.f32.vlgmr.msrb.gmra.mxu1 %vm803_vm0, %v968_v47 }
 0x3d9   :  { %v823_v55 = vpop.f32.mrf.mxu1 }
 0x3da   :  { %v824_v56 = vadd.f32 %v5868_v54, %v823_v55 }
 0x3dc   :  { %5597 = vmatmul.msk.f32.vlgmr.msra.gmra.mxu2 %vm803_vm0, %v824_v56 }
 0x3e1   :  { %v988_v58 = vpop.f32.mrf.mxu1 }
 0x3e2   :  { %v989_v59 = vadd.f32 %v5869_v57, %v988_v58 }
 0x3e4   :  { %5602 = vmatmul.msk.f32.vlgmr.msrb.gmra.mxu2 %vm803_vm0, %v989_v59 }
 0x45f   :  { %v849_v61 = vpop.f32.mrf.mxu2 }
 0x460   :  { %v850_v62 = vadd.f32 %v5870_v60, %v849_v61  ;;  %v1099_v61 = vlaneseq }
 0x462   :  { %872 = vrot.lane.b32.xlu1 %v850_v62, %s7241_s16  ;;  %v5598_v5 = vmul.f32 -1.442695, %v850_v62  ;;  %s9282_s16 = sld [smem:[#allocation110_spill]] }
 0x467   :  { %v1014_v0 = vpop.f32.mrf.mxu2 }
 0x468   :  { %v1015_v1 = vadd.f32 %v5871_v63, %v1014_v0  ;;  %v1100_v63 = vshrl.u32 %v1099_v61, 7  ;;  %v1155_v61 = vld [vmem:[%s9268_s8 + $0x70] sm:$0xff] }
 0x46a   :  { %1037 = vrot.lane.b32.xlu2 %v1015_v1, %s7242_s22  ;;  %v5603_v2 = vmul.f32 -1.442695, %v1015_v1  ;;  %5863 = vset.pattern.permute.xlu1 %v1100_v63 }
 0x46b   :  { %5864 = vset.pattern.permute.xlu2 %v1100_v63  ;;  %5865 = vset.pattern.permute.xlu0 %v1100_v63  ;;  %v1154_v63 = vld [vmem:[%s9268_s8 + $0x68] sm:$0xff] }
 0x46c   :  { %5906 = vpow2.f32 %v5603_v2 }
 0x472   :  { %v5907_v3 = vpop.eup %5906 }
 0x473   :  { %v1020_v4 = vadd.f32 1.0, %v5907_v3 }
 0x475   :  { %5908 = vrcp.f32 %v1020_v4  ;;  %vm1026_vm3 = vweird.f32 %v1020_v4  ;;  %v1032_v12 = vand.u32 2147483648, %v1020_v4  ;;  %v1030_v14 = vand.u32 2147483647, %v1020_v4 }
 0x476   :  { %5910 = vpow2.f32 %v5598_v5 }
 0x477   :  { %v1033_v16 = vor.u32 1.1754944e-38, %v1032_v12  ;;  %vm1031_vm6 = vcmp.eq.f32.partialorder %v1030_v14, 8.507059e+37 }
 0x47b   :  { %v5909_v6 = vpop.eup %5908 }
 0x47c   :  { %v1022_v7 = vmul.f32 %v5909_v6, %v1020_v4  ;;  %v5911_v8 = vpop.eup %5910  ;;  %vm1027_vm4 = vweird.f32 %v5909_v6 }
 0x47d   :  { %v855_v10 = vadd.f32 1.0, %v5911_v8  ;;  %vm1028_vm5 = vmor %vm1026_vm3, %vm1027_vm4 }
 0x47e   :  { %v1023_v9 = vsub.f32 1.0, %v1022_v7  ;;  %v5872_v7 = vld [vmem:[%s9265_s29] ss:$0 sm:$0xff]  ;;  %s9286_s29 = sld [smem:[#allocation114_spill]] }
 0x47f   :  { %5912 = vrcp.f32 %v855_v10  ;;  %v867_v27 = vand.u32 2147483648, %v855_v10  ;;  %vm861_vm8 = vweird.f32 %v855_v10  ;;  %v865_v28 = vand.u32 2147483647, %v855_v10 }
 0x480   :  { %v1024_v11 = vmul.f32 %v5909_v6, %v1023_v9  ;;  %5914 = vrcp.f32 %v7243_v37  ;;  %v5873_v9 = vld [vmem:[%s9266_s26] ss:$0 sm:$0xff]  ;;  %s9287_s26 = sld [smem:[#allocation76_spill]] }
 0x481   :  { %v868_v32 = vor.u32 1.1754944e-38, %v867_v27  ;;  %vm866_vm10 = vcmp.eq.f32.partialorder %v865_v28, 8.507059e+37  ;;  %5916 = vrcp.f32 %v7244_v38 }
 0x482   :  { %v1025_v13 = vadd.f32 %v5909_v6, %v1024_v11 }
 0x484   :  { %v1029_v17 = vsel %vm1028_vm5, %v5909_v6, %v1025_v13  ;;  %vm9171_vm5 = vcmask 257024  }
 0x485   :  { %v5913_v15 = vpop.eup %5912  ;;  %v1034_v19 = vsel %vm1031_vm6, %v1033_v16, %v1029_v17  ;;  %vm1200_vm6 = vcmask 1041409  }
 0x486   :  { %v857_v18 = vmul.f32 %v5913_v15, %v855_v10  ;;  %vm862_vm7 = vweird.f32 %v5913_v15  ;;  %v5915_v39 = vpop.eup %5914 }
 0x487   :  { %vm863_vm9 = vmor %vm861_vm8, %vm862_vm7  ;;  %v5917_v40 = vpop.eup %5916  ;;  %v882_v41 = vmul.f32 4.0, %v5915_v39  ;;  %vm886_vm12 = vweird.f32 %v5915_v39 }
 0x488   :  { %v858_v22 = vsub.f32 1.0, %v857_v18  ;;  %v1046_v42 = vmul.f32 32.0, %v5917_v40  ;;  %vm1050_vm13 = vweird.f32 %v5917_v40 }
 0x489   :  { %v883_v43 = vsub.f32 1.0, %v882_v41 }
 0x48a   :  { %v859_v25 = vmul.f32 %v5913_v15, %v858_v22  ;;  %v1047_v44 = vsub.f32 1.0, %v1046_v42 }
 0x48b   :  { %v884_v45 = vmul.f32 %v5915_v39, %v883_v43 }
 0x48c   :  { %v860_v26 = vadd.f32 %v5913_v15, %v859_v25  ;;  %v1048_v46 = vmul.f32 %v5917_v40, %v1047_v44 }
 0x48d   :  { %v885_v47 = vadd.f32 %v5915_v39, %v884_v45 }
 0x48e   :  { %v864_v30 = vsel %vm863_vm9, %v5913_v15, %v860_v26  ;;  %v1049_v48 = vadd.f32 %v5917_v40, %v1048_v46  ;;  %v5874_v46 = vld [vmem:[#allocation7] ss:$0 sm:$0xff] }
 0x48f   :  { %v869_v34 = vsel %vm866_vm10, %v868_v32, %v864_v30 }
 0x490   :  { %v7826_v49 = vsel %vm1050_vm13, %v5917_v40, %v1049_v48  ;;  %v5875_v48 = vld [vmem:[#allocation8] ss:$0 sm:$0xff] }
 0x4c4   :  { %v1038_v20 = vpop.permute.xlu2 %1037 }
 0x4c5   :  { %v1040_v21 = vmul.f32 %v1038_v20, %v1034_v19 }
 0x4c7   :  { %v1041_v23 = vadd.f32 %v1040_v21, %v7790_v29 }
 0x4c9   :  { %v1042_v24 = vsel %vm803_vm0, %v1041_v23, 0.0 }
 0x4ca   :  { %1043 = vadd.xlane.f32.xlu0 %v1042_v24 }
 0x4d4   :  { %v873_v33 = vpop.permute.xlu1 %872 }
 0x4d5   :  { %v875_v35 = vmul.f32 %v873_v33, %v869_v34 }
 0x4d7   :  { %v876_v36 = vadd.f32 %v875_v35, %v7792_v31  ;;  %v887_v31 = vsel %vm886_vm12, %v5915_v39, %v885_v47  ;;  %vm1349_vm12 = vcmask 1047556  }
 0x4d9   :  { %v878_v29 = vsel %vm877_vm11, %v876_v36, 0.0 }
 0x4da   :  { %879 = vadd.xlane.f32.xlu1 %v878_v29 }
 0x53d   :  { %v1044_v50 = vpop.xlane.xlu0 %1043 }
 0x53e   :  { %v1052_v53 = vmul.f32 %v7826_v49, %v1044_v50  ;;  %v1139_v50 = vld [vmem:[%s9267_s24 + $0x38] sm:$0xff] }
 0x53f   :  { %1236 = vmatpush.msra.mxu1 %v1139_v50  ;;  %v1173_v50 = vld [vmem:[%s9269_s28 + $0x78] sm:$0xff] }
 0x540   :  { %v7829_v56 = vsub.f32 %v1041_v23, %v1052_v53  ;;  %v1134_v53 = vld [vmem:[%s9267_s24 + $0x10] sm:$0xff] }
 0x542   :  { %v1054_v58 = vmul.f32 %v7829_v56, %v7829_v56 }
 0x544   :  { %v1055_v59 = vsel %vm803_vm0, %v1054_v58, 0.0 }
 0x54d   :  { %v880_v51 = vpop.xlane.xlu1 %879 }
 0x54e   :  { %v888_v52 = vmul.f32 %v887_v31, %v880_v51  ;;  %v1136_v51 = vld [vmem:[%s9267_s24 + $0x20] sm:$0xff] }
 0x550   :  { %v889_v54 = vsub.f32 %v876_v36, %v888_v52  ;;  %v1137_v52 = vld [vmem:[%s9267_s24 + $0x28] sm:$0xff] }
 0x551   :  { %1237 = vmatpush.msra.mxu1 %v1137_v52  ;;  %v1171_v52 = vld [vmem:[%s9269_s28 + $0x68] sm:$0xff] }
 0x552   :  { %v890_v55 = vmul.f32 %v889_v54, %v889_v54 }
 0x554   :  { %v891_v57 = vsel %vm877_vm11, %v890_v55, 0.0 }
 0x555   :  { %892 = vadd.xlane.f32.xlu2 %v891_v57  ;;  %v1133_v57 = vld [vmem:[%s9267_s24 + $0x8] sm:$0xff] }
 0x55d   :  { %1056 = vadd.xlane.f32.xlu2 %v1055_v59 }
 0x5c8   :  { %v893_v60 = vpop.xlane.xlu2 %892 }
 0x5c9   :  { %v894_v62 = vmul.f32 %v893_v60, %v887_v31  ;;  %v1138_v31 = vld [vmem:[%s9267_s24 + $0x30] sm:$0xff]  ;;  %v1156_v60 = vld [vmem:[%s9268_s8 + $0x78] sm:$0xff] }
 0x5ca   :  { %1216 = vmatpush.msrb.mxu3 %v1138_v31  ;;  %1252 = vmatpush.msra.mxu2 %v1156_v60  ;;  %v1172_v31 = vld [vmem:[%s9269_s28 + $0x70] sm:$0xff] }
 0x5cb   :  { %v895_v0 = vadd.f32 1e-05, %v894_v62  ;;  %v1164_v60 = vld [vmem:[%s9269_s28 + $0x30] sm:$0xff] }
 0x5cc   :  { %1217 = vmatpush.msrb.mxu3 %v1136_v51  ;;  %1253 = vmatpush.msra.mxu2 %v1155_v61  ;;  %v1170_v51 = vld [vmem:[%s9269_s28 + $0x60] sm:$0xff]  ;;  %v1165_v61 = vld [vmem:[%s9269_s28 + $0x38] sm:$0xff] }
 0x5cd   :  { %5918 = vrsqrt.f32 %v895_v0  ;;  %vm902_vm15 = vweird.f32 %v895_v0 }
 0x5ce   :  { %1218 = vmatpush.msrb.mxu3 %v1134_v53  ;;  %1254 = vmatpush.msra.mxu2 %v1154_v63  ;;  %v1163_v63 = vld [vmem:[%s9269_s28 + $0x28] sm:$0xff] }
 0x5d0   :  { %v1057_v36 = vpop.xlane.xlu2 %1056 }
 0x5d1   :  { %v1058_v29 = vmul.f32 %v1057_v36, %v7826_v49  ;;  %v1184_v36 = vld [vmem:[%s9269_s28 + $0xd0] sm:$0xff] }
 0x5d3   :  { %v5919_v1 = vpop.eup %5918  ;;  %v1059_v37 = vadd.f32 1e-05, %v1058_v29  ;;  %v1185_v29 = vld [vmem:[%s9269_s28 + $0xd8] sm:$0xff] }
 0x5d4   :  { %v897_v2 = vmul.f32 %v5919_v1, %v895_v0  ;;  %vm903_vm14 = vweird.f32 %v5919_v1  ;;  %v1153_v0 = vld [vmem:[%s9268_s8 + $0x60] sm:$0xff] }
 0x5d5   :  { %vm904_vm1 = vmor %vm902_vm15, %vm903_vm14  ;;  %vm1066_vm3 = vweird.f32 %v1059_v37  ;;  %1255 = vmatpush.msra.mxu2 %v1153_v0 }
 0x5d6   :  { %v898_v3 = vmul.f32 %v5919_v1, %v897_v2  ;;  %v1152_v2 = vld [vmem:[%s9268_s8 + $0x58] sm:$0xff] }
 0x5d7   :  { %1256 = vmatpush.msra.mxu2 %v1152_v2 }
 0x5d8   :  { %v899_v4 = vmul.f32 0.5, %v898_v3  ;;  %v1151_v3 = vld [vmem:[%s9268_s8 + $0x50] sm:$0xff] }
 0x5d9   :  { %1257 = vmatpush.msra.mxu2 %v1151_v3  ;;  %v1160_v3 = vld [vmem:[%s9269_s28 + $0x10] sm:$0xff] }
 0x5da   :  { %v900_v5 = vsub.f32 1.5, %v899_v4 }
 0x5dc   :  { %v901_v6 = vmul.f32 %v5919_v1, %v900_v5  ;;  %v1150_v5 = vld [vmem:[%s9268_s8 + $0x48] sm:$0xff] }
 0x5dd   :  { %1258 = vmatpush.msra.mxu2 %v1150_v5  ;;  %v1158_v5 = vld [vmem:[%s9269_s28] sm:$0xff] }
 0x5de   :  { %v905_v8 = vsel %vm904_vm1, %v5919_v1, %v901_v6  ;;  %v1149_v6 = vld [vmem:[%s9268_s8 + $0x40] sm:$0xff] }
 0x5df   :  { %v906_v10 = vmul.f32 %v905_v8, %v889_v54  ;;  %v1135_v54 = vld [vmem:[%s9267_s24 + $0x18] sm:$0xff]  ;;  %1259 = vmatpush.msra.mxu2 %v1149_v6  ;;  %v1159_v6 = vld [vmem:[%s9269_s28 + $0x8] sm:$0xff] }
 0x5e0   :  { %1238 = vmatpush.msra.mxu1 %v1135_v54 }
 0x5e1   :  { %v910_v11 = vmul.f32 %v5872_v7, %v906_v10 }
 0x5e2   :  { %1239 = vmatpush.msra.mxu1 %v1133_v57 }
 0x5e3   :  { %v914_v12 = vadd.f32 %v5873_v9, %v910_v11 }
 0x5e5   :  { %v1079_v13 = vsel %vm877_vm11, %v914_v12, -inf }
 0x5e6   :  { %v1080_v14 = vrot.slane %v1079_v13, 4 }
 0x5e8   :  { %v1081_v15 = vmax.f32 %v1079_v13, %v1080_v14 }
 0x5ea   :  { %v1082_v16 = vrot.slane %v1081_v15, 2 }
 0x5ec   :  { %v1083_v17 = vmax.f32 %v1081_v15, %v1082_v16 }
 0x5ee   :  { %v1084_v18 = vrot.slane %v1083_v17, 1 }
 0x5f0   :  { %v1085_v19 = vmax.f32 %v1083_v17, %v1084_v18 }
 0x5f2   :  { %v1086_v20 = vsub.f32 %v914_v12, %v1085_v19 }
 0x5f4   :  { %v1087_v21 = vmul.f32 1.442695, %v1086_v20 }
 0x5f6   :  { %5920 = vpow2.f32 %v1087_v21 }
 0x5fc   :  { %v5921_v22 = vpop.eup %5920 }
 0x5fd   :  { %v1089_v23 = vsel %vm877_vm11, %v5921_v22, 0.0 }
 0x5fe   :  { %v1090_v24 = vrot.slane %v1089_v23, 4 }
 0x600   :  { %v1091_v25 = vadd.f32 %v1090_v24, %v1089_v23  ;;  %v1147_v23 = vld [vmem:[%s9268_s8 + $0x30] sm:$0xff]  ;;  %v1146_v24 = vld [vmem:[%s9268_s8 + $0x28] sm:$0xff] }
 0x602   :  { %v1092_v26 = vrot.slane %v1091_v25, 2 }
 0x604   :  { %v1093_v27 = vadd.f32 %v1092_v26, %v1091_v25  ;;  %v1145_v25 = vld [vmem:[%s9268_s8 + $0x20] sm:$0xff]  ;;  %v1144_v26 = vld [vmem:[%s9268_s8 + $0x18] sm:$0xff] }
 0x606   :  { %v1094_v28 = vrot.slane %v1093_v27, 1 }
 0x608   :  { %v1095_v30 = vadd.f32 %v1094_v28, %v1093_v27  ;;  %v1143_v27 = vld [vmem:[%s9268_s8 + $0x10] sm:$0xff]  ;;  %v1142_v28 = vld [vmem:[%s9268_s8 + $0x8] sm:$0xff] }
 0x60a   :  { %5922 = vrcp.f32 %v1095_v30  ;;  %v1141_v30 = vld [vmem:[%s9268_s8] sm:$0xff] }
 0x60b   :  { %5924 = vrsqrt.f32 %v1059_v37 }
 0x610   :  { %v5923_v32 = vpop.eup %5922 }
 0x611   :  { %v1097_v33 = vmul.f32 %v5923_v32, %v5921_v22  ;;  %v5925_v38 = vpop.eup %5924  ;;  %v1148_v22 = vld [vmem:[%s9268_s8 + $0x38] sm:$0xff]  ;;  %v1188_v32 = vld [vmem:[%s9269_s28 + $0xf0] sm:$0xff]  ;;  %s7253_s8 = smov 123  }
 0x612   :  { %v1061_v39 = vmul.f32 %v5925_v38, %v1059_v37  ;;  %vm1067_vm2 = vweird.f32 %v5925_v38  ;;  %1260 = vmatpush.msra.mxu2 %v1148_v22  ;;  %v1182_v37 = vld [vmem:[%s9269_s28 + $0xc0] sm:$0xff] }
 0x613   :  { %v1098_v34 = vperm.slane %v1097_v33, 0  ;;  %v1105_v35 = vperm.slane %v1097_v33, 1  ;;  %vm1068_vm4 = vmor %vm1066_vm3, %vm1067_vm2  ;;  %v1189_v33 = vld [vmem:[%s9269_s28 + $0xf8] sm:$0xff] }
 0x614   :  { %v1062_v40 = vmul.f32 %v5925_v38, %v1061_v39  ;;  %1261 = vmatpush.msra.mxu2 %v1147_v23  ;;  %1297 = vmatpush.msrb.mxu1 %v1189_v33  ;;  %v1180_v39 = vld [vmem:[%s9269_s28 + $0xb0] sm:$0xff] }
 0x615   :  { %1103 = vperm.xlu1 %5863, %v1098_v34   ;;  %1110 = vperm.xlu2 %5864, %v1105_v35   ;;  %v1186_v34 = vld [vmem:[%s9269_s28 + $0xe0] sm:$0xff]  ;;  %v1187_v35 = vld [vmem:[%s9269_s28 + $0xe8] sm:$0xff] }
 0x616   :  { %v1063_v41 = vmul.f32 0.5, %v1062_v40  ;;  %1262 = vmatpush.msra.mxu2 %v1146_v24  ;;  %1298 = vmatpush.msrb.mxu1 %v1187_v35  ;;  %v1181_v40 = vld [vmem:[%s9269_s28 + $0xb8] sm:$0xff] }
 0x618   :  { %v1064_v42 = vsub.f32 1.5, %v1063_v41  ;;  %1263 = vmatpush.msra.mxu2 %v1145_v25  ;;  %1299 = vmatpush.msrb.mxu1 %v1185_v29  ;;  %v1178_v41 = vld [vmem:[%s9269_s28 + $0xa0] sm:$0xff]  ;;  %v7247_v29 = vmov 1983009808  }
 0x61a   :  { %v1065_v43 = vmul.f32 %v5925_v38, %v1064_v42  ;;  %1264 = vmatpush.msra.mxu2 %v1144_v26  ;;  %v1179_v42 = vld [vmem:[%s9269_s28 + $0xa8] sm:$0xff] }
 0x61c   :  { %v1069_v44 = vsel %vm1068_vm4, %v5925_v38, %v1065_v43  ;;  %1265 = vmatpush.msra.mxu2 %v1143_v27  ;;  %v1183_v38 = vld [vmem:[%s9269_s28 + $0xc8] sm:$0xff]  ;;  %v1176_v43 = vld [vmem:[%s9269_s28 + $0x90] sm:$0xff]  ;;  %vm1417_vm4 = vcmask 257027  }
 0x61d   :  { %v1070_v45 = vmul.f32 %v1069_v44, %v7829_v56  ;;  %v1132_v56 = vld [vmem:[%s9267_s24] sm:$0xff]  ;;  %1300 = vmatpush.msrb.mxu1 %v1183_v38  ;;  %v1177_v44 = vld [vmem:[%s9269_s28 + $0x98] sm:$0xff]  ;;  %s7251_s24 = smov 5  }
 0x61e   :  { %1219 = vmatpush.msrb.mxu3 %v1132_v56  ;;  %1266 = vmatpush.msra.mxu2 %v1142_v28  ;;  %v1169_v56 = vld [vmem:[%s9269_s28 + $0x58] sm:$0xff] }
 0x61f   :  { %v1074_v47 = vmul.f32 %v5874_v46, %v1070_v45  ;;  %1301 = vmatpush.msrb.mxu1 %v1181_v40  ;;  %v7885_v45 = vld [vmem:[%s9270_s1] sm:$0x3]  ;;  %s9289_s1 = sld [smem:[#allocation118_spill]] }
 0x620   :  { %1267 = vmatpush.msra.mxu2 %v1141_v30  ;;  %1277 = vmatpush.msra.mxu3 %v1188_v32  ;;  %v1174_v46 = vld [vmem:[%s9269_s28 + $0x80] sm:$0xff]  ;;  %v1194_v26 = vperm.slane %v7885_v45, 0 }
 0x621   :  { %v1078_v55 = vadd.f32 %v5875_v48, %v1074_v47  ;;  %1302 = vmatpush.msrb.mxu1 %v1179_v42  ;;  %v1175_v47 = vld [vmem:[%s9269_s28 + $0x88] sm:$0xff]  ;;  %v1195_v48 = vperm.slane %v7885_v45, 1 }
 0x622   :  { %1278 = vmatpush.msra.mxu3 %v1186_v34 }
 0x623   :  { %v1113_v59 = vrot.slane %v1078_v55, 4  ;;  %1303 = vmatpush.msrb.mxu1 %v1177_v44 }
 0x624   :  { %1279 = vmatpush.msra.mxu3 %v1184_v36 }
 0x625   :  { %1304 = vmatpush.msrb.mxu1 %v1175_v47 }
 0x626   :  { %1280 = vmatpush.msra.mxu3 %v1182_v37  ;;  %v1352_v37 = vunpack.c.l.s4 %v7247_v29 }
 0x627   :  { %1305 = vmatpush.msrb.mxu1 %v1173_v50 }
 0x628   :  { %1281 = vmatpush.msra.mxu3 %v1180_v39 }
 0x629   :  { %1306 = vmatpush.msrb.mxu1 %v1171_v52 }
 0x62a   :  { %1282 = vmatpush.msra.mxu3 %v1178_v41  ;;  %v1353_v41 = vunpack.c.0.s8 %v1352_v37 }
 0x62b   :  { %1307 = vmatpush.msrb.mxu1 %v1169_v56 }
 0x62c   :  { %1283 = vmatpush.msra.mxu3 %v1176_v43  ;;  %v7248_v43 = vmov 1934713408  }
 0x62d   :  { %v1364_v44 = vunpack.c.l.s4 %v7248_v43  ;;  %v1439_v43 = vld [vmem:[%s9276_s10 + $0x48] sm:$0xff] }
 0x62e   :  { %1284 = vmatpush.msra.mxu3 %v1174_v46 }
 0x630   :  { %1285 = vmatpush.msra.mxu3 %v1172_v31  ;;  %v1365_v31 = vunpack.c.0.s8 %v1364_v44  ;;  %v1438_v44 = vld [vmem:[%s9276_s10 + $0x40] sm:$0xff] }
 0x632   :  { %1286 = vmatpush.msra.mxu3 %v1170_v51 }
 0x66f   :  { %v1111_v58 = vpop.permute.xlu2 %1110 }
 0x670   :  { %v1116_v62 = vmul.f32 %v1113_v59, %v1111_v58  ;;  %v1166_v58 = vld [vmem:[%s9269_s28 + $0x40] sm:$0xff]  ;;  %v1167_v59 = vld [vmem:[%s9269_s28 + $0x48] sm:$0xff] }
 0x671   :  { %1308 = vmatpush.msrb.mxu1 %v1167_v59 }
 0x672   :  { %v1125_v1 = vsel %vm9171_vm5, %v1116_v62, 0.0  ;;  %v1162_v62 = vld [vmem:[%s9269_s28 + $0x20] sm:$0xff] }
 0x673   :  { %v1126_v4 = vrot.slane %v1125_v1, 4  ;;  %1309 = vmatpush.msrb.mxu1 %v1165_v61 }
 0x675   :  { %v1127_v7 = vadd.f32 %v1126_v4, %v1125_v1  ;;  %1310 = vmatpush.msrb.mxu1 %v1163_v63  ;;  %v1161_v4 = vld [vmem:[%s9269_s28 + $0x18] sm:$0xff] }
 0x677   :  { %v1128_v10 = vrot.slane %v1127_v7, 2  ;;  %1311 = vmatpush.msrb.mxu1 %v1161_v4  ;;  %v1446_v4 = vld [vmem:[%s9272_s14 + $0x18] sm:$0xff] }
 0x678   :  { %1477 = vmatpush.msrb.mxu0 %v1446_v4  ;;  %v1425_v4 = vld [vmem:[%s9280_s3 + $0x18] sm:$0xff] }
 0x679   :  { %v1129_v13 = vadd.f32 %v1128_v10, %v1127_v7  ;;  %1312 = vmatpush.msrb.mxu1 %v1159_v6  ;;  %v5876_v7 = vld [vmem:[#allocation10] ss:$0 sm:$0xff]  ;;  %v1444_v6 = vld [vmem:[%s9272_s14 + $0x8] sm:$0xff] }
 0x67b   :  { %v1130_v16 = vrot.slane %v1129_v13, 1 }
 0x67d   :  { %v1131_v20 = vadd.f32 %v1130_v16, %v1129_v13 }
 0x687   :  { %v1104_v8 = vpop.permute.xlu1 %1103 }
 0x688   :  { %v1115_v9 = vmul.f32 %v1104_v8, %v1078_v55  ;;  %v1168_v55 = vld [vmem:[%s9269_s28 + $0x50] sm:$0xff]  ;;  %s9288_s28 = sld [smem:[#allocation116_spill]] }
 0x689   :  { %1287 = vmatpush.msra.mxu3 %v1168_v55 }
 0x68a   :  { %v1118_v11 = vsel %vm9171_vm5, %v1115_v9, 0.0 }
 0x68b   :  { %v1119_v12 = vrot.slane %v1118_v11, 4  ;;  %1288 = vmatpush.msra.mxu3 %v1166_v58 }
 0x68d   :  { %v1120_v14 = vadd.f32 %v1119_v12, %v1118_v11  ;;  %1289 = vmatpush.msra.mxu3 %v1164_v60  ;;  %v1190_v11 = vld [vmem:[%s9271_s7] sm:$0x3]  ;;  %s9290_s7 = sld [smem:[#allocation126_spill]] }
 0x68e   :  { %v1273_v12 = vperm.slane %v1190_v11, 0  ;;  %v1274_v22 = vperm.slane %v1190_v11, 1 }
 0x68f   :  { %v1121_v15 = vrot.slane %v1120_v14, 2  ;;  %1290 = vmatpush.msra.mxu3 %v1162_v62 }
 0x691   :  { %v1122_v17 = vadd.f32 %v1121_v15, %v1120_v14  ;;  %1291 = vmatpush.msra.mxu3 %v1160_v3 }
 0x693   :  { %v1123_v18 = vrot.slane %v1122_v17, 1  ;;  %1292 = vmatpush.msra.mxu3 %v1158_v5  ;;  %v1445_v5 = vld [vmem:[%s9272_s14 + $0x10] sm:$0xff] }
 0x694   :  { %1478 = vmatpush.msrb.mxu0 %v1445_v5 }
 0x695   :  { %v1124_v19 = vadd.f32 %v1123_v18, %v1122_v17 }
 0x696   :  { %1479 = vmatpush.msrb.mxu0 %v1444_v6  ;;  %v1426_v6 = vld [vmem:[%s9280_s3 + $0x20] sm:$0xff] }
 0x697   :  { %v1201_v21 = vsel %vm1200_vm6, %v1131_v20, %v1124_v19 }
 0x698   :  { %5604 = vmatmul.msk.f32.vlgmr.msrb.gmra.mxu3 %vm803_vm0, %v1201_v21  ;;  %5605 = vmatmul.msk.f32.vlgmr.msra.gmra.mxu1 %vm803_vm0, %v1201_v21 }
 0x715   :  { %v1241_v53 = vpop.f32.mrf.mxu1 }
 0x716   :  { %v1242_v54 = vadd.f32 %v1241_v53, %v1195_v48 }
 0x718   :  { %v1245_v57 = vmul.f32 1.442695, %v1242_v54  ;;  %vm1244_vm7 = vcmp.gt.f32.partialorder %v1242_v54, 0.0 }
 0x71a   :  { %5926 = vpow2.f32 %v1245_v57 }
 0x71b   :  { %v1221_v10 = vpop.f32.mrf.mxu3 }
 0x71c   :  { %v1222_v34 = vadd.f32 %v1221_v10, %v1194_v26 }
 0x720   :  { %v5927_v0 = vpop.eup %5926 }
 0x721   :  { %v5606_v1 = vadd.f32 -1.0, %v5927_v0 }
 0x723   :  { %v1248_v2 = vsel %vm1244_vm7, %v1242_v54, %v5606_v1  ;;  %vm9174_vm7 = vcmask 1041408  }
 0x724   :  { %1268 = vmatmul.f32.vlgmr.msra.gmra.mxu2 %v1248_v2 }
 0x7a7   :  { %v1269_v8 = vpop.f32.mrf.mxu2 }
 0x7a8   :  { %v1270_v9 = vadd.f32 %v5876_v7, %v1269_v8  ;;  %v1443_v7 = vld [vmem:[%s9272_s14] sm:$0xff]  ;;  %s9291_s14 = sld [smem:[#allocation127_spill]] }
 0x7a9   :  { %1480 = vmatpush.msrb.mxu0 %v1443_v7 }
 0x7aa   :  { %1293 = vmatmul.f32.vlgmr.msra.gmra.mxu3 %v1270_v9  ;;  %1313 = vmatmul.f32.vlgmr.msrb.gmra.mxu1 %v1270_v9 }
 0x827   :  { %v1314_v25 = vpop.f32.mrf.mxu1 }
 0x828   :  { %v1315_v30 = vadd.f32 %v1314_v25, %v1274_v22  ;;  %v1191_v25 = vld [vmem:[%s9273_s30] sm:$0xf]  ;;  %s9292_s30 = sld [smem:[#allocation120_spill]] }
 0x82d   :  { %v1294_v13 = vpop.f32.mrf.mxu3 }
 0x82e   :  { %v1295_v14 = vadd.f32 %v1294_v13, %v1273_v12 }
 0x830   :  { %v5607_v15 = vmul.f32 -1.442695, %v1295_v14 }
 0x832   :  { %5928 = vpow2.f32 %v5607_v15 }
 0x838   :  { %v5929_v16 = vpop.eup %5928 }
 0x839   :  { %v1320_v17 = vadd.f32 1.0, %v5929_v16 }
 0x83b   :  { %5930 = vrcp.f32 %v1320_v17  ;;  %v1332_v21 = vand.u32 2147483648, %v1320_v17  ;;  %v1330_v24 = vand.u32 2147483647, %v1320_v17  ;;  %vm1326_vm9 = vweird.f32 %v1320_v17 }
 0x83d   :  { %v1333_v28 = vor.u32 1.1754944e-38, %v1332_v21  ;;  %vm1331_vm11 = vcmp.eq.f32.partialorder %v1330_v24, 8.507059e+37 }
 0x841   :  { %v5931_v18 = vpop.eup %5930 }
 0x842   :  { %v1322_v19 = vmul.f32 %v5931_v18, %v1320_v17  ;;  %vm1327_vm8 = vweird.f32 %v5931_v18 }
 0x843   :  { %vm1328_vm10 = vmor %vm1326_vm9, %vm1327_vm8  ;;  %vm1485_vm8 = vcmask 15360   ;;  %vm1522_vm9 = vcmask 785408  }
 0x844   :  { %v1323_v20 = vsub.f32 1.0, %v1322_v19 }
 0x846   :  { %v1324_v23 = vmul.f32 %v5931_v18, %v1323_v20 }
 0x848   :  { %v1325_v27 = vadd.f32 %v5931_v18, %v1324_v23 }
 0x84a   :  { %v1329_v32 = vsel %vm1328_vm10, %v5931_v18, %v1325_v27 }
 0x84b   :  { %v1334_v33 = vsel %vm1331_vm11, %v1333_v28, %v1329_v32 }
 0x84c   :  { %v1336_v35 = vmul.f32 %v1334_v33, %v1315_v30  ;;  %v1192_v30 = vld [vmem:[%s9274_s2] sm:$0xf]  ;;  %s9293_s2 = sld [smem:[#allocation77_spill]] }
 0x84e   :  { %v1337_v36 = vadd.f32 %v1336_v35, %v1222_v34 }
 0x850   :  { %1339 = vrot.lane.b32.xlu1 %v1337_v36, %s7242_s22  ;;  %1345 = vrot.lane.b32.xlu0 %v1337_v36, %s7245_s19 }
 0x858   :  { %1342 = vrot.lane.b32.xlu0 %v1337_v36, %s7246_s12 }
 0x8c2   :  { %v1346_v38 = vpop.permute.xlu0 %1345  ;;  %v1340_v40 = vpop.permute.xlu1 %1339 }
 0x8c3   :  { %v1355_v39 = vrot.slane %v1346_v38, 4 }
 0x8c5   :  { %v1356_v42 = vsel %vm1349_vm12, %v1355_v39, %v1340_v40  ;;  %v1428_v39 = vld [vmem:[%s9275_s21] sm:$0xff] }
 0x8c6   :  { %v1360_v45 = vperm.slane %v1356_v42, %v1353_v41  ;;  %v1440_v42 = vld [vmem:[%s9276_s10 + $0x50] sm:$0xff] }
 0x8c8   :  { %v1361_v50 = vrot.slane %v1360_v45, 4  ;;  %v1429_v45 = vld [vmem:[%s9275_s21 + $0x8] sm:$0xff]  ;;  %s9294_s21 = sld [smem:[#allocation122_spill]] }
 0x8ca   :  { %v1343_v46 = vpop.permute.xlu0 %1342 }
 0x8cb   :  { %v1348_v47 = vrot.slane %v1343_v46, 4  ;;  %v1437_v46 = vld [vmem:[%s9276_s10 + $0x38] sm:$0xff] }
 0x8cd   :  { %v1350_v48 = vsel %vm1349_vm12, %v1348_v47, %v1337_v36  ;;  %v1436_v47 = vld [vmem:[%s9276_s10 + $0x30] sm:$0xff] }
 0x8ce   :  { %v1354_v51 = vperm.slane %v1350_v48, %v1353_v41  ;;  %v1441_v41 = vld [vmem:[%s9276_s10 + $0x58] sm:$0xff] }
 0x8cf   :  { %v1755_v48 = vld [vmem:[%s9277_s11 + $0x18] sm:$0xff] }
 0x8d0   :  { %v1362_v52 = vsel %vm1349_vm12, %v1361_v50, %v1354_v51  ;;  %1802 = vmatpush.msra.mxu1 %v1755_v48  ;;  %v1435_v50 = vld [vmem:[%s9276_s10 + $0x28] sm:$0xff] }
 0x8d1   :  { %v1366_v53 = vperm.slane %v1362_v52, %v1365_v31  ;;  %v1754_v31 = vld [vmem:[%s9277_s11 + $0x10] sm:$0xff]  ;;  %v1753_v51 = vld [vmem:[%s9277_s11 + $0x8] sm:$0xff]  ;;  %v1434_v52 = vld [vmem:[%s9276_s10 + $0x20] sm:$0xff] }
 0x8d2   :  { %1803 = vmatpush.msra.mxu1 %v1754_v31 }
 0x8d3   :  { %v1369_v54 = vsel %vm9171_vm5, %v1366_v53, 0.0  ;;  %v1367_v55 = vrot.slane %v1366_v53, 4 }
 0x8d4   :  { %1370 = vadd.xlane.f32.xlu1 %v1369_v54  ;;  %1804 = vmatpush.msra.mxu1 %v1753_v51  ;;  %v1432_v54 = vld [vmem:[%s9276_s10 + $0x10] sm:$0xff] }
 0x8d5   :  { %v1368_v56 = vsel %vm1349_vm12, 0.0, %v1367_v55  ;;  %v1431_v55 = vld [vmem:[%s9276_s10 + $0x8] sm:$0xff] }
 0x8d6   :  { %v1372_v57 = vsel %vm9171_vm5, %v1368_v56, 0.0 }
 0x8d7   :  { %1373 = vadd.xlane.f32.xlu2 %v1372_v57  ;;  %v1420_v57 = vld [vmem:[%s9278_s0] sm:$0xff] }
 0x947   :  { %v1371_v58 = vpop.xlane.xlu1 %1370 }
 0x948   :  { %v1375_v59 = vmul.f32 %v1371_v58, %v7826_v49  ;;  %v2720_v58 = vld [vmem:[%s9279_s4 + $0x18] sm:$0xff] }
 0x94a   :  { %v1377_v60 = vsub.f32 %v1366_v53, %v1375_v59  ;;  %v1374_v61 = vpop.xlane.xlu2 %1373  ;;  %v1433_v53 = vld [vmem:[%s9276_s10 + $0x18] sm:$0xff]  ;;  %v2719_v59 = vld [vmem:[%s9279_s4 + $0x10] sm:$0xff] }
 0x94b   :  { %v1376_v62 = vmul.f32 %v1374_v61, %v7826_v49  ;;  %v2717_v61 = vld [vmem:[%s9279_s4] sm:$0xff] }
 0x94c   :  { %v1379_v63 = vmul.f32 %v1377_v60, %v1377_v60 }
 0x94d   :  { %v1378_v0 = vsub.f32 %v1368_v56, %v1376_v62  ;;  %v1430_v56 = vld [vmem:[%s9276_s10] sm:$0xff]  ;;  %v1421_v62 = vld [vmem:[%s9278_s0 + $0x8] sm:$0xff]  ;;  %s9295_s10 = sld [smem:[#allocation123_spill]] }
 0x94e   :  { %v1381_v1 = vsel %vm9171_vm5, %v1379_v63, 0.0  ;;  %v1752_v63 = vld [vmem:[%s9277_s11] sm:$0xff]  ;;  %s9296_s11 = sld [smem:[#allocation128_spill]] }
 0x94f   :  { %1382 = vadd.xlane.f32.xlu2 %v1381_v1  ;;  %v1380_v2 = vmul.f32 %v1378_v0, %v1378_v0  ;;  %1805 = vmatpush.msra.mxu1 %v1752_v63  ;;  %v1423_v1 = vld [vmem:[%s9280_s3 + $0x8] sm:$0xff]  ;;  %s9302_s0 = sld [smem:[#allocation130_spill]] }
 0x951   :  { %v1384_v3 = vsel %vm9171_vm5, %v1380_v2, 0.0  ;;  %v1424_v2 = vld [vmem:[%s9280_s3 + $0x10] sm:$0xff] }
 0x952   :  { %1385 = vadd.xlane.f32.xlu0 %v1384_v3 }
 0x9c2   :  { %v1383_v8 = vpop.xlane.xlu2 %1382 }
 0x9c3   :  { %v1387_v9 = vmul.f32 %v1383_v8, %v7826_v49 }
 0x9c5   :  { %v1389_v10 = vadd.f32 1e-05, %v1387_v9  ;;  %v1386_v11 = vpop.xlane.xlu0 %1385 }
 0x9c6   :  { %v1388_v12 = vmul.f32 %v1386_v11, %v7826_v49  ;;  %v7980_v11 = vld [vmem:[#allocation19] ss:$0 sm:$0xff] }
 0x9c7   :  { %5932 = vrsqrt.f32 %v1389_v10  ;;  %vm1397_vm14 = vweird.f32 %v1389_v10 }
 0x9c8   :  { %v1390_v13 = vadd.f32 1e-05, %v1388_v12 }
 0x9ca   :  { %5934 = vrsqrt.f32 %v1390_v13  ;;  %vm1407_vm2 = vweird.f32 %v1390_v13 }
 0x9cd   :  { %v5933_v14 = vpop.eup %5932 }
 0x9ce   :  { %v1392_v15 = vmul.f32 %v5933_v14, %v1389_v10  ;;  %vm1398_vm13 = vweird.f32 %v5933_v14  ;;  %v1427_v10 = vld [vmem:[%s9280_s3 + $0x28] sm:$0xff] }
 0x9cf   :  { %vm1399_vm15 = vmor %vm1397_vm14, %vm1398_vm13 }
 0x9d0   :  { %v5935_v16 = vpop.eup %5934  ;;  %v1393_v17 = vmul.f32 %v5933_v14, %v1392_v15 }
 0x9d1   :  { %v1402_v18 = vmul.f32 %v5935_v16, %v1390_v13  ;;  %vm1408_vm1 = vweird.f32 %v5935_v16 }
 0x9d2   :  { %v1394_v19 = vmul.f32 0.5, %v1393_v17  ;;  %vm1409_vm3 = vmor %vm1407_vm2, %vm1408_vm1 }
 0x9d3   :  { %v1403_v20 = vmul.f32 %v5935_v16, %v1402_v18  ;;  %v5877_v18 = vld [vmem:[#allocation11] ss:$0 sm:$0xff] }
 0x9d4   :  { %v1395_v21 = vsub.f32 1.5, %v1394_v19 }
 0x9d5   :  { %v1404_v22 = vmul.f32 0.5, %v1403_v20 }
 0x9d6   :  { %v1396_v23 = vmul.f32 %v5933_v14, %v1395_v21 }
 0x9d7   :  { %v1405_v24 = vsub.f32 1.5, %v1404_v22  ;;  %v1450_v22 = vld [vmem:[%s9281_s6 + $0x18] sm:$0xff] }
 0x9d8   :  { %v1400_v26 = vsel %vm1399_vm15, %v5933_v14, %v1396_v23  ;;  %v1449_v23 = vld [vmem:[%s9281_s6 + $0x10] sm:$0xff]  ;;  %1597 = vmatpush.msrb.mxu2 %v1450_v22  ;;  %v1452_v22 = vld [vmem:[%s9283_s9] sm:$0xff] }
 0x9d9   :  { %v1411_v27 = vmul.f32 %v1400_v26, %v1377_v60  ;;  %v1406_v28 = vmul.f32 %v5935_v16, %v1405_v24  ;;  %v2718_v60 = vld [vmem:[%s9279_s4 + $0x8] sm:$0xff]  ;;  %s5454_s4 = sshll.u32 %s7649_s13, 4  ;;  %s5455_s4 = int_to_ptr.hbm [resolvable:$true] %s5454_s4 }
 0x9da   :  { %v1448_v26 = vld [vmem:[%s9281_s6 + $0x8] sm:$0xff]  ;;  %1598 = vmatpush.msrb.mxu2 %v1449_v23 }
 0x9db   :  { %v1413_v32 = vmul.f32 %v1411_v27, %v1191_v25  ;;  %v1410_v33 = vsel %vm1409_vm3, %v5935_v16, %v1406_v28 }
 0x9dc   :  { %v1412_v34 = vmul.f32 %v1410_v33, %v1378_v0  ;;  %v1422_v0 = vld [vmem:[%s9280_s3] sm:$0xff]  ;;  %1599 = vmatpush.msrb.mxu2 %v1448_v26  ;;  %s7034_s3 = sshra.s32 %s5455_s4, 4  ;;  %s7035_s3 = int_to_ptr.hbm [resolvable:$true] %s7034_s3 }
 0x9dd   :  { %v7929_v35 = vadd.f32 %v1413_v32, %v1192_v30  ;;  %5622 = vmatmul.msk.f32.vlgmr.msra.gmra.mxu1 %vm803_vm0, %v1422_v0  ;;  %v1759_v0 = vld [vmem:[%s9282_s16 + $0x10] sm:$0xff]  ;;  %p7039_p2 = scmp.lt.s32.totalorder %s7035_s3, %s7649_s13 }
 0x9de   :  { %v1414_v36 = vmul.f32 %v1412_v34, %v1191_v25 }
 0x9df   :  { %1418 = vst.msk [vmem:[#allocation53 - $0x3] sm:$0x8] %vm1417_vm4, %v7929_v35 }
 0x9e0   :  { %v7932_v29 = vadd.f32 %v1414_v36, %v1192_v30  ;;  %v1447_v30 = vld [vmem:[%s9281_s6] sm:$0xff]  ;;  %s7038_s6 = scalar_lea.hbm %s7649_s13, 16 }
 0x9e1   :  { %1600 = vmatpush.msrb.mxu2 %v1447_v30  ;;  %v1764_v30 = vld [vmem:[%s9284_s27 + $0x10] sm:$0xff] }
 0x9e2   :  { %v1461_v37 = vrot.slane %v7932_v29, 7  ;;  %1419 = vst.msk [vmem:[#allocation53 - $0x2] sm:$0x8] %vm1417_vm4, %v7932_v29 }
 0x9e4   :  { %v1462_v38 = vsel %vm1200_vm6, %v1461_v37, %v7929_v35 }
 0x9e5   :  { %5608 = vmatmul.msk.f32.vlgmr.msrb.gmra.mxu0 %vm803_vm0, %v1462_v38  ;;  %5623 = vmatmul.msk.f32.gmra.mxu1 %vm803_vm0, %v1423_v1  ;;  %v1758_v1 = vld [vmem:[%s9282_s16 + $0x8] sm:$0xff] }
 0x9ed   :  { %5624 = vmatmul.msk.f32.gmra.mxu1 %vm803_vm0, %v1424_v2  ;;  %v1757_v2 = vld [vmem:[%s9282_s16] sm:$0xff] }
 0x9f5   :  { %5625 = vmatmul.msk.f32.gmra.mxu1 %vm803_vm0, %v1425_v4 }
 0x9fd   :  { %5626 = vmatmul.msk.f32.gmra.mxu1 %vm803_vm0, %v1426_v6 }
 0xa05   :  { %5627 = vmatmul.msk.f32.gmra.mxu1 %vm803_vm0, %v1427_v10 }
 0xa5a   :  { %v1807_v12 = vpop.f32.mrf.mxu1 }
 0xa5b   :  { %v7983_v13 = vadd.f32 %v7980_v11, %v1807_v12 }
 0xa5d   :  { %v1831_v14 = vmul.f32 1.442695, %v7983_v13  ;;  %vm1825_vm10 = vcmp.gt.f32.partialorder %v7983_v13, 0.0 }
 0xa5f   :  { %5936 = vpow2.f32 %v1831_v14  ;;  %v1454_v14 = vld [vmem:[%s9283_s9 + $0x10] sm:$0xff] }
 0xa62   :  { %v1482_v40 = vpop.f32.mrf.mxu0  ;;  %v1810_v19 = vpop.f32.mrf.mxu1 }
 0xa63   :  { %5609 = vmatpush.msk.msra.mxu0 %vm9174_vm7, %v1482_v40  ;;  %v7992_v21 = vadd.f32 %v7980_v11, %v1810_v19  ;;  %v1453_v19 = vld [vmem:[%s9283_s9 + $0x8] sm:$0xff] }
 0xa64   :  { %5610 = vmatmul.msk.f32.vlgmr.msra.gmra.mxu0 %vm1485_vm8, %v1428_v39 }
 0xa65   :  { %1533 = vmatpush.msrb.mxu0 %v1441_v41  ;;  %v5937_v15 = vpop.eup %5936  ;;  %v1833_v28 = vmul.f32 1.442695, %v7992_v21  ;;  %vm1826_vm12 = vcmp.gt.f32.partialorder %v7992_v21, 0.0 }
 0xa66   :  { %v5628_v16 = vadd.f32 -1.0, %v5937_v15 }
 0xa67   :  { %1534 = vmatpush.msrb.mxu0 %v1440_v42 }
 0xa68   :  { %v1849_v17 = vsel %vm1825_vm10, %v7983_v13, %v5628_v16  ;;  %vm1690_vm10 = vcmask 23552  }
 0xa69   :  { %1535 = vmatpush.msrb.mxu0 %v1439_v43 }
 0xa6a   :  { %v1813_v32 = vpop.f32.mrf.mxu1 }
 0xa6b   :  { %1536 = vmatpush.msrb.mxu0 %v1438_v44  ;;  %v8003_v34 = vadd.f32 %v7980_v11, %v1813_v32  ;;  %v1763_v32 = vld [vmem:[%s9284_s27 + $0x8] sm:$0xff] }
 0xa6c   :  { %5611 = vmatmul.msk.f32.gmra.mxu0 %vm1485_vm8, %v1429_v45 }
 0xa6d   :  { %1537 = vmatpush.msrb.mxu0 %v1437_v46  ;;  %v1835_v40 = vmul.f32 1.442695, %v8003_v34  ;;  %vm1827_vm15 = vcmp.gt.f32.partialorder %v8003_v34, 0.0 }
 0xa6f   :  { %1538 = vmatpush.msrb.mxu0 %v1436_v47 }
 0xa71   :  { %1539 = vmatpush.msrb.mxu0 %v1435_v50 }
 0xa72   :  { %v1816_v42 = vpop.f32.mrf.mxu1 }
 0xa73   :  { %1540 = vmatpush.msrb.mxu0 %v1434_v52  ;;  %v8008_v44 = vadd.f32 %v7980_v11, %v1816_v42 }
 0xa75   :  { %1541 = vmatpush.msrb.mxu0 %v1433_v53  ;;  %v1837_v46 = vmul.f32 1.442695, %v8008_v44  ;;  %vm1828_vm14 = vcmp.gt.f32.partialorder %v8008_v44, 0.0 }
 0xa77   :  { %1542 = vmatpush.msrb.mxu0 %v1432_v54 }
 0xa79   :  { %1543 = vmatpush.msrb.mxu0 %v1431_v55 }
 0xa7b   :  { %1544 = vmatpush.msrb.mxu0 %v1430_v56 }
 0xa7c   :  { %5612 = vmatmul.msk.f32.vlgmr.msrb.gmra.mxu0 %vm1522_vm9, %v1420_v57 }
 0xa7d   :  { %2745 = vmatpush.msra.mxu0 %v2720_v58  ;;  %v1760_v58 = vld [vmem:[%s9282_s16 + $0x18] sm:$0xff] }
 0xa7e   :  { %1900 = vmatpush.msra.mxu2 %v1760_v58  ;;  %v2710_v58 = vld [vmem:[%s9286_s29 + $0x70] sm:$0xff] }
 0xa7f   :  { %2746 = vmatpush.msra.mxu0 %v2719_v59  ;;  %v1819_v59 = vpop.f32.mrf.mxu1 }
 0xa80   :  { %1901 = vmatpush.msra.mxu2 %v1759_v0  ;;  %v8034_v6 = vadd.f32 %v7980_v11, %v1819_v59  ;;  %v2709_v59 = vld [vmem:[%s9286_s29 + $0x68] sm:$0xff] }
 0xa81   :  { %2747 = vmatpush.msra.mxu0 %v2718_v60  ;;  %v2705_v0 = vld [vmem:[%s9286_s29 + $0x48] sm:$0xff] }
 0xa82   :  { %1902 = vmatpush.msra.mxu2 %v1758_v1  ;;  %vm1829_vm2 = vcmp.gt.f32.partialorder %v8034_v6, 0.0  ;;  %v2704_v1 = vld [vmem:[%s9286_s29 + $0x40] sm:$0xff] }
 0xa83   :  { %2748 = vmatpush.msra.mxu0 %v2717_v61 }
 0xa84   :  { %5613 = vmatmul.msk.f32.gmra.mxu0 %vm1522_vm9, %v1421_v62  ;;  %1903 = vmatpush.msra.mxu2 %v1757_v2 }
 0xa87   :  { %v1822_v60 = vpop.f32.mrf.mxu1 }
 0xa88   :  { %v8024_v61 = vadd.f32 %v7980_v11, %v1822_v60  ;;  %v1455_v11 = vld [vmem:[%s9283_s9 + $0x18] sm:$0xff]  ;;  %v2708_v60 = vld [vmem:[%s9286_s29 + $0x60] sm:$0xff] }
 0xa89   :  { %1629 = vmatpush.msrb.mxu3 %v1455_v11  ;;  %v2698_v11 = vld [vmem:[%s9286_s29 + $0x10] sm:$0xff] }
 0xa8a   :  { %v1841_v62 = vmul.f32 1.442695, %v8024_v61  ;;  %vm1830_vm1 = vcmp.gt.f32.partialorder %v8024_v61, 0.0 }
 0xa8b   :  { %1630 = vmatpush.msrb.mxu3 %v1454_v14  ;;  %v2715_v14 = vld [vmem:[%s9286_s29 + $0x98] sm:$0xff] }
 0xa8c   :  { %5652 = vmatmul.msk.f32.vlgmr.msra.gmra.mxu0 %vm803_vm0, %v1462_v38 }
 0xa8d   :  { %1631 = vmatpush.msrb.mxu3 %v1453_v19  ;;  %v2688_v19 = vld [vmem:[%s9287_s26] sm:$0xff] }
 0xa8f   :  { %1632 = vmatpush.msrb.mxu3 %v1452_v22  ;;  %v2712_v22 = vld [vmem:[%s9286_s29 + $0x80] sm:$0xff] }
 0xae1   :  { %v1513_v3 = vpop.f32.mrf.mxu0 }
 0xae2   :  { %1554 = vrot.lane.b32.xlu1 %v1513_v3, %s7249_s15 }
 0xae9   :  { %v1516_v5 = vpop.f32.mrf.mxu0 }
 0xaea   :  { %1556 = vrot.lane.b32.xlu0 %v1516_v5, %s7249_s15  ;;  %1864 = vrot.lane.b32.xlu1 %v1849_v17, %s7242_s22  ;;  %s7036_s15 = scalar_lea.hbm %s7035_s3, 16 }
 0xaeb   :  { %p7037_p1 = scmp.ne.s32.totalorder %s7035_s3, %s7036_s15  ;;  %p7040_p3 = scmp.lt.s32.totalorder %s7038_s6, %s7036_s15 }
 0xaed   :  { %p7041_p4 = por %p7040_p3, %p7039_p2 }
 0xaef   :  { %p7042_p5 = pnand %p7041_p4, %p7037_p1 }
 0xaf9   :  { %v1546_v7 = vpop.f32.mrf.mxu0 }
 0xafa   :  { %v7989_v20 = vadd.f32 %v5877_v18, %v1546_v7  ;;  %v1839_v7 = vmul.f32 1.442695, %v8034_v6 }
 0xb01   :  { %v1549_v8 = vpop.f32.mrf.mxu0 }
 0xb02   :  { %v8000_v33 = vadd.f32 %v5877_v18, %v1549_v8 }
 0xb09   :  { %v2750_v9 = vpop.f32.mrf.mxu0 }
 0xb0a   :  { %5653 = vmatpush.msk.msrb.mxu0 %vm9174_vm7, %v2750_v9 }
 0xb0c   :  { %2817 = vmatpush.msra.mxu0 %v2715_v14 }
 0xb54   :  { %v1555_v24 = vpop.permute.xlu1 %1554 }
 0xb55   :  { %v1560_v25 = vadd.f32 %v1555_v24, %v7989_v20 }
 0xb57   :  { %v1564_v27 = vmul.f32 1.442695, %v1560_v25  ;;  %vm1562_vm11 = vcmp.gt.f32.partialorder %v1560_v25, 0.0 }
 0xb59   :  { %5938 = vpow2.f32 %v1564_v27 }
 0xb5a   :  { %5940 = vpow2.f32 %v1833_v28  ;;  %v1765_v28 = vld [vmem:[%s9284_s27 + $0x18] sm:$0xff] }
 0xb5b   :  { %1956 = vmatpush.msra.mxu3 %v1765_v28 }
 0xb5c   :  { %v1557_v36 = vpop.permute.xlu0 %1556  ;;  %v1865_v15 = vpop.permute.xlu1 %1864 }
 0xb5d   :  { %v1561_v37 = vadd.f32 %v1557_v36, %v8000_v33  ;;  %1957 = vmatpush.msra.mxu3 %v1764_v30  ;;  %v1762_v36 = vld [vmem:[%s9284_s27] sm:$0xff] }
 0xb5f   :  { %v5939_v38 = vpop.eup %5938  ;;  %v1566_v39 = vmul.f32 1.442695, %v1561_v37  ;;  %vm1563_vm13 = vcmp.gt.f32.partialorder %v1561_v37, 0.0  ;;  %1958 = vmatpush.msra.mxu3 %v1763_v32 }
 0xb60   :  { %v5614_v41 = vadd.f32 -1.0, %v5939_v38  ;;  %v5941_v43 = vpop.eup %5940 }
 0xb61   :  { %5942 = vpow2.f32 %v1566_v39  ;;  %v5629_v47 = vadd.f32 -1.0, %v5941_v43  ;;  %1959 = vmatpush.msra.mxu3 %v1762_v36 }
 0xb62   :  { %v1570_v45 = vsel %vm1562_vm11, %v1560_v25, %v5614_v41  ;;  %5944 = vpow2.f32 %v1835_v40  ;;  %v5879_v25 = vld [vmem:[#allocation13] ss:$0 sm:$0xff]  ;;  %v5880_v40 = vld [vmem:[#allocation20] ss:$0 sm:$0xff] }
 0xb63   :  { %1577 = vrot.lane.b32.xlu2 %v1570_v45, %s7250_s17  ;;  %5946 = vpow2.f32 %v1837_v46  ;;  %v1850_v50 = vsel %vm1826_vm12, %v7992_v21, %v5629_v47 }
 0xb64   :  { %5948 = vpow2.f32 %v1841_v62  ;;  %v2707_v62 = vld [vmem:[%s9286_s29 + $0x58] sm:$0xff] }
 0xb65   :  { %5950 = vpow2.f32 %v1839_v7  ;;  %v2701_v7 = vld [vmem:[%s9286_s29 + $0x28] sm:$0xff] }
 0xb67   :  { %v5943_v48 = vpop.eup %5942 }
 0xb68   :  { %v5615_v31 = vadd.f32 -1.0, %v5943_v48  ;;  %v5945_v51 = vpop.eup %5944 }
 0xb69   :  { %v5947_v53 = vpop.eup %5946  ;;  %v5630_v54 = vadd.f32 -1.0, %v5945_v51 }
 0xb6a   :  { %v1571_v52 = vsel %vm1563_vm13, %v1561_v37, %v5615_v31  ;;  %v5631_v55 = vadd.f32 -1.0, %v5947_v53  ;;  %v5949_v3 = vpop.eup %5948  ;;  %v2695_v37 = vld [vmem:[%s9285_s23] sm:$0xff] }
 0xb6b   :  { %1579 = vrot.lane.b32.xlu0 %v1571_v52, %s7250_s17  ;;  %1866 = vrot.lane.b32.xlu2 %v1850_v50, %s7242_s22  ;;  %v1851_v57 = vsel %vm1827_vm15, %v8003_v34, %v5630_v54  ;;  %v5633_v4 = vadd.f32 -1.0, %v5949_v3  ;;  %v5951_v8 = vpop.eup %5950  ;;  %v5881_v54 = vld [vmem:[#allocation14] ss:$0 sm:$0xff]  ;;  %v2703_v3 = vld [vmem:[%s9286_s29 + $0x38] sm:$0xff] }
 0xb6c   :  { %v1852_v56 = vsel %vm1828_vm14, %v8008_v44, %v5631_v55  ;;  %v5632_v9 = vadd.f32 -1.0, %v5951_v8  ;;  %5654 = vmatmul.msk.f32.vlgmr.msrb.gmra.mxu0 %vm1485_vm8, %v2695_v37  ;;  %v2700_v8 = vld [vmem:[%s9286_s29 + $0x20] sm:$0xff] }
 0xb6d   :  { %1870 = vrot.lane.b32.xlu1 %v1852_v56, %s7242_s22  ;;  %v1854_v5 = vsel %vm1830_vm1, %v8024_v61, %v5633_v4  ;;  %v2702_v4 = vld [vmem:[%s9286_s29 + $0x30] sm:$0xff] }
 0xb6e   :  { %v1853_v10 = vsel %vm1829_vm2, %v8034_v6, %v5632_v9 }
 0xb73   :  { %1868 = vrot.lane.b32.xlu0 %v1851_v57, %s7242_s22  ;;  %1872 = vrot.lane.b32.xlu2 %v1853_v10, %s7242_s22  ;;  %v2711_v57 = vld [vmem:[%s9286_s29 + $0x78] sm:$0xff] }
 0xb74   :  { %2785 = vmatpush.msrb.mxu1 %v2711_v57 }
 0xb76   :  { %2786 = vmatpush.msrb.mxu1 %v2710_v58 }
 0xb78   :  { %2787 = vmatpush.msrb.mxu1 %v2709_v59 }
 0xb7a   :  { %2788 = vmatpush.msrb.mxu1 %v2708_v60 }
 0xb7b   :  { %1874 = vrot.lane.b32.xlu0 %v1854_v5, %s7242_s22  ;;  %v8080_v5 = vld [vmem:[#allocation22] ss:$0 sm:$0xff] }
 0xb7c   :  { %2789 = vmatpush.msrb.mxu1 %v2707_v62 }
 0xbbd   :  { %v1578_v63 = vpop.permute.xlu2 %1577 }
 0xbbe   :  { %5616 = vmatmul.msk.f32.vlgmr.msrb.gmra.mxu2 %vm803_vm0, %v1578_v63  ;;  %v2706_v63 = vld [vmem:[%s9286_s29 + $0x50] sm:$0xff] }
 0xbbf   :  { %2790 = vmatpush.msrb.mxu1 %v2706_v63 }
 0xbc1   :  { %2791 = vmatpush.msrb.mxu1 %v2705_v0 }
 0xbc3   :  { %2792 = vmatpush.msrb.mxu1 %v2704_v1 }
 0xbc5   :  { %v1867_v16 = vpop.permute.xlu2 %1866  ;;  %2793 = vmatpush.msrb.mxu1 %v2703_v3 }
 0xbc7   :  { %2794 = vmatpush.msrb.mxu1 %v2702_v4 }
 0xbc9   :  { %2795 = vmatpush.msrb.mxu1 %v2701_v7 }
 0xbcb   :  { %2796 = vmatpush.msrb.mxu1 %v2700_v8 }
 0xbcd   :  { %v1873_v23 = vpop.permute.xlu2 %1872 }
 0xbdd   :  { %v1580_v12 = vpop.permute.xlu0 %1579 }
 0xbde   :  { %5617 = vmatmul.msk.f32.gmra.mxu2 %vm803_vm0, %v1580_v12  ;;  %v2699_v12 = vld [vmem:[%s9286_s29 + $0x18] sm:$0xff] }
 0xbdf   :  { %v1871_v18 = vpop.permute.xlu1 %1870  ;;  %2797 = vmatpush.msrb.mxu1 %v2699_v12 }
 0xbe1   :  { %2798 = vmatpush.msrb.mxu1 %v2698_v11 }
 0xbe5   :  { %v1869_v17 = vpop.permute.xlu0 %1868 }
 0xbe6   :  { %5634 = vmatmul.msk.f32.vlgmr.msra.gmra.mxu2 %vm803_vm0, %v1865_v15  ;;  %v2697_v15 = vld [vmem:[%s9286_s29 + $0x8] sm:$0xff] }
 0xbe7   :  { %2799 = vmatpush.msrb.mxu1 %v2697_v15 }
 0xbed   :  { %v1875_v24 = vpop.permute.xlu0 %1874 }
 0xbee   :  { %5635 = vmatmul.msk.f32.gmra.mxu2 %vm803_vm0, %v1867_v16  ;;  %v2714_v16 = vld [vmem:[%s9286_s29 + $0x90] sm:$0xff] }
 0xbef   :  { %2818 = vmatpush.msra.mxu0 %v2714_v16 }
 0xbf6   :  { %5636 = vmatmul.msk.f32.gmra.mxu2 %vm803_vm0, %v1869_v17  ;;  %v2696_v17 = vld [vmem:[%s9286_s29] sm:$0xff] }
 0xbf7   :  { %2800 = vmatpush.msrb.mxu1 %v2696_v17 }
 0xbf8   :  { %2801 = vmatmul.f32.vlgmr.msrb.gmra.mxu1 %v2688_v19 }
 0xbfe   :  { %5637 = vmatmul.msk.f32.gmra.mxu2 %vm803_vm0, %v1871_v18  ;;  %v2713_v18 = vld [vmem:[%s9286_s29 + $0x88] sm:$0xff] }
 0xbff   :  { %2819 = vmatpush.msra.mxu0 %v2713_v18 }
 0xc01   :  { %2820 = vmatpush.msra.mxu0 %v2712_v22 }
 0xc06   :  { %5638 = vmatmul.msk.f32.gmra.mxu2 %vm803_vm0, %v1873_v23 }
 0xc0e   :  { %5639 = vmatmul.msk.f32.gmra.mxu2 %vm803_vm0, %v1875_v24 }
 0xc41   :  { %v1602_v26 = vpop.f32.mrf.mxu2 }
 0xc42   :  { %v1603_v27 = vadd.f32 %v5879_v25, %v1602_v26  ;;  %v2689_v26 = vld [vmem:[%s9287_s26 + $0x8] sm:$0xff] }
 0xc43   :  { %5655 = vmatmul.msk.f32.vlgmr.msra.gmra.mxu0 %vm803_vm0, %v2689_v26 }
 0xc44   :  { %5618 = vmatmul.msk.f32.vlgmr.msrb.gmra.mxu3 %vm803_vm0, %v1603_v27  ;;  %v2776_v27 = vpop.f32.mrf.mxu0 }
 0xc61   :  { %v1605_v38 = vpop.f32.mrf.mxu2 }
 0xc62   :  { %v1606_v39 = vadd.f32 %v5879_v25, %v1605_v38 }
 0xc64   :  { %5619 = vmatmul.msk.f32.gmra.mxu3 %vm803_vm0, %v1606_v39 }
 0xc69   :  { %v1905_v41 = vpop.f32.mrf.mxu2 }
 0xc6a   :  { %v1906_v42 = vadd.f32 %v5880_v40, %v1905_v41 }
 0xc6c   :  { %5640 = vmatmul.msk.f32.vlgmr.msra.gmra.mxu3 %vm803_vm0, %v1906_v42 }
 0xc71   :  { %v1908_v43 = vpop.f32.mrf.mxu2 }
 0xc72   :  { %v1909_v45 = vadd.f32 %v5880_v40, %v1908_v43 }
 0xc74   :  { %5641 = vmatmul.msk.f32.gmra.mxu3 %vm803_vm0, %v1909_v45 }
 0xc79   :  { %v1911_v46 = vpop.f32.mrf.mxu2 }
 0xc7a   :  { %v1912_v47 = vadd.f32 %v5880_v40, %v1911_v46 }
 0xc7c   :  { %5642 = vmatmul.msk.f32.gmra.mxu3 %vm803_vm0, %v1912_v47 }
 0xc81   :  { %v1914_v48 = vpop.f32.mrf.mxu2 }
 0xc82   :  { %v1915_v31 = vadd.f32 %v5880_v40, %v1914_v48 }
 0xc84   :  { %5643 = vmatmul.msk.f32.gmra.mxu3 %vm803_vm0, %v1915_v31 }
 0xc89   :  { %v1917_v50 = vpop.f32.mrf.mxu2 }
 0xc8a   :  { %v1918_v51 = vadd.f32 %v5880_v40, %v1917_v50 }
 0xc8c   :  { %5644 = vmatmul.msk.f32.gmra.mxu3 %vm803_vm0, %v1918_v51 }
 0xc91   :  { %v1920_v52 = vpop.f32.mrf.mxu2 }
 0xc92   :  { %v1921_v53 = vadd.f32 %v5880_v40, %v1920_v52 }
 0xc94   :  { %5645 = vmatmul.msk.f32.gmra.mxu3 %vm803_vm0, %v1921_v53 }
 0xcc7   :  { %v1634_v55 = vpop.f32.mrf.mxu3 }
 0xcc8   :  { %v8066_v56 = vadd.f32 %v5881_v54, %v1634_v55 }
 0xcca   :  { %1680 = vrot.lane.b32.xlu0 %v8066_v56, %s7250_s17  ;;  %v5620_v37 = vmul.f32 -1.442695, %v8066_v56 }
 0xccc   :  { %5952 = vpow2.f32 %v5620_v37 }
 0xcd2   :  { %v5953_v38 = vpop.eup %5952 }
 0xcd3   :  { %v1646_v39 = vadd.f32 1.0, %v5953_v38 }
 0xcd5   :  { %5954 = vrcp.f32 %v1646_v39  ;;  %v1659_v31 = vand.u32 2147483648, %v1646_v39  ;;  %vm1653_vm4 = vweird.f32 %v1646_v39  ;;  %v1657_v50 = vand.u32 2147483647, %v1646_v39 }
 0xcd7   :  { %v1660_v52 = vor.u32 1.1754944e-38, %v1659_v31  ;;  %vm1658_vm9 = vcmp.eq.f32.partialorder %v1657_v50, 8.507059e+37 }
 0xcdb   :  { %v5955_v40 = vpop.eup %5954 }
 0xcdc   :  { %v1649_v42 = vmul.f32 %v5955_v40, %v1646_v39  ;;  %vm1654_vm3 = vweird.f32 %v5955_v40 }
 0xcdd   :  { %vm1655_vm8 = vmor %vm1653_vm4, %vm1654_vm3 }
 0xcde   :  { %v1650_v43 = vsub.f32 1.0, %v1649_v42 }
 0xce0   :  { %v1651_v46 = vmul.f32 %v5955_v40, %v1650_v43 }
 0xce2   :  { %v1652_v48 = vadd.f32 %v5955_v40, %v1651_v46 }
 0xce4   :  { %v1656_v51 = vsel %vm1655_vm8, %v5955_v40, %v1652_v48 }
 0xce7   :  { %v1637_v2 = vpop.f32.mrf.mxu3 }
 0xce8   :  { %v1638_v24 = vadd.f32 %v5881_v54, %v1637_v2  ;;  %v1661_v54 = vsel %vm1658_vm9, %v1660_v52, %v1656_v51 }
 0xcea   :  { %v5621_v57 = vmul.f32 -1.442695, %v1638_v24 }
 0xcef   :  { %v1961_v9 = vpop.f32.mrf.mxu3 }
 0xcf0   :  { %v8085_v10 = vadd.f32 %v8080_v5, %v1961_v9 }
 0xcf2   :  { %2099 = vrot.lane.b32.xlu1 %v8085_v10, %s7242_s22  ;;  %v5646_v62 = vmul.f32 -1.442695, %v8085_v10 }
 0xcf7   :  { %v1964_v23 = vpop.f32.mrf.mxu3 }
 0xcf8   :  { %v1965_v25 = vadd.f32 %v8080_v5, %v1964_v23 }
 0xcfa   :  { %1682 = vrot.lane.b32.xlu1 %v1638_v24, %s7250_s17  ;;  %2101 = vrot.lane.b32.xlu2 %v1965_v25, %s7242_s22  ;;  %v5647_v41 = vmul.f32 -1.442695, %v1965_v25 }
 0xcfc   :  { %5956 = vpow2.f32 %v5647_v41 }
 0xcff   :  { %v1967_v28 = vpop.f32.mrf.mxu3 }
 0xd00   :  { %v1968_v30 = vadd.f32 %v8080_v5, %v1967_v28 }
 0xd02   :  { %2826 = vrot.lane.b32.xlu2 %v2776_v27, %s7251_s24  ;;  %v5957_v45 = vpop.eup %5956  ;;  %v5648_v3 = vmul.f32 -1.442695, %v1968_v30 }
 0xd03   :  { %v1998_v47 = vadd.f32 1.0, %v5957_v45 }
 0xd05   :  { %5958 = vrcp.f32 %v1998_v47  ;;  %vm2023_vm11 = vweird.f32 %v1998_v47  ;;  %v2027_v9 = vand.u32 2147483647, %v1998_v47 }
 0xd06   :  { %5960 = vpow2.f32 %v5621_v57 }
 0xd07   :  { %v1970_v32 = vpop.f32.mrf.mxu3  ;;  %5962 = vpow2.f32 %v5646_v62  ;;  %vm2028_vm14 = vcmp.eq.f32.partialorder %v2027_v9, 8.507059e+37 }
 0xd08   :  { %v1971_v36 = vadd.f32 %v8080_v5, %v1970_v32  ;;  %5964 = vpow2.f32 %v5648_v3 }
 0xd0a   :  { %2103 = vrot.lane.b32.xlu2 %v1968_v30, %s7242_s22  ;;  %v5649_v14 = vmul.f32 -1.442695, %v1971_v36 }
 0xd0b   :  { %v5959_v56 = vpop.eup %5958 }
 0xd0c   :  { %v2019_v60 = vmul.f32 %v5959_v56, %v1998_v47  ;;  %v5961_v0 = vpop.eup %5960  ;;  %vm2024_vm12 = vweird.f32 %v5959_v56 }
 0xd0d   :  { %v1647_v4 = vadd.f32 1.0, %v5961_v0  ;;  %v5963_v7 = vpop.eup %5962  ;;  %vm2025_vm13 = vmor %vm2023_vm11, %vm2024_vm12 }
 0xd0e   :  { %v2020_v63 = vsub.f32 1.0, %v2019_v60  ;;  %v1997_v12 = vadd.f32 1.0, %v5963_v7  ;;  %v5965_v16 = vpop.eup %5964 }
 0xd0f   :  { %v8114_v2 = vpop.f32.mrf.mxu3  ;;  %5966 = vrcp.f32 %v1647_v4  ;;  %v8119_v24 = vadd.f32 1.0, %v5965_v16  ;;  %v1674_v45 = vand.u32 2147483648, %v1647_v4  ;;  %vm1668_vm1 = vweird.f32 %v1647_v4 }
 0xd10   :  { %v2021_v1 = vmul.f32 %v5959_v56, %v2020_v63  ;;  %5968 = vrcp.f32 %v1997_v12  ;;  %v1672_v46 = vand.u32 2147483647, %v1647_v4  ;;  %v2012_v52 = vand.u32 2147483647, %v1997_v12 }
 0xd11   :  { %5970 = vpow2.f32 %v5649_v14  ;;  %vm2008_vm4 = vweird.f32 %v1997_v12  ;;  %v1974_v0 = vadd.f32 %v8080_v5, %v8114_v2  ;;  %vm2038_vm12 = vweird.f32 %v8119_v24 }
 0xd12   :  { %2105 = vrot.lane.b32.xlu2 %v1971_v36, %s7242_s22  ;;  %v2022_v8 = vadd.f32 %v5959_v56, %v2021_v1  ;;  %5972 = vrcp.f32 %v8119_v24  ;;  %vm1673_vm8 = vcmp.eq.f32.partialorder %v1672_v46, 8.507059e+37  ;;  %vm2013_vm11 = vcmp.eq.f32.partialorder %v2012_v52, 8.507059e+37 }
 0xd14   :  { %v2026_v10 = vsel %vm2025_vm13, %v5959_v56, %v2022_v8  ;;  %v2042_v8 = vand.u32 2147483647, %v8119_v24 }
 0xd15   :  { %v5967_v22 = vpop.eup %5966 }
 0xd16   :  { %v1664_v27 = vmul.f32 %v5967_v22, %v1647_v4  ;;  %v5969_v28 = vpop.eup %5968  ;;  %vm1669_vm15 = vweird.f32 %v5967_v22 }
 0xd17   :  { %v1976_v15 = vpop.f32.mrf.mxu3  ;;  %v5971_v30 = vpop.eup %5970  ;;  %v2004_v32 = vmul.f32 %v5969_v28, %v1997_v12  ;;  %vm1670_vm2 = vmor %vm1668_vm1, %vm1669_vm15  ;;  %vm2009_vm3 = vweird.f32 %v5969_v28  ;;  %vm2043_vm15 = vcmp.eq.f32.partialorder %v2042_v8, 8.507059e+37 }
 0xd18   :  { %v8117_v23 = vadd.f32 %v8080_v5, %v1976_v15  ;;  %v1665_v36 = vsub.f32 1.0, %v1664_v27  ;;  %v8129_v37 = vadd.f32 1.0, %v5971_v30  ;;  %v5973_v38 = vpop.eup %5972  ;;  %vm2010_vm9 = vmor %vm2008_vm4, %vm2009_vm3 }
 0xd19   :  { %v2005_v39 = vsub.f32 1.0, %v2004_v32  ;;  %v2034_v41 = vmul.f32 %v5973_v38, %v8119_v24  ;;  %vm2039_vm13 = vweird.f32 %v5973_v38 }
 0xd1a   :  { %5974 = vrcp.f32 %v8129_v37  ;;  %vm2053_vm1 = vweird.f32 %v8129_v37  ;;  %v2059_v15 = vand.u32 2147483648, %v8129_v37 }
 0xd1b   :  { %v2006_v42 = vmul.f32 %v5969_v28, %v2005_v39 }
 0xd1d   :  { %v2007_v48 = vadd.f32 %v5969_v28, %v2006_v42 }
 0xd20   :  { %v5975_v50 = vpop.eup %5974 }
 0xd21   :  { %v2049_v62 = vmul.f32 %v5975_v50, %v8129_v37 }
 0xd23   :  { %v2050_v9 = vsub.f32 1.0, %v2049_v62 }
 0xd3c   :  { %v1681_v53 = vpop.permute.xlu0 %1680 }
 0xd3d   :  { %v1686_v55 = vmul.f32 %v1681_v53, %v1661_v54  ;;  %v2014_v53 = vand.u32 2147483648, %v1997_v12  ;;  %v1675_v54 = vor.u32 1.1754944e-38, %v1674_v45  ;;  %v7252_v45 = vmov 3.0  }
 0xd3f   :  { %v8109_v58 = vadd.f32 %v1686_v55, %v7989_v20  ;;  %v2029_v20 = vand.u32 2147483648, %v1998_v47  ;;  %v2035_v47 = vsub.f32 1.0, %v2034_v41  ;;  %v2015_v63 = vor.u32 1.1754944e-38, %v2014_v53 }
 0xd41   :  { %v1691_v59 = vsel %vm1690_vm10, %v8109_v58, 0.0  ;;  %v2030_v11 = vor.u32 1.1754944e-38, %v2029_v20  ;;  %v2036_v55 = vmul.f32 %v5973_v38, %v2035_v47  ;;  %v2044_v20 = vand.u32 2147483648, %v8119_v24 }
 0xd42   :  { %1692 = vadd.xlane.f32.xlu2 %v1691_v59  ;;  %v2011_v59 = vsel %vm2010_vm9, %v5969_v28, %v2007_v48 }
 0xd43   :  { %v2031_v17 = vsel %vm2028_vm14, %v2030_v11, %v2026_v10  ;;  %v2016_v3 = vsel %vm2013_vm11, %v2015_v63, %v2011_v59  ;;  %v2037_v4 = vadd.f32 %v5973_v38, %v2036_v55  ;;  %vm2040_vm14 = vmor %vm2038_vm12, %vm2039_vm13  ;;  %v2045_v5 = vor.u32 1.1754944e-38, %v2044_v20 }
 0xd45   :  { %v2041_v11 = vsel %vm2040_vm14, %v5973_v38, %v2037_v4 }
 0xd46   :  { %v2046_v14 = vsel %vm2043_vm15, %v2045_v5, %v2041_v11 }
 0xd54   :  { %v2102_v18 = vpop.permute.xlu2 %2101 }
 0xd55   :  { %v2118_v19 = vmul.f32 %v2102_v18, %v2031_v17  ;;  %v2057_v18 = vand.u32 2147483647, %v8129_v37  ;;  %v5650_v37 = vmul.f32 -1.442695, %v1974_v0 }
 0xd57   :  { %v8122_v25 = vadd.f32 %v2118_v19, %v7992_v21  ;;  %v1666_v21 = vmul.f32 %v5967_v22, %v1665_v36  ;;  %vm2058_vm4 = vcmp.eq.f32.partialorder %v2057_v18, 8.507059e+37  ;;  %5976 = vpow2.f32 %v5650_v37 }
 0xd59   :  { %v2132_v26 = vsel %vm803_vm0, %v8122_v25, 0.0  ;;  %v1667_v43 = vadd.f32 %v5967_v22, %v1666_v21 }
 0xd5a   :  { %2133 = vadd.xlane.f32.xlu1 %v2132_v26  ;;  %2109 = vrot.lane.b32.xlu2 %v8117_v23, %s7242_s22 }
 0xd5b   :  { %v1671_v31 = vsel %vm1670_vm2, %v5967_v22, %v1667_v43  ;;  %vm2054_vm2 = vweird.f32 %v5975_v50  ;;  %v2060_v22 = vor.u32 1.1754944e-38, %v2059_v15  ;;  %v2802_v15 = vpop.f32.mrf.mxu1 }
 0xd5c   :  { %v8133_v51 = vpop.permute.xlu2 %2826  ;;  %v1676_v57 = vsel %vm1673_vm8, %v1675_v54, %v1671_v31  ;;  %vm2055_vm3 = vmor %vm2053_vm1, %vm2054_vm2 }
 0xd5d   :  { %v5977_v38 = vpop.eup %5976 }
 0xd5e   :  { %v2001_v39 = vadd.f32 1.0, %v5977_v38 }
 0xd60   :  { %5978 = vrcp.f32 %v2001_v39  ;;  %vm2068_vm8 = vweird.f32 %v2001_v39  ;;  %v2072_v54 = vand.u32 2147483647, %v2001_v39 }
 0xd62   :  { %vm2073_vm12 = vcmp.eq.f32.partialorder %v2072_v54, 8.507059e+37 }
 0xd64   :  { %v2100_v40 = vpop.permute.xlu1 %2099  ;;  %v2104_v2 = vpop.permute.xlu2 %2103 }
 0xd65   :  { %v2117_v7 = vmul.f32 %v2100_v40, %v2016_v3  ;;  %v2119_v16 = vmul.f32 %v2104_v2, %v2046_v14  ;;  %v5883_v14 = vld [vmem:[#allocation26] ss:$0 sm:$0xff] }
 0xd66   :  { %v5979_v41 = vpop.eup %5978 }
 0xd67   :  { %v8148_v10 = vadd.f32 %v2117_v7, %v7983_v13  ;;  %v8156_v13 = vadd.f32 %v2119_v16, %v8003_v34  ;;  %v5651_v34 = vmul.f32 -1.442695, %v8117_v23  ;;  %v2064_v43 = vmul.f32 %v5979_v41, %v2001_v39 }
 0xd68   :  { %vm2069_vm9 = vweird.f32 %v5979_v41 }
 0xd69   :  { %v2129_v19 = vsel %vm803_vm0, %v8148_v10, 0.0  ;;  %v2135_v30 = vsel %vm803_vm0, %v8156_v13, 0.0  ;;  %5980 = vpow2.f32 %v5651_v34  ;;  %v2065_v48 = vsub.f32 1.0, %v2064_v43  ;;  %vm2070_vm11 = vmor %vm2068_vm8, %vm2069_vm9 }
 0xd6a   :  { %5982 = vrcp.f32 %v7252_v45 }
 0xd6c   :  { %v1683_v56 = vpop.permute.xlu1 %1682  ;;  %v2106_v26 = vpop.permute.xlu2 %2105 }
 0xd6d   :  { %v1687_v60 = vmul.f32 %v1683_v56, %v1676_v57 }
 0xd6f   :  { %v8140_v1 = vadd.f32 %v1687_v60, %v8000_v33  ;;  %v2051_v33 = vmul.f32 %v5975_v50, %v2050_v9  ;;  %v5981_v47 = vpop.eup %5980 }
 0xd70   :  { %v2002_v23 = vadd.f32 1.0, %v5981_v47  ;;  %v5983_v31 = vpop.eup %5982 }
 0xd71   :  { %v1694_v12 = vsel %vm1690_vm10, %v8140_v1, 0.0  ;;  %v2052_v17 = vadd.f32 %v5975_v50, %v2051_v33  ;;  %v1698_v52 = vmul.f32 3.0, %v5983_v31  ;;  %vm1702_vm13 = vweird.f32 %v5983_v31 }
 0xd72   :  { %1695 = vadd.xlane.f32.xlu0 %v1694_v12  ;;  %5984 = vrcp.f32 %v2002_v23  ;;  %vm2083_vm14 = vweird.f32 %v2002_v23 }
 0xd73   :  { %2107 = vrot.lane.b32.xlu1 %v1974_v0, %s7242_s22  ;;  %v2056_v24 = vsel %vm2055_vm3, %v5975_v50, %v2052_v17  ;;  %v2066_v50 = vmul.f32 %v5979_v41, %v2065_v48  ;;  %v1699_v55 = vsub.f32 1.0, %v1698_v52  ;;  %v2089_v17 = vand.u32 2147483648, %v2002_v23 }
 0xd74   :  { %v2061_v27 = vsel %vm2058_vm4, %v2060_v22, %v2056_v24  ;;  %v2803_v24 = vadd.f32 %v5883_v14, %v2802_v15  ;;  %v2722_v15 = vld [vmem:[%s9288_s28 + $0x8] sm:$0xff] }
 0xd75   :  { %v2120_v28 = vmul.f32 %v2106_v26, %v2061_v27  ;;  %v2067_v53 = vadd.f32 %v5979_v41, %v2066_v50  ;;  %v1700_v60 = vmul.f32 %v5983_v31, %v1699_v55  ;;  %v2822_v26 = vpop.f32.mrf.mxu0 }
 0xd76   :  { %v8194_v38 = vadd.f32 %v2822_v26, %v2803_v24 }
 0xd77   :  { %v8161_v32 = vadd.f32 %v2120_v28, %v8008_v44  ;;  %v2071_v57 = vsel %vm2070_vm11, %v5979_v41, %v2067_v53  ;;  %v1701_v7 = vadd.f32 %v5983_v31, %v1700_v60 }
 0xd78   :  { %v5985_v59 = vpop.eup %5984  ;;  %v2829_v41 = vadd.f32 %v8133_v51, %v8194_v38 }
 0xd79   :  { %v2138_v36 = vsel %vm803_vm0, %v8161_v32, 0.0  ;;  %v2079_v3 = vmul.f32 %v5985_v59, %v2002_v23  ;;  %v8180_v12 = vsel %vm1702_vm13, %v5983_v31, %v1701_v7  ;;  %vm2084_vm15 = vweird.f32 %v5985_v59  ;;  %v2724_v7 = vld [vmem:[%s9288_s28 + $0x18] sm:$0xff] }
 0xd7a   :  { %2130 = vadd.xlane.f32.xlu0 %v2129_v19  ;;  %v2087_v19 = vand.u32 2147483647, %v2002_v23  ;;  %vm2085_vm1 = vmor %vm2083_vm14, %vm2084_vm15  ;;  %vm2830_vm3 = vcmp.gt.f32.partialorder %v2829_v41, 0.0  ;;  %2855 = vmatpush.msrb.mxu0 %v2724_v7 }
 0xd7b   :  { %v2080_v8 = vsub.f32 1.0, %v2079_v3 }
 0xd7c   :  { %vm2088_vm2 = vcmp.eq.f32.partialorder %v2087_v19, 8.507059e+37 }
 0xd7d   :  { %v2081_v11 = vmul.f32 %v5985_v59, %v2080_v8 }
 0xd7f   :  { %v2082_v18 = vadd.f32 %v5985_v59, %v2081_v11 }
 0xd81   :  { %v2086_v37 = vsel %vm2085_vm1, %v5985_v59, %v2082_v18 }
 0xd82   :  { %2136 = vadd.xlane.f32.xlu0 %v2135_v30  ;;  %v2090_v30 = vor.u32 1.1754944e-38, %v2089_v17  ;;  %v2721_v17 = vld [vmem:[%s9288_s28] sm:$0xff] }
 0xd8a   :  { %2139 = vadd.xlane.f32.xlu0 %v2138_v36 }
 0xdb5   :  { %v1693_v5 = vpop.xlane.xlu2 %1692 }
 0xdb6   :  { %v1704_v16 = vmul.f32 %v8180_v12, %v1693_v5 }
 0xdb8   :  { %v8190_v27 = vsub.f32 %v8109_v58, %v1704_v16 }
 0xdba   :  { %v1708_v34 = vmul.f32 %v8190_v27, %v8190_v27 }
 0xdbc   :  { %v1710_v45 = vsel %vm1690_vm10, %v1708_v34, 0.0 }
 0xdbd   :  { %v2110_v58 = vpop.permute.xlu2 %2109 }
 0xdcd   :  { %v2134_v21 = vpop.xlane.xlu1 %2133 }
 0xdce   :  { %v2148_v40 = vmul.f32 %v2134_v21, %v7826_v49  ;;  %v2091_v21 = vsel %vm2088_vm2, %v2090_v30, %v2086_v37 }
 0xdd0   :  { %v8168_v42 = vsub.f32 %v8122_v25, %v2148_v40  ;;  %v2074_v25 = vand.u32 2147483648, %v2001_v39 }
 0xdd2   :  { %v2160_v44 = vmul.f32 %v8168_v42, %v8168_v42  ;;  %v2075_v56 = vor.u32 1.1754944e-38, %v2074_v25 }
 0xdd4   :  { %v2168_v46 = vsel %vm803_vm0, %v2160_v44, 0.0  ;;  %v2076_v63 = vsel %vm2073_vm12, %v2075_v56, %v2071_v57  ;;  %v2122_v44 = vmul.f32 %v2110_v58, %v2091_v21  ;;  %v8251_v58 = vld [vmem:[#allocation23] ss:$0 sm:$0xff] }
 0xdd5   :  { %2169 = vadd.xlane.f32.xlu1 %v2168_v46 }
 0xdd6   :  { %v2128_v48 = vadd.f32 %v2122_v44, %v8024_v61 }
 0xdd8   :  { %v2144_v31 = vsel %vm803_vm0, %v2128_v48, 0.0 }
 0xde5   :  { %v8173_v62 = vpop.xlane.xlu0 %1695  ;;  %v2108_v0 = vpop.permute.xlu1 %2107 }
 0xde6   :  { %v2121_v4 = vmul.f32 %v2108_v0, %v2076_v63  ;;  %v1705_v61 = vmul.f32 %v8180_v12, %v8173_v62 }
 0xde8   :  { %v8176_v20 = vadd.f32 %v2121_v4, %v8034_v6 }
 0xdea   :  { %v2141_v9 = vsel %vm803_vm0, %v8176_v20, 0.0 }
 0xdeb   :  { %2142 = vadd.xlane.f32.xlu2 %v2141_v9 }
 0xded   :  { %v2131_v2 = vpop.xlane.xlu0 %2130 }
 0xdee   :  { %v2147_v33 = vmul.f32 %v2131_v2, %v7826_v49 }
 0xdf0   :  { %v8185_v6 = vsub.f32 %v8148_v10, %v2147_v33 }
 0xdf2   :  { %v2159_v22 = vmul.f32 %v8185_v6, %v8185_v6 }
 0xdf4   :  { %v2165_v28 = vsel %vm803_vm0, %v2159_v22, 0.0 }
 0xdf5   :  { %v2137_v36 = vpop.xlane.xlu0 %2136  ;;  %2166 = vadd.xlane.f32.xlu0 %v2165_v28 }
 0xdf6   :  { %v2149_v10 = vmul.f32 %v2137_v36, %v7826_v49 }
 0xdf8   :  { %v8197_v39 = vsub.f32 %v8156_v13, %v2149_v10  ;;  %v2831_v13 = vmul.f32 1.442695, %v2829_v41 }
 0xdfa   :  { %v2161_v40 = vmul.f32 %v8197_v39, %v8197_v39  ;;  %5986 = vpow2.f32 %v2831_v13 }
 0xdfc   :  { %v2171_v43 = vsel %vm803_vm0, %v2161_v40, 0.0 }
 0xdfd   :  { %2172 = vadd.xlane.f32.xlu1 %v2171_v43  ;;  %v2140_v46 = vpop.xlane.xlu0 %2139  ;;  %1711 = vadd.xlane.f32.xlu0 %v1710_v45  ;;  %v8256_v45 = vld [vmem:[#allocation25] ss:$0 sm:$0xff] }
 0xdfe   :  { %v2150_v47 = vmul.f32 %v2140_v46, %v7826_v49 }
 0xe00   :  { %v8210_v23 = vsub.f32 %v8161_v32, %v2150_v47  ;;  %v5987_v50 = vpop.eup %5986  ;;  %v8220_v32 = vsub.f32 %v8140_v1, %v1705_v61 }
 0xe01   :  { %v5656_v25 = vadd.f32 -1.0, %v5987_v50 }
 0xe02   :  { %v2162_v51 = vmul.f32 %v8210_v23, %v8210_v23  ;;  %v1709_v54 = vmul.f32 %v8220_v32, %v8220_v32 }
 0xe03   :  { %v2834_v53 = vsel %vm2830_vm3, %v2829_v41, %v5656_v25 }
 0xe04   :  { %v2174_v52 = vsel %vm803_vm0, %v2162_v51, 0.0  ;;  %v1713_v55 = vsel %vm1690_vm10, %v1709_v54, 0.0  ;;  %v8262_v54 = vld [vmem:[#allocation16] ss:$0 sm:$0xff] }
 0xe05   :  { %2145 = vadd.xlane.f32.xlu1 %v2144_v31 }
 0xe0d   :  { %2175 = vadd.xlane.f32.xlu1 %v2174_v52 }
 0xe11   :  { %2839 = vrot.lane.b32.xlu0 %v2834_v53, %s7253_s8 }
 0xe3b   :  { %1714 = vadd.xlane.f32.xlu0 %v1713_v55 }
 0xe48   :  { %v2170_v1 = vpop.xlane.xlu1 %2169 }
 0xe49   :  { %v2184_v3 = vmul.f32 %v2170_v1, %v7826_v49 }
 0xe4b   :  { %v8236_v8 = vadd.f32 1e-05, %v2184_v3 }
 0xe4d   :  { %vm2211_vm15 = vweird.f32 %v8236_v8 }
 0xe5e   :  { %v2143_v56 = vpop.xlane.xlu2 %2142 }
 0xe5f   :  { %v2151_v57 = vmul.f32 %v2143_v56, %v7826_v49  ;;  %v8264_v56 = vld [vmem:[#allocation17] ss:$0 sm:$0xff] }
 0xe61   :  { %v8227_v59 = vsub.f32 %v8176_v20, %v2151_v57  ;;  %v2723_v20 = vld [vmem:[%s9288_s28 + $0x10] sm:$0xff] }
 0xe62   :  { %2856 = vmatpush.msrb.mxu0 %v2723_v20 }
 0xe63   :  { %v2163_v60 = vmul.f32 %v8227_v59, %v8227_v59 }
 0xe64   :  { %2857 = vmatpush.msrb.mxu0 %v2722_v15 }
 0xe65   :  { %v2177_v62 = vsel %vm803_vm0, %v2163_v60, 0.0 }
 0xe66   :  { %2178 = vadd.xlane.f32.xlu2 %v2177_v62  ;;  %2858 = vmatpush.msrb.mxu0 %v2721_v17 }
 0xe68   :  { %v2167_v63 = vpop.xlane.xlu0 %2166 }
 0xe69   :  { %v2183_v0 = vmul.f32 %v2167_v63, %v7826_v49 }
 0xe6b   :  { %v2189_v4 = vadd.f32 1e-05, %v2183_v0 }
 0xe6d   :  { %5988 = vrsqrt.f32 %v2189_v4  ;;  %vm2201_vm8 = vweird.f32 %v2189_v4 }
 0xe6e   :  { %5990 = vrsqrt.f32 %v8236_v8 }
 0xe70   :  { %v2173_v9 = vpop.xlane.xlu1 %2172  ;;  %v1712_v5 = vpop.xlane.xlu0 %1711 }
 0xe71   :  { %v1716_v2 = vmul.f32 %v1712_v5, %v8180_v12  ;;  %v2185_v50 = vmul.f32 %v2173_v9, %v7826_v49 }
 0xe73   :  { %v5989_v11 = vpop.eup %5988  ;;  %v1718_v33 = vadd.f32 1e-05, %v1716_v2  ;;  %v2191_v61 = vadd.f32 1e-05, %v2185_v50 }
 0xe74   :  { %v2196_v14 = vmul.f32 %v5989_v11, %v2189_v4  ;;  %v8242_v18 = vpop.eup %5990  ;;  %vm2202_vm4 = vweird.f32 %v5989_v11 }
 0xe75   :  { %5992 = vrsqrt.f32 %v1718_v33  ;;  %v2206_v28 = vmul.f32 %v8242_v18, %v8236_v8  ;;  %vm2203_vm9 = vmor %vm2201_vm8, %vm2202_vm4  ;;  %vm1726_vm12 = vweird.f32 %v1718_v33  ;;  %vm2212_vm14 = vweird.f32 %v8242_v18 }
 0xe76   :  { %v2197_v16 = vmul.f32 %v5989_v11, %v2196_v14  ;;  %5994 = vrsqrt.f32 %v2191_v61  ;;  %vm2213_vm1 = vmor %vm2211_vm15, %vm2212_vm14  ;;  %vm2221_vm3 = vweird.f32 %v2191_v61 }
 0xe77   :  { %v2207_v40 = vmul.f32 %v8242_v18, %v2206_v28 }
 0xe78   :  { %v2198_v19 = vmul.f32 0.5, %v2197_v16  ;;  %v2146_v22 = vpop.xlane.xlu1 %2145 }
 0xe79   :  { %v2152_v24 = vmul.f32 %v2146_v22, %v7826_v49  ;;  %v2208_v47 = vmul.f32 0.5, %v2207_v40 }
 0xe7a   :  { %v2199_v26 = vsub.f32 1.5, %v2198_v19 }
 0xe7b   :  { %v8247_v30 = vsub.f32 %v2128_v48, %v2152_v24  ;;  %v5993_v36 = vpop.eup %5992  ;;  %v2209_v25 = vsub.f32 1.5, %v2208_v47 }
 0xe7c   :  { %v2200_v37 = vmul.f32 %v5989_v11, %v2199_v26  ;;  %v1721_v10 = vmul.f32 %v5993_v36, %v1718_v33  ;;  %vm1727_vm11 = vweird.f32 %v5993_v36  ;;  %v5995_v9 = vpop.eup %5994 }
 0xe7d   :  { %v2164_v34 = vmul.f32 %v8247_v30, %v8247_v30  ;;  %vm1728_vm13 = vmor %vm1726_vm12, %vm1727_vm11  ;;  %v2210_v60 = vmul.f32 %v8242_v18, %v2209_v25  ;;  %v2216_v2 = vmul.f32 %v5995_v9, %v2191_v61  ;;  %vm2222_vm2 = vweird.f32 %v5995_v9 }
 0xe7e   :  { %v2204_v21 = vsel %vm2203_vm9, %v5989_v11, %v2200_v37  ;;  %v1722_v44 = vmul.f32 %v5993_v36, %v1721_v10  ;;  %vm2223_vm4 = vmor %vm2221_vm3, %vm2222_vm2 }
 0xe7f   :  { %v2255_v41 = vmul.f32 %v2204_v21, %v8185_v6  ;;  %v2180_v43 = vsel %vm803_vm0, %v2164_v34, 0.0  ;;  %v2214_v0 = vsel %vm2213_vm1, %v8242_v18, %v2210_v60  ;;  %v2217_v18 = vmul.f32 %v5995_v9, %v2216_v2 }
 0xe80   :  { %2181 = vadd.xlane.f32.xlu1 %v2180_v43  ;;  %v1723_v13 = vmul.f32 0.5, %v1722_v44  ;;  %v2256_v5 = vmul.f32 %v2214_v0, %v8168_v42  ;;  %v2176_v28 = vpop.xlane.xlu1 %2175 }
 0xe81   :  { %v2264_v46 = vmul.f32 %v8251_v58, %v2255_v41  ;;  %v2218_v42 = vmul.f32 0.5, %v2217_v18  ;;  %v2186_v37 = vmul.f32 %v2176_v28, %v7826_v49 }
 0xe82   :  { %v1724_v31 = vsub.f32 1.5, %v1723_v13  ;;  %v2265_v33 = vmul.f32 %v8251_v58, %v2256_v5 }
 0xe83   :  { %v2273_v48 = vadd.f32 %v8256_v45, %v2264_v46  ;;  %v2840_v51 = vpop.permute.xlu0 %2839  ;;  %v2219_v10 = vsub.f32 1.5, %v2218_v42  ;;  %v8284_v44 = vadd.f32 1e-05, %v2186_v37 }
 0xe84   :  { %5657 = vmatmul.msk.f32.vlgmr.msrb.gmra.mxu0 %vm803_vm0, %v2840_v51  ;;  %v1725_v53 = vmul.f32 %v5993_v36, %v1724_v31  ;;  %v2274_v22 = vadd.f32 %v8256_v45, %v2265_v33 }
 0xe85   :  { %v2435_v52 = vrot.slane %v2273_v48, 1  ;;  %v2436_v6 = vrot.slane %v2273_v48, 2  ;;  %2477 = vst [vmem:[#allocation1] ss:$9 sm:$0xff] %v2273_v48  ;;  %v2437_v1 = vrot.slane %v2273_v48, 3  ;;  %v2438_v3 = vrot.slane %v2273_v48, 4 }
 0xe86   :  { %v1729_v55 = vsel %vm1728_vm13, %v5993_v36, %v1725_v53  ;;  %v2439_v7 = vrot.slane %v2273_v48, 5  ;;  %v2440_v15 = vrot.slane %v2273_v48, 6  ;;  %v2441_v16 = vrot.slane %v2273_v48, 7 }
 0xe87   :  { %2479 = vst [vmem:[#allocation1 + $0x1] ss:$9 sm:$0xff] %v2435_v52  ;;  %v1740_v57 = vmul.f32 %v1729_v55, %v8190_v27  ;;  %v2442_v34 = vrot.slane %v2274_v22, 1  ;;  %v2443_v21 = vrot.slane %v2274_v22, 2  ;;  %v2444_v41 = vrot.slane %v2274_v22, 3 }
 0xe88   :  { %2481 = vst [vmem:[#allocation1 + $0x2] ss:$9 sm:$0xff] %v2436_v6  ;;  %v2220_v43 = vmul.f32 %v5995_v9, %v2219_v10  ;;  %v2445_v51 = vrot.slane %v2274_v22, 4  ;;  %v2446_v52 = vrot.slane %v2274_v22, 5  ;;  %v2447_v55 = vrot.slane %v2274_v22, 6 }
 0xe89   :  { %v1745_v62 = vmul.f32 %v8262_v54, %v1740_v57  ;;  %vm2231_vm13 = vweird.f32 %v8284_v44 }
 0xe8a   :  { %v2224_v47 = vsel %vm2223_vm4, %v5995_v9, %v2220_v43 }
 0xe8b   :  { %v1750_v63 = vadd.f32 %v8264_v56, %v1745_v62  ;;  %v2257_v50 = vmul.f32 %v2224_v47, %v8197_v39 }
 0xe8d   :  { %v2279_v27 = vsel %vm1690_vm10, %v1750_v63, -inf  ;;  %v2266_v62 = vmul.f32 %v8251_v58, %v2257_v50 }
 0xe8e   :  { %v2280_v20 = vrot.slane %v2279_v27, 4 }
 0xe8f   :  { %v8273_v4 = vld [vmem:[#allocation1] sm:$0xff] }
 0xe90   :  { %2483 = vst [vmem:[#allocation1] ss:$9 sm:$0xff] %v2437_v1  ;;  %v2281_v8 = vmax.f32 %v2279_v27, %v2280_v20  ;;  %v2448_v27 = vrot.slane %v2274_v22, 7 }
 0xe91   :  { %2484 = vst [vmem:[#allocation1 + $0x1] ss:$9 sm:$0xff] %v2438_v3  ;;  %v2275_v3 = vadd.f32 %v8256_v45, %v2266_v62 }
 0xe92   :  { %2485 = vst [vmem:[#allocation1 + $0x2] ss:$9 sm:$0xff] %v2439_v7  ;;  %v2282_v11 = vrot.slane %v2281_v8, 2 }
 0xe93   :  { %v2449_v9 = vrot.slane %v2275_v3, 1  ;;  %v2451_v42 = vrot.slane %v2275_v3, 3 }
 0xe94   :  { %v2283_v14 = vmax.f32 %v2281_v8, %v2282_v11 }
 0xe96   :  { %v2284_v19 = vrot.slane %v2283_v14, 1 }
 0xe98   :  { %v2285_v24 = vmax.f32 %v2283_v14, %v2284_v19 }
 0xe99   :  { %v8278_v17 = vld [vmem:[#allocation1] sm:$0xff] }
 0xe9a   :  { %2487 = vst [vmem:[#allocation1] ss:$9 sm:$0xff] %v2440_v15  ;;  %v2293_v26 = vsub.f32 %v1750_v63, %v2285_v24 }
 0xe9b   :  { %2488 = vst [vmem:[#allocation1 + $0x1] ss:$9 sm:$0xff] %v2441_v16 }
 0xe9c   :  { %2489 = vst [vmem:[#allocation1 + $0x2] ss:$9 sm:$0xff] %v2274_v22  ;;  %v2295_v36 = vmul.f32 1.442695, %v2293_v26  ;;  %v2450_v22 = vrot.slane %v2275_v3, 2  ;;  %v2452_v26 = vrot.slane %v2275_v3, 4 }
 0xe9e   :  { %5996 = vpow2.f32 %v2295_v36 }
 0xe9f   :  { %5998 = vrsqrt.f32 %v8284_v44 }
 0xea3   :  { %v8282_v40 = vld [vmem:[#allocation1] sm:$0xff] }
 0xea4   :  { %2491 = vst [vmem:[#allocation1] ss:$9 sm:$0xff] %v2442_v34  ;;  %v5997_v46 = vpop.eup %5996 }
 0xea5   :  { %2492 = vst [vmem:[#allocation1 + $0x1] ss:$9 sm:$0xff] %v2443_v21  ;;  %v2299_v13 = vsel %vm1690_vm10, %v5997_v46, 0.0  ;;  %v5999_v53 = vpop.eup %5998 }
 0xea6   :  { %2493 = vst [vmem:[#allocation1 + $0x2] ss:$9 sm:$0xff] %v2444_v41  ;;  %v2300_v48 = vrot.slane %v2299_v13, 4  ;;  %v2226_v63 = vmul.f32 %v5999_v53, %v8284_v44  ;;  %vm2232_vm9 = vweird.f32 %v5999_v53 }
 0xea7   :  { %vm2233_vm14 = vmor %vm2231_vm13, %vm2232_vm9  ;;  %vm3713_vm9 = vcmask 1042434   ;;  %vm3719_vm13 = vcmask 1045509  }
 0xea8   :  { %v2301_v31 = vadd.f32 %v2300_v48, %v2299_v13  ;;  %v2227_v7 = vmul.f32 %v5999_v53, %v2226_v63  ;;  %v2453_v48 = vrot.slane %v2275_v3, 5 }
 0xeaa   :  { %v2302_v25 = vrot.slane %v2301_v31, 2 }
 0xeac   :  { %v2303_v61 = vadd.f32 %v2302_v25, %v2301_v31  ;;  %v2454_v31 = vrot.slane %v2275_v3, 6 }
 0xead   :  { %v8289_v6 = vld [vmem:[#allocation1] sm:$0xff] }
 0xeae   :  { %2495 = vst [vmem:[#allocation1] ss:$9 sm:$0xff] %v2445_v51  ;;  %v1715_v57 = vpop.xlane.xlu0 %1714  ;;  %v2304_v1 = vrot.slane %v2303_v61, 1 }
 0xeaf   :  { %2496 = vst [vmem:[#allocation1 + $0x1] ss:$9 sm:$0xff] %v2446_v52  ;;  %v1717_v60 = vmul.f32 %v1715_v57, %v8180_v12  ;;  %v2228_v12 = vmul.f32 0.5, %v2227_v7 }
 0xeb0   :  { %2497 = vst [vmem:[#allocation1 + $0x2] ss:$9 sm:$0xff] %v2447_v55  ;;  %v2305_v39 = vadd.f32 %v2304_v1, %v2303_v61 }
 0xeb1   :  { %v1719_v0 = vadd.f32 1e-05, %v1717_v60  ;;  %v2229_v14 = vsub.f32 1.5, %v2228_v12 }
 0xeb3   :  { %6000 = vrsqrt.f32 %v1719_v0  ;;  %v2230_v36 = vmul.f32 %v5999_v53, %v2229_v14  ;;  %vm1736_vm11 = vweird.f32 %v1719_v0 }
 0xeb4   :  { %6002 = vrcp.f32 %v2305_v39 }
 0xeb5   :  { %v2234_v21 = vsel %vm2233_vm14, %v5999_v53, %v2230_v36  ;;  %vm3721_vm14 = vcmask 1046534  }
 0xeb6   :  { %v2258_v13 = vmul.f32 %v2234_v21, %v8210_v23 }
 0xeb7   :  { %v8295_v20 = vld [vmem:[#allocation1] sm:$0xff] }
 0xeb8   :  { %2499 = vst [vmem:[#allocation1] ss:$9 sm:$0xff] %v2448_v27 }
 0xeb9   :  { %v6001_v5 = vpop.eup %6000  ;;  %2500 = vst [vmem:[#allocation1 + $0x1] ss:$9 sm:$0xff] %v2275_v3 }
 0xeba   :  { %2501 = vst [vmem:[#allocation1 + $0x2] ss:$9 sm:$0xff] %v2449_v9  ;;  %v1731_v8 = vmul.f32 %v6001_v5, %v1719_v0  ;;  %v6003_v2 = vpop.eup %6002  ;;  %vm1737_vm8 = vweird.f32 %v6001_v5 }
 0xebb   :  { %v8297_v11 = vmul.f32 %v6003_v2, %v5997_v46  ;;  %vm1738_vm12 = vmor %vm1736_vm11, %vm1737_vm8  ;;  %vm2575_vm8 = vcmask 256000   ;;  %vm3715_vm11 = vcmask 1043459  }
 0xebc   :  { %v1732_v33 = vmul.f32 %v6001_v5, %v1731_v8 }
 0xebd   :  { %v2331_v16 = vperm.slane %v8297_v11, 2  ;;  %v2324_v18 = vperm.slane %v8297_v11, 1  ;;  %v2317_v19 = vperm.slane %v8297_v11, 0  ;;  %v2345_v41 = vperm.slane %v8297_v11, 4 }
 0xebe   :  { %v1733_v15 = vmul.f32 0.5, %v1732_v33  ;;  %v2338_v46 = vperm.slane %v8297_v11, 3  ;;  %v2359_v25 = vperm.slane %v8297_v11, 6  ;;  %v2352_v23 = vperm.slane %v8297_v11, 5 }
 0xebf   :  { %2336 = vperm.xlu0 %5865, %v2331_v16   ;;  %2329 = vperm.xlu1 %5863, %v2324_v18   ;;  %v2366_v63 = vperm.slane %v8297_v11, 7 }
 0xec0   :  { %v1734_v24 = vsub.f32 1.5, %v1733_v15  ;;  %2322 = vperm.xlu2 %5864, %v2317_v19  }
 0xec1   :  { %v8302_v28 = vld [vmem:[#allocation1] sm:$0xff] }
 0xec2   :  { %2503 = vst [vmem:[#allocation1] ss:$9 sm:$0xff] %v2450_v22  ;;  %v1735_v37 = vmul.f32 %v6001_v5, %v1734_v24 }
 0xec3   :  { %2504 = vst [vmem:[#allocation1 + $0x1] ss:$9 sm:$0xff] %v2451_v42 }
 0xec4   :  { %2505 = vst [vmem:[#allocation1 + $0x2] ss:$9 sm:$0xff] %v2452_v26  ;;  %v1739_v10 = vsel %vm1738_vm12, %v6001_v5, %v1735_v37  ;;  %vm3717_vm12 = vcmask 1044484  }
 0xec5   :  { %v1741_v34 = vmul.f32 %v1739_v10, %v8220_v32  ;;  %v2455_v32 = vrot.slane %v2275_v3, 7 }
 0xec7   :  { %v1746_v43 = vmul.f32 %v8262_v54, %v1741_v34  ;;  %2350 = vperm.xlu1 %5863, %v2345_v41   ;;  %v2267_v54 = vmul.f32 %v8251_v58, %v2258_v13  ;;  %v2728_v13 = vld [vmem:[%s9289_s1 + $0x10] sm:$0xff] }
 0xec8   :  { %2343 = vperm.xlu2 %5864, %v2338_v46  }
 0xec9   :  { %v1751_v47 = vadd.f32 %v8264_v56, %v1746_v43  ;;  %v2276_v53 = vadd.f32 %v8256_v45, %v2267_v54  ;;  %v2729_v43 = vld [vmem:[%s9289_s1 + $0x18] sm:$0xff] }
 0xeca   :  { %2881 = vmatpush.msra.mxu0 %v2729_v43 }
 0xecb   :  { %v8311_v44 = vld [vmem:[#allocation1] sm:$0xff]  ;;  %v2286_v51 = vsel %vm1690_vm10, %v1751_v47, -inf  ;;  %v2456_v60 = vrot.slane %v2276_v53, 1  ;;  %v2457_v62 = vrot.slane %v2276_v53, 2  ;;  %v2458_v9 = vrot.slane %v2276_v53, 3 }
 0xecc   :  { %2507 = vst [vmem:[#allocation1] ss:$9 sm:$0xff] %v2453_v48  ;;  %v2287_v50 = vrot.slane %v2286_v51, 4  ;;  %v2459_v5 = vrot.slane %v2276_v53, 4  ;;  %v2460_v8 = vrot.slane %v2276_v53, 5  ;;  %v2461_v18 = vrot.slane %v2276_v53, 6  ;;  %2882 = vmatpush.msra.mxu0 %v2728_v13 }
 0xecd   :  { %2508 = vst [vmem:[#allocation1 + $0x1] ss:$9 sm:$0xff] %v2454_v31  ;;  %v2462_v24 = vrot.slane %v2276_v53, 7 }
 0xece   :  { %2509 = vst [vmem:[#allocation1 + $0x2] ss:$9 sm:$0xff] %v2455_v32  ;;  %v2288_v52 = vmax.f32 %v2286_v51, %v2287_v50  ;;  %v2727_v51 = vld [vmem:[%s9289_s1 + $0x8] sm:$0xff] }
 0xecf   :  { %2364 = vperm.xlu1 %5863, %v2359_v25   ;;  %2883 = vmatpush.msra.mxu0 %v2727_v51 }
 0xed0   :  { %v2289_v56 = vrot.slane %v2288_v52, 2  ;;  %2357 = vperm.xlu2 %5864, %v2352_v23  }
 0xed2   :  { %v2290_v55 = vmax.f32 %v2288_v52, %v2289_v56  ;;  %v2726_v52 = vld [vmem:[%s9289_s1] sm:$0xff] }
 0xed3   :  { %2884 = vmatpush.msra.mxu0 %v2726_v52  ;;  %v3670_v52 = vld [vmem:[%s9290_s7 + $0x10] sm:$0xff] }
 0xed4   :  { %v2291_v57 = vrot.slane %v2290_v55, 1 }
 0xed5   :  { %v8318_v61 = vld [vmem:[#allocation1] sm:$0xff] }
 0xed6   :  { %2511 = vst [vmem:[#allocation1] ss:$9 sm:$0xff] %v2276_v53  ;;  %v2292_v1 = vmax.f32 %v2290_v55, %v2291_v57 }
 0xed7   :  { %2512 = vst [vmem:[#allocation1 + $0x1] ss:$9 sm:$0xff] %v2456_v60  ;;  %v5888_v60 = vld [vmem:[#allocation28] ss:$0 sm:$0xff] }
 0xed8   :  { %2513 = vst [vmem:[#allocation1 + $0x2] ss:$9 sm:$0xff] %v2457_v62  ;;  %v2294_v0 = vsub.f32 %v1751_v47, %v2292_v1  ;;  %2371 = vperm.xlu2 %5864, %v2366_v63  }
 0xed9   :  { %v2179_v3 = vpop.xlane.xlu2 %2178 }
 0xeda   :  { %v2297_v39 = vmul.f32 1.442695, %v2294_v0  ;;  %v2187_v7 = vmul.f32 %v2179_v3, %v7826_v49 }
 0xedc   :  { %6004 = vpow2.f32 %v2297_v39  ;;  %v2193_v27 = vadd.f32 1e-05, %v2187_v7 }
 0xede   :  { %6006 = vrsqrt.f32 %v2193_v27  ;;  %vm2241_vm15 = vweird.f32 %v2193_v27 }
 0xedf   :  { %v8322_v12 = vld [vmem:[#allocation1] sm:$0xff] }
 0xee0   :  { %2515 = vst [vmem:[#allocation1] ss:$9 sm:$0xff] %v2458_v9 }
 0xee1   :  { %2516 = vst [vmem:[#allocation1 + $0x1] ss:$9 sm:$0xff] %v2459_v5 }
 0xee2   :  { %v6005_v2 = vpop.eup %6004  ;;  %2517 = vst [vmem:[#allocation1 + $0x2] ss:$9 sm:$0xff] %v2460_v8 }
 0xee3   :  { %v2306_v11 = vsel %vm1690_vm10, %v6005_v2, 0.0 }
 0xee4   :  { %v2307_v33 = vrot.slane %v2306_v11, 4  ;;  %v6007_v14 = vpop.eup %6006 }
 0xee5   :  { %v2236_v16 = vmul.f32 %v6007_v14, %v2193_v27  ;;  %vm2242_vm10 = vweird.f32 %v6007_v14 }
 0xee6   :  { %v2308_v15 = vadd.f32 %v2307_v33, %v2306_v11  ;;  %vm2243_vm1 = vmor %vm2241_vm15, %vm2242_vm10  ;;  %vm9172_vm10 = vcmask 1047559  }
 0xee7   :  { %v2237_v22 = vmul.f32 %v6007_v14, %v2236_v16 }
 0xee8   :  { %v2309_v19 = vrot.slane %v2308_v15, 2 }
 0xee9   :  { %v8325_v42 = vld [vmem:[#allocation1] sm:$0xff]  ;;  %v2238_v36 = vmul.f32 0.5, %v2237_v22 }
 0xeea   :  { %2519 = vst [vmem:[#allocation1] ss:$9 sm:$0xff] %v2461_v18  ;;  %v2310_v26 = vadd.f32 %v2309_v19, %v2308_v15 }
 0xeeb   :  { %2520 = vst [vmem:[#allocation1 + $0x1] ss:$9 sm:$0xff] %v2462_v24  ;;  %v2239_v10 = vsub.f32 1.5, %v2238_v36 }
 0xeec   :  { %v2311_v37 = vrot.slane %v2310_v26, 1 }
 0xeed   :  { %v2240_v21 = vmul.f32 %v6007_v14, %v2239_v10  ;;  %v3760_v10 = vrot.slane %v7932_v29, 1 }
 0xeee   :  { %v2312_v34 = vadd.f32 %v2311_v37, %v2310_v26 }
 0xeef   :  { %v2244_v41 = vsel %vm2243_vm1, %v6007_v14, %v2240_v21 }
 0xef0   :  { %6008 = vrcp.f32 %v2312_v34  ;;  %v2259_v46 = vmul.f32 %v2244_v41, %v8227_v59 }
 0xef2   :  { %v2268_v47 = vmul.f32 %v8251_v58, %v2259_v46 }
 0xef3   :  { %v2182_v48 = vpop.xlane.xlu1 %2181 }
 0xef4   :  { %v2188_v31 = vmul.f32 %v2182_v48, %v7826_v49  ;;  %v2277_v32 = vadd.f32 %v8256_v45, %v2268_v47 }
 0xef6   :  { %v6009_v50 = vpop.eup %6008  ;;  %v2194_v54 = vadd.f32 1e-05, %v2188_v31  ;;  %2521 = vst [vmem:[#allocation1 + $0x2] ss:$9 sm:$0xff] %v2277_v32  ;;  %v2463_v53 = vrot.slane %v2277_v32, 1  ;;  %v2464_v55 = vrot.slane %v2277_v32, 2 }
 0xef7   :  { %v2316_v25 = vmul.f32 %v6009_v50, %v6005_v2  ;;  %v2465_v1 = vrot.slane %v2277_v32, 3  ;;  %v2466_v2 = vrot.slane %v2277_v32, 4  ;;  %v2467_v11 = vrot.slane %v2277_v32, 5 }
 0xef8   :  { %6010 = vrsqrt.f32 %v2194_v54  ;;  %vm2251_vm3 = vweird.f32 %v2194_v54  ;;  %v2468_v15 = vrot.slane %v2277_v32, 6  ;;  %v2469_v36 = vrot.slane %v2277_v32, 7 }
 0xef9   :  { %v2373_v59 = vperm.slane %v2316_v25, 0  ;;  %v2380_v23 = vperm.slane %v2316_v25, 1  ;;  %v2387_v56 = vperm.slane %v2316_v25, 2  ;;  %v2394_v39 = vperm.slane %v2316_v25, 3 }
 0xefa   :  { %v2401_v3 = vperm.slane %v2316_v25, 4  ;;  %v2408_v9 = vperm.slane %v2316_v25, 5  ;;  %v2415_v16 = vperm.slane %v2316_v25, 6  ;;  %v2422_v18 = vperm.slane %v2316_v25, 7 }
 0xefb   :  { %2378 = vperm.xlu0 %5865, %v2373_v59   ;;  %2385 = vperm.xlu1 %5863, %v2380_v23  }
 0xefc   :  { %2392 = vperm.xlu2 %5864, %v2387_v56   ;;  %v3669_v56 = vld [vmem:[%s9290_s7 + $0x8] sm:$0xff] }
 0xefd   :  { %v8335_v57 = vld [vmem:[#allocation1] sm:$0xff] }
 0xefe   :  { %v6011_v62 = vpop.eup %6010  ;;  %2523 = vst [vmem:[#allocation1] ss:$9 sm:$0xff] %v2463_v53 }
 0xeff   :  { %2524 = vst [vmem:[#allocation1 + $0x1] ss:$9 sm:$0xff] %v2464_v55  ;;  %v2246_v63 = vmul.f32 %v6011_v62, %v2194_v54  ;;  %vm2252_vm2 = vweird.f32 %v6011_v62  ;;  %v3671_v54 = vld [vmem:[%s9290_s7 + $0x18] sm:$0xff] }
 0xf00   :  { %2525 = vst [vmem:[#allocation1 + $0x2] ss:$9 sm:$0xff] %v2465_v1  ;;  %vm2253_vm4 = vmor %vm2251_vm3, %vm2252_vm2  ;;  %3748 = vmatpush.msrb.mxu0 %v3671_v54  ;;  %v3668_v1 = vld [vmem:[%s9290_s7] sm:$0xff] }
 0xf01   :  { %v2860_v0 = vpop.f32.mrf.mxu0  ;;  %v2247_v7 = vmul.f32 %v6011_v62, %v2246_v63 }
 0xf02   :  { %v2861_v27 = vadd.f32 %v5888_v60, %v2860_v0  ;;  %3749 = vmatpush.msrb.mxu0 %v3670_v52 }
 0xf03   :  { %2399 = vperm.xlu0 %5865, %v2394_v39   ;;  %2406 = vperm.xlu1 %5863, %v2401_v3   ;;  %v2248_v5 = vmul.f32 0.5, %v2247_v7 }
 0xf04   :  { %2413 = vperm.xlu2 %5864, %v2408_v9   ;;  %5658 = vmatmul.msk.f32.vlgmr.msra.gmra.mxu0 %vm803_vm0, %v2861_v27 }
 0xf05   :  { %v2249_v8 = vsub.f32 1.5, %v2248_v5  ;;  %3750 = vmatpush.msrb.mxu0 %v3669_v56 }
 0xf07   :  { %v8338_v33 = vld [vmem:[#allocation1] sm:$0xff]  ;;  %v2250_v14 = vmul.f32 %v6011_v62, %v2249_v8  ;;  %3751 = vmatpush.msrb.mxu0 %v3668_v1 }
 0xf08   :  { %2527 = vst [vmem:[#allocation1] ss:$9 sm:$0xff] %v2466_v2 }
 0xf09   :  { %2528 = vst [vmem:[#allocation1 + $0x1] ss:$9 sm:$0xff] %v2467_v11  ;;  %v2254_v19 = vsel %vm2253_vm4, %v6011_v62, %v2250_v14 }
 0xf0a   :  { %2529 = vst [vmem:[#allocation1 + $0x2] ss:$9 sm:$0xff] %v2468_v15  ;;  %v2260_v22 = vmul.f32 %v2254_v19, %v8247_v30 }
 0xf0b   :  { %2420 = vperm.xlu0 %5865, %v2415_v16   ;;  %2427 = vperm.xlu1 %5863, %v2422_v18  }
 0xf0c   :  { %v2269_v24 = vmul.f32 %v8251_v58, %v2260_v22 }
 0xf0e   :  { %v2278_v26 = vadd.f32 %v8256_v45, %v2269_v24 }
 0xf10   :  { %v2470_v37 = vrot.slane %v2278_v26, 1  ;;  %v2471_v30 = vrot.slane %v2278_v26, 2  ;;  %v2472_v41 = vrot.slane %v2278_v26, 3  ;;  %v2473_v58 = vrot.slane %v2278_v26, 4 }
 0xf11   :  { %v8344_v34 = vld [vmem:[#allocation1] sm:$0xff]  ;;  %v2474_v46 = vrot.slane %v2278_v26, 5  ;;  %v2475_v13 = vrot.slane %v2278_v26, 6  ;;  %v2476_v48 = vrot.slane %v2278_v26, 7 }
 0xf12   :  { %2531 = vst [vmem:[#allocation1] ss:$9 sm:$0xff] %v2469_v36 }
 0xf13   :  { %3833 = vrot.lane.b32.xlu1 %v3760_v10, %s7245_s19  ;;  %2532 = vst [vmem:[#allocation1 + $0x1] ss:$9 sm:$0xff] %v2278_v26 }
 0xf14   :  { %2533 = vst [vmem:[#allocation1 + $0x2] ss:$9 sm:$0xff] %v2470_v37 }
 0xf1a   :  { %v2323_v21 = vpop.permute.xlu2 %2322 }
 0xf1b   :  { %v8349_v43 = vld [vmem:[#allocation1] sm:$0xff]  ;;  %v2559_v31 = vmul.f32 %v8273_v4, %v2323_v21 }
 0xf1c   :  { %2535 = vst [vmem:[#allocation1] ss:$9 sm:$0xff] %v2471_v30 }
 0xf1d   :  { %2536 = vst [vmem:[#allocation1 + $0x1] ss:$9 sm:$0xff] %v2472_v41  ;;  %v2576_v32 = vsel %vm2575_vm8, %v2559_v31, 0.0 }
 0xf1e   :  { %2537 = vst [vmem:[#allocation1 + $0x2] ss:$9 sm:$0xff] %v2473_v58  ;;  %v2577_v25 = vrot.slane %v2576_v32, 4 }
 0xf20   :  { %v2578_v63 = vadd.f32 %v2577_v25, %v2576_v32 }
 0xf22   :  { %v2344_v45 = vpop.permute.xlu2 %2343  ;;  %v2579_v5 = vrot.slane %v2578_v63, 2 }
 0xf23   :  { %v2562_v50 = vmul.f32 %v8289_v6, %v2344_v45 }
 0xf24   :  { %v2580_v19 = vadd.f32 %v2579_v5, %v2578_v63 }
 0xf25   :  { %v8351_v47 = vld [vmem:[#allocation1] sm:$0xff]  ;;  %v2597_v4 = vsel %vm2575_vm8, %v2562_v50, 0.0 }
 0xf26   :  { %2539 = vst [vmem:[#allocation1] ss:$9 sm:$0xff] %v2474_v46  ;;  %v2581_v41 = vrot.slane %v2580_v19, 1 }
 0xf27   :  { %2540 = vst [vmem:[#allocation1 + $0x1] ss:$9 sm:$0xff] %v2475_v13 }
 0xf28   :  { %2541 = vst [vmem:[#allocation1 + $0x2] ss:$9 sm:$0xff] %v2476_v48  ;;  %v2582_v50 = vadd.f32 %v2581_v41, %v2580_v19  ;;  %v8399_v41 = vld [vmem:[%s9291_s14 + $0x8] sm:$0xff] }
 0xf2a   :  { %v2358_v51 = vpop.permute.xlu2 %2357 }
 0xf2b   :  { %v2564_v62 = vmul.f32 %v8302_v28, %v2358_v51 }
 0xf31   :  { %v2337_v59 = vpop.permute.xlu0 %2336  ;;  %v2330_v23 = vpop.permute.xlu1 %2329 }
 0xf32   :  { %v2561_v53 = vmul.f32 %v8282_v40, %v2337_v59  ;;  %v2560_v55 = vmul.f32 %v8278_v17, %v2330_v23  ;;  %v2372_v60 = vpop.permute.xlu2 %2371  ;;  %v2598_v40 = vrot.slane %v2597_v4, 4  ;;  %v2611_v17 = vsel %vm2575_vm8, %v2564_v62, 0.0 }
 0xf33   :  { %v2566_v7 = vmul.f32 %v8318_v61, %v2372_v60  ;;  %v2612_v15 = vrot.slane %v2611_v17, 4 }
 0xf34   :  { %v2590_v6 = vsel %vm2575_vm8, %v2561_v53, 0.0  ;;  %v2583_v0 = vsel %vm2575_vm8, %v2560_v55, 0.0  ;;  %v2599_v14 = vadd.f32 %v2598_v40, %v2597_v4 }
 0xf35   :  { %v2591_v39 = vrot.slane %v2590_v6, 4  ;;  %v2584_v3 = vrot.slane %v2583_v0, 4  ;;  %v2625_v2 = vsel %vm2575_vm8, %v2566_v7, 0.0  ;;  %v2613_v37 = vadd.f32 %v2612_v15, %v2611_v17 }
 0xf36   :  { %v2626_v22 = vrot.slane %v2625_v2, 4  ;;  %v2600_v36 = vrot.slane %v2599_v14, 2 }
 0xf37   :  { %v2592_v27 = vadd.f32 %v2591_v39, %v2590_v6  ;;  %v2585_v9 = vadd.f32 %v2584_v3, %v2583_v0  ;;  %v2614_v31 = vrot.slane %v2613_v37, 2 }
 0xf38   :  { %v2627_v58 = vadd.f32 %v2626_v22, %v2625_v2  ;;  %v2601_v48 = vadd.f32 %v2600_v36, %v2599_v14  ;;  %v8393_v36 = vld [vmem:[%s9291_s14 + $0x10] sm:$0xff] }
 0xf39   :  { %v2593_v8 = vrot.slane %v2592_v27, 2  ;;  %v2586_v28 = vrot.slane %v2585_v9, 2  ;;  %v2351_v11 = vpop.permute.xlu1 %2350  ;;  %v2615_v53 = vadd.f32 %v2614_v31, %v2613_v37 }
 0xf3a   :  { %v2563_v16 = vmul.f32 %v8295_v20, %v2351_v11  ;;  %v2628_v54 = vrot.slane %v2627_v58, 2  ;;  %v2602_v56 = vrot.slane %v2601_v48, 1 }
 0xf3b   :  { %v2587_v18 = vadd.f32 %v2586_v28, %v2585_v9  ;;  %v2594_v24 = vadd.f32 %v2593_v8, %v2592_v27  ;;  %v2616_v6 = vrot.slane %v2615_v53, 1 }
 0xf3c   :  { %v2604_v61 = vsel %vm2575_vm8, %v2563_v16, 0.0  ;;  %v2629_v4 = vadd.f32 %v2628_v54, %v2627_v58  ;;  %v2603_v63 = vadd.f32 %v2602_v56, %v2601_v48 }
 0xf3d   :  { %v2605_v26 = vrot.slane %v2604_v61, 4  ;;  %v2588_v30 = vrot.slane %v2587_v18, 1  ;;  %v2595_v45 = vrot.slane %v2594_v24, 1  ;;  %v2617_v17 = vadd.f32 %v2616_v6, %v2615_v53 }
 0xf3e   :  { %v2630_v39 = vrot.slane %v2629_v4, 1 }
 0xf3f   :  { %v2606_v21 = vadd.f32 %v2605_v26, %v2604_v61  ;;  %v2589_v51 = vadd.f32 %v2588_v30, %v2587_v18  ;;  %v2596_v25 = vadd.f32 %v2595_v45, %v2594_v24  ;;  %v8390_v26 = vld [vmem:[%s9291_s14 + $0x18] sm:$0xff]  ;;  %v8404_v45 = vld [vmem:[%s9291_s14] sm:$0xff] }
 0xf40   :  { %v2631_v9 = vadd.f32 %v2630_v39, %v2629_v4  ;;  %3776 = vmatpush.msra.mxu0 %v8390_v26 }
 0xf41   :  { %v2607_v46 = vrot.slane %v2606_v21, 2  ;;  %v2365_v13 = vpop.permute.xlu1 %2364  ;;  %v3712_v55 = vsel %vm1200_vm6, %v2589_v51, %v2582_v50 }
 0xf42   :  { %v2565_v20 = vmul.f32 %v8311_v44, %v2365_v13  ;;  %v3714_v62 = vsel %vm3713_vm9, %v2596_v25, %v3712_v55  ;;  %3777 = vmatpush.msra.mxu0 %v8393_v36 }
 0xf43   :  { %v2608_v32 = vadd.f32 %v2607_v46, %v2606_v21  ;;  %v3716_v3 = vsel %vm3715_vm11, %v2603_v63, %v3714_v62  ;;  %v2542_v62 = vld [vmem:[#allocation1] sm:$0xff] }
 0xf44   :  { %v2618_v52 = vsel %vm2575_vm8, %v2565_v20, 0.0  ;;  %3778 = vmatpush.msra.mxu0 %v8399_v41 }
 0xf45   :  { %v2609_v59 = vrot.slane %v2608_v32, 1  ;;  %v2619_v23 = vrot.slane %v2618_v52, 4 }
 0xf46   :  { %3779 = vmatpush.msra.mxu0 %v8404_v45 }
 0xf47   :  { %v2620_v60 = vadd.f32 %v2619_v23, %v2618_v52  ;;  %v2610_v1 = vadd.f32 %v2609_v59, %v2608_v32 }
 0xf49   :  { %v2621_v44 = vrot.slane %v2620_v60, 2  ;;  %v3718_v7 = vsel %vm3717_vm12, %v2610_v1, %v3716_v3 }
 0xf4a   :  { %v3720_v5 = vsel %vm3719_vm13, %v2617_v17, %v3718_v7 }
 0xf4b   :  { %v2622_v0 = vadd.f32 %v2621_v44, %v2620_v60 }
 0xf4d   :  { %v2623_v40 = vrot.slane %v2622_v0, 1 }
 0xf4f   :  { %v2624_v27 = vadd.f32 %v2623_v40, %v2622_v0 }
 0xf51   :  { %v3722_v8 = vsel %vm3721_vm14, %v2624_v27, %v3720_v5 }
 0xf52   :  { %v8380_v28 = vsel %vm9172_vm10, %v2631_v9, %v3722_v8 }
 0xf53   :  { %5685 = vmatmul.msk.f32.vlgmr.msrb.gmra.mxu0 %vm803_vm0, %v8380_v28 }
 0xf54   :  { %3891 = vmatpush.msrb.mxu0 %v8390_v26 }
 0xf56   :  { %v2393_v2 = vpop.permute.xlu2 %2392  ;;  %3892 = vmatpush.msrb.mxu0 %v8393_v36 }
 0xf57   :  { %v2569_v11 = vmul.f32 %v8335_v57, %v2393_v2 }
 0xf58   :  { %3893 = vmatpush.msrb.mxu0 %v8399_v41 }
 0xf59   :  { %v2646_v15 = vsel %vm2575_vm8, %v2569_v11, 0.0 }
 0xf5a   :  { %v2647_v24 = vrot.slane %v2646_v15, 4  ;;  %3894 = vmatpush.msrb.mxu0 %v8404_v45 }
 0xf5e   :  { %v2414_v14 = vpop.permute.xlu2 %2413 }
 0xf5f   :  { %v2572_v19 = vmul.f32 %v8349_v43, %v2414_v14 }
 0xf6d   :  { %v2379_v16 = vpop.permute.xlu0 %2378  ;;  %v2386_v18 = vpop.permute.xlu1 %2385 }
 0xf6e   :  { %v2567_v22 = vmul.f32 %v8322_v12, %v2379_v16  ;;  %v2568_v61 = vmul.f32 %v8325_v42, %v2386_v18  ;;  %v2667_v12 = vsel %vm2575_vm8, %v2572_v19, 0.0  ;;  %v2648_v42 = vadd.f32 %v2647_v24, %v2646_v15 }
 0xf6f   :  { %v2668_v46 = vrot.slane %v2667_v12, 4 }
 0xf70   :  { %v2632_v57 = vsel %vm2575_vm8, %v2567_v22, 0.0  ;;  %v2639_v37 = vsel %vm2575_vm8, %v2568_v61, 0.0  ;;  %v2649_v50 = vrot.slane %v2648_v42, 2 }
 0xf71   :  { %v2633_v30 = vrot.slane %v2632_v57, 4  ;;  %v2640_v21 = vrot.slane %v2639_v37, 4  ;;  %v2669_v23 = vadd.f32 %v2668_v46, %v2667_v12 }
 0xf72   :  { %v2650_v60 = vadd.f32 %v2649_v50, %v2648_v42 }
 0xf73   :  { %v2634_v43 = vadd.f32 %v2633_v30, %v2632_v57  ;;  %v2641_v58 = vadd.f32 %v2640_v21, %v2639_v37  ;;  %v2670_v1 = vrot.slane %v2669_v23, 2 }
 0xf74   :  { %v2651_v17 = vrot.slane %v2650_v60, 1 }
 0xf75   :  { %v2635_v13 = vrot.slane %v2634_v43, 2  ;;  %v2642_v48 = vrot.slane %v2641_v58, 2  ;;  %v2400_v31 = vpop.permute.xlu0 %2399  ;;  %v2407_v51 = vpop.permute.xlu1 %2406  ;;  %v2671_v16 = vadd.f32 %v2670_v1, %v2669_v23 }
 0xf76   :  { %v2570_v20 = vmul.f32 %v8338_v33, %v2400_v31  ;;  %v2571_v32 = vmul.f32 %v8344_v34, %v2407_v51  ;;  %v2652_v19 = vadd.f32 %v2651_v17, %v2650_v60 }
 0xf77   :  { %v2636_v54 = vadd.f32 %v2635_v13, %v2634_v43  ;;  %v2643_v52 = vadd.f32 %v2642_v48, %v2641_v58  ;;  %v2672_v21 = vrot.slane %v2671_v16, 1 }
 0xf78   :  { %v2653_v25 = vsel %vm2575_vm8, %v2570_v20, 0.0  ;;  %v2660_v59 = vsel %vm2575_vm8, %v2571_v32, 0.0 }
 0xf79   :  { %v2654_v56 = vrot.slane %v2653_v25, 4  ;;  %v2661_v53 = vrot.slane %v2660_v59, 4  ;;  %v2637_v55 = vrot.slane %v2636_v54, 1  ;;  %v2644_v33 = vrot.slane %v2643_v52, 1 }
 0xf7a   :  { %v2673_v48 = vadd.f32 %v2672_v21, %v2671_v16 }
 0xf7b   :  { %v2655_v34 = vadd.f32 %v2654_v56, %v2653_v25  ;;  %v2662_v4 = vadd.f32 %v2661_v53, %v2660_v59  ;;  %v2638_v39 = vadd.f32 %v2637_v55, %v2636_v54  ;;  %v2645_v3 = vadd.f32 %v2644_v33, %v2643_v52  ;;  %v5890_v56 = vld [vmem:[#allocation41] ss:$0 sm:$0xff] }
 0xf7c   :  { %v3759_v54 = vrot.slane %v7929_v35, 2 }
 0xf7d   :  { %v2656_v44 = vrot.slane %v2655_v34, 2  ;;  %v2663_v63 = vrot.slane %v2662_v4, 2  ;;  %v2421_v6 = vpop.permute.xlu0 %2420  ;;  %v2428_v0 = vpop.permute.xlu1 %2427  ;;  %v3725_v18 = vsel %vm1200_vm6, %v2645_v3, %v2638_v39 }
 0xf7e   :  { %v2573_v7 = vmul.f32 %v8351_v47, %v2421_v6  ;;  %v2574_v40 = vmul.f32 %v2542_v62, %v2428_v0  ;;  %v3726_v30 = vsel %vm3713_vm9, %v2652_v19, %v3725_v18  ;;  %v3761_v52 = vsel %vm1200_vm6, %v3760_v10, %v3759_v54 }
 0xf7f   :  { %v2657_v27 = vadd.f32 %v2656_v44, %v2655_v34  ;;  %v2664_v9 = vadd.f32 %v2663_v63, %v2662_v4  ;;  %v3830_v62 = vrot.slane %v7929_v35, 1 }
 0xf80   :  { %v2674_v5 = vsel %vm2575_vm8, %v2573_v7, 0.0  ;;  %v2681_v8 = vsel %vm2575_vm8, %v2574_v40, 0.0 }
 0xf81   :  { %v2658_v2 = vrot.slane %v2657_v27, 1  ;;  %v2665_v11 = vrot.slane %v2664_v9, 1  ;;  %v2675_v14 = vrot.slane %v2674_v5, 4  ;;  %v2682_v15 = vrot.slane %v2681_v8, 4  ;;  %v8439_v25 = vpop.f32.mrf.mxu0 }
 0xf83   :  { %v2659_v22 = vadd.f32 %v2658_v2, %v2657_v27  ;;  %v2676_v61 = vadd.f32 %v2675_v14, %v2674_v5  ;;  %v2683_v24 = vadd.f32 %v2682_v15, %v2681_v8  ;;  %v2666_v47 = vadd.f32 %v2665_v11, %v2664_v9 }
 0xf85   :  { %v2677_v57 = vrot.slane %v2676_v61, 2  ;;  %v2684_v37 = vrot.slane %v2683_v24, 2  ;;  %v3727_v12 = vsel %vm3715_vm11, %v2659_v22, %v3726_v30 }
 0xf86   :  { %v3728_v13 = vsel %vm3717_vm12, %v2666_v47, %v3727_v12  ;;  %v3834_v12 = vpop.permute.xlu1 %3833 }
 0xf87   :  { %v2678_v42 = vadd.f32 %v2677_v57, %v2676_v61  ;;  %v2685_v43 = vadd.f32 %v2684_v37, %v2683_v24  ;;  %v3729_v20 = vsel %vm3719_vm13, %v2673_v48, %v3728_v13 }
 0xf89   :  { %v2679_v58 = vrot.slane %v2678_v42, 1  ;;  %v2686_v46 = vrot.slane %v2685_v43, 1 }
 0xf8b   :  { %v2680_v31 = vadd.f32 %v2679_v58, %v2678_v42  ;;  %v2687_v51 = vadd.f32 %v2686_v46, %v2685_v43 }
 0xf8d   :  { %v3730_v32 = vsel %vm3721_vm14, %v2680_v31, %v3729_v20 }
 0xf8e   :  { %v8426_v50 = vsel %vm9172_vm10, %v2687_v51, %v3730_v32 }
 0xf8f   :  { %5686 = vmatmul.msk.f32.gmra.mxu0 %vm803_vm0, %v8426_v50 }
 0xf97   :  { %5687 = vmatmul.msk.f32.vlgmr.msra.gmra.mxu0 %vm803_vm0, %v3761_v52 }
 0xf98   :  { %4005 = vmatpush.msra.mxu0 %v8390_v26 }
 0xf9a   :  { %4006 = vmatpush.msra.mxu0 %v8393_v36 }
 0xf9c   :  { %4007 = vmatpush.msra.mxu0 %v8399_v41 }
 0xf9e   :  { %4008 = vmatpush.msra.mxu0 %v8404_v45 }
 0xfd0   :  { %v3753_v59 = vpop.f32.mrf.mxu0 }
 0xfd1   :  { %v8441_v53 = vadd.f32 %v5890_v56, %v3753_v59 }
0x100c   :  { %v3756_v23 = vpop.f32.mrf.mxu0 }
0x100d   :  { %v8443_v55 = vadd.f32 %v5890_v56, %v3756_v23 }
0x1014   :  { %v3781_v29 = vpop.f32.mrf.mxu0 }
0x1015   :  { %v3785_v10 = vrot.slane %v3781_v29, 1  ;;  %v3788_v33 = vadd.f32 %v3781_v29, %v8441_v53 }
0x1017   :  { %v3789_v60 = vadd.f32 %v3785_v10, %v8443_v55  ;;  %6012 = vtanh.f32 %v3788_v33  ;;  %v5688_v6 = vmul.f32 -1.442695, %v3788_v33 }
0x1019   :  { %6014 = vtanh.f32 %v3789_v60  ;;  %v5689_v1 = vmul.f32 -1.442695, %v3789_v60 }
0x101b   :  { %6016 = vpow2.f32 %v5689_v1 }
0x101d   :  { %v6013_v34 = vpop.eup %6012 }
0x101e   :  { %3841 = vrot.lane.b32.xlu0 %v6013_v34, %s7246_s12 }
0x101f   :  { %v6015_v4 = vpop.eup %6014 }
0x1020   :  { %3843 = vrot.lane.b32.xlu2 %v6015_v4, %s7246_s12 }
0x1021   :  { %v6017_v44 = vpop.eup %6016 }
0x1022   :  { %v3797_v63 = vadd.f32 1.0, %v6017_v44 }
0x1024   :  { %6018 = vrcp.f32 %v3797_v63  ;;  %v3824_v9 = vand.u32 2147483648, %v3797_v63  ;;  %vm3818_vm1 = vweird.f32 %v3797_v63  ;;  %v3822_v35 = vand.u32 2147483647, %v3797_v63 }
0x1025   :  { %6020 = vpow2.f32 %v5688_v6 }
0x1026   :  { %v3825_v8 = vor.u32 1.1754944e-38, %v3824_v9  ;;  %vm3823_vm3 = vcmp.eq.f32.partialorder %v3822_v35, 8.507059e+37 }
0x1028   :  { %3831 = vrot.lane.b32.xlu2 %v3830_v62, %s7245_s19 }
0x102a   :  { %v6019_v0 = vpop.eup %6018 }
0x102b   :  { %v3814_v39 = vmul.f32 %v6019_v0, %v3797_v63  ;;  %v6021_v7 = vpop.eup %6020  ;;  %vm3819_vm15 = vweird.f32 %v6019_v0 }
0x102c   :  { %v3796_v40 = vadd.f32 1.0, %v6021_v7  ;;  %vm3820_vm2 = vmor %vm3818_vm1, %vm3819_vm15 }
0x102d   :  { %v3815_v3 = vsub.f32 1.0, %v3814_v39 }
0x102e   :  { %6022 = vrcp.f32 %v3796_v40  ;;  %v3809_v61 = vand.u32 2147483648, %v3796_v40  ;;  %vm3803_vm8 = vweird.f32 %v3796_v40  ;;  %v3807_v24 = vand.u32 2147483647, %v3796_v40 }
0x102f   :  { %v3816_v17 = vmul.f32 %v6019_v0, %v3815_v3 }
0x1030   :  { %v3810_v57 = vor.u32 1.1754944e-38, %v3809_v61  ;;  %vm3808_vm15 = vcmp.eq.f32.partialorder %v3807_v24, 8.507059e+37 }
0x1031   :  { %v3817_v27 = vadd.f32 %v6019_v0, %v3816_v17 }
0x1033   :  { %v3821_v5 = vsel %vm3820_vm2, %v6019_v0, %v3817_v27 }
0x1034   :  { %v6023_v2 = vpop.eup %6022  ;;  %v3826_v14 = vsel %vm3823_vm3, %v3825_v8, %v3821_v5 }
0x1035   :  { %v3799_v16 = vmul.f32 %v6023_v2, %v3796_v40  ;;  %vm3804_vm4 = vweird.f32 %v6023_v2  ;;  %v3838_v42 = vmul.f32 %v3834_v12, %v3826_v14 }
0x1036   :  { %vm3805_vm5 = vmor %vm3803_vm8, %vm3804_vm4 }
0x1037   :  { %v3800_v18 = vsub.f32 1.0, %v3799_v16 }
0x1039   :  { %v3801_v19 = vmul.f32 %v6023_v2, %v3800_v18 }
0x103b   :  { %v3802_v22 = vadd.f32 %v6023_v2, %v3801_v19 }
0x103d   :  { %v3806_v47 = vsel %vm3805_vm5, %v6023_v2, %v3802_v22 }
0x103e   :  { %v3811_v37 = vsel %vm3808_vm15, %v3810_v57, %v3806_v47 }
0x107a   :  { %v3844_v11 = vpop.permute.xlu2 %3843 }
0x107b   :  { %v3848_v15 = vmul.f32 %v3844_v11, %v3826_v14 }
0x107d   :  { %3853 = vrot.lane.b32.xlu0 %v3848_v15, %s7245_s19 }
0x1082   :  { %v3832_v13 = vpop.permute.xlu2 %3831 }
0x1083   :  { %v3837_v48 = vmul.f32 %v3832_v13, %v3811_v37 }
0x1090   :  { %v3842_v30 = vpop.permute.xlu0 %3841 }
0x1091   :  { %v3847_v21 = vmul.f32 %v3842_v30, %v3811_v37 }
0x1093   :  { %3851 = vrot.lane.b32.xlu1 %v3847_v21, %s7245_s19 }
0x10ef   :  { %v3854_v43 = vpop.permute.xlu0 %3853 }
0x10f0   :  { %v8453_v58 = vadd.f32 %v3854_v43, %v3838_v42 }
0x10f2   :  { %6024 = vtanh.f32 %v8453_v58  ;;  %v3948_v12 = vrot.slane %v8453_v58, 7 }
0x10f8   :  { %v6025_v46 = vpop.eup %6024 }
0x10f9   :  { %3865 = vrot.lane.b32.xlu2 %v6025_v46, %s7246_s12 }
0x1105   :  { %v3852_v31 = vpop.permute.xlu1 %3851 }
0x1106   :  { %v8457_v51 = vadd.f32 %v3852_v31, %v3837_v48 }
0x1108   :  { %6026 = vtanh.f32 %v8457_v51  ;;  %v3947_v43 = vrot.slane %v8457_v51, 7 }
0x110e   :  { %v6027_v20 = vpop.eup %6026 }
0x110f   :  { %3863 = vrot.lane.b32.xlu0 %v6027_v20, %s7246_s12 }
0x1153   :  { %v3866_v32 = vpop.permute.xlu2 %3865 }
0x1154   :  { %v8461_v54 = vmul.f32 %v3866_v32, %v3826_v14 }
0x1156   :  { %v3873_v59 = vrot.slane %v8461_v54, 7 }
0x1181   :  { %v3864_v52 = vpop.permute.xlu0 %3863 }
0x1182   :  { %v8464_v23 = vmul.f32 %v3864_v52, %v3811_v37 }
0x1184   :  { %v3874_v56 = vsel %vm1200_vm6, %v3873_v59, %v8464_v23 }
0x1185   :  { %3875 = vrot.lane.b32.xlu1 %v3874_v56, %s7245_s19 }
0x11f7   :  { %v3876_v29 = vpop.permute.xlu1 %3875 }
0x11f8   :  { %5690 = vmatmul.msk.f32.vlgmr.msrb.gmra.mxu0 %vm803_vm0, %v3876_v29 }
0x11f9   :  { %4469 = vmatpush.msrb.mxu0 %v8390_v26 }
0x11fb   :  { %4470 = vmatpush.msrb.mxu0 %v8393_v36 }
0x11fd   :  { %4471 = vmatpush.msrb.mxu0 %v8399_v41 }
0x11ff   :  { %4472 = vmatpush.msrb.mxu0 %v8404_v45 }
0x1275   :  { %v3896_v10 = vpop.f32.mrf.mxu0 }
0x1276   :  { %v3900_v33 = vrot.slane %v3896_v10, 7  ;;  %v3904_v60 = vadd.f32 %v3896_v10, %v8443_v55 }
0x1278   :  { %v3903_v34 = vadd.f32 %v3900_v33, %v8441_v53  ;;  %6028 = vtanh.f32 %v3904_v60  ;;  %v5692_v6 = vmul.f32 -1.442695, %v3904_v60 }
0x127a   :  { %6030 = vtanh.f32 %v3903_v34  ;;  %v5691_v1 = vmul.f32 -1.442695, %v3903_v34 }
0x127c   :  { %6032 = vpow2.f32 %v5691_v1 }
0x127e   :  { %v6029_v4 = vpop.eup %6028 }
0x127f   :  { %3957 = vrot.lane.b32.xlu0 %v6029_v4, %s7246_s12 }
0x1280   :  { %v6031_v62 = vpop.eup %6030 }
0x1281   :  { %3955 = vrot.lane.b32.xlu2 %v6031_v62, %s7246_s12 }
0x1282   :  { %v6033_v44 = vpop.eup %6032 }
0x1283   :  { %v3911_v63 = vadd.f32 1.0, %v6033_v44 }
0x1285   :  { %6034 = vrcp.f32 %v3911_v63  ;;  %v3924_v9 = vand.u32 2147483648, %v3911_v63  ;;  %vm3918_vm1 = vweird.f32 %v3911_v63  ;;  %v3922_v35 = vand.u32 2147483647, %v3911_v63 }
0x1286   :  { %6036 = vpow2.f32 %v5692_v6 }
0x1287   :  { %v3925_v8 = vor.u32 1.1754944e-38, %v3924_v9  ;;  %vm3923_vm3 = vcmp.eq.f32.partialorder %v3922_v35, 8.507059e+37 }
0x128b   :  { %v6035_v0 = vpop.eup %6034 }
0x128c   :  { %v3914_v39 = vmul.f32 %v6035_v0, %v3911_v63  ;;  %v6037_v7 = vpop.eup %6036  ;;  %vm3919_vm5 = vweird.f32 %v6035_v0 }
0x128d   :  { %v3912_v40 = vadd.f32 1.0, %v6037_v7  ;;  %vm3920_vm2 = vmor %vm3918_vm1, %vm3919_vm5 }
0x128e   :  { %v3915_v3 = vsub.f32 1.0, %v3914_v39 }
0x128f   :  { %6038 = vrcp.f32 %v3912_v40  ;;  %v3939_v61 = vand.u32 2147483648, %v3912_v40  ;;  %vm3933_vm8 = vweird.f32 %v3912_v40  ;;  %v3937_v24 = vand.u32 2147483647, %v3912_v40 }
0x1290   :  { %v3916_v17 = vmul.f32 %v6035_v0, %v3915_v3 }
0x1291   :  { %v3940_v57 = vor.u32 1.1754944e-38, %v3939_v61  ;;  %vm3938_vm5 = vcmp.eq.f32.partialorder %v3937_v24, 8.507059e+37 }
0x1292   :  { %v3917_v27 = vadd.f32 %v6035_v0, %v3916_v17 }
0x1294   :  { %v3921_v5 = vsel %vm3920_vm2, %v6035_v0, %v3917_v27 }
0x1295   :  { %v6039_v2 = vpop.eup %6038  ;;  %v3926_v14 = vsel %vm3923_vm3, %v3925_v8, %v3921_v5 }
0x1296   :  { %v3929_v16 = vmul.f32 %v6039_v2, %v3912_v40  ;;  %vm3934_vm4 = vweird.f32 %v6039_v2  ;;  %v3951_v48 = vmul.f32 %v3947_v43, %v3926_v14 }
0x1297   :  { %vm3935_vm15 = vmor %vm3933_vm8, %vm3934_vm4 }
0x1298   :  { %v3930_v18 = vsub.f32 1.0, %v3929_v16 }
0x129a   :  { %v3931_v19 = vmul.f32 %v6039_v2, %v3930_v18 }
0x129c   :  { %v3932_v22 = vadd.f32 %v6039_v2, %v3931_v19 }
0x129e   :  { %v3936_v47 = vsel %vm3935_vm15, %v6039_v2, %v3932_v22 }
0x129f   :  { %v3941_v30 = vsel %vm3938_vm5, %v3940_v57, %v3936_v47 }
0x12a0   :  { %v3952_v42 = vmul.f32 %v3948_v12, %v3941_v30 }
0x12db   :  { %v3956_v11 = vpop.permute.xlu2 %3955 }
0x12dc   :  { %v3961_v15 = vmul.f32 %v3956_v11, %v3926_v14 }
0x12de   :  { %3965 = vrot.lane.b32.xlu1 %v3961_v15, %s7245_s19 }
0x12f1   :  { %v3958_v37 = vpop.permute.xlu0 %3957 }
0x12f2   :  { %v3962_v21 = vmul.f32 %v3958_v37, %v3941_v30 }
0x12f4   :  { %3967 = vrot.lane.b32.xlu2 %v3962_v21, %s7245_s19 }
0x134e   :  { %v3968_v46 = vpop.permute.xlu2 %3967 }
0x134f   :  { %v8482_v13 = vadd.f32 %v3968_v46, %v3952_v42 }
0x1350   :  { %v3966_v31 = vpop.permute.xlu1 %3965 }
0x1351   :  { %6040 = vtanh.f32 %v8482_v13  ;;  %v8485_v20 = vadd.f32 %v3966_v31, %v3951_v48 }
0x1353   :  { %6042 = vtanh.f32 %v8485_v20  ;;  %v4062_v46 = vrot.slane %v8485_v20, 7 }
0x1357   :  { %v6041_v32 = vpop.eup %6040 }
0x1358   :  { %3979 = vrot.lane.b32.xlu1 %v6041_v32, %s7246_s12 }
0x1359   :  { %v6043_v52 = vpop.eup %6042 }
0x135a   :  { %3977 = vrot.lane.b32.xlu0 %v6043_v52, %s7246_s12 }
0x13ca   :  { %v3980_v58 = vpop.permute.xlu1 %3979 }
0x13cb   :  { %v8492_v56 = vmul.f32 %v3980_v58, %v3941_v30  ;;  %v4063_v58 = vrot.slane %v8482_v13, 7  ;;  %v2691_v13 = vld [vmem:[%s9293_s2 + $0x8] sm:$0xff] }
0x13cc   :  { %v3978_v59 = vpop.permute.xlu0 %3977 }
0x13cd   :  { %v8490_v51 = vmul.f32 %v3978_v59, %v3926_v14 }
0x13cf   :  { %v3987_v29 = vrot.slane %v8490_v51, 1 }
0x13d1   :  { %v3988_v10 = vsel %vm1200_vm6, %v8492_v56, %v3987_v29 }
0x13d2   :  { %3989 = vrot.lane.b32.xlu2 %v3988_v10, %s7245_s19 }
0x142c   :  { %v3990_v33 = vpop.permute.xlu2 %3989 }
0x142d   :  { %5693 = vmatmul.msk.f32.vlgmr.msra.gmra.mxu0 %vm803_vm0, %v3990_v33  ;;  %v2955_v33 = vld [vmem:[%s9292_s30 + $0x18] sm:$0xff] }
0x142e   :  { %2999 = vmatpush.msra.mxu1 %v2955_v33 }
0x14aa   :  { %v4010_v60 = vpop.f32.mrf.mxu0 }
0x14ab   :  { %v4014_v34 = vrot.slane %v4010_v60, 6  ;;  %v4015_v4 = vrot.slane %v4010_v60, 7  ;;  %v2954_v60 = vld [vmem:[%s9292_s30 + $0x10] sm:$0xff] }
0x14ac   :  { %3000 = vmatpush.msra.mxu1 %v2954_v60 }
0x14ad   :  { %v4018_v62 = vadd.f32 %v4014_v34, %v8441_v53  ;;  %v4019_v1 = vadd.f32 %v4015_v4, %v8443_v55  ;;  %v2953_v34 = vld [vmem:[%s9292_s30 + $0x8] sm:$0xff]  ;;  %v2952_v4 = vld [vmem:[%s9292_s30] sm:$0xff] }
0x14ae   :  { %3001 = vmatpush.msra.mxu1 %v2953_v34 }
0x14af   :  { %6044 = vtanh.f32 %v4018_v62  ;;  %v5694_v6 = vmul.f32 -1.442695, %v4018_v62  ;;  %v5695_v0 = vmul.f32 -1.442695, %v4019_v1  ;;  %v2690_v62 = vld [vmem:[%s9293_s2] sm:$0xff] }
0x14b0   :  { %6046 = vtanh.f32 %v4019_v1  ;;  %3002 = vmatpush.msra.mxu1 %v2952_v4  ;;  %v2692_v1 = vld [vmem:[%s9293_s2 + $0x10] sm:$0xff] }
0x14b1   :  { %6048 = vpow2.f32 %v5694_v6  ;;  %5660 = vmatmul.msk.f32.vlgmr.msra.gmra.mxu1 %vm803_vm0, %v2690_v62 }
0x14b2   :  { %6050 = vpow2.f32 %v5695_v0  ;;  %4121 = vmatpush.msrb.mxu1 %v8390_v26 }
0x14b4   :  { %4122 = vmatpush.msrb.mxu1 %v8393_v36 }
0x14b5   :  { %v6045_v44 = vpop.eup %6044 }
0x14b6   :  { %v6047_v63 = vpop.eup %6046  ;;  %4070 = vrot.lane.b32.xlu0 %v6045_v44, %s7246_s12  ;;  %4123 = vmatpush.msrb.mxu1 %v8399_v41 }
0x14b7   :  { %4072 = vrot.lane.b32.xlu1 %v6047_v63, %s7246_s12  ;;  %v6049_v39 = vpop.eup %6048 }
0x14b8   :  { %v6051_v3 = vpop.eup %6050  ;;  %v4026_v7 = vadd.f32 1.0, %v6049_v39  ;;  %4124 = vmatpush.msrb.mxu1 %v8404_v45 }
0x14b9   :  { %v4027_v40 = vadd.f32 1.0, %v6051_v3  ;;  %5661 = vmatmul.msk.f32.gmra.mxu1 %vm803_vm0, %v2691_v13 }
0x14ba   :  { %6052 = vrcp.f32 %v4026_v7  ;;  %v4039_v16 = vand.u32 2147483648, %v4026_v7  ;;  %vm4033_vm3 = vweird.f32 %v4026_v7  ;;  %v4037_v19 = vand.u32 2147483647, %v4026_v7  ;;  %4585 = vmatpush.msra.mxu1 %v8390_v26 }
0x14bb   :  { %6054 = vrcp.f32 %v4027_v40  ;;  %v4054_v18 = vand.u32 2147483648, %v4027_v40  ;;  %vm4048_vm4 = vweird.f32 %v4027_v40  ;;  %v4052_v22 = vand.u32 2147483647, %v4027_v40 }
0x14bc   :  { %v4040_v47 = vor.u32 1.1754944e-38, %v4039_v16  ;;  %vm4038_vm5 = vcmp.eq.f32.partialorder %v4037_v19, 8.507059e+37  ;;  %4586 = vmatpush.msra.mxu1 %v8393_v36 }
0x14bd   :  { %v4055_v57 = vor.u32 1.1754944e-38, %v4054_v18  ;;  %vm4053_vm10 = vcmp.eq.f32.partialorder %v4052_v22, 8.507059e+37 }
0x14be   :  { %4587 = vmatpush.msra.mxu1 %v8399_v41 }
0x14c0   :  { %v6053_v17 = vpop.eup %6052  ;;  %4588 = vmatpush.msra.mxu1 %v8404_v45 }
0x14c1   :  { %v6055_v27 = vpop.eup %6054  ;;  %v4029_v9 = vmul.f32 %v6053_v17, %v4026_v7  ;;  %vm4034_vm1 = vweird.f32 %v6053_v17  ;;  %5662 = vmatmul.msk.f32.gmra.mxu1 %vm803_vm0, %v2692_v1 }
0x14c2   :  { %v4044_v35 = vmul.f32 %v6055_v27, %v4027_v40  ;;  %vm4049_vm2 = vweird.f32 %v6055_v27  ;;  %vm4035_vm8 = vmor %vm4033_vm3, %vm4034_vm1 }
0x14c3   :  { %v4030_v5 = vsub.f32 1.0, %v4029_v9  ;;  %vm4050_vm15 = vmor %vm4048_vm4, %vm4049_vm2  ;;  %v2693_v9 = vld [vmem:[%s9293_s2 + $0x18] sm:$0xff] }
0x14c4   :  { %v4045_v8 = vsub.f32 1.0, %v4044_v35 }
0x14c5   :  { %v4031_v2 = vmul.f32 %v6053_v17, %v4030_v5 }
0x14c6   :  { %v4046_v11 = vmul.f32 %v6055_v27, %v4045_v8 }
0x14c7   :  { %v4032_v14 = vadd.f32 %v6053_v17, %v4031_v2 }
0x14c8   :  { %v4047_v15 = vadd.f32 %v6055_v27, %v4046_v11 }
0x14c9   :  { %v4036_v61 = vsel %vm4035_vm8, %v6053_v17, %v4032_v14  ;;  %5663 = vmatmul.msk.f32.gmra.mxu1 %vm803_vm0, %v2693_v9 }
0x14ca   :  { %v4051_v24 = vsel %vm4050_vm15, %v6055_v27, %v4047_v15  ;;  %v4041_v30 = vsel %vm4038_vm5, %v4040_v47, %v4036_v61 }
0x14cb   :  { %v4056_v12 = vsel %vm4053_vm10, %v4055_v57, %v4051_v24  ;;  %v4066_v48 = vmul.f32 %v4062_v46, %v4041_v30  ;;  %vm9175_vm10 = vcmask 1040384  }
0x14cc   :  { %v4067_v59 = vmul.f32 %v4063_v58, %v4056_v12  ;;  %v4681_v0 = vsel %vm9175_vm10, %v8464_v23, %v8490_v51  ;;  %v4682_v3 = vsel %vm9175_vm10, %v8461_v54, %v8492_v56  ;;  %v2694_v23 = vld [vmem:[%s9293_s2 + $0x20] sm:$0xff]  ;;  %v8551_v54 = vld [vmem:[#allocation34] ss:$0 sm:$0xff] }
0x14d1   :  { %5664 = vmatmul.msk.f32.gmra.mxu1 %vm803_vm0, %v2694_v23 }
0x1528   :  { %v4071_v37 = vpop.permute.xlu0 %4070 }
0x1529   :  { %v4073_v21 = vpop.permute.xlu1 %4072  ;;  %v4076_v42 = vmul.f32 %v4071_v37, %v4041_v30 }
0x152a   :  { %v4077_v43 = vmul.f32 %v4073_v21, %v4056_v12 }
0x152b   :  { %4080 = vrot.lane.b32.xlu2 %v4076_v42, %s7245_s19 }
0x152c   :  { %4082 = vrot.lane.b32.xlu0 %v4077_v43, %s7245_s19 }
0x152e   :  { %v3004_v51 = vpop.f32.mrf.mxu1 }
0x1536   :  { %v3007_v56 = vpop.f32.mrf.mxu1 }
0x1537   :  { %v8554_v5 = vadd.f32 %v8551_v54, %v3007_v56 }
0x153e   :  { %v3010_v2 = vpop.f32.mrf.mxu1 }
0x153f   :  { %v8558_v11 = vadd.f32 %v8551_v54, %v3010_v2 }
0x1546   :  { %v3013_v14 = vpop.f32.mrf.mxu1 }
0x1547   :  { %v8571_v33 = vadd.f32 %v8551_v54, %v3013_v14 }
0x1549   :  { %vm3022_vm15 = vcmp.gt.f32.partialorder %v8571_v33, 0.0 }
0x154e   :  { %v8560_v15 = vpop.f32.mrf.mxu1 }
0x1585   :  { %v4081_v31 = vpop.permute.xlu2 %4080 }
0x1586   :  { %v8506_v32 = vadd.f32 %v4081_v31, %v4066_v48  ;;  %v8567_v48 = vadd.f32 %v8551_v54, %v3004_v51 }
0x1588   :  { %6056 = vtanh.f32 %v8506_v32  ;;  %vm3019_vm8 = vcmp.gt.f32.partialorder %v8567_v48, 0.0 }
0x158e   :  { %v6057_v52 = vpop.eup %6056 }
0x158f   :  { %4092 = vrot.lane.b32.xlu1 %v6057_v52, %s7246_s12 }
0x159e   :  { %v4083_v29 = vpop.permute.xlu0 %4082 }
0x159f   :  { %v8511_v10 = vadd.f32 %v4083_v29, %v4067_v59  ;;  %v3024_v59 = vmul.f32 1.442695, %v8567_v48 }
0x15a1   :  { %6058 = vtanh.f32 %v8511_v10 }
0x15a7   :  { %v6059_v20 = vpop.eup %6058 }
0x15a8   :  { %4094 = vrot.lane.b32.xlu2 %v6059_v20, %s7246_s12 }
0x1601   :  { %v4093_v44 = vpop.permute.xlu1 %4092 }
0x1602   :  { %v4095_v63 = vpop.permute.xlu2 %4094  ;;  %v4098_v6 = vmul.f32 %v4093_v44, %v4041_v30  ;;  %v3030_v44 = vmul.f32 1.442695, %v8571_v33 }
0x1603   :  { %v4099_v39 = vmul.f32 %v4095_v63, %v4056_v12 }
0x1604   :  { %v4102_v7 = vrot.slane %v4098_v6, 2  ;;  %v8540_v40 = vsel %vm9174_vm7, %v4681_v0, %v4098_v6 }
0x1605   :  { %v4103_v17 = vrot.slane %v4099_v39, 1  ;;  %v8543_v27 = vsel %vm9174_vm7, %v4682_v3, %v4099_v39 }
0x1607   :  { %v4104_v35 = vsel %vm1200_vm6, %v4103_v17, %v4102_v7 }
0x1608   :  { %4105 = vrot.lane.b32.xlu0 %v4104_v35, %s7245_s19 }
0x167a   :  { %v4106_v8 = vpop.permute.xlu0 %4105 }
0x167b   :  { %5696 = vmatmul.msk.f32.vlgmr.msrb.gmra.mxu1 %vm803_vm0, %v4106_v8 }
0x16f8   :  { %v4126_v16 = vpop.f32.mrf.mxu1 }
0x16f9   :  { %v4130_v18 = vrot.slane %v4126_v16, 5  ;;  %v4131_v19 = vrot.slane %v4126_v16, 6 }
0x16fb   :  { %v4134_v22 = vadd.f32 %v4130_v18, %v8441_v53  ;;  %v4135_v61 = vadd.f32 %v4131_v19, %v8443_v55  ;;  %v2960_v19 = vld [vmem:[%s9294_s21 + $0x18] sm:$0xff] }
0x16fc   :  { %3084 = vmatpush.msrb.mxu2 %v2960_v19 }
0x16fd   :  { %6060 = vtanh.f32 %v4134_v22  ;;  %v5698_v57 = vmul.f32 -1.442695, %v4135_v61  ;;  %v5697_v12 = vmul.f32 -1.442695, %v4134_v22  ;;  %v2959_v22 = vld [vmem:[%s9294_s21 + $0x10] sm:$0xff] }
0x16fe   :  { %6062 = vtanh.f32 %v4135_v61  ;;  %v2958_v61 = vld [vmem:[%s9294_s21 + $0x8] sm:$0xff]  ;;  %3085 = vmatpush.msrb.mxu2 %v2959_v22 }
0x16ff   :  { %6064 = vpow2.f32 %v5698_v57 }
0x1700   :  { %3086 = vmatpush.msrb.mxu2 %v2958_v61 }
0x1703   :  { %v6061_v24 = vpop.eup %6060 }
0x1704   :  { %v6063_v47 = vpop.eup %6062  ;;  %4186 = vrot.lane.b32.xlu1 %v6061_v24, %s7246_s12  ;;  %v2957_v24 = vld [vmem:[%s9294_s21] sm:$0xff] }
0x1705   :  { %4188 = vrot.lane.b32.xlu2 %v6063_v47, %s7246_s12  ;;  %v6065_v37 = vpop.eup %6064  ;;  %3087 = vmatpush.msrb.mxu2 %v2957_v24  ;;  %v4179_v47 = vrot.slane %v8511_v10, 7 }
0x1706   :  { %v4143_v30 = vadd.f32 1.0, %v6065_v37 }
0x1707   :  { %4237 = vmatpush.msra.mxu2 %v8390_v26 }
0x1708   :  { %6066 = vrcp.f32 %v4143_v30  ;;  %v4170_v29 = vand.u32 2147483648, %v4143_v30  ;;  %vm4164_vm2 = vweird.f32 %v4143_v30  ;;  %v4168_v20 = vand.u32 2147483647, %v4143_v30 }
0x1709   :  { %6068 = vpow2.f32 %v5697_v12  ;;  %4238 = vmatpush.msra.mxu2 %v8393_v36 }
0x170a   :  { %v4171_v34 = vor.u32 1.1754944e-38, %v4170_v29  ;;  %vm4169_vm4 = vcmp.eq.f32.partialorder %v4168_v20, 8.507059e+37  ;;  %v8615_v20 = vadd.f32 %v8551_v54, %v8560_v15 }
0x170b   :  { %4239 = vmatpush.msra.mxu2 %v8399_v41 }
0x170d   :  { %4240 = vmatpush.msra.mxu2 %v8404_v45 }
0x170e   :  { %v6067_v21 = vpop.eup %6066 }
0x170f   :  { %v4160_v42 = vmul.f32 %v6067_v21, %v4143_v30  ;;  %v6069_v46 = vpop.eup %6068  ;;  %vm4165_vm1 = vweird.f32 %v6067_v21  ;;  %v3028_v30 = vmul.f32 1.442695, %v8558_v11 }
0x1710   :  { %v4142_v52 = vadd.f32 1.0, %v6069_v46  ;;  %vm4166_vm3 = vmor %vm4164_vm2, %vm4165_vm1 }
0x1711   :  { %v4161_v43 = vsub.f32 1.0, %v4160_v42 }
0x1712   :  { %6070 = vrcp.f32 %v4142_v52  ;;  %v4155_v23 = vand.u32 2147483648, %v4142_v52  ;;  %vm4149_vm1 = vweird.f32 %v4142_v52  ;;  %v4153_v56 = vand.u32 2147483647, %v4142_v52 }
0x1713   :  { %v4162_v31 = vmul.f32 %v6067_v21, %v4161_v43  ;;  %6072 = vpow2.f32 %v3024_v59  ;;  %v3026_v59 = vmul.f32 1.442695, %v8554_v5 }
0x1714   :  { %6074 = vpow2.f32 %v3030_v44  ;;  %v4156_v2 = vor.u32 1.1754944e-38, %v4155_v23  ;;  %v2965_v44 = vld [vmem:[%s9295_s10 + $0x18] sm:$0xff] }
0x1715   :  { %v4163_v58 = vadd.f32 %v6067_v21, %v4162_v31  ;;  %v4178_v31 = vrot.slane %v8506_v32, 7  ;;  %3134 = vmatpush.msrb.mxu3 %v2965_v44 }
0x1717   :  { %v4167_v60 = vsel %vm4166_vm3, %v6067_v21, %v4163_v58  ;;  %vm4154_vm3 = vcmp.eq.f32.partialorder %v4153_v56, 8.507059e+37 }
0x1718   :  { %v8573_v62 = vsel %vm4169_vm4, %v4171_v34, %v4167_v60  ;;  %v6071_v13 = vpop.eup %6070  ;;  %vm3021_vm4 = vcmp.gt.f32.partialorder %v8558_v11, 0.0  ;;  %v3032_v60 = vmul.f32 1.442695, %v8615_v20 }
0x1719   :  { %v6073_v63 = vpop.eup %6072  ;;  %v4145_v6 = vmul.f32 %v6071_v13, %v4142_v52  ;;  %vm4150_vm5 = vweird.f32 %v6071_v13  ;;  %v4183_v57 = vmul.f32 %v4179_v47, %v8573_v62 }
0x171a   :  { %v5665_v0 = vadd.f32 -1.0, %v6073_v63  ;;  %v6075_v7 = vpop.eup %6074  ;;  %vm4151_vm2 = vmor %vm4149_vm1, %vm4150_vm5  ;;  %v2964_v63 = vld [vmem:[%s9295_s10 + $0x10] sm:$0xff]  ;;  %vm9173_vm5 = vcmask 1042432  }
0x171b   :  { %v4146_v39 = vsub.f32 1.0, %v4145_v6  ;;  %v5668_v9 = vadd.f32 -1.0, %v6075_v7  ;;  %3135 = vmatpush.msrb.mxu3 %v2964_v63  ;;  %v2963_v6 = vld [vmem:[%s9295_s10 + $0x8] sm:$0xff] }
0x171c   :  { %v3039_v3 = vsel %vm3019_vm8, %v8567_v48, %v5665_v0  ;;  %vm3020_vm8 = vcmp.gt.f32.partialorder %v8554_v5, 0.0  ;;  %v2962_v0 = vld [vmem:[%s9295_s10] sm:$0xff] }
0x171d   :  { %v4147_v17 = vmul.f32 %v6071_v13, %v4146_v39  ;;  %v3042_v51 = vsel %vm3022_vm15, %v8571_v33, %v5668_v9  ;;  %vm3023_vm15 = vcmp.gt.f32.partialorder %v8615_v20, 0.0  ;;  %3136 = vmatpush.msrb.mxu3 %v2963_v6 }
0x171f   :  { %v4148_v35 = vadd.f32 %v6071_v13, %v4147_v17  ;;  %3137 = vmatpush.msrb.mxu3 %v2962_v0 }
0x1721   :  { %v4152_v8 = vsel %vm4151_vm2, %v6071_v13, %v4148_v35  ;;  %4353 = vmatpush.msra.mxu3 %v8390_v26 }
0x1722   :  { %v8584_v16 = vsel %vm4154_vm3, %v4156_v2, %v4152_v8 }
0x1723   :  { %v4182_v52 = vmul.f32 %v4178_v31, %v8584_v16  ;;  %4354 = vmatpush.msra.mxu3 %v8393_v36 }
0x1725   :  { %4355 = vmatpush.msra.mxu3 %v8399_v41 }
0x1727   :  { %4356 = vmatpush.msra.mxu3 %v8404_v45  ;;  %v5892_v45 = vld [vmem:[#allocation35] ss:$0 sm:$0xff] }
0x175f   :  { %v4189_v4 = vpop.permute.xlu2 %4188 }
0x1760   :  { %v4193_v1 = vmul.f32 %v4189_v4, %v8573_v62 }
0x1762   :  { %4198 = vrot.lane.b32.xlu1 %v4193_v1, %s7245_s19 }
0x176a   :  { %3052 = vrot.lane.b32.xlu1 %v3039_v3, %s7242_s22 }
0x1772   :  { %3058 = vrot.lane.b32.xlu1 %v3042_v51, %s7242_s22 }
0x1776   :  { %v4187_v14 = vpop.permute.xlu1 %4186 }
0x1777   :  { %v4192_v18 = vmul.f32 %v4187_v14, %v8584_v16 }
0x1779   :  { %4196 = vrot.lane.b32.xlu0 %v4192_v18, %s7245_s19 }
0x17d4   :  { %v4199_v37 = vpop.permute.xlu1 %4198 }
0x17d5   :  { %v8599_v21 = vadd.f32 %v4199_v37, %v4183_v57 }
0x17d7   :  { %6076 = vtanh.f32 %v8599_v21 }
0x17d8   :  { %6078 = vpow2.f32 %v3028_v30 }
0x17dc   :  { %v3053_v12 = vpop.permute.xlu1 %3052 }
0x17dd   :  { %v6077_v42 = vpop.eup %6076  ;;  %5670 = vmatmul.msk.f32.vlgmr.msrb.gmra.mxu2 %vm803_vm0, %v3053_v12 }
0x17de   :  { %v6079_v43 = vpop.eup %6078  ;;  %4210 = vrot.lane.b32.xlu0 %v6077_v42, %s7246_s12 }
0x17df   :  { %v5667_v46 = vadd.f32 -1.0, %v6079_v43 }
0x17e1   :  { %v3041_v10 = vsel %vm3021_vm4, %v8558_v11, %v5667_v46 }
0x17e6   :  { %3056 = vrot.lane.b32.xlu0 %v3041_v10, %s7242_s22 }
0x17eb   :  { %v4197_v58 = vpop.permute.xlu0 %4196 }
0x17ec   :  { %v8610_v29 = vadd.f32 %v4197_v58, %v4182_v52 }
0x17ee   :  { %6080 = vtanh.f32 %v8610_v29 }
0x17ef   :  { %6082 = vpow2.f32 %v3026_v59 }
0x17f0   :  { %6084 = vpow2.f32 %v3032_v60 }
0x17f4   :  { %v6081_v34 = vpop.eup %6080 }
0x17f5   :  { %v6083_v32 = vpop.eup %6082  ;;  %4208 = vrot.lane.b32.xlu2 %v6081_v34, %s7246_s12 }
0x17f6   :  { %v5666_v4 = vadd.f32 -1.0, %v6083_v32  ;;  %v6085_v1 = vpop.eup %6084 }
0x17f7   :  { %v5669_v54 = vadd.f32 -1.0, %v6085_v1 }
0x17f8   :  { %v3040_v13 = vsel %vm3020_vm8, %v8554_v5, %v5666_v4 }
0x17f9   :  { %v3043_v15 = vsel %vm3023_vm15, %v8615_v20, %v5669_v54 }
0x17fd   :  { %3054 = vrot.lane.b32.xlu2 %v3040_v13, %s7242_s22 }
0x1805   :  { %3060 = vrot.lane.b32.xlu2 %v3043_v15, %s7242_s22 }
0x184f   :  { %v4209_v39 = vpop.permute.xlu2 %4208 }
0x1850   :  { %v4211_v3 = vpop.permute.xlu0 %4210  ;;  %v4214_v7 = vmul.f32 %v4209_v39, %v8584_v16 }
0x1851   :  { %v4215_v17 = vmul.f32 %v4211_v3, %v8573_v62 }
0x1852   :  { %v4218_v9 = vrot.slane %v4214_v7, 3  ;;  %v8637_v35 = vsel %vm9173_vm5, %v8540_v40, %v4214_v7  ;;  %v3059_v40 = vpop.permute.xlu1 %3058 }
0x1853   :  { %v4219_v23 = vrot.slane %v4215_v17, 2  ;;  %v8641_v26 = vsel %vm9173_vm5, %v8543_v27, %v4215_v17 }
0x1855   :  { %v4220_v36 = vsel %vm1200_vm6, %v4219_v23, %v4218_v9 }
0x1856   :  { %4221 = vrot.lane.b32.xlu0 %v4220_v36, %s7245_s19 }
0x1857   :  { %v3055_v41 = vpop.permute.xlu2 %3054 }
0x1858   :  { %5671 = vmatmul.msk.f32.gmra.mxu2 %vm803_vm0, %v3055_v41  ;;  %v3057_v51 = vpop.permute.xlu0 %3056 }
0x185f   :  { %v3061_v27 = vpop.permute.xlu2 %3060 }
0x1860   :  { %v3089_v62 = vpop.f32.mrf.mxu2  ;;  %5672 = vmatmul.msk.f32.gmra.mxu2 %vm803_vm0, %v3057_v51 }
0x1861   :  { %v3090_v56 = vadd.f32 %v5892_v45, %v3089_v62 }
0x1863   :  { %5675 = vmatmul.msk.f32.vlgmr.msrb.gmra.mxu3 %vm803_vm0, %v3090_v56 }
0x1868   :  { %5673 = vmatmul.msk.f32.gmra.mxu2 %vm803_vm0, %v3059_v40  ;;  %v4295_v40 = vrot.slane %v8599_v21, 7 }
0x1870   :  { %5674 = vmatmul.msk.f32.gmra.mxu2 %vm803_vm0, %v3061_v27 }
0x18c8   :  { %v4222_v8 = vpop.permute.xlu0 %4221 }
0x18c9   :  { %5699 = vmatmul.msk.f32.vlgmr.msra.gmra.mxu2 %vm803_vm0, %v4222_v8 }
0x18db   :  { %v3092_v2 = vpop.f32.mrf.mxu2 }
0x18dc   :  { %v3093_v14 = vadd.f32 %v5892_v45, %v3092_v2 }
0x18de   :  { %5676 = vmatmul.msk.f32.gmra.mxu3 %vm803_vm0, %v3093_v14 }
0x18e3   :  { %v3095_v16 = vpop.f32.mrf.mxu2 }
0x18e4   :  { %v3096_v18 = vadd.f32 %v5892_v45, %v3095_v16  ;;  %v4294_v16 = vrot.slane %v8610_v29, 7 }
0x18e6   :  { %5677 = vmatmul.msk.f32.gmra.mxu3 %vm803_vm0, %v3096_v18 }
0x18eb   :  { %v3098_v19 = vpop.f32.mrf.mxu2 }
0x18ec   :  { %v3099_v22 = vadd.f32 %v5892_v45, %v3098_v19 }
0x18ee   :  { %5678 = vmatmul.msk.f32.gmra.mxu3 %vm803_vm0, %v3099_v22 }
0x18f3   :  { %v3101_v61 = vpop.f32.mrf.mxu2 }
0x18f4   :  { %v3102_v24 = vadd.f32 %v5892_v45, %v3101_v61 }
0x18f6   :  { %5679 = vmatmul.msk.f32.gmra.mxu3 %vm803_vm0, %v3102_v24 }
0x194c   :  { %v4242_v47 = vpop.f32.mrf.mxu2 }
0x194d   :  { %v4246_v57 = vrot.slane %v4242_v47, 4  ;;  %v4247_v37 = vrot.slane %v4242_v47, 5 }
0x194f   :  { %v4250_v30 = vadd.f32 %v4246_v57, %v8441_v53  ;;  %v4251_v12 = vadd.f32 %v4247_v37, %v8443_v55 }
0x1951   :  { %6086 = vtanh.f32 %v4250_v30  ;;  %v5701_v46 = vmul.f32 -1.442695, %v4251_v12  ;;  %v5700_v58 = vmul.f32 -1.442695, %v4250_v30 }
0x1952   :  { %6088 = vtanh.f32 %v4251_v12 }
0x1953   :  { %6090 = vpow2.f32 %v5701_v46  ;;  %v8680_v46 = vpop.f32.mrf.mxu3 }
0x1957   :  { %v6087_v42 = vpop.eup %6086 }
0x1958   :  { %v6089_v43 = vpop.eup %6088  ;;  %4302 = vrot.lane.b32.xlu1 %v6087_v42, %s7246_s12 }
0x1959   :  { %4304 = vrot.lane.b32.xlu2 %v6089_v43, %s7246_s12  ;;  %v6091_v10 = vpop.eup %6090 }
0x195a   :  { %v4259_v31 = vadd.f32 1.0, %v6091_v10 }
0x195c   :  { %6092 = vrcp.f32 %v4259_v31  ;;  %v4286_v1 = vand.u32 2147483648, %v4259_v31  ;;  %vm4280_vm2 = vweird.f32 %v4259_v31  ;;  %v4284_v54 = vand.u32 2147483647, %v4259_v31 }
0x195d   :  { %6094 = vpow2.f32 %v5700_v58 }
0x195e   :  { %v4287_v44 = vor.u32 1.1754944e-38, %v4286_v1  ;;  %vm4285_vm4 = vcmp.eq.f32.partialorder %v4284_v54, 8.507059e+37 }
0x1961   :  { %v8682_v10 = vpop.f32.mrf.mxu3 }
0x1962   :  { %v6093_v52 = vpop.eup %6092 }
0x1963   :  { %v4276_v59 = vmul.f32 %v6093_v52, %v4259_v31  ;;  %v6095_v34 = vpop.eup %6094  ;;  %vm4281_vm1 = vweird.f32 %v6093_v52 }
0x1964   :  { %v4258_v4 = vadd.f32 1.0, %v6095_v34  ;;  %vm4282_vm3 = vmor %vm4280_vm2, %vm4281_vm1 }
0x1965   :  { %v4277_v60 = vsub.f32 1.0, %v4276_v59 }
0x1966   :  { %6096 = vrcp.f32 %v4258_v4  ;;  %v4271_v23 = vand.u32 2147483648, %v4258_v4  ;;  %vm4265_vm15 = vweird.f32 %v4258_v4  ;;  %v4269_v36 = vand.u32 2147483647, %v4258_v4 }
0x1967   :  { %v4278_v32 = vmul.f32 %v6093_v52, %v4277_v60 }
0x1968   :  { %v4272_v45 = vor.u32 1.1754944e-38, %v4271_v23  ;;  %vm4270_vm1 = vcmp.eq.f32.partialorder %v4269_v36, 8.507059e+37 }
0x1969   :  { %v4279_v13 = vadd.f32 %v6093_v52, %v4278_v32  ;;  %v8684_v31 = vpop.f32.mrf.mxu3 }
0x196b   :  { %v4283_v15 = vsel %vm4282_vm3, %v6093_v52, %v4279_v13 }
0x196c   :  { %v4288_v6 = vsel %vm4285_vm4, %v4287_v44, %v4283_v15  ;;  %v6097_v0 = vpop.eup %6096 }
0x196d   :  { %v4261_v3 = vmul.f32 %v6097_v0, %v4258_v4  ;;  %vm4266_vm8 = vweird.f32 %v6097_v0  ;;  %v4299_v27 = vmul.f32 %v4295_v40, %v4288_v6 }
0x196e   :  { %vm4267_vm5 = vmor %vm4265_vm15, %vm4266_vm8 }
0x196f   :  { %v4262_v7 = vsub.f32 1.0, %v4261_v3 }
0x1971   :  { %v4263_v17 = vmul.f32 %v6097_v0, %v4262_v7  ;;  %v8686_v52 = vpop.f32.mrf.mxu3 }
0x1973   :  { %v4264_v9 = vadd.f32 %v6097_v0, %v4263_v17 }
0x1975   :  { %v4268_v41 = vsel %vm4267_vm5, %v6097_v0, %v4264_v9  ;;  %vm4688_vm5 = vcmask 1043456  }
0x1976   :  { %v4273_v62 = vsel %vm4270_vm1, %v4272_v45, %v4268_v41 }
0x1977   :  { %v4298_v18 = vmul.f32 %v4294_v16, %v4273_v62 }
0x19b3   :  { %v4305_v63 = vpop.permute.xlu2 %4304 }
0x19b4   :  { %v4309_v39 = vmul.f32 %v4305_v63, %v4288_v6 }
0x19b6   :  { %4314 = vrot.lane.b32.xlu1 %v4309_v39, %s7245_s19 }
0x19ca   :  { %v4303_v51 = vpop.permute.xlu1 %4302 }
0x19cb   :  { %v4308_v56 = vmul.f32 %v4303_v51, %v4273_v62 }
0x19cd   :  { %4312 = vrot.lane.b32.xlu0 %v4308_v56, %s7245_s19 }
0x1a28   :  { %v4315_v8 = vpop.permute.xlu1 %4314 }
0x1a29   :  { %v8662_v2 = vadd.f32 %v4315_v8, %v4299_v27 }
0x1a2b   :  { %6098 = vtanh.f32 %v8662_v2 }
0x1a31   :  { %v6099_v14 = vpop.eup %6098 }
0x1a32   :  { %4326 = vrot.lane.b32.xlu0 %v6099_v14, %s7246_s12 }
0x1a3f   :  { %v4313_v19 = vpop.permute.xlu0 %4312 }
0x1a40   :  { %v8667_v22 = vadd.f32 %v4313_v19, %v4298_v18 }
0x1a42   :  { %6100 = vtanh.f32 %v8667_v22 }
0x1a48   :  { %v6101_v61 = vpop.eup %6100 }
0x1a49   :  { %4324 = vrot.lane.b32.xlu2 %v6101_v61, %s7246_s12 }
0x1aa3   :  { %v4325_v21 = vpop.permute.xlu2 %4324 }
0x1aa4   :  { %v4327_v24 = vpop.permute.xlu0 %4326  ;;  %v4330_v47 = vmul.f32 %v4325_v21, %v4273_v62 }
0x1aa5   :  { %v4331_v57 = vmul.f32 %v4327_v24, %v4288_v6 }
0x1aa6   :  { %v4334_v37 = vrot.slane %v4330_v47, 4  ;;  %v8672_v30 = vsel %vm4688_vm5, %v8637_v35, %v4330_v47  ;;  %v8688_v35 = vpop.f32.mrf.mxu3  ;;  %v4410_v47 = vrot.slane %v8667_v22, 7 }
0x1aa7   :  { %v4335_v12 = vrot.slane %v4331_v57, 3  ;;  %v8675_v29 = vsel %vm4688_vm5, %v8641_v26, %v4331_v57  ;;  %v4411_v57 = vrot.slane %v8662_v2, 7 }
0x1aa9   :  { %v4336_v42 = vsel %vm1200_vm6, %v4335_v12, %v4334_v37 }
0x1aaa   :  { %4337 = vrot.lane.b32.xlu1 %v4336_v42, %s7245_s19 }
0x1b1c   :  { %v4338_v43 = vpop.permute.xlu1 %4337 }
0x1b1d   :  { %5702 = vmatmul.msk.f32.vlgmr.msra.gmra.mxu3 %vm803_vm0, %v4338_v43 }
0x1ba0   :  { %v4358_v58 = vpop.f32.mrf.mxu3 }
0x1ba1   :  { %v4362_v26 = vrot.slane %v4358_v58, 3  ;;  %v4363_v59 = vrot.slane %v4358_v58, 4 }
0x1ba3   :  { %v4366_v60 = vadd.f32 %v4362_v26, %v8441_v53  ;;  %v4367_v34 = vadd.f32 %v4363_v59, %v8443_v55 }
0x1ba5   :  { %6102 = vtanh.f32 %v4366_v60  ;;  %v5703_v13 = vmul.f32 -1.442695, %v4366_v60  ;;  %v5704_v44 = vmul.f32 -1.442695, %v4367_v34 }
0x1ba6   :  { %6104 = vtanh.f32 %v4367_v34 }
0x1ba7   :  { %6106 = vpow2.f32 %v5703_v13 }
0x1bab   :  { %v6103_v32 = vpop.eup %6102 }
0x1bac   :  { %v6105_v4 = vpop.eup %6104  ;;  %4418 = vrot.lane.b32.xlu2 %v6103_v32, %s7246_s12 }
0x1bad   :  { %4420 = vrot.lane.b32.xlu0 %v6105_v4, %s7246_s12  ;;  %v6107_v1 = vpop.eup %6106 }
0x1bae   :  { %v4374_v54 = vadd.f32 1.0, %v6107_v1 }
0x1bb0   :  { %6108 = vrcp.f32 %v4374_v54  ;;  %v4387_v17 = vand.u32 2147483648, %v4374_v54  ;;  %vm4381_vm3 = vweird.f32 %v4374_v54  ;;  %v4385_v9 = vand.u32 2147483647, %v4374_v54 }
0x1bb1   :  { %6110 = vpow2.f32 %v5704_v44 }
0x1bb2   :  { %v4388_v36 = vor.u32 1.1754944e-38, %v4387_v17  ;;  %vm4386_vm8 = vcmp.eq.f32.partialorder %v4385_v9, 8.507059e+37 }
0x1bb6   :  { %v6109_v15 = vpop.eup %6108 }
0x1bb7   :  { %v4377_v63 = vmul.f32 %v6109_v15, %v4374_v54  ;;  %v6111_v39 = vpop.eup %6110  ;;  %vm4382_vm2 = vweird.f32 %v6109_v15 }
0x1bb8   :  { %v4375_v3 = vadd.f32 1.0, %v6111_v39  ;;  %vm4383_vm4 = vmor %vm4381_vm3, %vm4382_vm2  ;;  %vm4691_vm3 = vcmask 1044480  }
0x1bb9   :  { %v4378_v6 = vsub.f32 1.0, %v4377_v63 }
0x1bba   :  { %6112 = vrcp.f32 %v4375_v3  ;;  %v4402_v14 = vand.u32 2147483648, %v4375_v3  ;;  %vm4396_vm1 = vweird.f32 %v4375_v3  ;;  %v4400_v16 = vand.u32 2147483647, %v4375_v3 }
0x1bbb   :  { %v4379_v0 = vmul.f32 %v6109_v15, %v4378_v6 }
0x1bbc   :  { %v4403_v19 = vor.u32 1.1754944e-38, %v4402_v14  ;;  %vm4401_vm2 = vcmp.eq.f32.partialorder %v4400_v16, 8.507059e+37 }
0x1bbd   :  { %v4380_v7 = vadd.f32 %v6109_v15, %v4379_v0 }
0x1bbf   :  { %v4384_v23 = vsel %vm4383_vm4, %v6109_v15, %v4380_v7 }
0x1bc0   :  { %v4389_v45 = vsel %vm4386_vm8, %v4388_v36, %v4384_v23  ;;  %v6113_v62 = vpop.eup %6112 }
0x1bc1   :  { %v4392_v56 = vmul.f32 %v6113_v62, %v4375_v3  ;;  %vm4397_vm15 = vweird.f32 %v6113_v62  ;;  %v4414_v37 = vmul.f32 %v4410_v47, %v4389_v45 }
0x1bc2   :  { %vm4398_vm5 = vmor %vm4396_vm1, %vm4397_vm15 }
0x1bc3   :  { %v4393_v40 = vsub.f32 1.0, %v4392_v56 }
0x1bc5   :  { %v4394_v27 = vmul.f32 %v6113_v62, %v4393_v40 }
0x1bc7   :  { %v4395_v8 = vadd.f32 %v6113_v62, %v4394_v27 }
0x1bc9   :  { %v4399_v18 = vsel %vm4398_vm5, %v6113_v62, %v4395_v8 }
0x1bca   :  { %v4404_v21 = vsel %vm4401_vm2, %v4403_v19, %v4399_v18 }
0x1bcb   :  { %v4415_v12 = vmul.f32 %v4411_v57, %v4404_v21 }
0x1c06   :  { %v4419_v41 = vpop.permute.xlu2 %4418 }
0x1c07   :  { %v4424_v51 = vmul.f32 %v4419_v41, %v4389_v45 }
0x1c09   :  { %4428 = vrot.lane.b32.xlu1 %v4424_v51, %s7245_s19 }
0x1c1f   :  { %v4421_v61 = vpop.permute.xlu0 %4420 }
0x1c20   :  { %v4425_v24 = vmul.f32 %v4421_v61, %v4404_v21 }
0x1c22   :  { %4430 = vrot.lane.b32.xlu2 %v4425_v24, %s7245_s19 }
0x1c7b   :  { %v4429_v42 = vpop.permute.xlu1 %4428 }
0x1c7c   :  { %v4431_v43 = vpop.permute.xlu2 %4430  ;;  %v8698_v58 = vadd.f32 %v4429_v42, %v4414_v37 }
0x1c7d   :  { %v8700_v26 = vadd.f32 %v4431_v43, %v4415_v12 }
0x1c7e   :  { %6114 = vtanh.f32 %v8698_v58 }
0x1c7f   :  { %6116 = vtanh.f32 %v8700_v26 }
0x1c84   :  { %v6115_v59 = vpop.eup %6114 }
0x1c85   :  { %v6117_v60 = vpop.eup %6116  ;;  %4440 = vrot.lane.b32.xlu0 %v6115_v59, %s7246_s12 }
0x1c86   :  { %4442 = vrot.lane.b32.xlu1 %v6117_v60, %s7246_s12 }
0x1cf7   :  { %v4441_v2 = vpop.permute.xlu0 %4440 }
0x1cf8   :  { %v4443_v22 = vpop.permute.xlu1 %4442  ;;  %v4446_v34 = vmul.f32 %v4441_v2, %v4389_v45 }
0x1cf9   :  { %v4447_v32 = vmul.f32 %v4443_v22, %v4404_v21 }
0x1cfa   :  { %v4450_v4 = vrot.slane %v4446_v34, 5  ;;  %v8707_v13 = vsel %vm4691_vm3, %v8672_v30, %v4446_v34  ;;  %v4526_v34 = vrot.slane %v8698_v58, 7 }
0x1cfb   :  { %v4451_v1 = vrot.slane %v4447_v32, 4  ;;  %v8710_v54 = vsel %vm4691_vm3, %v8675_v29, %v4447_v32 }
0x1cfd   :  { %v4452_v15 = vsel %vm1200_vm6, %v4451_v1, %v4450_v4 }
0x1cfe   :  { %4453 = vrot.lane.b32.xlu2 %v4452_v15, %s7245_s19 }
0x1d58   :  { %v4454_v44 = vpop.permute.xlu2 %4453 }
0x1d59   :  { %5705 = vmatmul.msk.f32.vlgmr.msrb.gmra.mxu0 %vm803_vm0, %v4454_v44  ;;  %v5889_v44 = vld [vmem:[#allocation29] ss:$0 sm:$0xff] }
0x1dd6   :  { %v4474_v63 = vpop.f32.mrf.mxu0 }
0x1dd7   :  { %v4478_v6 = vrot.slane %v4474_v63, 2  ;;  %v4479_v0 = vrot.slane %v4474_v63, 3  ;;  %v2887_v63 = vadd.f32 %v5889_v44, %v8439_v25 }
0x1dd9   :  { %v4482_v39 = vadd.f32 %v4478_v6, %v8441_v53  ;;  %v4483_v3 = vadd.f32 %v4479_v0, %v8443_v55  ;;  %v4527_v6 = vrot.slane %v8700_v26, 7  ;;  %v5659_v26 = vmul.f32 -1.442695, %v2887_v63 }
0x1ddb   :  { %6118 = vtanh.f32 %v4482_v39  ;;  %v5706_v29 = vmul.f32 -1.442695, %v4482_v39  ;;  %v5707_v17 = vmul.f32 -1.442695, %v4483_v3 }
0x1ddc   :  { %6120 = vtanh.f32 %v4483_v3 }
0x1ddd   :  { %6122 = vpow2.f32 %v5706_v29 }
0x1dde   :  { %6124 = vpow2.f32 %v5707_v17 }
0x1de1   :  { %v6119_v30 = vpop.eup %6118 }
0x1de2   :  { %v6121_v7 = vpop.eup %6120  ;;  %4534 = vrot.lane.b32.xlu0 %v6119_v30, %s7246_s12  ;;  %v8733_v30 = vld [vmem:[#allocation37] ss:$0 sm:$0xff] }
0x1de3   :  { %4536 = vrot.lane.b32.xlu1 %v6121_v7, %s7246_s12  ;;  %v6123_v9 = vpop.eup %6122  ;;  %v3140_v7 = vadd.f32 %v8733_v30, %v8680_v46  ;;  %v3146_v25 = vadd.f32 %v8733_v30, %v8684_v31 }
0x1de4   :  { %v6125_v23 = vpop.eup %6124  ;;  %v4490_v36 = vadd.f32 1.0, %v6123_v9 }
0x1de5   :  { %v4491_v41 = vadd.f32 1.0, %v6125_v23  ;;  %v5680_v29 = vmul.f32 -1.442695, %v3140_v7  ;;  %v5682_v17 = vmul.f32 -1.442695, %v3146_v25 }
0x1de6   :  { %6126 = vrcp.f32 %v4490_v36  ;;  %v4503_v19 = vand.u32 2147483648, %v4490_v36  ;;  %vm4497_vm15 = vweird.f32 %v4490_v36  ;;  %v4501_v21 = vand.u32 2147483647, %v4490_v36 }
0x1de7   :  { %6128 = vrcp.f32 %v4491_v41  ;;  %v4518_v61 = vand.u32 2147483648, %v4491_v41  ;;  %vm4512_vm1 = vweird.f32 %v4491_v41  ;;  %v4516_v24 = vand.u32 2147483647, %v4491_v41 }
0x1de8   :  { %v4504_v37 = vor.u32 1.1754944e-38, %v4503_v19  ;;  %vm4502_vm3 = vcmp.eq.f32.partialorder %v4501_v21, 8.507059e+37 }
0x1de9   :  { %v4519_v12 = vor.u32 1.1754944e-38, %v4518_v61  ;;  %vm4517_vm7 = vcmp.eq.f32.partialorder %v4516_v24, 8.507059e+37 }
0x1dec   :  { %v6127_v45 = vpop.eup %6126 }
0x1ded   :  { %v6129_v51 = vpop.eup %6128  ;;  %v4493_v62 = vmul.f32 %v6127_v45, %v4490_v36  ;;  %vm4498_vm4 = vweird.f32 %v6127_v45 }
0x1dee   :  { %v4508_v56 = vmul.f32 %v6129_v51, %v4491_v41  ;;  %vm4513_vm8 = vweird.f32 %v6129_v51  ;;  %vm4499_vm5 = vmor %vm4497_vm15, %vm4498_vm4 }
0x1def   :  { %v4494_v40 = vsub.f32 1.0, %v4493_v62  ;;  %vm4514_vm2 = vmor %vm4512_vm1, %vm4513_vm8 }
0x1df0   :  { %v4509_v27 = vsub.f32 1.0, %v4508_v56 }
0x1df1   :  { %v4495_v8 = vmul.f32 %v6127_v45, %v4494_v40 }
0x1df2   :  { %v4510_v14 = vmul.f32 %v6129_v51, %v4509_v27 }
0x1df3   :  { %v4496_v16 = vadd.f32 %v6127_v45, %v4495_v8 }
0x1df4   :  { %v4511_v18 = vadd.f32 %v6129_v51, %v4510_v14 }
0x1df5   :  { %v4500_v47 = vsel %vm4499_vm5, %v6127_v45, %v4496_v16 }
0x1df6   :  { %v4515_v57 = vsel %vm4514_vm2, %v6129_v51, %v4511_v18  ;;  %v4505_v43 = vsel %vm4502_vm3, %v4504_v37, %v4500_v47 }
0x1df7   :  { %v4520_v60 = vsel %vm4517_vm7, %v4519_v12, %v4515_v57  ;;  %v4530_v32 = vmul.f32 %v4526_v34, %v4505_v43  ;;  %vm4694_vm7 = vcmask 1045504  }
0x1df8   :  { %v4531_v0 = vmul.f32 %v4527_v6, %v4520_v60 }
0x1e54   :  { %v4535_v42 = vpop.permute.xlu0 %4534 }
0x1e55   :  { %v4537_v59 = vpop.permute.xlu1 %4536  ;;  %v4540_v2 = vmul.f32 %v4535_v42, %v4505_v43 }
0x1e56   :  { %v4541_v22 = vmul.f32 %v4537_v59, %v4520_v60 }
0x1e57   :  { %4544 = vrot.lane.b32.xlu2 %v4540_v2, %s7245_s19 }
0x1e58   :  { %4546 = vrot.lane.b32.xlu0 %v4541_v22, %s7245_s19 }
0x1eb1   :  { %v4545_v4 = vpop.permute.xlu2 %4544 }
0x1eb2   :  { %v8722_v1 = vadd.f32 %v4545_v4, %v4530_v32 }
0x1eb4   :  { %6130 = vtanh.f32 %v8722_v1 }
0x1eba   :  { %v6131_v15 = vpop.eup %6130 }
0x1ebb   :  { %4556 = vrot.lane.b32.xlu1 %v6131_v15, %s7246_s12 }
0x1ec3   :  { %2909 = vrot.lane.b32.xlu1 %v2887_v63, %s7253_s8 }
0x1eca   :  { %v4547_v39 = vpop.permute.xlu0 %4546 }
0x1ecb   :  { %v8729_v3 = vadd.f32 %v4547_v39, %v4531_v0 }
0x1ecd   :  { %6132 = vtanh.f32 %v8729_v3 }
0x1ece   :  { %6134 = vpow2.f32 %v5659_v26 }
0x1ecf   :  { %6136 = vpow2.f32 %v5680_v29 }
0x1ed0   :  { %6138 = vpow2.f32 %v5682_v17 }
0x1ed3   :  { %v6133_v58 = vpop.eup %6132 }
0x1ed4   :  { %4558 = vrot.lane.b32.xlu2 %v6133_v58, %s7246_s12  ;;  %v6135_v9 = vpop.eup %6134 }
0x1ed5   :  { %v6137_v23 = vpop.eup %6136  ;;  %v2892_v36 = vadd.f32 1.0, %v6135_v9 }
0x1ed6   :  { %v3169_v41 = vadd.f32 1.0, %v6137_v23  ;;  %v6139_v46 = vpop.eup %6138  ;;  %v3143_v23 = vadd.f32 %v8733_v30, %v8682_v10  ;;  %v3149_v10 = vadd.f32 %v8733_v30, %v8686_v52 }
0x1ed7   :  { %6140 = vrcp.f32 %v2892_v36  ;;  %v8741_v45 = vadd.f32 1.0, %v6139_v46  ;;  %vm2898_vm4 = vweird.f32 %v2892_v36  ;;  %v2904_v47 = vand.u32 2147483648, %v2892_v36 }
0x1ed8   :  { %6142 = vrcp.f32 %v3169_v41  ;;  %v3185_v2 = vand.u32 2147483648, %v3169_v41  ;;  %v2902_v22 = vand.u32 2147483647, %v2892_v36  ;;  %vm3179_vm1 = vweird.f32 %v3169_v41 }
0x1ed9   :  { %6144 = vrcp.f32 %v8741_v45  ;;  %v2905_v44 = vor.u32 1.1754944e-38, %v2904_v47  ;;  %v3215_v29 = vand.u32 2147483648, %v8741_v45  ;;  %v3213_v9 = vand.u32 2147483647, %v8741_v45 }
0x1eda   :  { %vm2903_vm3 = vcmp.eq.f32.partialorder %v2902_v22, 8.507059e+37 }
0x1edc   :  { %3254 = vrot.lane.b32.xlu2 %v3140_v7, %s7242_s22 }
0x1edd   :  { %v6141_v51 = vpop.eup %6140 }
0x1ede   :  { %v6143_v62 = vpop.eup %6142  ;;  %v2894_v31 = vmul.f32 %v6141_v51, %v2892_v36  ;;  %vm2899_vm8 = vweird.f32 %v6141_v51 }
0x1edf   :  { %v3175_v56 = vmul.f32 %v6143_v62, %v3169_v41  ;;  %v6145_v8 = vpop.eup %6144  ;;  %vm3180_vm15 = vweird.f32 %v6143_v62  ;;  %vm2900_vm5 = vmor %vm2898_vm4, %vm2899_vm8  ;;  %vm3209_vm8 = vweird.f32 %v8741_v45 }
0x1ee0   :  { %v2895_v40 = vsub.f32 1.0, %v2894_v31  ;;  %v3205_v18 = vmul.f32 %v6145_v8, %v8741_v45  ;;  %vm3181_vm2 = vmor %vm3179_vm1, %vm3180_vm15  ;;  %vm3210_vm4 = vweird.f32 %v6145_v8  ;;  %vm3214_vm15 = vcmp.eq.f32.partialorder %v3213_v9, 8.507059e+37 }
0x1ee1   :  { %v3176_v27 = vsub.f32 1.0, %v3175_v56  ;;  %v8782_v56 = vadd.f32 %v8733_v30, %v8688_v35 }
0x1ee2   :  { %v2896_v14 = vmul.f32 %v6141_v51, %v2895_v40  ;;  %v3206_v12 = vsub.f32 1.0, %v3205_v18  ;;  %v5681_v40 = vmul.f32 -1.442695, %v3143_v23 }
0x1ee3   :  { %v3177_v16 = vmul.f32 %v6143_v62, %v3176_v27 }
0x1ee4   :  { %3258 = vrot.lane.b32.xlu2 %v3146_v25, %s7242_s22  ;;  %v2897_v24 = vadd.f32 %v6141_v51, %v2896_v14  ;;  %v3207_v63 = vmul.f32 %v6145_v8, %v3206_v12  ;;  %6146 = vpow2.f32 %v5681_v40  ;;  %v7254_v14 = vmov 5.0  }
0x1ee5   :  { %v3178_v37 = vadd.f32 %v6143_v62, %v3177_v16 }
0x1ee6   :  { %v3208_v25 = vadd.f32 %v6145_v8, %v3207_v63 }
0x1ee7   :  { %v3182_v15 = vsel %vm3181_vm2, %v6143_v62, %v3178_v37 }
0x1eea   :  { %v6147_v27 = vpop.eup %6146 }
0x1f2d   :  { %v4557_v19 = vpop.permute.xlu1 %4556 }
0x1f2e   :  { %v4559_v61 = vpop.permute.xlu2 %4558  ;;  %v4562_v21 = vmul.f32 %v4557_v19, %v4505_v43  ;;  %v3183_v43 = vand.u32 2147483647, %v3169_v41 }
0x1f2f   :  { %v4563_v57 = vmul.f32 %v4559_v61, %v4520_v60  ;;  %v2901_v60 = vsel %vm2900_vm5, %v6141_v51, %v2897_v24 }
0x1f30   :  { %v4566_v42 = vrot.slane %v4562_v21, 6  ;;  %v8747_v59 = vsel %vm4694_vm7, %v8707_v13, %v4562_v21  ;;  %v3186_v13 = vor.u32 1.1754944e-38, %v3185_v2  ;;  %vm3184_vm10 = vcmp.eq.f32.partialorder %v3183_v43, 8.507059e+37 }
0x1f31   :  { %v4567_v34 = vrot.slane %v4563_v57, 5  ;;  %v8751_v32 = vsel %vm4694_vm7, %v8710_v54, %v4563_v57  ;;  %v2906_v6 = vsel %vm2903_vm3, %v2905_v44, %v2901_v60  ;;  %vm2914_vm7 = vcmask 39936  }
0x1f32   :  { %v3187_v54 = vsel %vm3184_vm10, %v3186_v13, %v3182_v15  ;;  %vm3211_vm10 = vmor %vm3209_vm8, %vm3210_vm4 }
0x1f33   :  { %v4568_v4 = vsel %vm1200_vm6, %v4567_v34, %v4566_v42  ;;  %v3212_v41 = vsel %vm3211_vm10, %v6145_v8, %v3208_v25  ;;  %v3170_v8 = vadd.f32 1.0, %v6147_v27 }
0x1f34   :  { %4569 = vrot.lane.b32.xlu0 %v4568_v4, %s7245_s19 }
0x1f35   :  { %v2910_v0 = vpop.permute.xlu1 %2909  ;;  %v3200_v22 = vand.u32 2147483648, %v3170_v8  ;;  %vm3194_vm5 = vweird.f32 %v3170_v8  ;;  %v3198_v43 = vand.u32 2147483647, %v3170_v8 }
0x1f36   :  { %v3255_v39 = vpop.permute.xlu2 %3254  ;;  %v2912_v58 = vmul.f32 %v2910_v0, %v2906_v6 }
0x1f37   :  { %v3269_v7 = vmul.f32 %v3255_v39, %v3187_v54  ;;  %v3201_v15 = vor.u32 1.1754944e-38, %v3200_v22  ;;  %vm3199_vm4 = vcmp.eq.f32.partialorder %v3198_v43, 8.507059e+37 }
0x1f38   :  { %v8757_v26 = vadd.f32 %v2912_v58, %v8194_v38 }
0x1f39   :  { %v8761_v17 = vadd.f32 %v3269_v7, %v8567_v48  ;;  %v3216_v48 = vor.u32 1.1754944e-38, %v3215_v29 }
0x1f3a   :  { %v2915_v36 = vsel %vm2914_vm7, %v8757_v26, 0.0 }
0x1f3b   :  { %v3279_v38 = vsel %vm803_vm0, %v8761_v17, 0.0  ;;  %2916 = vadd.xlane.f32.xlu1 %v2915_v36  ;;  %v3217_v46 = vsel %vm3214_vm15, %v3216_v48, %v3212_v41 }
0x1f3c   :  { %3280 = vadd.xlane.f32.xlu2 %v3279_v38  ;;  %3256 = vrot.lane.b32.xlu0 %v3143_v23, %s7242_s22 }
0x1f3e   :  { %v3259_v51 = vpop.permute.xlu2 %3258 }
0x1f3f   :  { %v3271_v45 = vmul.f32 %v3259_v51, %v3217_v46 }
0x1f41   :  { %v8773_v62 = vadd.f32 %v3271_v45, %v8558_v11  ;;  %v5683_v11 = vmul.f32 -1.442695, %v3149_v10 }
0x1f43   :  { %v3285_v31 = vsel %vm803_vm0, %v8773_v62, 0.0  ;;  %6148 = vpow2.f32 %v5683_v11 }
0x1f44   :  { %3286 = vadd.xlane.f32.xlu2 %v3285_v31  ;;  %3260 = vrot.lane.b32.xlu0 %v3149_v10, %s7242_s22  ;;  %6150 = vrcp.f32 %v3170_v8 }
0x1f45   :  { %6152 = vrcp.f32 %v7254_v14 }
0x1f49   :  { %v6149_v52 = vpop.eup %6148 }
0x1f4a   :  { %v3172_v16 = vadd.f32 1.0, %v6149_v52  ;;  %v6151_v18 = vpop.eup %6150 }
0x1f4b   :  { %v6153_v19 = vpop.eup %6152  ;;  %v3190_v61 = vmul.f32 %v6151_v18, %v3170_v8  ;;  %vm3195_vm1 = vweird.f32 %v6151_v18  ;;  %v5684_v8 = vmul.f32 -1.442695, %v8782_v56 }
0x1f4c   :  { %3262 = vrot.lane.b32.xlu0 %v8782_v56, %s7242_s22  ;;  %6154 = vrcp.f32 %v3172_v16  ;;  %v2919_v35 = vmul.f32 5.0, %v6153_v19  ;;  %vm2923_vm2 = vweird.f32 %v6153_v19  ;;  %vm3196_vm3 = vmor %vm3194_vm5, %vm3195_vm1  ;;  %v3230_v58 = vand.u32 2147483648, %v3172_v16 }
0x1f4d   :  { %v3191_v30 = vsub.f32 1.0, %v3190_v61  ;;  %vm3224_vm10 = vweird.f32 %v3172_v16  ;;  %v3228_v29 = vand.u32 2147483647, %v3172_v16  ;;  %6156 = vpow2.f32 %v5684_v8 }
0x1f4e   :  { %v2920_v24 = vsub.f32 1.0, %v2919_v35  ;;  %v3231_v41 = vor.u32 1.1754944e-38, %v3230_v58 }
0x1f4f   :  { %v3192_v47 = vmul.f32 %v6151_v18, %v3191_v30  ;;  %vm3229_vm1 = vcmp.eq.f32.partialorder %v3228_v29, 8.507059e+37 }
0x1f50   :  { %v2921_v37 = vmul.f32 %v6153_v19, %v2920_v24 }
0x1f51   :  { %v3193_v42 = vadd.f32 %v6151_v18, %v3192_v47 }
0x1f52   :  { %v6155_v21 = vpop.eup %6154  ;;  %v2922_v34 = vadd.f32 %v6153_v19, %v2921_v37 }
0x1f53   :  { %v3220_v57 = vmul.f32 %v6155_v21, %v3172_v16  ;;  %v3197_v60 = vsel %vm3196_vm3, %v6151_v18, %v3193_v42  ;;  %vm3225_vm8 = vweird.f32 %v6155_v21 }
0x1f54   :  { %v8787_v44 = vsel %vm2923_vm2, %v6153_v19, %v2922_v34  ;;  %v3202_v63 = vsel %vm3199_vm4, %v3201_v15, %v3197_v60  ;;  %vm3226_vm15 = vmor %vm3224_vm10, %vm3225_vm8  ;;  %v6157_v19 = vpop.eup %6156 }
0x1f55   :  { %v3221_v2 = vsub.f32 1.0, %v3220_v57  ;;  %v3173_v56 = vadd.f32 1.0, %v6157_v19 }
0x1f57   :  { %v3222_v4 = vmul.f32 %v6155_v21, %v3221_v2  ;;  %vm3239_vm2 = vweird.f32 %v3173_v56  ;;  %v3245_v60 = vand.u32 2147483648, %v3173_v56 }
0x1f59   :  { %v3223_v39 = vadd.f32 %v6155_v21, %v3222_v4  ;;  %v3243_v4 = vand.u32 2147483647, %v3173_v56 }
0x1f5b   :  { %v3227_v23 = vsel %vm3226_vm15, %v6155_v21, %v3223_v39  ;;  %v8824_v39 = vld [vmem:[#allocation40] ss:$0 sm:$0xff]  ;;  %vm3244_vm10 = vcmp.eq.f32.partialorder %v3243_v4, 8.507059e+37 }
0x1f5c   :  { %v3232_v48 = vsel %vm3229_vm1, %v3231_v41, %v3227_v23 }
0x1fa6   :  { %v4570_v12 = vpop.permute.xlu0 %4569 }
0x1fa7   :  { %5708 = vmatmul.msk.f32.vlgmr.msra.gmra.mxu1 %vm803_vm0, %v4570_v12 }
0x1fae   :  { %v3257_v13 = vpop.permute.xlu0 %3256  ;;  %v2917_v6 = vpop.xlane.xlu1 %2916 }
0x1faf   :  { %v3270_v0 = vmul.f32 %v3257_v13, %v3202_v63  ;;  %v2925_v54 = vmul.f32 %v8787_v44, %v2917_v6  ;;  %v3281_v38 = vpop.xlane.xlu2 %3280  ;;  %v8821_v63 = vld [vmem:[#allocation38] ss:$0 sm:$0xff] }
0x1fb1   :  { %v8791_v7 = vsub.f32 %v8757_v26, %v2925_v54  ;;  %v8794_v25 = vadd.f32 %v3270_v0, %v8554_v5  ;;  %v3294_v5 = vmul.f32 %v3281_v38, %v7826_v49  ;;  %v3246_v54 = vor.u32 1.1754944e-38, %v3245_v60 }
0x1fb3   :  { %v3282_v9 = vsel %vm803_vm0, %v8794_v25, 0.0  ;;  %v2927_v36 = vmul.f32 %v8791_v7, %v8791_v7  ;;  %v3299_v10 = vsub.f32 %v8761_v17, %v3294_v5 }
0x1fb4   :  { %3283 = vadd.xlane.f32.xlu0 %v3282_v9 }
0x1fb5   :  { %v2928_v26 = vsel %vm2914_vm7, %v2927_v36, 0.0  ;;  %v3304_v40 = vmul.f32 %v3299_v10, %v3299_v10 }
0x1fb6   :  { %v3261_v46 = vpop.permute.xlu0 %3260  ;;  %2929 = vadd.xlane.f32.xlu1 %v2928_v26 }
0x1fb7   :  { %v3272_v51 = vmul.f32 %v3261_v46, %v3232_v48  ;;  %v3309_v11 = vsel %vm803_vm0, %v3304_v40, 0.0 }
0x1fb9   :  { %v8803_v45 = vadd.f32 %v3272_v51, %v8571_v33 }
0x1fbb   :  { %v3288_v31 = vsel %vm803_vm0, %v8803_v45, 0.0 }
0x1fbc   :  { %3289 = vadd.xlane.f32.xlu0 %v3288_v31 }
0x1fbe   :  { %v3263_v27 = vpop.permute.xlu0 %3262 }
0x1fc4   :  { %3310 = vadd.xlane.f32.xlu0 %v3309_v11 }
0x2024   :  { %v4590_v52 = vpop.f32.mrf.mxu1 }
0x2025   :  { %v4594_v14 = vrot.slane %v4590_v52, 1  ;;  %v4595_v16 = vrot.slane %v4590_v52, 2 }
0x2027   :  { %v8811_v33 = vadd.f32 %v4594_v14, %v8441_v53  ;;  %v8814_v17 = vadd.f32 %v4595_v16, %v8443_v55  ;;  %v3284_v18 = vpop.xlane.xlu0 %3283 }
0x2028   :  { %v3295_v6 = vmul.f32 %v3284_v18, %v7826_v49 }
0x2029   :  { %6158 = vtanh.f32 %v8811_v33 }
0x202a   :  { %6160 = vtanh.f32 %v8814_v17  ;;  %v8828_v36 = vsub.f32 %v8794_v25, %v3295_v6 }
0x202b   :  { %6162 = vrcp.f32 %v3173_v56 }
0x202c   :  { %v3305_v51 = vmul.f32 %v8828_v36, %v8828_v36 }
0x202e   :  { %v3312_v31 = vsel %vm803_vm0, %v3305_v51, 0.0 }
0x202f   :  { %v6159_v61 = vpop.eup %6158  ;;  %v3290_v35 = vpop.xlane.xlu0 %3289 }
0x2030   :  { %v6161_v30 = vpop.eup %6160  ;;  %4650 = vrot.lane.b32.xlu1 %v6159_v61, %s7246_s12  ;;  %v3297_v46 = vmul.f32 %v3290_v35, %v7826_v49  ;;  %v5709_v35 = vmul.f32 -1.442695, %v8811_v33 }
0x2031   :  { %4652 = vrot.lane.b32.xlu2 %v6161_v30, %s7246_s12  ;;  %v6163_v55 = vpop.eup %6162 }
0x2032   :  { %v3235_v47 = vmul.f32 %v6163_v55, %v3173_v56  ;;  %vm3240_vm7 = vweird.f32 %v6163_v55  ;;  %v8838_v25 = vsub.f32 %v8803_v45, %v3297_v46 }
0x2033   :  { %vm3241_vm3 = vmor %vm3239_vm2, %vm3240_vm7 }
0x2034   :  { %v3236_v57 = vsub.f32 1.0, %v3235_v47  ;;  %v3307_v11 = vmul.f32 %v8838_v25, %v8838_v25 }
0x2036   :  { %v3237_v42 = vmul.f32 %v6163_v55, %v3236_v57  ;;  %v3318_v16 = vsel %vm803_vm0, %v3307_v11, 0.0 }
0x2037   :  { %v3311_v53 = vpop.xlane.xlu0 %3310 }
0x2038   :  { %v3324_v21 = vmul.f32 %v3311_v53, %v7826_v49  ;;  %v3238_v34 = vadd.f32 %v6163_v55, %v3237_v42  ;;  %v5710_v53 = vmul.f32 -1.442695, %v8814_v17 }
0x203a   :  { %v3329_v24 = vadd.f32 1e-05, %v3324_v21  ;;  %v3242_v13 = vsel %vm3241_vm3, %v6163_v55, %v3238_v34 }
0x203b   :  { %v3247_v29 = vsel %vm3244_vm10, %v3246_v54, %v3242_v13 }
0x203c   :  { %6164 = vrsqrt.f32 %v3329_v24  ;;  %vm3340_vm4 = vweird.f32 %v3329_v24  ;;  %v3273_v23 = vmul.f32 %v3263_v27, %v3247_v29  ;;  %v2930_v27 = vpop.xlane.xlu1 %2929 }
0x203d   :  { %v2931_v14 = vmul.f32 %v2930_v27, %v8787_v44 }
0x203f   :  { %v2932_v18 = vadd.f32 1e-05, %v2931_v14 }
0x2041   :  { %6166 = vrsqrt.f32 %v2932_v18  ;;  %vm2939_vm1 = vweird.f32 %v2932_v18 }
0x2042   :  { %v6165_v37 = vpop.eup %6164  ;;  %6168 = vpow2.f32 %v5709_v35 }
0x2043   :  { %v3335_v12 = vmul.f32 %v6165_v37, %v3329_v24  ;;  %vm3341_vm5 = vweird.f32 %v6165_v37  ;;  %6170 = vpow2.f32 %v5710_v53 }
0x2044   :  { %vm3342_vm8 = vmor %vm3340_vm4, %vm3341_vm5  ;;  %vm3408_vm5 = vcmask 35840  }
0x2045   :  { %v3336_v2 = vmul.f32 %v6165_v37, %v3335_v12 }
0x2047   :  { %v3337_v22 = vmul.f32 0.5, %v3336_v2  ;;  %v6167_v19 = vpop.eup %6166  ;;  %v5895_v2 = vld [vmem:[#allocation32] ss:$0 sm:$0xff] }
0x2048   :  { %v2934_v61 = vmul.f32 %v6167_v19, %v2932_v18  ;;  %v6169_v44 = vpop.eup %6168  ;;  %vm2940_vm15 = vweird.f32 %v6167_v19 }
0x2049   :  { %v3338_v43 = vsub.f32 1.5, %v3337_v22  ;;  %v4606_v55 = vadd.f32 1.0, %v6169_v44  ;;  %vm2941_vm7 = vmor %vm2939_vm1, %vm2940_vm15  ;;  %v6171_v57 = vpop.eup %6170 }
0x204a   :  { %v2935_v30 = vmul.f32 %v6167_v19, %v2934_v61  ;;  %v4607_v33 = vadd.f32 1.0, %v6171_v57 }
0x204b   :  { %v3339_v15 = vmul.f32 %v6165_v37, %v3338_v43  ;;  %6172 = vrcp.f32 %v4606_v55  ;;  %v4619_v29 = vand.u32 2147483648, %v4606_v55  ;;  %vm4613_vm3 = vweird.f32 %v4606_v55 }
0x204c   :  { %v2936_v56 = vmul.f32 0.5, %v2935_v30  ;;  %6174 = vrcp.f32 %v4607_v33  ;;  %vm4628_vm15 = vweird.f32 %v4607_v33  ;;  %v4632_v14 = vand.u32 2147483647, %v4607_v33 }
0x204d   :  { %v3343_v0 = vsel %vm3342_vm8, %v6165_v37, %v3339_v15  ;;  %v5894_v37 = vld [vmem:[#allocation31] ss:$0 sm:$0xff] }
0x204e   :  { %v3384_v58 = vmul.f32 %v3343_v0, %v3299_v10  ;;  %v8835_v10 = vadd.f32 %v3273_v23, %v8615_v20  ;;  %v2937_v21 = vsub.f32 1.5, %v2936_v56  ;;  %v4617_v23 = vand.u32 2147483647, %v4606_v55 }
0x2050   :  { %v3392_v9 = vmul.f32 %v8821_v63, %v3384_v58  ;;  %v3291_v40 = vsel %vm803_vm0, %v8835_v10, 0.0  ;;  %v2938_v24 = vmul.f32 %v6167_v19, %v2937_v21  ;;  %vm4618_vm8 = vcmp.eq.f32.partialorder %v4617_v23, 8.507059e+37 }
0x2051   :  { %v6173_v42 = vpop.eup %6172 }
0x2052   :  { %v3400_v38 = vadd.f32 %v8824_v39, %v3392_v9  ;;  %v2942_v47 = vsel %vm2941_vm7, %v6167_v19, %v2938_v24  ;;  %v4609_v17 = vmul.f32 %v6173_v42, %v4606_v55  ;;  %v6175_v60 = vpop.eup %6174  ;;  %vm4614_vm2 = vweird.f32 %v6173_v42 }
0x2053   :  { %v2943_v12 = vmul.f32 %v2942_v47, %v8791_v7  ;;  %v4624_v15 = vmul.f32 %v6175_v60, %v4607_v33  ;;  %vm4615_vm4 = vmor %vm4613_vm3, %vm4614_vm2  ;;  %vm4629_vm10 = vweird.f32 %v6175_v60  ;;  %vm4633_vm7 = vcmp.eq.f32.partialorder %v4632_v14, 8.507059e+37 }
0x2054   :  { %v3508_v41 = vrot.slane %v3400_v38, 1  ;;  %v3509_v26 = vrot.slane %v3400_v38, 2  ;;  %v3510_v48 = vrot.slane %v3400_v38, 3  ;;  %3543 = vst [vmem:[#allocation1] ss:$9 sm:$0xff] %v3400_v38  ;;  %v3511_v5 = vrot.slane %v3400_v38, 4  ;;  %vm4630_vm1 = vmor %vm4628_vm15, %vm4629_vm10 }
0x2055   :  { %v3512_v20 = vrot.slane %v3400_v38, 5  ;;  %v3513_v8 = vrot.slane %v3400_v38, 6  ;;  %v3514_v45 = vrot.slane %v3400_v38, 7  ;;  %v2947_v22 = vmul.f32 %v5894_v37, %v2943_v12 }
0x2056   :  { %3545 = vst [vmem:[#allocation1 + $0x1] ss:$9 sm:$0xff] %v3508_v41  ;;  %v4610_v43 = vsub.f32 1.0, %v4609_v17  ;;  %v4625_v54 = vsub.f32 1.0, %v4624_v15 }
0x2057   :  { %3547 = vst [vmem:[#allocation1 + $0x2] ss:$9 sm:$0xff] %v3509_v26  ;;  %v2951_v34 = vadd.f32 %v5895_v2, %v2947_v22  ;;  %v3287_v26 = vpop.xlane.xlu2 %3286 }
0x2058   :  { %3549 = vst [vmem:[#allocation1 + $0x3] ss:$9 sm:$0xff] %v3510_v48  ;;  %v4611_v13 = vmul.f32 %v6173_v42, %v4610_v43  ;;  %v4626_v38 = vmul.f32 %v6175_v60, %v4625_v54  ;;  %v3296_v17 = vmul.f32 %v3287_v26, %v7826_v49 }
0x2059   :  { %3551 = vst [vmem:[#allocation1 + $0x4] ss:$9 sm:$0xff] %v3511_v5  ;;  %v3409_v4 = vsel %vm3408_vm5, %v2951_v34, -inf  ;;  %v3406_v0 = vrot.slane %v2951_v34, 4  ;;  %v4620_v5 = vor.u32 1.1754944e-38, %v4619_v29 }
0x205a   :  { %3313 = vadd.xlane.f32.xlu2 %v3312_v31  ;;  %3292 = vadd.xlane.f32.xlu1 %v3291_v40  ;;  %v3410_v6 = vrot.slane %v3409_v4, 4  ;;  %v4612_v58 = vadd.f32 %v6173_v42, %v4611_v13  ;;  %v4627_v40 = vadd.f32 %v6175_v60, %v4626_v38  ;;  %v8866_v15 = vsub.f32 %v8773_v62, %v3296_v17 }
0x205b   :  { %v3416_v9 = vsel %vm3408_vm5, %v3406_v0, -inf  ;;  %v4643_v17 = vrot.slane %v8729_v3, 7 }
0x205c   :  { %v3411_v7 = vmax.f32 %v3409_v4, %v3410_v6  ;;  %v4616_v41 = vsel %vm4615_vm4, %v6173_v42, %v4612_v58  ;;  %v3417_v46 = vrot.slane %v3416_v9, 4 }
0x205d   :  { %v8854_v51 = vsel %vm4618_vm8, %v4620_v5, %v4616_v41 }
0x205e   :  { %v3412_v48 = vrot.slane %v3411_v7, 2 }
0x2060   :  { %v8845_v52 = vld [vmem:[#allocation1] sm:$0xff]  ;;  %v3413_v27 = vmax.f32 %v3411_v7, %v3412_v48 }
0x2061   :  { %3553 = vst [vmem:[#allocation1] ss:$9 sm:$0xff] %v3512_v20  ;;  %v3418_v20 = vmax.f32 %v3416_v9, %v3417_v46  ;;  %v3306_v9 = vmul.f32 %v8866_v15, %v8866_v15 }
0x2062   :  { %3554 = vst [vmem:[#allocation1 + $0x1] ss:$9 sm:$0xff] %v3513_v8  ;;  %3319 = vadd.xlane.f32.xlu1 %v3318_v16  ;;  %v4634_v8 = vand.u32 2147483648, %v4607_v33  ;;  %v3414_v16 = vrot.slane %v3413_v27, 1 }
0x2063   :  { %3555 = vst [vmem:[#allocation1 + $0x2] ss:$9 sm:$0xff] %v3514_v45  ;;  %v4631_v45 = vsel %vm4630_vm1, %v6175_v60, %v4627_v40  ;;  %v3419_v18 = vrot.slane %v3418_v20, 2  ;;  %v3315_v41 = vsel %vm803_vm0, %v3306_v9, 0.0 }
0x2064   :  { %v4635_v61 = vor.u32 1.1754944e-38, %v4634_v8  ;;  %v3415_v56 = vmax.f32 %v3413_v27, %v3414_v16 }
0x2065   :  { %v3420_v53 = vmax.f32 %v3418_v20, %v3419_v18 }
0x2066   :  { %v8858_v35 = vsel %vm4633_vm7, %v4635_v61, %v4631_v45  ;;  %v3423_v44 = vsub.f32 %v2951_v34, %v3415_v56 }
0x2067   :  { %v3421_v21 = vrot.slane %v3420_v53, 1 }
0x2068   :  { %v3425_v24 = vmul.f32 1.442695, %v3423_v44 }
0x2069   :  { %v3422_v55 = vmax.f32 %v3420_v53, %v3421_v21 }
0x206a   :  { %6176 = vpow2.f32 %v3425_v24 }
0x206b   :  { %v3424_v47 = vsub.f32 %v3406_v0, %v3422_v55 }
0x206d   :  { %v3427_v57 = vmul.f32 1.442695, %v3424_v47 }
0x206f   :  { %6178 = vpow2.f32 %v3427_v57 }
0x2070   :  { %v6177_v37 = vpop.eup %6176 }
0x2071   :  { %v3429_v12 = vsel %vm3408_vm5, %v6177_v37, 0.0 }
0x2072   :  { %v3430_v33 = vrot.slane %v3429_v12, 4 }
0x2074   :  { %v3431_v2 = vadd.f32 %v3430_v33, %v3429_v12  ;;  %v4642_v33 = vrot.slane %v8722_v1, 7 }
0x2075   :  { %v6179_v42 = vpop.eup %6178 }
0x2076   :  { %v3436_v22 = vsel %vm3408_vm5, %v6179_v42, 0.0  ;;  %v3432_v60 = vrot.slane %v3431_v2, 2 }
0x2077   :  { %v3437_v43 = vrot.slane %v3436_v22, 4 }
0x2078   :  { %v3433_v58 = vadd.f32 %v3432_v60, %v3431_v2 }
0x2079   :  { %v3438_v7 = vadd.f32 %v3437_v43, %v3436_v22  ;;  %v4647_v43 = vmul.f32 %v4643_v17, %v8858_v35 }
0x207a   :  { %v3434_v23 = vrot.slane %v3433_v58, 1 }
0x207b   :  { %v3439_v38 = vrot.slane %v3438_v7, 2 }
0x207d   :  { %v3440_v48 = vadd.f32 %v3439_v38, %v3438_v7 }
0x208b   :  { %v4653_v19 = vpop.permute.xlu2 %4652 }
0x208c   :  { %v4657_v30 = vmul.f32 %v4653_v19, %v8858_v35 }
0x20a2   :  { %v4651_v31 = vpop.permute.xlu1 %4650 }
0x20a3   :  { %v4656_v11 = vmul.f32 %v4651_v31, %v8854_v51  ;;  %v3441_v31 = vrot.slane %v3440_v48, 1 }
0x20a5   :  { %4660 = vrot.lane.b32.xlu0 %v4656_v11, %s7245_s19  ;;  %v3442_v27 = vadd.f32 %v3441_v31, %v3440_v48 }
0x20ad   :  { %4662 = vrot.lane.b32.xlu0 %v4657_v30, %s7245_s19 }
0x20cd   :  { %v3314_v4 = vpop.xlane.xlu2 %3313  ;;  %v3293_v34 = vpop.xlane.xlu1 %3292 }
0x20ce   :  { %v3325_v13 = vmul.f32 %v3314_v4, %v7826_v49  ;;  %v3298_v6 = vmul.f32 %v3293_v34, %v7826_v49 }
0x20d0   :  { %v3330_v0 = vadd.f32 1e-05, %v3325_v13  ;;  %v8871_v54 = vsub.f32 %v8835_v10, %v3298_v6  ;;  %v3435_v10 = vadd.f32 %v3434_v23, %v3433_v58 }
0x20d2   :  { %6180 = vrsqrt.f32 %v3330_v0  ;;  %v3308_v29 = vmul.f32 %v8871_v54, %v8871_v54  ;;  %vm3350_vm2 = vweird.f32 %v3330_v0 }
0x20d3   :  { %6182 = vrcp.f32 %v3435_v10 }
0x20d4   :  { %v3321_v62 = vsel %vm803_vm0, %v3308_v29, 0.0  ;;  %6184 = vrcp.f32 %v3442_v27 }
0x20d5   :  { %3322 = vadd.xlane.f32.xlu2 %v3321_v62  ;;  %v3320_v29 = vpop.xlane.xlu1 %3319 }
0x20d6   :  { %v3327_v9 = vmul.f32 %v3320_v29, %v7826_v49 }
0x20d7   :  { %3316 = vadd.xlane.f32.xlu0 %v3315_v41 }
0x20d8   :  { %v6181_v26 = vpop.eup %6180  ;;  %v3332_v62 = vadd.f32 1e-05, %v3327_v9 }
0x20d9   :  { %v3345_v46 = vmul.f32 %v6181_v26, %v3330_v0  ;;  %vm3351_vm5 = vweird.f32 %v6181_v26  ;;  %v6183_v8 = vpop.eup %6182 }
0x20da   :  { %vm3352_vm3 = vmor %vm3350_vm2, %vm3351_vm5  ;;  %v3445_v16 = vmul.f32 %v6183_v8, %v6177_v37  ;;  %v6185_v30 = vpop.eup %6184  ;;  %vm3370_vm1 = vweird.f32 %v3332_v62 }
0x20db   :  { %v3346_v5 = vmul.f32 %v6181_v26, %v3345_v46  ;;  %v3446_v53 = vmul.f32 %v6185_v30, %v6179_v42  ;;  %v4646_v42 = vmul.f32 %v4642_v33, %v8854_v51 }
0x20dc   :  { %v3454_v61 = vperm.slane %v3445_v16, 1  ;;  %v3447_v1 = vperm.slane %v3445_v16, 0  ;;  %v3468_v6 = vperm.slane %v3445_v16, 3  ;;  %v3461_v0 = vperm.slane %v3445_v16, 2 }
0x20dd   :  { %v3347_v40 = vmul.f32 0.5, %v3346_v5  ;;  %v3496_v21 = vperm.slane %v3446_v53, 3  ;;  %v3482_v3 = vperm.slane %v3446_v53, 1  ;;  %v3475_v58 = vperm.slane %v3446_v53, 0 }
0x20de   :  { %v3489_v7 = vperm.slane %v3446_v53, 2 }
0x20df   :  { %v3348_v11 = vsub.f32 1.5, %v3347_v40 }
0x20e1   :  { %v3349_v20 = vmul.f32 %v6181_v26, %v3348_v11 }
0x20e3   :  { %v3353_v14 = vsel %vm3352_vm3, %v6181_v26, %v3349_v20 }
0x20e4   :  { %v3385_v45 = vmul.f32 %v3353_v14, %v8828_v36 }
0x20e6   :  { %v3393_v18 = vmul.f32 %v8821_v63, %v3385_v45 }
0x20e8   :  { %v3401_v19 = vadd.f32 %v8824_v39, %v3393_v18 }
0x20ea   :  { %v3515_v56 = vrot.slane %v3401_v19, 1  ;;  %3556 = vst [vmem:[#allocation1 + $0x3] ss:$9 sm:$0xff] %v3401_v19  ;;  %v3516_v44 = vrot.slane %v3401_v19, 2  ;;  %v3517_v55 = vrot.slane %v3401_v19, 3  ;;  %v3518_v36 = vrot.slane %v3401_v19, 4 }
0x20eb   :  { %3459 = vperm.xlu0 %5865, %v3454_v61   ;;  %v3519_v47 = vrot.slane %v3401_v19, 5  ;;  %v3520_v57 = vrot.slane %v3401_v19, 6  ;;  %v3521_v37 = vrot.slane %v3401_v19, 7 }
0x20ec   :  { %3557 = vst [vmem:[#allocation1 + $0x4] ss:$9 sm:$0xff] %v3515_v56 }
0x20f3   :  { %v8882_v24 = vld [vmem:[#allocation1] sm:$0xff]  ;;  %3501 = vperm.xlu0 %5865, %v3496_v21  }
0x20f4   :  { %3559 = vst [vmem:[#allocation1] ss:$9 sm:$0xff] %v3516_v44 }
0x20f5   :  { %3560 = vst [vmem:[#allocation1 + $0x1] ss:$9 sm:$0xff] %v3517_v55 }
0x20f6   :  { %3561 = vst [vmem:[#allocation1 + $0x2] ss:$9 sm:$0xff] %v3518_v36 }
0x20f7   :  { %3562 = vst [vmem:[#allocation1 + $0x3] ss:$9 sm:$0xff] %v3519_v47 }
0x20f8   :  { %3563 = vst [vmem:[#allocation1 + $0x4] ss:$9 sm:$0xff] %v3520_v57 }
0x20ff   :  { %v8884_v12 = vld [vmem:[#allocation1] sm:$0xff] }
0x2100   :  { %3565 = vst [vmem:[#allocation1] ss:$9 sm:$0xff] %v3521_v37 }
0x2117   :  { %v4661_v2 = vpop.permute.xlu0 %4660 }
0x2118   :  { %v8888_v22 = vadd.f32 %v4661_v2, %v4646_v42 }
0x211a   :  { %6186 = vtanh.f32 %v8888_v22 }
0x211f   :  { %v4663_v60 = vpop.permute.xlu0 %4662 }
0x2120   :  { %v6187_v4 = vpop.eup %6186  ;;  %v8893_v34 = vadd.f32 %v4663_v60, %v4647_v43 }
0x2121   :  { %4672 = vrot.lane.b32.xlu1 %v6187_v4, %s7246_s12 }
0x2122   :  { %6188 = vtanh.f32 %v8893_v34 }
0x2123   :  { %6190 = vrsqrt.f32 %v3332_v62 }
0x2128   :  { %v6189_v13 = vpop.eup %6188 }
0x2129   :  { %3452 = vperm.xlu1 %5863, %v3447_v1   ;;  %4674 = vrot.lane.b32.xlu2 %v6189_v13, %s7246_s12  ;;  %v6191_v26 = vpop.eup %6190 }
0x212a   :  { %v3365_v5 = vmul.f32 %v6191_v26, %v3332_v62  ;;  %vm3371_vm15 = vweird.f32 %v6191_v26 }
0x212b   :  { %vm3372_vm7 = vmor %vm3370_vm1, %vm3371_vm15 }
0x212c   :  { %v3366_v27 = vmul.f32 %v6191_v26, %v3365_v5 }
0x212e   :  { %v3367_v45 = vmul.f32 0.5, %v3366_v27 }
0x2130   :  { %v3368_v19 = vsub.f32 1.5, %v3367_v45 }
0x2131   :  { %3473 = vperm.xlu1 %5863, %v3468_v6   ;;  %3466 = vperm.xlu2 %5864, %v3461_v0  }
0x2132   :  { %v3369_v53 = vmul.f32 %v6191_v26, %v3368_v19 }
0x2134   :  { %v3373_v47 = vsel %vm3372_vm7, %v6191_v26, %v3369_v53  ;;  %v3678_v53 = vld [vmem:[%s9296_s11 + $0x8] sm:$0xff] }
0x2139   :  { %3487 = vperm.xlu1 %5863, %v3482_v3   ;;  %3480 = vperm.xlu2 %5864, %v3475_v58  }
0x2141   :  { %3494 = vperm.xlu2 %5864, %v3489_v7  }
0x2148   :  { %v3323_v48 = vpop.xlane.xlu2 %3322 }
0x2149   :  { %v3328_v40 = vmul.f32 %v3323_v48, %v7826_v49 }
0x214a   :  { %v3317_v23 = vpop.xlane.xlu0 %3316 }
0x214b   :  { %v3326_v38 = vmul.f32 %v3317_v23, %v7826_v49  ;;  %v3333_v8 = vadd.f32 1e-05, %v3328_v40 }
0x214d   :  { %v3331_v41 = vadd.f32 1e-05, %v3326_v38  ;;  %vm3380_vm2 = vweird.f32 %v3333_v8 }
0x214f   :  { %6192 = vrsqrt.f32 %v3331_v41  ;;  %vm3360_vm8 = vweird.f32 %v3331_v41 }
0x2150   :  { %6194 = vrsqrt.f32 %v3333_v8 }
0x2155   :  { %v6193_v10 = vpop.eup %6192 }
0x2156   :  { %v3355_v46 = vmul.f32 %v6193_v10, %v3331_v41  ;;  %vm3361_vm4 = vweird.f32 %v6193_v10  ;;  %v6195_v56 = vpop.eup %6194 }
0x2157   :  { %vm3362_vm10 = vmor %vm3360_vm8, %vm3361_vm4  ;;  %v3375_v36 = vmul.f32 %v6195_v56, %v3333_v8  ;;  %vm3381_vm5 = vweird.f32 %v6195_v56  ;;  %vm4697_vm4 = vcmask 1046528   ;;  %vm3611_vm8 = vcmask 258048  }
0x2158   :  { %v3356_v31 = vmul.f32 %v6193_v10, %v3355_v46  ;;  %vm3382_vm3 = vmor %vm3380_vm2, %vm3381_vm5 }
0x2159   :  { %v3376_v57 = vmul.f32 %v6195_v56, %v3375_v36 }
0x215a   :  { %v3357_v11 = vmul.f32 0.5, %v3356_v31 }
0x215b   :  { %v3377_v33 = vmul.f32 0.5, %v3376_v57  ;;  %v3684_v57 = vld [vmem:[#allocation43 + $0x18] sm:$0xff] }
0x215c   :  { %v3358_v20 = vsub.f32 1.5, %v3357_v11  ;;  %4764 = vmatpush.msrb.mxu3 %v3684_v57  ;;  %4887 = vmatpush.msra.mxu0 %v3684_v57 }
0x215d   :  { %v3378_v1 = vsub.f32 1.5, %v3377_v33  ;;  %5002 = vmatpush.msrb.mxu1 %v3684_v57 }
0x215e   :  { %v3359_v14 = vmul.f32 %v6193_v10, %v3358_v20 }
0x215f   :  { %v3379_v13 = vmul.f32 %v6195_v56, %v3378_v1 }
0x2160   :  { %v3363_v16 = vsel %vm3362_vm10, %v6193_v10, %v3359_v14  ;;  %vm9297_vm10 = vcmask 1047559  }
0x2161   :  { %v3386_v18 = vmul.f32 %v3363_v16, %v8866_v15  ;;  %v3387_v15 = vmul.f32 %v3373_v47, %v8838_v25  ;;  %v3383_v6 = vsel %vm3382_vm3, %v6195_v56, %v3379_v13  ;;  %v3677_v47 = vld [vmem:[%s9296_s11] sm:$0xff] }
0x2162   :  { %v3388_v29 = vmul.f32 %v3383_v6, %v8871_v54 }
0x2163   :  { %v3394_v61 = vmul.f32 %v8821_v63, %v3386_v18  ;;  %v3395_v37 = vmul.f32 %v8821_v63, %v3387_v15 }
0x2164   :  { %v3396_v38 = vmul.f32 %v8821_v63, %v3388_v29 }
0x2165   :  { %v3402_v30 = vadd.f32 %v8824_v39, %v3394_v61  ;;  %v3403_v4 = vadd.f32 %v8824_v39, %v3395_v37  ;;  %v3679_v61 = vld [vmem:[%s9296_s11 + $0x10] sm:$0xff] }
0x2166   :  { %v3404_v26 = vadd.f32 %v8824_v39, %v3396_v38  ;;  %v3683_v37 = vld [vmem:[#allocation43 + $0x10] sm:$0xff] }
0x2167   :  { %v3522_v21 = vrot.slane %v3402_v30, 1  ;;  %v3523_v44 = vrot.slane %v3402_v30, 2  ;;  %v3524_v55 = vrot.slane %v3402_v30, 3  ;;  %3566 = vst [vmem:[#allocation1 + $0x1] ss:$9 sm:$0xff] %v3402_v30  ;;  %v3525_v42 = vrot.slane %v3402_v30, 4  ;;  %4765 = vmatpush.msrb.mxu3 %v3683_v37  ;;  %4888 = vmatpush.msra.mxu0 %v3683_v37 }
0x2168   :  { %v3526_v2 = vrot.slane %v3402_v30, 5  ;;  %v3527_v43 = vrot.slane %v3402_v30, 6  ;;  %v3528_v60 = vrot.slane %v3402_v30, 7  ;;  %v3529_v25 = vrot.slane %v3403_v4, 1  ;;  %5003 = vmatpush.msrb.mxu1 %v3683_v37 }
0x2169   :  { %3567 = vst [vmem:[#allocation1 + $0x2] ss:$9 sm:$0xff] %v3522_v21  ;;  %v3530_v0 = vrot.slane %v3403_v4, 2  ;;  %v3531_v58 = vrot.slane %v3403_v4, 3  ;;  %v3532_v7 = vrot.slane %v3403_v4, 4  ;;  %v3533_v9 = vrot.slane %v3403_v4, 5 }
0x216a   :  { %3568 = vst [vmem:[#allocation1 + $0x3] ss:$9 sm:$0xff] %v3523_v44  ;;  %v3534_v10 = vrot.slane %v3403_v4, 6  ;;  %v3535_v48 = vrot.slane %v3403_v4, 7  ;;  %v3536_v5 = vrot.slane %v3404_v26, 1  ;;  %v3537_v31 = vrot.slane %v3404_v26, 2 }
0x216b   :  { %3569 = vst [vmem:[#allocation1 + $0x4] ss:$9 sm:$0xff] %v3524_v55  ;;  %v3538_v11 = vrot.slane %v3404_v26, 3  ;;  %v3539_v14 = vrot.slane %v3404_v26, 4  ;;  %v3540_v16 = vrot.slane %v3404_v26, 5  ;;  %v3541_v19 = vrot.slane %v3404_v26, 6 }
0x216c   :  { %v3542_v30 = vrot.slane %v3404_v26, 7 }
0x2172   :  { %v8906_v17 = vld [vmem:[#allocation1] sm:$0xff] }
0x2173   :  { %3571 = vst [vmem:[#allocation1] ss:$9 sm:$0xff] %v3525_v42 }
0x2174   :  { %3572 = vst [vmem:[#allocation1 + $0x1] ss:$9 sm:$0xff] %v3526_v2 }
0x2175   :  { %3573 = vst [vmem:[#allocation1 + $0x2] ss:$9 sm:$0xff] %v3527_v43  ;;  %v3682_v43 = vld [vmem:[#allocation43 + $0x8] sm:$0xff] }
0x2176   :  { %3574 = vst [vmem:[#allocation1 + $0x3] ss:$9 sm:$0xff] %v3528_v60  ;;  %4766 = vmatpush.msrb.mxu3 %v3682_v43  ;;  %4889 = vmatpush.msra.mxu0 %v3682_v43 }
0x2177   :  { %3575 = vst [vmem:[#allocation1 + $0x4] ss:$9 sm:$0xff] %v3403_v4  ;;  %5004 = vmatpush.msrb.mxu1 %v3682_v43 }
0x217e   :  { %v3576_v3 = vld [vmem:[#allocation1] sm:$0xff] }
0x217f   :  { %3577 = vst [vmem:[#allocation1] ss:$9 sm:$0xff] %v3529_v25 }
0x2180   :  { %3578 = vst [vmem:[#allocation1 + $0x1] ss:$9 sm:$0xff] %v3530_v0 }
0x2181   :  { %3579 = vst [vmem:[#allocation1 + $0x2] ss:$9 sm:$0xff] %v3531_v58 }
0x2182   :  { %3580 = vst [vmem:[#allocation1 + $0x3] ss:$9 sm:$0xff] %v3532_v7 }
0x2183   :  { %v4675_v62 = vpop.permute.xlu2 %4674  ;;  %3581 = vst [vmem:[#allocation1 + $0x4] ss:$9 sm:$0xff] %v3533_v9 }
0x2184   :  { %v4679_v23 = vmul.f32 %v4675_v62, %v8858_v35  ;;  %v3460_v35 = vpop.permute.xlu0 %3459 }
0x2185   :  { %v3604_v39 = vmul.f32 %v8882_v24, %v3460_v35  ;;  %v3680_v24 = vld [vmem:[%s9296_s11 + $0x18] sm:$0xff] }
0x2186   :  { %v8914_v41 = vsel %vm4697_vm4, %v8751_v32, %v4679_v23  ;;  %v4746_v27 = vrot.slane %v4679_v23, 6  ;;  %4732 = vmatpush.msrb.mxu2 %v3680_v24 }
0x2188   :  { %4733 = vmatpush.msrb.mxu2 %v3679_v61 }
0x218a   :  { %v8917_v54 = vld [vmem:[#allocation1] sm:$0xff]  ;;  %4734 = vmatpush.msrb.mxu2 %v3678_v53 }
0x218b   :  { %v3467_v46 = vpop.permute.xlu2 %3466  ;;  %3583 = vst [vmem:[#allocation1] ss:$9 sm:$0xff] %v3534_v10 }
0x218c   :  { %3584 = vst [vmem:[#allocation1 + $0x1] ss:$9 sm:$0xff] %v3535_v48  ;;  %v3605_v18 = vmul.f32 %v8884_v12, %v3467_v46  ;;  %4735 = vmatpush.msrb.mxu2 %v3677_v47  ;;  %v3502_v1 = vpop.permute.xlu0 %3501 }
0x218d   :  { %3585 = vst [vmem:[#allocation1 + $0x2] ss:$9 sm:$0xff] %v3404_v26 }
0x218e   :  { %3586 = vst [vmem:[#allocation1 + $0x3] ss:$9 sm:$0xff] %v3536_v5  ;;  %v3626_v12 = vsel %vm3611_vm8, %v3605_v18, 0.0  ;;  %5118 = vmatpush.msra.mxu2 %v3684_v57 }
0x218f   :  { %3587 = vst [vmem:[#allocation1 + $0x4] ss:$9 sm:$0xff] %v3537_v31  ;;  %v3627_v33 = vrot.slane %v3626_v12, 4 }
0x2190   :  { %5119 = vmatpush.msra.mxu2 %v3683_v37 }
0x2191   :  { %v3628_v25 = vadd.f32 %v3627_v33, %v3626_v12 }
0x2192   :  { %5120 = vmatpush.msra.mxu2 %v3682_v43 }
0x2193   :  { %v3481_v63 = vpop.permute.xlu2 %3480  ;;  %v4673_v40 = vpop.permute.xlu1 %4672  ;;  %v3629_v46 = vrot.slane %v3628_v25, 2 }
0x2194   :  { %v4678_v32 = vmul.f32 %v4673_v40, %v8854_v51  ;;  %v3607_v36 = vmul.f32 %v3576_v3, %v3481_v63 }
0x2196   :  { %v4745_v20 = vrot.slane %v4678_v32, 7  ;;  %v8923_v8 = vsel %vm4697_vm4, %v8747_v59, %v4678_v32  ;;  %v3588_v45 = vld [vmem:[#allocation1] sm:$0xff]  ;;  %v3619_v59 = vsel %vm3611_vm8, %v3604_v39, 0.0  ;;  %v3640_v60 = vsel %vm3611_vm8, %v3607_v36, 0.0 }
0x2197   :  { %3589 = vst [vmem:[#allocation1] ss:$9 sm:$0xff] %v3538_v11  ;;  %v3620_v55 = vrot.slane %v3619_v59, 4  ;;  %v3641_v7 = vrot.slane %v3640_v60, 4  ;;  %v3630_v39 = vadd.f32 %v3629_v46, %v3628_v25 }
0x2198   :  { %v4747_v51 = vsel %vm1200_vm6, %v4746_v27, %v4745_v20  ;;  %3590 = vst [vmem:[#allocation1 + $0x1] ss:$9 sm:$0xff] %v3539_v14 }
0x2199   :  { %4748 = vrot.lane.b32.xlu1 %v4747_v51, %s7245_s19  ;;  %3591 = vst [vmem:[#allocation1 + $0x2] ss:$9 sm:$0xff] %v3540_v16  ;;  %v3631_v61 = vrot.slane %v3630_v39, 1 }
0x219a   :  { %3592 = vst [vmem:[#allocation1 + $0x3] ss:$9 sm:$0xff] %v3541_v19 }
0x219b   :  { %v3453_v56 = vpop.permute.xlu1 %3452  ;;  %3593 = vst [vmem:[#allocation1 + $0x4] ss:$9 sm:$0xff] %v3542_v30  ;;  %v3495_v21 = vpop.permute.xlu2 %3494 }
0x219c   :  { %v3603_v44 = vmul.f32 %v8845_v52, %v3453_v56  ;;  %4823 = vst.sshfl [vmem:[#allocation1 + $0x10] sm:$0xff pattern:$0x75316420] %v8893_v34  ;;  %v3609_v42 = vmul.f32 %v3588_v45, %v3495_v21  ;;  %v3621_v52 = vadd.f32 %v3620_v55, %v3619_v59  ;;  %v3681_v34 = vld [vmem:[#allocation43] sm:$0xff] }
0x219d   :  { %4767 = vmatpush.msrb.mxu3 %v3681_v34  ;;  %4890 = vmatpush.msra.mxu0 %v3681_v34 }
0x219e   :  { %v3612_v15 = vsel %vm3611_vm8, %v3603_v44, 0.0  ;;  %v3654_v6 = vsel %vm3611_vm8, %v3609_v42, 0.0  ;;  %v3622_v9 = vrot.slane %v3621_v52, 2  ;;  %5005 = vmatpush.msrb.mxu1 %v3681_v34  ;;  %5121 = vmatpush.msra.mxu2 %v3681_v34 }
0x219f   :  { %v3613_v2 = vrot.slane %v3612_v15, 4  ;;  %v3655_v23 = vrot.slane %v3654_v6, 4 }
0x21a0   :  { %v3623_v5 = vadd.f32 %v3622_v9, %v3621_v52 }
0x21a1   :  { %v3614_v4 = vadd.f32 %v3613_v2, %v3612_v15  ;;  %v3656_v31 = vadd.f32 %v3655_v23, %v3654_v6  ;;  %v5898_v6 = vld [vmem:[#allocation44] ss:$0 sm:$0xff] }
0x21a2   :  { %v3594_v13 = vld [vmem:[#allocation1] sm:$0xff]  ;;  %v3624_v20 = vrot.slane %v3623_v5, 1 }
0x21a3   :  { %v3615_v0 = vrot.slane %v3614_v4, 2  ;;  %v3474_v3 = vpop.permute.xlu1 %3473  ;;  %v3610_v58 = vmul.f32 %v3594_v13, %v3502_v1  ;;  %4820 = vst.sshfl [vmem:[#allocation1] sm:$0xff pattern:$0x75316420] %v8888_v22  ;;  %v3642_v22 = vadd.f32 %v3641_v7, %v3640_v60  ;;  %v3657_v45 = vrot.slane %v3656_v31, 2 }
0x21a4   :  { %v3606_v29 = vmul.f32 %v8906_v17, %v3474_v3  ;;  %v3625_v59 = vadd.f32 %v3624_v20, %v3623_v5 }
0x21a5   :  { %v3661_v62 = vsel %vm3611_vm8, %v3610_v58, 0.0  ;;  %v3616_v10 = vadd.f32 %v3615_v0, %v3614_v4  ;;  %v3643_v11 = vrot.slane %v3642_v22, 2  ;;  %v3658_v53 = vadd.f32 %v3657_v45, %v3656_v31 }
0x21a6   :  { %v3633_v38 = vsel %vm3611_vm8, %v3606_v29, 0.0  ;;  %v3662_v26 = vrot.slane %v3661_v62, 4 }
0x21a7   :  { %v3634_v48 = vrot.slane %v3633_v38, 4  ;;  %v3617_v63 = vrot.slane %v3616_v10, 1  ;;  %v3644_v30 = vadd.f32 %v3643_v11, %v3642_v22  ;;  %v3659_v15 = vrot.slane %v3658_v53, 1 }
0x21a8   :  { %v3663_v35 = vadd.f32 %v3662_v26, %v3661_v62 }
0x21a9   :  { %v3635_v17 = vadd.f32 %v3634_v48, %v3633_v38  ;;  %v3618_v51 = vadd.f32 %v3617_v63, %v3616_v10  ;;  %v3645_v36 = vrot.slane %v3644_v30, 1  ;;  %v3660_v52 = vadd.f32 %v3659_v15, %v3658_v53 }
0x21aa   :  { %v3664_v18 = vrot.slane %v3663_v35, 2 }
0x21ab   :  { %v3636_v40 = vrot.slane %v3635_v17, 2  ;;  %v3488_v32 = vpop.permute.xlu1 %3487  ;;  %v4711_v21 = vsel %vm1200_vm6, %v3625_v59, %v3618_v51  ;;  %v3646_v2 = vadd.f32 %v3645_v36, %v3644_v30 }
0x21ac   :  { %v3608_v27 = vmul.f32 %v8917_v54, %v3488_v32  ;;  %v3665_v12 = vadd.f32 %v3664_v18, %v3663_v35  ;;  %v3632_v54 = vadd.f32 %v3631_v61, %v3630_v39 }
0x21ad   :  { %v3637_v14 = vadd.f32 %v3636_v40, %v3635_v17 }
0x21ae   :  { %v3647_v16 = vsel %vm3611_vm8, %v3608_v27, 0.0  ;;  %v4712_v57 = vsel %vm3713_vm9, %v3632_v54, %v4711_v21  ;;  %v3666_v37 = vrot.slane %v3665_v12, 1  ;;  %v4825_v54 = vld [vmem:[#allocation1 + $0x11] ss:$2 sm:$0xff] }
0x21af   :  { %v3638_v19 = vrot.slane %v3637_v14, 1  ;;  %v3648_v24 = vrot.slane %v3647_v16, 4  ;;  %v5716_v15 = vrot.slane %v4825_v54, 11 }
0x21b0   :  { %v3667_v4 = vadd.f32 %v3666_v37, %v3665_v12 }
0x21b1   :  { %v3649_v56 = vadd.f32 %v3648_v24, %v3647_v16  ;;  %v3639_v44 = vadd.f32 %v3638_v19, %v3637_v14 }
0x21b3   :  { %v3650_v55 = vrot.slane %v3649_v56, 2  ;;  %v4713_v33 = vsel %vm3715_vm11, %v3639_v44, %v4712_v57  ;;  %v4822_v44 = vld [vmem:[#allocation1 + $0x1] ss:$2 sm:$0xff] }
0x21b4   :  { %v4714_v60 = vsel %vm3717_vm12, %v3646_v2, %v4713_v33 }
0x21b5   :  { %v3651_v47 = vadd.f32 %v3650_v55, %v3649_v56  ;;  %v5715_v55 = vrot.slane %v4822_v44, 11 }
0x21b7   :  { %v3652_v42 = vrot.slane %v3651_v47, 1 }
0x21b9   :  { %v3653_v43 = vadd.f32 %v3652_v42, %v3651_v47 }
0x21bb   :  { %v4715_v34 = vsel %vm3719_vm13, %v3653_v43, %v4714_v60 }
0x21bc   :  { %v4716_v1 = vsel %vm3721_vm14, %v3660_v52, %v4715_v34 }
0x21bd   :  { %v8952_v13 = vsel %vm9297_vm10, %v3667_v4, %v4716_v1 }
0x21be   :  { %5711 = vmatmul.msk.f32.vlgmr.msrb.gmra.mxu2 %vm803_vm0, %v8952_v13 }
0x220b   :  { %v4749_v25 = vpop.permute.xlu1 %4748 }
0x220c   :  { %5712 = vmatmul.msk.f32.vlgmr.msrb.gmra.mxu3 %vm803_vm0, %v4749_v25 }
0x2241   :  { %v4737_v0 = vpop.f32.mrf.mxu2 }
0x2242   :  { %v8957_v3 = vadd.f32 %v5898_v6, %v4737_v0 }
0x2244   :  { %v8960_v7 = vrot.slane %v8957_v3, 4 }
0x228f   :  { %v4769_v58 = vpop.f32.mrf.mxu3 }
0x2290   :  { %v4773_v29 = vrot.slane %v4769_v58, 1  ;;  %v4776_v9 = vadd.f32 %v4769_v58, %v8957_v3 }
0x2292   :  { %v4777_v62 = vadd.f32 %v4773_v29, %v8960_v7  ;;  %6196 = vtanh.f32 %v4776_v9  ;;  %v5713_v26 = vmul.f32 -1.442695, %v4776_v9 }
0x2294   :  { %6198 = vtanh.f32 %v4777_v62  ;;  %v5714_v5 = vmul.f32 -1.442695, %v4777_v62 }
0x2295   :  { %6200 = vpow2.f32 %v5713_v26 }
0x2298   :  { %v6197_v23 = vpop.eup %6196 }
0x2299   :  { %4836 = vrot.lane.b32.xlu2 %v6197_v23, %s7246_s12 }
0x229a   :  { %v6199_v38 = vpop.eup %6198 }
0x229b   :  { %4838 = vrot.lane.b32.xlu0 %v6199_v38, %s7246_s12  ;;  %v6201_v10 = vpop.eup %6200 }
0x229c   :  { %v4784_v48 = vadd.f32 1.0, %v6201_v10 }
0x229e   :  { %6202 = vrcp.f32 %v4784_v48  ;;  %v4797_v40 = vand.u32 2147483648, %v4784_v48  ;;  %vm4791_vm11 = vweird.f32 %v4784_v48  ;;  %v4795_v39 = vand.u32 2147483647, %v4784_v48 }
0x229f   :  { %6204 = vpow2.f32 %v5714_v5 }
0x22a0   :  { %v4798_v27 = vor.u32 1.1754944e-38, %v4797_v40  ;;  %vm4796_vm13 = vcmp.eq.f32.partialorder %v4795_v39, 8.507059e+37 }
0x22a4   :  { %v6203_v46 = vpop.eup %6202 }
0x22a5   :  { %v4787_v22 = vmul.f32 %v6203_v46, %v4784_v48  ;;  %v6205_v35 = vpop.eup %6204  ;;  %vm4792_vm9 = vweird.f32 %v6203_v46 }
0x22a6   :  { %v4785_v32 = vadd.f32 1.0, %v6205_v35  ;;  %vm4793_vm12 = vmor %vm4791_vm11, %vm4792_vm9 }
0x22a7   :  { %v4788_v17 = vsub.f32 1.0, %v4787_v22 }
0x22a8   :  { %6206 = vrcp.f32 %v4785_v32  ;;  %v4812_v61 = vand.u32 2147483648, %v4785_v32  ;;  %vm4806_vm15 = vweird.f32 %v4785_v32  ;;  %v4810_v30 = vand.u32 2147483647, %v4785_v32 }
0x22a9   :  { %v4789_v31 = vmul.f32 %v6203_v46, %v4788_v17 }
0x22aa   :  { %v4813_v56 = vor.u32 1.1754944e-38, %v4812_v61  ;;  %vm4811_vm7 = vcmp.eq.f32.partialorder %v4810_v30, 8.507059e+37 }
0x22ab   :  { %v4790_v63 = vadd.f32 %v6203_v46, %v4789_v31 }
0x22ad   :  { %v4794_v11 = vsel %vm4793_vm12, %v6203_v46, %v4790_v63 }
0x22ae   :  { %v4799_v14 = vsel %vm4796_vm13, %v4798_v27, %v4794_v11  ;;  %v6207_v16 = vpop.eup %6206 }
0x22af   :  { %v4802_v18 = vmul.f32 %v6207_v16, %v4785_v32  ;;  %vm4807_vm14 = vweird.f32 %v6207_v16  ;;  %v4832_v36 = vmul.f32 %v5715_v55, %v4799_v14 }
0x22b0   :  { %vm4808_vm1 = vmor %vm4806_vm15, %vm4807_vm14 }
0x22b1   :  { %v4803_v51 = vsub.f32 1.0, %v4802_v18 }
0x22b3   :  { %v4804_v19 = vmul.f32 %v6207_v16, %v4803_v51 }
0x22b5   :  { %v4805_v24 = vadd.f32 %v6207_v16, %v4804_v19 }
0x22b7   :  { %v4809_v59 = vsel %vm4808_vm1, %v6207_v16, %v4805_v24 }
0x22b8   :  { %v4814_v12 = vsel %vm4811_vm7, %v4813_v56, %v4809_v59 }
0x22b9   :  { %v4833_v37 = vmul.f32 %v5716_v15, %v4814_v12 }
0x22f3   :  { %v4837_v20 = vpop.permute.xlu2 %4836 }
0x22f4   :  { %v4842_v45 = vmul.f32 %v4837_v20, %v4799_v14 }
0x22f6   :  { %4846 = vrot.lane.b32.xlu1 %v4842_v45, %s7245_s19 }
0x230d   :  { %v4839_v53 = vpop.permute.xlu0 %4838 }
0x230e   :  { %v4843_v21 = vmul.f32 %v4839_v53, %v4814_v12 }
0x2310   :  { %4848 = vrot.lane.b32.xlu2 %v4843_v21, %s7245_s19 }
0x2368   :  { %v4847_v47 = vpop.permute.xlu1 %4846 }
0x2369   :  { %v8968_v57 = vadd.f32 %v4847_v47, %v4832_v36 }
0x236a   :  { %v4849_v33 = vpop.permute.xlu2 %4848 }
0x236b   :  { %6208 = vtanh.f32 %v8968_v57  ;;  %v8971_v42 = vadd.f32 %v4849_v33, %v4833_v37  ;;  %v4943_v44 = vrot.slane %v8968_v57, 7 }
0x236d   :  { %6210 = vtanh.f32 %v8971_v42  ;;  %v4944_v15 = vrot.slane %v8971_v42, 7 }
0x2371   :  { %v6209_v2 = vpop.eup %6208 }
0x2372   :  { %4858 = vrot.lane.b32.xlu0 %v6209_v2, %s7246_s12 }
0x2373   :  { %v6211_v43 = vpop.eup %6210 }
0x2374   :  { %4860 = vrot.lane.b32.xlu1 %v6211_v43, %s7246_s12 }
0x23e4   :  { %v4859_v52 = vpop.permute.xlu0 %4858 }
0x23e5   :  { %v8976_v60 = vmul.f32 %v4859_v52, %v4799_v14 }
0x23e6   :  { %v4861_v4 = vpop.permute.xlu1 %4860 }
0x23e7   :  { %v8978_v34 = vmul.f32 %v4861_v4, %v4814_v12  ;;  %v4868_v1 = vperm.slane %v8976_v60, 0 }
0x23e9   :  { %v4869_v25 = vperm.slane %v8978_v34, 0 }
0x23eb   :  { %v4870_v6 = vsel %vm1200_vm6, %v4869_v25, %v4868_v1 }
0x23ec   :  { %4871 = vrot.lane.b32.xlu2 %v4870_v6, %s7245_s19 }
0x2446   :  { %v4872_v0 = vpop.permute.xlu2 %4871 }
0x2447   :  { %5717 = vmatmul.msk.f32.vlgmr.msra.gmra.mxu0 %vm803_vm0, %v4872_v0 }
0x24c4   :  { %v4892_v58 = vpop.f32.mrf.mxu0 }
0x24c5   :  { %v4896_v29 = vrot.slane %v4892_v58, 7  ;;  %v4900_v9 = vadd.f32 %v4892_v58, %v8960_v7 }
0x24c7   :  { %v4899_v62 = vadd.f32 %v4896_v29, %v8957_v3  ;;  %6212 = vtanh.f32 %v4900_v9  ;;  %v5719_v26 = vmul.f32 -1.442695, %v4900_v9 }
0x24c9   :  { %6214 = vtanh.f32 %v4899_v62  ;;  %v5718_v10 = vmul.f32 -1.442695, %v4899_v62 }
0x24ca   :  { %6216 = vpow2.f32 %v5719_v26 }
0x24cb   :  { %6218 = vpow2.f32 %v5718_v10 }
0x24cd   :  { %v6213_v23 = vpop.eup %6212 }
0x24ce   :  { %4953 = vrot.lane.b32.xlu1 %v6213_v23, %s7246_s12 }
0x24cf   :  { %v6215_v38 = vpop.eup %6214 }
0x24d0   :  { %4951 = vrot.lane.b32.xlu0 %v6215_v38, %s7246_s12  ;;  %v6217_v48 = vpop.eup %6216 }
0x24d1   :  { %v6219_v46 = vpop.eup %6218  ;;  %v4908_v22 = vadd.f32 1.0, %v6217_v48 }
0x24d2   :  { %v4907_v5 = vadd.f32 1.0, %v6219_v46 }
0x24d3   :  { %6220 = vrcp.f32 %v4908_v22  ;;  %v4935_v20 = vand.u32 2147483648, %v4908_v22  ;;  %vm4929_vm2 = vweird.f32 %v4908_v22  ;;  %v4933_v14 = vand.u32 2147483647, %v4908_v22 }
0x24d4   :  { %6222 = vrcp.f32 %v4907_v5  ;;  %v4920_v18 = vand.u32 2147483648, %v4907_v5  ;;  %vm4914_vm8 = vweird.f32 %v4907_v5  ;;  %v4918_v19 = vand.u32 2147483647, %v4907_v5 }
0x24d5   :  { %v4936_v51 = vor.u32 1.1754944e-38, %v4935_v20  ;;  %vm4934_vm10 = vcmp.eq.f32.partialorder %v4933_v14, 8.507059e+37 }
0x24d6   :  { %v4921_v56 = vor.u32 1.1754944e-38, %v4920_v18  ;;  %vm4919_vm11 = vcmp.eq.f32.partialorder %v4918_v19, 8.507059e+37 }
0x24d9   :  { %v6221_v17 = vpop.eup %6220 }
0x24da   :  { %v6223_v31 = vpop.eup %6222  ;;  %v4925_v35 = vmul.f32 %v6221_v17, %v4908_v22  ;;  %vm4930_vm5 = vweird.f32 %v6221_v17 }
0x24db   :  { %v4910_v63 = vmul.f32 %v6223_v31, %v4907_v5  ;;  %vm4931_vm3 = vmor %vm4929_vm2, %vm4930_vm5  ;;  %vm4915_vm4 = vweird.f32 %v6223_v31 }
0x24dc   :  { %v4926_v40 = vsub.f32 1.0, %v4925_v35  ;;  %vm4916_vm9 = vmor %vm4914_vm8, %vm4915_vm4  ;;  %vm9300_vm8 = vcmask 1041408  }
0x24dd   :  { %v4911_v32 = vsub.f32 1.0, %v4910_v63 }
0x24de   :  { %v4927_v39 = vmul.f32 %v6221_v17, %v4926_v40 }
0x24df   :  { %v4912_v11 = vmul.f32 %v6223_v31, %v4911_v32 }
0x24e0   :  { %v4928_v27 = vadd.f32 %v6221_v17, %v4927_v39 }
0x24e1   :  { %v4913_v45 = vadd.f32 %v6223_v31, %v4912_v11 }
0x24e2   :  { %v4932_v16 = vsel %vm4931_vm3, %v6221_v17, %v4928_v27  ;;  %vm9298_vm3 = vcmask 1040384  }
0x24e3   :  { %v4937_v61 = vsel %vm4934_vm10, %v4936_v51, %v4932_v16  ;;  %v4917_v30 = vsel %vm4916_vm9, %v6223_v31, %v4913_v45  ;;  %vm9299_vm4 = vmmov %vm9298_vm3 }
0x24e4   :  { %v4922_v12 = vsel %vm4919_vm11, %v4921_v56, %v4917_v30  ;;  %v4948_v37 = vmul.f32 %v4944_v15, %v4937_v61  ;;  %vm9301_vm10 = vmmov %vm9300_vm8 }
0x24e5   :  { %v4947_v55 = vmul.f32 %v4943_v44, %v4922_v12 }
0x2540   :  { %v4954_v24 = vpop.permute.xlu1 %4953 }
0x2541   :  { %v4958_v59 = vmul.f32 %v4954_v24, %v4937_v61 }
0x2542   :  { %v4952_v53 = vpop.permute.xlu0 %4951 }
0x2543   :  { %4963 = vrot.lane.b32.xlu0 %v4958_v59, %s7245_s19  ;;  %v4957_v21 = vmul.f32 %v4952_v53, %v4922_v12 }
0x2545   :  { %4961 = vrot.lane.b32.xlu2 %v4957_v21, %s7245_s19 }
0x259f   :  { %v4962_v54 = vpop.permute.xlu2 %4961 }
0x25a0   :  { %v8992_v36 = vadd.f32 %v4962_v54, %v4947_v55 }
0x25a2   :  { %6224 = vtanh.f32 %v8992_v36 }
0x25a8   :  { %v6225_v47 = vpop.eup %6224 }
0x25a9   :  { %4973 = vrot.lane.b32.xlu1 %v6225_v47, %s7246_s12 }
0x25b5   :  { %v4964_v33 = vpop.permute.xlu0 %4963 }
0x25b6   :  { %v8997_v2 = vadd.f32 %v4964_v33, %v4948_v37  ;;  %v5059_v33 = vrot.slane %v8992_v36, 7 }
0x25b8   :  { %6226 = vtanh.f32 %v8997_v2  ;;  %v5060_v55 = vrot.slane %v8997_v2, 7 }
0x25be   :  { %v6227_v43 = vpop.eup %6226 }
0x25bf   :  { %4975 = vrot.lane.b32.xlu2 %v6227_v43, %s7246_s12 }
0x2619   :  { %v4976_v57 = vpop.permute.xlu2 %4975 }
0x261a   :  { %v9001_v52 = vmul.f32 %v4976_v57, %v4937_v61 }
0x261b   :  { %v4974_v4 = vpop.permute.xlu1 %4973 }
0x261c   :  { %v9003_v1 = vmul.f32 %v4974_v4, %v4922_v12  ;;  %v4984_v25 = vperm.slane %v9001_v52, 1  ;;  %v5214_v36 = vsel %vm9299_vm4, %v8978_v34, %v9001_v52 }
0x261e   :  { %v4983_v6 = vperm.slane %v9003_v1, 1 }
0x2620   :  { %v4985_v42 = vsel %vm1200_vm6, %v4984_v25, %v4983_v6 }
0x2621   :  { %4986 = vrot.lane.b32.xlu0 %v4985_v42, %s7245_s19 }
0x2693   :  { %v4987_v0 = vpop.permute.xlu0 %4986 }
0x2694   :  { %5720 = vmatmul.msk.f32.vlgmr.msrb.gmra.mxu1 %vm803_vm0, %v4987_v0  ;;  %v5213_v0 = vsel %vm9298_vm3, %v8976_v60, %v9003_v1 }
0x2711   :  { %v5007_v58 = vpop.f32.mrf.mxu1 }
0x2712   :  { %v5011_v29 = vrot.slane %v5007_v58, 6  ;;  %v5012_v9 = vrot.slane %v5007_v58, 7 }
0x2714   :  { %v5015_v62 = vadd.f32 %v5011_v29, %v8957_v3  ;;  %v5016_v23 = vadd.f32 %v5012_v9, %v8960_v7 }
0x2716   :  { %6228 = vtanh.f32 %v5015_v62  ;;  %v5722_v10 = vmul.f32 -1.442695, %v5016_v23  ;;  %v5721_v5 = vmul.f32 -1.442695, %v5015_v62 }
0x2717   :  { %6230 = vtanh.f32 %v5016_v23 }
0x2718   :  { %6232 = vpow2.f32 %v5722_v10 }
0x271c   :  { %v6229_v38 = vpop.eup %6228 }
0x271d   :  { %v6231_v26 = vpop.eup %6230  ;;  %5067 = vrot.lane.b32.xlu1 %v6229_v38, %s7246_s12 }
0x271e   :  { %5069 = vrot.lane.b32.xlu2 %v6231_v26, %s7246_s12  ;;  %v6233_v48 = vpop.eup %6232 }
0x271f   :  { %v5024_v46 = vadd.f32 1.0, %v6233_v48 }
0x2721   :  { %6234 = vrcp.f32 %v5024_v46  ;;  %v5051_v39 = vand.u32 2147483648, %v5024_v46  ;;  %vm5045_vm13 = vweird.f32 %v5024_v46  ;;  %v5049_v11 = vand.u32 2147483647, %v5024_v46 }
0x2722   :  { %6236 = vpow2.f32 %v5721_v5 }
0x2723   :  { %v5052_v20 = vor.u32 1.1754944e-38, %v5051_v39  ;;  %vm5050_vm15 = vcmp.eq.f32.partialorder %v5049_v11, 8.507059e+37 }
0x2727   :  { %v6235_v22 = vpop.eup %6234 }
0x2728   :  { %v5041_v17 = vmul.f32 %v6235_v22, %v5024_v46  ;;  %v6237_v35 = vpop.eup %6236  ;;  %vm5046_vm12 = vweird.f32 %v6235_v22 }
0x2729   :  { %v5023_v40 = vadd.f32 1.0, %v6237_v35  ;;  %vm5047_vm14 = vmor %vm5045_vm13, %vm5046_vm12 }
0x272a   :  { %v5042_v31 = vsub.f32 1.0, %v5041_v17 }
0x272b   :  { %6238 = vrcp.f32 %v5023_v40  ;;  %v5036_v30 = vand.u32 2147483648, %v5023_v40  ;;  %vm5030_vm7 = vweird.f32 %v5023_v40  ;;  %v5034_v59 = vand.u32 2147483647, %v5023_v40 }
0x272c   :  { %v5043_v63 = vmul.f32 %v6235_v22, %v5042_v31 }
0x272d   :  { %v5037_v53 = vor.u32 1.1754944e-38, %v5036_v30  ;;  %vm5035_vm2 = vcmp.eq.f32.partialorder %v5034_v59, 8.507059e+37 }
0x272e   :  { %v5044_v32 = vadd.f32 %v6235_v22, %v5043_v63 }
0x2730   :  { %v5048_v27 = vsel %vm5047_vm14, %v6235_v22, %v5044_v32 }
0x2731   :  { %v5053_v45 = vsel %vm5050_vm15, %v5052_v20, %v5048_v27  ;;  %v6239_v16 = vpop.eup %6238 }
0x2732   :  { %v5026_v51 = vmul.f32 %v6239_v16, %v5023_v40  ;;  %vm5031_vm1 = vweird.f32 %v6239_v16  ;;  %v5064_v54 = vmul.f32 %v5060_v55, %v5053_v45 }
0x2733   :  { %vm5032_vm5 = vmor %vm5030_vm7, %vm5031_vm1  ;;  %vm9303_vm7 = vcmask 1042432  }
0x2734   :  { %v5027_v19 = vsub.f32 1.0, %v5026_v51 }
0x2736   :  { %v5028_v24 = vmul.f32 %v6239_v16, %v5027_v19 }
0x2738   :  { %v5029_v61 = vadd.f32 %v6239_v16, %v5028_v24 }
0x273a   :  { %v5033_v56 = vsel %vm5032_vm5, %v6239_v16, %v5029_v61  ;;  %vm9304_vm5 = vmmov %vm9303_vm7 }
0x273b   :  { %v5038_v21 = vsel %vm5035_vm2, %v5037_v53, %v5033_v56 }
0x273c   :  { %v5063_v43 = vmul.f32 %v5059_v33, %v5038_v21  ;;  %v3686_v33 = vld [vmem:[%s9302_s0] sm:$0xff] }
0x2778   :  { %v5070_v14 = vpop.permute.xlu2 %5069 }
0x2779   :  { %v5074_v18 = vmul.f32 %v5070_v14, %v5053_v45 }
0x277b   :  { %5079 = vrot.lane.b32.xlu1 %v5074_v18, %s7245_s19 }
0x278f   :  { %v5068_v12 = vpop.permute.xlu1 %5067 }
0x2790   :  { %v5073_v44 = vmul.f32 %v5068_v12, %v5038_v21 }
0x2792   :  { %5077 = vrot.lane.b32.xlu0 %v5073_v44, %s7245_s19 }
0x27ed   :  { %v5080_v47 = vpop.permute.xlu1 %5079 }
0x27ee   :  { %v9017_v15 = vadd.f32 %v5080_v47, %v5064_v54  ;;  %v3689_v54 = vld [vmem:[%s9302_s0 + $0x18] sm:$0xff]  ;;  %v3688_v47 = vld [vmem:[%s9302_s0 + $0x10] sm:$0xff] }
0x27ef   :  { %5244 = vmatpush.msra.mxu3 %v3689_v54  ;;  %5385 = vmatpush.msrb.mxu0 %v3689_v54 }
0x27f0   :  { %6240 = vtanh.f32 %v9017_v15 }
0x27f1   :  { %5245 = vmatpush.msra.mxu3 %v3688_v47  ;;  %5386 = vmatpush.msrb.mxu0 %v3688_v47 }
0x27f6   :  { %v6241_v37 = vpop.eup %6240 }
0x27f7   :  { %5091 = vrot.lane.b32.xlu0 %v6241_v37, %s7246_s12  ;;  %v3687_v37 = vld [vmem:[%s9302_s0 + $0x8] sm:$0xff] }
0x27f8   :  { %5246 = vmatpush.msra.mxu3 %v3687_v37  ;;  %5387 = vmatpush.msrb.mxu0 %v3687_v37 }
0x27fa   :  { %5247 = vmatpush.msra.mxu3 %v3686_v33  ;;  %5388 = vmatpush.msrb.mxu0 %v3686_v33 }
0x2804   :  { %v5078_v57 = vpop.permute.xlu0 %5077 }
0x2805   :  { %v9022_v4 = vadd.f32 %v5078_v57, %v5063_v43  ;;  %v5176_v57 = vrot.slane %v9017_v15, 7 }
0x2807   :  { %6242 = vtanh.f32 %v9022_v4  ;;  %v5175_v43 = vrot.slane %v9022_v4, 7 }
0x280d   :  { %v6243_v25 = vpop.eup %6242 }
0x280e   :  { %5089 = vrot.lane.b32.xlu2 %v6243_v25, %s7246_s12 }
0x2868   :  { %v5090_v2 = vpop.permute.xlu2 %5089 }
0x2869   :  { %v5092_v6 = vpop.permute.xlu0 %5091  ;;  %v5095_v42 = vmul.f32 %v5090_v2, %v5038_v21 }
0x286a   :  { %v5096_v58 = vmul.f32 %v5092_v6, %v5053_v45 }
0x286b   :  { %v5099_v29 = vperm.slane %v5095_v42, 2  ;;  %v9033_v9 = vsel %vm9300_vm8, %v5213_v0, %v5095_v42 }
0x286c   :  { %v5100_v62 = vperm.slane %v5096_v58, 2  ;;  %v9036_v23 = vsel %vm9301_vm10, %v5214_v36, %v5096_v58 }
0x286e   :  { %v5101_v38 = vsel %vm1200_vm6, %v5100_v62, %v5099_v29 }
0x286f   :  { %5102 = vrot.lane.b32.xlu1 %v5101_v38, %s7245_s19 }
0x28e1   :  { %v5103_v26 = vpop.permute.xlu1 %5102 }
0x28e2   :  { %5723 = vmatmul.msk.f32.vlgmr.msra.gmra.mxu2 %vm803_vm0, %v5103_v26 }
0x2965   :  { %v5123_v60 = vpop.f32.mrf.mxu2 }
0x2966   :  { %v5127_v1 = vrot.slane %v5123_v60, 5  ;;  %v5128_v10 = vrot.slane %v5123_v60, 6 }
0x2968   :  { %v5131_v34 = vadd.f32 %v5127_v1, %v8957_v3  ;;  %v5132_v52 = vadd.f32 %v5128_v10, %v8960_v7 }
0x296a   :  { %6244 = vtanh.f32 %v5131_v34  ;;  %v5724_v22 = vmul.f32 -1.442695, %v5131_v34  ;;  %v5725_v35 = vmul.f32 -1.442695, %v5132_v52  ;;  %v5899_v34 = vld [vmem:[#allocation46] ss:$0 sm:$0xff] }
0x296b   :  { %6246 = vtanh.f32 %v5132_v52 }
0x296c   :  { %6248 = vpow2.f32 %v5724_v22 }
0x2970   :  { %v6245_v48 = vpop.eup %6244 }
0x2971   :  { %v6247_v46 = vpop.eup %6246  ;;  %5183 = vrot.lane.b32.xlu2 %v6245_v48, %s7246_s12 }
0x2972   :  { %5185 = vrot.lane.b32.xlu0 %v6247_v46, %s7246_s12  ;;  %v6249_v5 = vpop.eup %6248 }
0x2973   :  { %v5139_v17 = vadd.f32 1.0, %v6249_v5 }
0x2975   :  { %6250 = vrcp.f32 %v5139_v17  ;;  %v5152_v11 = vand.u32 2147483648, %v5139_v17  ;;  %vm5146_vm9 = vweird.f32 %v5139_v17  ;;  %v5150_v27 = vand.u32 2147483647, %v5139_v17 }
0x2976   :  { %6252 = vpow2.f32 %v5725_v35 }
0x2977   :  { %v5153_v14 = vor.u32 1.1754944e-38, %v5152_v11  ;;  %vm5151_vm12 = vcmp.eq.f32.partialorder %v5150_v27, 8.507059e+37 }
0x297b   :  { %v6251_v31 = vpop.eup %6250 }
0x297c   :  { %v5142_v63 = vmul.f32 %v6251_v31, %v5139_v17  ;;  %v6253_v7 = vpop.eup %6252  ;;  %vm5147_vm6 = vweird.f32 %v6251_v31 }
0x297d   :  { %v5140_v32 = vadd.f32 1.0, %v6253_v7  ;;  %vm5148_vm11 = vmor %vm5146_vm9, %vm5147_vm6 }
0x297e   :  { %v5143_v3 = vsub.f32 1.0, %v5142_v63 }
0x297f   :  { %6254 = vrcp.f32 %v5140_v32  ;;  %v5167_v59 = vand.u32 2147483648, %v5140_v32  ;;  %vm5161_vm14 = vweird.f32 %v5140_v32  ;;  %v5165_v56 = vand.u32 2147483647, %v5140_v32 }
0x2980   :  { %v5144_v40 = vmul.f32 %v6251_v31, %v5143_v3 }
0x2981   :  { %v5168_v12 = vor.u32 1.1754944e-38, %v5167_v59  ;;  %vm5166_vm1 = vcmp.eq.f32.partialorder %v5165_v56, 8.507059e+37 }
0x2982   :  { %v5145_v39 = vadd.f32 %v6251_v31, %v5144_v40 }
0x2984   :  { %v5149_v20 = vsel %vm5148_vm11, %v6251_v31, %v5145_v39 }
0x2985   :  { %v5154_v16 = vsel %vm5151_vm12, %v5153_v14, %v5149_v20  ;;  %v6255_v51 = vpop.eup %6254 }
0x2986   :  { %v5157_v19 = vmul.f32 %v6255_v51, %v5140_v32  ;;  %vm5162_vm13 = vweird.f32 %v6255_v51  ;;  %v5179_v25 = vmul.f32 %v5175_v43, %v5154_v16 }
0x2987   :  { %vm5163_vm15 = vmor %vm5161_vm14, %vm5162_vm13 }
0x2988   :  { %v5158_v24 = vsub.f32 1.0, %v5157_v19 }
0x298a   :  { %v5159_v61 = vmul.f32 %v6255_v51, %v5158_v24 }
0x298c   :  { %v5160_v30 = vadd.f32 %v6255_v51, %v5159_v61 }
0x298e   :  { %v5164_v53 = vsel %vm5163_vm15, %v6255_v51, %v5160_v30 }
0x298f   :  { %v5169_v44 = vsel %vm5166_vm1, %v5168_v12, %v5164_v53 }
0x2990   :  { %v5180_v2 = vmul.f32 %v5176_v57, %v5169_v44 }
0x29cb   :  { %v5184_v45 = vpop.permute.xlu2 %5183 }
0x29cc   :  { %v5189_v18 = vmul.f32 %v5184_v45, %v5154_v16 }
0x29ce   :  { %5193 = vrot.lane.b32.xlu1 %v5189_v18, %s7245_s19 }
0x29e4   :  { %v5186_v21 = vpop.permute.xlu0 %5185 }
0x29e5   :  { %v5190_v55 = vmul.f32 %v5186_v21, %v5169_v44 }
0x29e7   :  { %5195 = vrot.lane.b32.xlu2 %v5190_v55, %s7245_s19 }
0x29ef   :  { %5224 = vrot.lane.b32.xlu2 %v8923_v8, %s7245_s19 }
0x2a40   :  { %v5194_v6 = vpop.permute.xlu1 %5193 }
0x2a41   :  { %v5196_v8 = vpop.permute.xlu2 %5195  ;;  %v5199_v42 = vadd.f32 %v5194_v6, %v5179_v25 }
0x2a42   :  { %v5200_v0 = vadd.f32 %v5196_v8, %v5180_v2 }
0x2a43   :  { %6256 = vtanh.f32 %v5199_v42 }
0x2a44   :  { %6258 = vtanh.f32 %v5200_v0 }
0x2a49   :  { %v6257_v58 = vpop.eup %6256  ;;  %v5225_v36 = vpop.permute.xlu2 %5224 }
0x2a4a   :  { %v6259_v29 = vpop.eup %6258  ;;  %5726 = vmatmul.msk.f32.vlgmr.msra.gmra.mxu3 %vm803_vm0, %v5225_v36  ;;  %5205 = vrot.lane.b32.xlu0 %v6257_v58, %s7246_s12 }
0x2a4b   :  { %5207 = vrot.lane.b32.xlu1 %v6259_v29, %s7246_s12 }
0x2a52   :  { %5226 = vrot.lane.b32.xlu0 %v8914_v41, %s7245_s19 }
0x2abc   :  { %v5206_v15 = vpop.permute.xlu0 %5205 }
0x2abd   :  { %v5208_v4 = vpop.permute.xlu1 %5207  ;;  %v5211_v62 = vmul.f32 %v5206_v15, %v5154_v16 }
0x2abe   :  { %v5212_v38 = vmul.f32 %v5208_v4, %v5169_v44 }
0x2abf   :  { %v5217_v26 = vsel %vm9303_vm7, %v9033_v9, %v5211_v62 }
0x2ac0   :  { %v5218_v60 = vsel %vm9304_vm5, %v9036_v23, %v5212_v38  ;;  %5365 = vst [vmem:[#allocation1] ss:$2 sm:$0xff] %v5217_v26 }
0x2ac1   :  { %5367 = vst [vmem:[#allocation1 + $0x1] ss:$2 sm:$0xff] %v5218_v60 }
0x2ac4   :  { %v5227_v1 = vpop.permute.xlu0 %5226 }
0x2ac5   :  { %5727 = vmatmul.msk.f32.gmra.mxu3 %vm803_vm0, %v5227_v1 }
0x2ac8   :  { %v5368_v10 = vld.sshfl [vmem:[#allocation1] sm:$0xff pattern:$0x75316420] }
0x2ac9   :  { %5369 = vrot.lane.b32.xlu1 %v5368_v10, %s7245_s19 }
0x2acd   :  { %v5249_v41 = vpop.f32.mrf.mxu3 }
0x2ace   :  { %v5250_v52 = vadd.f32 %v5899_v34, %v5249_v41 }
0x2ad0   :  { %5295 = vrot.lane.b32.xlu0 %v5250_v52, %s7242_s22  ;;  %v5728_v48 = vmul.f32 -1.442695, %v5250_v52 }
0x2ad2   :  { %6260 = vpow2.f32 %v5728_v48 }
0x2ad8   :  { %v6261_v46 = vpop.eup %6260 }
0x2ad9   :  { %v5261_v9 = vadd.f32 1.0, %v6261_v46 }
0x2adb   :  { %6262 = vrcp.f32 %v5261_v9  ;;  %v5274_v63 = vand.u32 2147483648, %v5261_v9  ;;  %vm5268_vm3 = vweird.f32 %v5261_v9  ;;  %v5272_v3 = vand.u32 2147483647, %v5261_v9 }
0x2add   :  { %v5275_v7 = vor.u32 1.1754944e-38, %v5274_v63  ;;  %vm5273_vm8 = vcmp.eq.f32.partialorder %v5272_v3, 8.507059e+37 }
0x2ae1   :  { %v6263_v22 = vpop.eup %6262 }
0x2ae2   :  { %v5264_v23 = vmul.f32 %v6263_v22, %v5261_v9  ;;  %vm5269_vm2 = vweird.f32 %v6263_v22 }
0x2ae3   :  { %vm5270_vm4 = vmor %vm5268_vm3, %vm5269_vm2 }
0x2ae4   :  { %v5265_v5 = vsub.f32 1.0, %v5264_v23 }
0x2ae6   :  { %v5266_v17 = vmul.f32 %v6263_v22, %v5265_v5 }
0x2ae8   :  { %v5267_v35 = vadd.f32 %v6263_v22, %v5266_v17 }
0x2aea   :  { %v5271_v40 = vsel %vm5270_vm4, %v6263_v22, %v5267_v35 }
0x2aeb   :  { %v5276_v32 = vsel %vm5273_vm8, %v5275_v7, %v5271_v40  ;;  %v9081_v7 = vld [vmem:[#allocation47] ss:$0 sm:$0xff] }
0x2b3b   :  { %v5370_v31 = vpop.permute.xlu1 %5369 }
0x2b3c   :  { %5730 = vmatmul.msk.f32.vlgmr.msrb.gmra.mxu0 %vm803_vm0, %v5370_v31 }
0x2b42   :  { %v5296_v39 = vpop.permute.xlu0 %5295 }
0x2b43   :  { %v5301_v11 = vmul.f32 %v5296_v39, %v5276_v32 }
0x2b45   :  { %v5305_v27 = vadd.f32 %v5301_v11, %v8380_v28  ;;  %v9083_v11 = vld [vmem:[#allocation49] ss:$0 sm:$0xff] }
0x2b47   :  { %v5307_v20 = vsel %vm803_vm0, %v5305_v27, 0.0 }
0x2b48   :  { %5308 = vadd.xlane.f32.xlu0 %v5307_v20  ;;  %v5252_v14 = vpop.f32.mrf.mxu3 }
0x2b49   :  { %v5253_v45 = vadd.f32 %v5899_v34, %v5252_v14 }
0x2b4b   :  { %5297 = vrot.lane.b32.xlu1 %v5253_v45, %s7242_s22  ;;  %v5729_v16 = vmul.f32 -1.442695, %v5253_v45 }
0x2b4d   :  { %6264 = vpow2.f32 %v5729_v16 }
0x2b53   :  { %v6265_v18 = vpop.eup %6264 }
0x2b54   :  { %v5262_v51 = vadd.f32 1.0, %v6265_v18 }
0x2b56   :  { %6266 = vrcp.f32 %v5262_v51  ;;  %v5289_v56 = vand.u32 2147483648, %v5262_v51  ;;  %vm5283_vm6 = vweird.f32 %v5262_v51  ;;  %v5287_v28 = vand.u32 2147483647, %v5262_v51 }
0x2b58   :  { %v5290_v55 = vor.u32 1.1754944e-38, %v5289_v56  ;;  %vm5288_vm11 = vcmp.eq.f32.partialorder %v5287_v28, 8.507059e+37 }
0x2b5c   :  { %v6267_v19 = vpop.eup %6266 }
0x2b5d   :  { %v5279_v24 = vmul.f32 %v6267_v19, %v5262_v51  ;;  %vm5284_vm10 = vweird.f32 %v6267_v19 }
0x2b5e   :  { %vm5285_vm9 = vmor %vm5283_vm6, %vm5284_vm10 }
0x2b5f   :  { %v5280_v61 = vsub.f32 1.0, %v5279_v24 }
0x2b61   :  { %v5281_v30 = vmul.f32 %v6267_v19, %v5280_v61 }
0x2b63   :  { %v5282_v59 = vadd.f32 %v6267_v19, %v5281_v30 }
0x2b65   :  { %v5286_v21 = vsel %vm5285_vm9, %v6267_v19, %v5282_v59 }
0x2b66   :  { %v5291_v37 = vsel %vm5288_vm11, %v5290_v55, %v5286_v21 }
0x2bb9   :  { %v5390_v53 = vpop.f32.mrf.mxu0 }
0x2bba   :  { %v5391_v12 = vadd.f32 %v5899_v34, %v5390_v53 }
0x2bbb   :  { %v5309_v44 = vpop.xlane.xlu0 %5308 }
0x2bbc   :  { %v5313_v54 = vmul.f32 %v5309_v44, %v7826_v49  ;;  %5413 = vrot.lane.b32.xlu2 %v5391_v12, %s7242_s22  ;;  %v5731_v8 = vmul.f32 -1.442695, %v5391_v12  ;;  %s7255_s22 = smov [#allocation50]  }
0x2bbd   :  { %v5298_v47 = vpop.permute.xlu1 %5297  ;;  %s5452_s19 = sshll.u32 %s7255_s22, 4  ;;  %s5453_s19 = int_to_ptr.vmem [resolvable:$true] %s5452_s19 }
0x2bbe   :  { %v5315_v33 = vsub.f32 %v5305_v27, %v5313_v54  ;;  %v5302_v43 = vmul.f32 %v5298_v47, %v5291_v37  ;;  %6268 = vpow2.f32 %v5731_v8 }
0x2bc0   :  { %v5306_v57 = vadd.f32 %v5302_v43, %v8426_v50  ;;  %v5317_v25 = vmul.f32 %v5315_v33, %v5315_v33 }
0x2bc2   :  { %v5319_v2 = vsel %vm803_vm0, %v5317_v25, 0.0  ;;  %v5310_v6 = vsel %vm803_vm0, %v5306_v57, 0.0 }
0x2bc3   :  { %5320 = vadd.xlane.f32.xlu0 %v5319_v2  ;;  %5311 = vadd.xlane.f32.xlu1 %v5310_v6 }
0x2bc4   :  { %v6269_v42 = vpop.eup %6268 }
0x2bc5   :  { %v5396_v0 = vadd.f32 1.0, %v6269_v42 }
0x2bc7   :  { %6270 = vrcp.f32 %v5396_v0  ;;  %v5408_v62 = vand.u32 2147483648, %v5396_v0  ;;  %vm5402_vm13 = vweird.f32 %v5396_v0  ;;  %v5406_v50 = vand.u32 2147483647, %v5396_v0 }
0x2bc9   :  { %v5409_v26 = vor.u32 1.1754944e-38, %v5408_v62  ;;  %vm5407_vm15 = vcmp.eq.f32.partialorder %v5406_v50, 8.507059e+37 }
0x2bcd   :  { %v6271_v58 = vpop.eup %6270 }
0x2bce   :  { %v5398_v36 = vmul.f32 %v6271_v58, %v5396_v0  ;;  %vm5403_vm12 = vweird.f32 %v6271_v58 }
0x2bcf   :  { %vm5404_vm14 = vmor %vm5402_vm13, %vm5403_vm12 }
0x2bd0   :  { %v5399_v29 = vsub.f32 1.0, %v5398_v36 }
0x2bd2   :  { %v5400_v15 = vmul.f32 %v6271_v58, %v5399_v29 }
0x2bd4   :  { %v5401_v4 = vadd.f32 %v6271_v58, %v5400_v15 }
0x2bd6   :  { %v5405_v38 = vsel %vm5404_vm14, %v6271_v58, %v5401_v4 }
0x2bd7   :  { %v5410_v1 = vsel %vm5407_vm15, %v5409_v26, %v5405_v38 }
0x2c16   :  { %v5414_v60 = vpop.permute.xlu2 %5413 }
0x2c17   :  { %v5416_v10 = vmul.f32 %v5414_v60, %v5410_v1 }
0x2c19   :  { %v5418_v34 = vadd.f32 %v5416_v10, %v8952_v13 }
0x2c1b   :  { %v5419_v41 = vsel %vm803_vm0, %v5418_v34, 0.0 }
0x2c1c   :  { %5420 = vadd.xlane.f32.xlu2 %v5419_v41 }
0x2c36   :  { %v5321_v52 = vpop.xlane.xlu0 %5320  ;;  %v5312_v48 = vpop.xlane.xlu1 %5311 }
0x2c37   :  { %v5325_v46 = vmul.f32 %v5321_v52, %v7826_v49  ;;  %v5314_v9 = vmul.f32 %v5312_v48, %v7826_v49 }
0x2c39   :  { %v5327_v22 = vadd.f32 1e-05, %v5325_v46  ;;  %v5316_v23 = vsub.f32 %v5306_v57, %v5314_v9 }
0x2c3b   :  { %6272 = vrsqrt.f32 %v5327_v22  ;;  %v5318_v5 = vmul.f32 %v5316_v23, %v5316_v23  ;;  %vm5335_vm7 = vweird.f32 %v5327_v22 }
0x2c3d   :  { %v5322_v17 = vsel %vm803_vm0, %v5318_v5, 0.0 }
0x2c3e   :  { %5323 = vadd.xlane.f32.xlu1 %v5322_v17 }
0x2c41   :  { %v6273_v31 = vpop.eup %6272 }
0x2c42   :  { %v5330_v35 = vmul.f32 %v6273_v31, %v5327_v22  ;;  %vm5336_vm1 = vweird.f32 %v6273_v31 }
0x2c43   :  { %vm5337_vm5 = vmor %vm5335_vm7, %vm5336_vm1 }
0x2c44   :  { %v5331_v63 = vmul.f32 %v6273_v31, %v5330_v35 }
0x2c46   :  { %v5332_v13 = vmul.f32 0.5, %v5331_v63 }
0x2c48   :  { %v5333_v3 = vsub.f32 1.5, %v5332_v13 }
0x2c4a   :  { %v5334_v40 = vmul.f32 %v6273_v31, %v5333_v3 }
0x2c4c   :  { %v5338_v32 = vsel %vm5337_vm5, %v6273_v31, %v5334_v40 }
0x2c4d   :  { %v5349_v39 = vmul.f32 %v5338_v32, %v5315_v33 }
0x2c4f   :  { %v5354_v27 = vmul.f32 %v9081_v7, %v5349_v39 }
0x2c51   :  { %v5359_v20 = vadd.f32 %v9083_v11, %v5354_v27 }
0x2c53   :  { %5361 = vst.msk [vmem:[#allocation50] sm:$0xff] %vm803_vm0, %v5359_v20 }
0x2c8f   :  { %v5421_v14 = vpop.xlane.xlu2 %5420 }
0x2c90   :  { %v5422_v45 = vmul.f32 %v5421_v14, %v7826_v49 }
0x2c92   :  { %v5423_v16 = vsub.f32 %v5418_v34, %v5422_v45 }
0x2c94   :  { %v5424_v18 = vmul.f32 %v5423_v16, %v5423_v16 }
0x2c96   :  { %v5425_v51 = vsel %vm803_vm0, %v5424_v18, 0.0 }
0x2c97   :  { %5426 = vadd.xlane.f32.xlu2 %v5425_v51 }
0x2cb1   :  { %v5324_v19 = vpop.xlane.xlu1 %5323 }
0x2cb2   :  { %v5326_v24 = vmul.f32 %v5324_v19, %v7826_v49 }
0x2cb4   :  { %v5328_v61 = vadd.f32 1e-05, %v5326_v24 }
0x2cb6   :  { %6274 = vrsqrt.f32 %v5328_v61  ;;  %vm5345_vm3 = vweird.f32 %v5328_v61 }
0x2cbc   :  { %v6275_v30 = vpop.eup %6274 }
0x2cbd   :  { %v5340_v59 = vmul.f32 %v6275_v30, %v5328_v61  ;;  %vm5346_vm2 = vweird.f32 %v6275_v30 }
0x2cbe   :  { %vm5347_vm4 = vmor %vm5345_vm3, %vm5346_vm2 }
0x2cbf   :  { %v5341_v56 = vmul.f32 %v6275_v30, %v5340_v59 }
0x2cc1   :  { %v5342_v28 = vmul.f32 0.5, %v5341_v56 }
0x2cc3   :  { %v5343_v53 = vsub.f32 1.5, %v5342_v28 }
0x2cc5   :  { %v5344_v12 = vmul.f32 %v6275_v30, %v5343_v53 }
0x2cc7   :  { %v5348_v21 = vsel %vm5347_vm4, %v6275_v30, %v5344_v12 }
0x2cc8   :  { %v5350_v44 = vmul.f32 %v5348_v21, %v5316_v23 }
0x2cca   :  { %v5355_v55 = vmul.f32 %v9081_v7, %v5350_v44 }
0x2ccc   :  { %v5360_v54 = vadd.f32 %v9083_v11, %v5355_v55 }
0x2cce   :  { %5362 = vst.msk [vmem:[#allocation50 + $0x8] sm:$0xff] %vm803_vm0, %v5360_v54 }
0x2ccf   :  { %7045 = shalt.err (!%p7042_p5)
}
0x2cd0   :  { %5460 = dma.vmem_to_hbm [thread:$0]  %s5453_s19, 256, %s5455_s4, [#allocation4], %s7237_s25, %s7237_s25, %s7238_s18   ;;  %vm9305_vm6 = vcmask 257024  }
0x2cd1   :  { %s5467_s13 = sshll.u32 %s7654_s20, 4  ;;  %s7256_s25 = smov [#allocation51]   ;;  %vm9306_vm9 = vmmov %vm9305_vm6  ;;  %s5468_s13 = int_to_ptr.hbm [resolvable:$true] %s5467_s13 }
0x2cd2   :  { %s5465_s18 = sshll.u32 %s7256_s25, 4  ;;  %s7257_s17 = smov [#allocation53]   ;;  %s5466_s18 = int_to_ptr.vmem [resolvable:$true] %s5465_s18 }
0x2cd3   :  { %s9103_s16 = sshll.u32 %s7257_s17, 4  ;;  %s5480_s9 = sshll.u32 %s7659_s5, 4  ;;  %s5479_s16 = int_to_ptr.vmem [resolvable:$true] %s9103_s16  ;;  %s9109_s9 = int_to_ptr.hbm [resolvable:$true] %s5480_s9 }
0x2cd4   :  { %s7058_s27 = sshra.s32 %s5468_s13, 4  ;;  %s7062_s29 = scalar_lea.hbm %s7654_s20, 8  ;;  %s7059_s27 = int_to_ptr.hbm [resolvable:$true] %s7058_s27 }
0x2cd5   :  { %s7060_s23 = scalar_lea.hbm %s7059_s27, 8  ;;  %p7063_p7 = scmp.lt.s32.totalorder %s7059_s27, %s7654_s20 }
0x2cd6   :  { %p7061_p6 = scmp.ne.s32.totalorder %s7059_s27, %s7060_s23  ;;  %p7064_p8 = scmp.lt.s32.totalorder %s7062_s29, %s7060_s23 }
0x2cd8   :  { %p7065_p9 = por %p7064_p8, %p7063_p7 }
0x2cda   :  { %p7066_p10 = pnand %p7065_p9, %p7061_p6 }
0x2d0a   :  { %v5427_v47 = vpop.xlane.xlu2 %5426 }
0x2d0b   :  { %v5428_v37 = vmul.f32 %v5427_v47, %v7826_v49 }
0x2d0d   :  { %v5429_v33 = vadd.f32 1e-05, %v5428_v37 }
0x2d0f   :  { %6276 = vrsqrt.f32 %v5429_v33  ;;  %vm5436_vm8 = vweird.f32 %v5429_v33 }
0x2d15   :  { %v6277_v43 = vpop.eup %6276 }
0x2d16   :  { %v5431_v57 = vmul.f32 %v6277_v43, %v5429_v33  ;;  %vm5437_vm0 = vweird.f32 %v6277_v43 }
0x2d17   :  { %vm5438_vm10 = vmor %vm5436_vm8, %vm5437_vm0 }
0x2d18   :  { %v5432_v25 = vmul.f32 %v6277_v43, %v5431_v57 }
0x2d1a   :  { %v5433_v2 = vmul.f32 0.5, %v5432_v25 }
0x2d1c   :  { %v5434_v6 = vsub.f32 1.5, %v5433_v2 }
0x2d1e   :  { %v5435_v8 = vmul.f32 %v6277_v43, %v5434_v6 }
0x2d20   :  { %v5439_v42 = vsel %vm5438_vm10, %v6277_v43, %v5435_v8 }
0x2d21   :  { %v5440_v0 = vmul.f32 %v5439_v42, %v5423_v16 }
0x2d23   :  { %v5441_v58 = vmul.f32 %v9081_v7, %v5440_v0 }
0x2d25   :  { %v5442_v49 = vadd.f32 %v9083_v11, %v5441_v58 }
0x2d27   :  { %v5444_v36 = vrot.slane %v5442_v49, 4  ;;  %5446 = vst.msk [vmem:[#allocation51] sm:$0xf] %vm9305_vm6, %v5442_v49 }
0x2d29   :  { %5447 = vst.msk [vmem:[#allocation51 + $0x4] sm:$0xf] %vm9306_vm9, %v5444_v36 }
0x2d2a   :  { %7069 = shalt.err (!%p7066_p10)
}
0x2d2b   :  { %s7258_s26 = smov 4   ;;  %s7082_s24 = sshra.s32 %s9109_s9, 4  ;;  %s7083_s24 = int_to_ptr.hbm [resolvable:$true] %s7082_s24 }
0x2d2c   :  { %5473 = dma.vmem_to_hbm [thread:$0]  %s5466_s18, 128, %s5468_s13, [#allocation52], %s7246_s12, %s7246_s12, %s7258_s26  }
0x2d2d   :  { %s7084_s8 = scalar_lea.hbm %s7083_s24, 2  ;;  %s7086_s28 = scalar_lea.hbm %s7659_s5, 2 }
0x2d2e   :  { %p7085_p11 = scmp.ne.s32.totalorder %s7083_s24, %s7084_s8  ;;  %p7087_p12 = scmp.lt.s32.totalorder %s7083_s24, %s7659_s5 }
0x2d2f   :  { %p7088_p13 = scmp.lt.s32.totalorder %s7086_s28, %s7084_s8 }
0x2d31   :  { %p7089_p0 = por %p7088_p13, %p7087_p12 }
0x2d33   :  { %p7090_p1 = pnand %p7089_p0, %p7085_p11 }
0x2d35   :  { %7093 = shalt.err (!%p7090_p1)
}
0x2d36   :  { %s7259_s20 = smov 16   ;;  %s7260_s1 = smov 1  }
0x2d37   :  { %5486 = dma.vmem_to_hbm [thread:$0]  %s5479_s16, 32, %s9109_s9, [#allocation52], %s7259_s20, %s7259_s20, %s7260_s1  }
0x2d38   :  { %7126 = dma.done.wait [#allocation4], 256  }
0x2d39   :  { %7127 = vsyncadd [#allocation4], 4294967040 }
0x2d3a   :  { %7128 = dma.done.wait [#allocation52], 160  }
0x2d3b   :  { %7129 = vsyncadd [#allocation52], 4294967136 }
0x2d3c   :  { %5499 = vsyncpa [#allocation3], 1 }
0x2d3d   :  { %5500 = vsyncpa [#allocation6], 1 }
0x2d3e   :  { %5501 = vsyncpa [#allocation9], 1 }
0x2d3f   :  { %5502 = vsyncpa [#allocation12], 1 }
0x2d40   :  { %5503 = vsyncpa [#allocation15], 1 }
0x2d41   :  { %5504 = vsyncpa [#allocation18], 1 }
0x2d42   :  { %5505 = vsyncpa [#allocation21], 1 }
0x2d43   :  { %5506 = vsyncpa [#allocation24], 1 }
0x2d44   :  { %5507 = vsyncpa [#allocation27], 1 }
0x2d45   :  { %5508 = vsyncpa [#allocation30], 1 }
0x2d46   :  { %5509 = vsyncpa [#allocation33], 1 }
0x2d47   :  { %5510 = vsyncpa [#allocation36], 1 }
0x2d48   :  { %5511 = vsyncpa [#allocation39], 1 }
0x2d49   :  { %5512 = vsyncpa [#allocation42], 1 }
0x2d4a   :  { %5513 = vsyncpa [#allocation45], 1 }
0x2d4b   :  { %5514 = vsyncpa [#allocation48], 1 }
0x2d4c   :  { %5515 = vsyncpa [#allocation4], 1 }
0x2d4d   :  { %5516 = vsyncpa [#allocation52], 1 }

</bundles_post_ra>
